<compile_context>
chip_gen: v7x
topology: tpu7x:2x2x1
jax: 0.10.0
libtpu: 0.0.40
codegen_flags: <defaults>
</compile_context>

<pallas_src>
import functools

import jax
import jax.numpy as jnp
from jax import lax
from jax.experimental import pallas as pl
from jax.experimental.pallas import tpu as pltpu

LN_EPS = 1e-5


def _layernorm_f32(x_f32, gamma_ref, beta_ref):
    """LayerNorm over the last axis, stats in f32. gamma/beta refs are (1, C)."""
    mu = jnp.mean(x_f32, axis=-1, keepdims=True)
    xc = x_f32 - mu
    var = jnp.mean(xc * xc, axis=-1, keepdims=True)
    inv = lax.rsqrt(var + LN_EPS)
    return xc * inv * gamma_ref[...].astype(jnp.float32) + beta_ref[...].astype(jnp.float32)


def block_kernel(n_head,
                 x_ref, g1_ref, b1_ref,
                 wqkv_ref, wproj_ref, bproj_ref,
                 g2_ref, b2_ref,
                 w1_ref, bf1_ref, w2_ref, bf2_ref,
                 o_ref):
    # x_ref block: (1, T, C); weights are full arrays; o_ref block: (1, T, C)
    x = x_ref[0]                              # (T, C) in input dtype
    T, C = x.shape
    H = C // n_head
    xf = x.astype(jnp.float32)

    # ---- LayerNorm 1 + fused QKV projection (single lane-dense MXU push, width 3C)
    ln1 = _layernorm_f32(xf, g1_ref, b1_ref).astype(x.dtype)
    qkv = jnp.dot(ln1, wqkv_ref[...], preferred_element_type=jnp.float32)   # (T, 3C) f32

    scale = C ** -0.5                         # reference scales by n_embd, not head_size
    row = lax.broadcasted_iota(jnp.int32, (T, T), 0)
    col = lax.broadcasted_iota(jnp.int32, (T, T), 1)
    causal = col <= row

    head_outs = []
    for h in range(n_head):                   # static loop, n_head small
        q = qkv[:, h * H:(h + 1) * H]                       # (T, H)
        k = qkv[:, C + h * H:C + (h + 1) * H]               # (T, H)
        v = qkv[:, 2 * C + h * H:2 * C + (h + 1) * H]       # (T, H)
        # contract on the head dim of both operands: no explicit k transpose
        s = lax.dot_general(q, k, (((1,), (1,)), ((), ())),
                            preferred_element_type=jnp.float32) * scale    # (T, T)
        s = jnp.where(causal, s, jnp.float32(-1e30))        # finite mask value (robust)
        m = jnp.max(s, axis=-1, keepdims=True)
        e = jnp.exp(s - m)
        denom = jnp.sum(e, axis=-1, keepdims=True)          # >= 1 (diagonal contributes 1)
        p = e * pl.reciprocal(denom, approx=True)           # EUP vrcp, otherwise idle
        head_outs.append(jnp.dot(p, v, preferred_element_type=jnp.float32))
    attn = jnp.concatenate(head_outs, axis=-1).astype(x.dtype)             # (T, C) lane-dense

    # TODO(synk): nn.Dropout on attention probs / proj output / ffwd output = identity.
    sa = (jnp.dot(attn, wproj_ref[...], preferred_element_type=jnp.float32)
          + bproj_ref[...].astype(jnp.float32))
    x1 = xf + sa                                # residual 1 (f32)

    # ---- LayerNorm 2 + FeedForward (Linear 4C -> ReLU -> Linear C)
    ln2 = _layernorm_f32(x1, g2_ref, b2_ref).astype(x.dtype)
    h1 = (jnp.dot(ln2, w1_ref[...], preferred_element_type=jnp.float32)
          + bf1_ref[...].astype(jnp.float32))
    h1 = jnp.maximum(h1, 0.0).astype(x.dtype)
    ff = (jnp.dot(h1, w2_ref[...], preferred_element_type=jnp.float32)
          + bf2_ref[...].astype(jnp.float32))

    o_ref[0] = (x1 + ff).astype(o_ref.dtype)    # residual 2


def block_forward(x, g1, b1, wqkv, wproj, bproj, g2, b2, w1, bf1, w2, bf2, *, n_head):
    """x: (B, T, C). Weights pre-transposed so the kernel does x @ W.
       wqkv: (C, 3C) = [Wq_all | Wk_all | Wv_all] with per-head (C, H) columns.
       1-D params are passed as (1, dim) arrays."""
    B, T, C = x.shape

    def full_spec(a):
        return pl.BlockSpec(a.shape, lambda b: (0, 0))

    kernel = functools.partial(block_kernel, n_head)
    return pl.pallas_call(
        kernel,
        out_shape=jax.ShapeDtypeStruct((B, T, C), x.dtype),
        grid_spec=pltpu.PrefetchScalarGridSpec(
            num_scalar_prefetch=0,
            grid=(B,),
            in_specs=[
                pl.BlockSpec((1, T, C), lambda b: (b, 0, 0)),   # per-batch slice of x
                full_spec(g1), full_spec(b1),
                full_spec(wqkv), full_spec(wproj), full_spec(bproj),
                full_spec(g2), full_spec(b2),
                full_spec(w1), full_spec(bf1), full_spec(w2), full_spec(bf2),
            ],
            out_specs=pl.BlockSpec((1, T, C), lambda b: (b, 0, 0)),
        ),
        compiler_params=pltpu.CompilerParams(
            dimension_semantics=("parallel",),   # batch axis shards over v7x's 2 TCs
            vmem_limit_bytes=64 << 20,
        ),
    )(x, g1, b1, wqkv, wproj, bproj, g2, b2, w1, bf1, w2, bf2)


if __name__ == "__main__":
    # Shapes consistent with TrainConfig: n_embd=384, n_head=6 (head_size=64); small B, T.
    B, T = 2, 8
    C, n_head = 384, 6
    H = C // n_head

    key = jax.random.PRNGKey(0)
    keys = jax.random.split(key, 16)

    x = jax.random.normal(keys[0], (B, T, C), dtype=jnp.float32)

    # Per-head nn.Linear(C, H, bias=False) weights, stored PyTorch-style as (H, C).
    wq_h = jax.random.normal(keys[1], (n_head, H, C), jnp.float32) / jnp.sqrt(C)
    wk_h = jax.random.normal(keys[2], (n_head, H, C), jnp.float32) / jnp.sqrt(C)
    wv_h = jax.random.normal(keys[3], (n_head, H, C), jnp.float32) / jnp.sqrt(C)
    wproj = jax.random.normal(keys[4], (C, C), jnp.float32) / jnp.sqrt(C)      # (out, in)
    bproj = 0.02 * jax.random.normal(keys[5], (C,), jnp.float32)
    g1 = 1.0 + 0.1 * jax.random.normal(keys[6], (C,), jnp.float32)
    beta1 = 0.1 * jax.random.normal(keys[7], (C,), jnp.float32)
    g2 = 1.0 + 0.1 * jax.random.normal(keys[8], (C,), jnp.float32)
    beta2 = 0.1 * jax.random.normal(keys[9], (C,), jnp.float32)
    w1 = jax.random.normal(keys[10], (4 * C, C), jnp.float32) / jnp.sqrt(C)    # (out, in)
    b1f = 0.02 * jax.random.normal(keys[11], (4 * C,), jnp.float32)
    w2 = jax.random.normal(keys[12], (C, 4 * C), jnp.float32) / jnp.sqrt(4 * C)
    b2f = 0.02 * jax.random.normal(keys[13], (C,), jnp.float32)

    # Fuse all heads + Q/K/V into one (C, 3C) matrix (columns = x @ W.T layout).
    def fuse_heads(w):   # (n_head, H, C) -> (C, n_head*H)
        return jnp.concatenate([w[h].T for h in range(n_head)], axis=1)

    wqkv = jnp.concatenate([fuse_heads(wq_h), fuse_heads(wk_h), fuse_heads(wv_h)], axis=1)

    out = block_forward(
        x,
        g1.reshape(1, C), beta1.reshape(1, C),
        wqkv, wproj.T, bproj.reshape(1, C),
        g2.reshape(1, C), beta2.reshape(1, C),
        w1.T, b1f.reshape(1, 4 * C), w2.T, b2f.reshape(1, C),
        n_head=n_head,
    )
    out = jax.block_until_ready(out)

    # ---- Plain-JAX reference (same math as the PyTorch Block, dropout = identity)
    def layernorm(v, g, b):
        mu = v.mean(-1, keepdims=True)
        var = ((v - mu) ** 2).mean(-1, keepdims=True)
        return (v - mu) / jnp.sqrt(var + LN_EPS) * g + b

    ln1 = layernorm(x, g1, beta1)
    mask = jnp.tril(jnp.ones((T, T), dtype=bool))
    heads = []
    for h in range(n_head):
        k_ = ln1 @ wk_h[h].T
        q_ = ln1 @ wq_h[h].T
        v_ = ln1 @ wv_h[h].T
        wei = (q_ @ jnp.swapaxes(k_, -2, -1)) * (C ** -0.5)
        wei = jnp.where(mask[None, :, :], wei, -jnp.inf)
        wei = jax.nn.softmax(wei, axis=-1)
        heads.append(wei @ v_)
    sa_ref = jnp.concatenate(heads, axis=-1) @ wproj.T + bproj
    xr = x + sa_ref
    ln2 = layernorm(xr, g2, beta2)
    ff_ref = jnp.maximum(ln2 @ w1.T + b1f, 0.0) @ w2.T + b2f
    ref = xr + ff_ref

    assert out.shape == (B, T, C)
    assert jnp.allclose(out, ref, atol=2e-2, rtol=2e-2), (
        f"mismatch vs JAX reference, max abs diff = {jnp.max(jnp.abs(out - ref))}")
    print("KERNEL_OK")
</pallas_src>

<mosaic_0001>
module attributes {stable_mosaic.version = 11 : i64} {
  func.func @block_kernel(%arg0: i32, %arg1: memref<1x8x384xf32, #tpu.memory_space<vmem>>, %arg2: memref<1x384xf32, #tpu.memory_space<vmem>>, %arg3: memref<1x384xf32, #tpu.memory_space<vmem>>, %arg4: memref<384x1152xf32, #tpu.memory_space<vmem>>, %arg5: memref<384x384xf32, #tpu.memory_space<vmem>>, %arg6: memref<1x384xf32, #tpu.memory_space<vmem>>, %arg7: memref<1x384xf32, #tpu.memory_space<vmem>>, %arg8: memref<1x384xf32, #tpu.memory_space<vmem>>, %arg9: memref<384x1536xf32, #tpu.memory_space<vmem>>, %arg10: memref<1x1536xf32, #tpu.memory_space<vmem>>, %arg11: memref<1536x384xf32, #tpu.memory_space<vmem>>, %arg12: memref<1x384xf32, #tpu.memory_space<vmem>>, %arg13: memref<1x8x384xf32, #tpu.memory_space<vmem>>) attributes {dimension_semantics = [#tpu.dimension_semantics<parallel>], iteration_bounds = array<i64: 2>, scalar_prefetch = 0 : i64, scratch_operands = 0 : i64, tpu.core_type = #tpu.core_type<tc>, window_params = [{transform_indices = @transform_0, window_bounds = array<i64: 1, 8, 384>}, {pipeline_mode = #tpu.pipeline_mode<synchronous>, transform_indices = @transform_1, window_bounds = array<i64: 1, 384>}, {pipeline_mode = #tpu.pipeline_mode<synchronous>, transform_indices = @transform_2, window_bounds = array<i64: 1, 384>}, {pipeline_mode = #tpu.pipeline_mode<synchronous>, transform_indices = @transform_3, window_bounds = array<i64: 384, 1152>}, {pipeline_mode = #tpu.pipeline_mode<synchronous>, transform_indices = @transform_4, window_bounds = array<i64: 384, 384>}, {pipeline_mode = #tpu.pipeline_mode<synchronous>, transform_indices = @transform_5, window_bounds = array<i64: 1, 384>}, {pipeline_mode = #tpu.pipeline_mode<synchronous>, transform_indices = @transform_6, window_bounds = array<i64: 1, 384>}, {pipeline_mode = #tpu.pipeline_mode<synchronous>, transform_indices = @transform_7, window_bounds = array<i64: 1, 384>}, {pipeline_mode = #tpu.pipeline_mode<synchronous>, transform_indices = @transform_8, window_bounds = array<i64: 384, 1536>}, {pipeline_mode = #tpu.pipeline_mode<synchronous>, transform_indices = @transform_9, window_bounds = array<i64: 1, 1536>}, {pipeline_mode = #tpu.pipeline_mode<synchronous>, transform_indices = @transform_10, window_bounds = array<i64: 1536, 384>}, {pipeline_mode = #tpu.pipeline_mode<synchronous>, transform_indices = @transform_11, window_bounds = array<i64: 1, 384>}, {transform_indices = @transform_12, window_bounds = array<i64: 1, 8, 384>}]} {
    %c0 = arith.constant 0 : index
    %c0_0 = arith.constant 0 : index
    %c0_1 = arith.constant 0 : index
    %0 = vector.load %arg1[%c0, %c0_0, %c0_1] : memref<1x8x384xf32, #tpu.memory_space<vmem>>, vector<1x8x384xf32>
    %1 = vector.shape_cast %0 : vector<1x8x384xf32> to vector<8x384xf32>
    %cst = arith.constant dense<0.000000e+00> : vector<8xf32>
    %2 = vector.multi_reduction <add>, %1, %cst [1] : vector<8x384xf32> to vector<8xf32>
    %3 = vector.shape_cast %2 : vector<8xf32> to vector<8x1xf32>
    %cst_2 = arith.constant 3.840000e+02 : f32
    %4 = vector.broadcast %cst_2 : f32 to vector<8x1xf32>
    %5 = arith.divf %3, %4 : vector<8x1xf32>
    %6 = vector.broadcast %5 : vector<8x1xf32> to vector<8x384xf32>
    %7 = arith.subf %1, %6 : vector<8x384xf32>
    %8 = arith.mulf %7, %7 : vector<8x384xf32>
    %cst_3 = arith.constant dense<0.000000e+00> : vector<8xf32>
    %9 = vector.multi_reduction <add>, %8, %cst_3 [1] : vector<8x384xf32> to vector<8xf32>
    %10 = vector.shape_cast %9 : vector<8xf32> to vector<8x1xf32>
    %cst_4 = arith.constant 3.840000e+02 : f32
    %11 = vector.broadcast %cst_4 : f32 to vector<8x1xf32>
    %12 = arith.divf %10, %11 : vector<8x1xf32>
    %cst_5 = arith.constant 9.99999974E-6 : f32
    %13 = vector.broadcast %cst_5 : f32 to vector<8x1xf32>
    %14 = arith.addf %12, %13 : vector<8x1xf32>
    %15 = math.rsqrt %14 : vector<8x1xf32>
    %16 = vector.broadcast %15 : vector<8x1xf32> to vector<8x384xf32>
    %17 = arith.mulf %7, %16 : vector<8x384xf32>
    %c0_6 = arith.constant 0 : index
    %c0_7 = arith.constant 0 : index
    %18 = vector.load %arg2[%c0_6, %c0_7] : memref<1x384xf32, #tpu.memory_space<vmem>>, vector<1x384xf32>
    %19 = vector.broadcast %18 : vector<1x384xf32> to vector<8x384xf32>
    %20 = arith.mulf %17, %19 : vector<8x384xf32>
    %c0_8 = arith.constant 0 : index
    %c0_9 = arith.constant 0 : index
    %21 = vector.load %arg3[%c0_8, %c0_9] : memref<1x384xf32, #tpu.memory_space<vmem>>, vector<1x384xf32>
    %22 = vector.broadcast %21 : vector<1x384xf32> to vector<8x384xf32>
    %23 = arith.addf %20, %22 : vector<8x384xf32>
    %c0_10 = arith.constant 0 : index
    %c0_11 = arith.constant 0 : index
    %24 = vector.load %arg4[%c0_10, %c0_11] : memref<384x1152xf32, #tpu.memory_space<vmem>>, vector<384x1152xf32>
    %cst_12 = arith.constant dense<0.000000e+00> : vector<8x1152xf32>
    %25 = tpu.matmul %23, %24, %cst_12 {dimension_numbers = #tpu.dot_dimension_numbers<[1], [0], [0], [1], [0, 0, 1, 1], [], []>} : vector<8x384xf32>, vector<384x1152xf32>, vector<8x1152xf32> -> vector<8x1152xf32>
    %26 = tpu.iota {dimensions = array<i32: 0>} : vector<8x8xi32>
    %27 = tpu.iota {dimensions = array<i32: 1>} : vector<8x8xi32>
    %28 = arith.cmpi sle, %27, %26 : vector<8x8xi32>
    %29 = vector.extract_strided_slice %25 {offsets = [0, 0], sizes = [8, 64], strides = [1, 1]} : vector<8x1152xf32> to vector<8x64xf32>
    %30 = vector.extract_strided_slice %25 {offsets = [0, 384], sizes = [8, 64], strides = [1, 1]} : vector<8x1152xf32> to vector<8x64xf32>
    %31 = vector.extract_strided_slice %25 {offsets = [0, 768], sizes = [8, 64], strides = [1, 1]} : vector<8x1152xf32> to vector<8x64xf32>
    %cst_13 = arith.constant dense<0.000000e+00> : vector<8x8xf32>
    %32 = tpu.matmul %29, %30, %cst_13 {dimension_numbers = #tpu.dot_dimension_numbers<[1], [1], [0], [0], [0, 0, 1, 0], [], []>} : vector<8x64xf32>, vector<8x64xf32>, vector<8x8xf32> -> vector<8x8xf32>
    %cst_14 = arith.constant 0.0510310382 : f32
    %33 = vector.broadcast %cst_14 : f32 to vector<8x8xf32>
    %34 = arith.mulf %32, %33 : vector<8x8xf32>
    %cst_15 = arith.constant -1.000000e+30 : f32
    %35 = vector.broadcast %cst_15 : f32 to vector<8x8xf32>
    %36 = arith.select %28, %34, %35 : vector<8x8xi1>, vector<8x8xf32>
    %cst_16 = arith.constant dense<0xFF800000> : vector<8xf32>
    %37 = vector.multi_reduction <maximumf>, %36, %cst_16 [1] : vector<8x8xf32> to vector<8xf32>
    %38 = vector.shape_cast %37 : vector<8xf32> to vector<8x1xf32>
    %39 = vector.broadcast %38 : vector<8x1xf32> to vector<8x8xf32>
    %40 = arith.subf %36, %39 : vector<8x8xf32>
    %41 = math.exp %40 : vector<8x8xf32>
    %cst_17 = arith.constant dense<0.000000e+00> : vector<8xf32>
    %42 = vector.multi_reduction <add>, %41, %cst_17 [1] : vector<8x8xf32> to vector<8xf32>
    %43 = vector.shape_cast %42 : vector<8xf32> to vector<8x1xf32>
    %44 = tpu.reciprocal %43 {approx = true} : vector<8x1xf32> -> vector<8x1xf32>
    %45 = vector.broadcast %44 : vector<8x1xf32> to vector<8x8xf32>
    %46 = arith.mulf %41, %45 : vector<8x8xf32>
    %cst_18 = arith.constant dense<0.000000e+00> : vector<8x64xf32>
    %47 = tpu.matmul %46, %31, %cst_18 {dimension_numbers = #tpu.dot_dimension_numbers<[1], [0], [0], [1], [0, 0, 1, 1], [], []>} : vector<8x8xf32>, vector<8x64xf32>, vector<8x64xf32> -> vector<8x64xf32>
    %48 = vector.extract_strided_slice %25 {offsets = [0, 64], sizes = [8, 64], strides = [1, 1]} : vector<8x1152xf32> to vector<8x64xf32>
    %49 = vector.extract_strided_slice %25 {offsets = [0, 448], sizes = [8, 64], strides = [1, 1]} : vector<8x1152xf32> to vector<8x64xf32>
    %50 = vector.extract_strided_slice %25 {offsets = [0, 832], sizes = [8, 64], strides = [1, 1]} : vector<8x1152xf32> to vector<8x64xf32>
    %cst_19 = arith.constant dense<0.000000e+00> : vector<8x8xf32>
    %51 = tpu.matmul %48, %49, %cst_19 {dimension_numbers = #tpu.dot_dimension_numbers<[1], [1], [0], [0], [0, 0, 1, 0], [], []>} : vector<8x64xf32>, vector<8x64xf32>, vector<8x8xf32> -> vector<8x8xf32>
    %cst_20 = arith.constant 0.0510310382 : f32
    %52 = vector.broadcast %cst_20 : f32 to vector<8x8xf32>
    %53 = arith.mulf %51, %52 : vector<8x8xf32>
    %cst_21 = arith.constant -1.000000e+30 : f32
    %54 = vector.broadcast %cst_21 : f32 to vector<8x8xf32>
    %55 = arith.select %28, %53, %54 : vector<8x8xi1>, vector<8x8xf32>
    %cst_22 = arith.constant dense<0xFF800000> : vector<8xf32>
    %56 = vector.multi_reduction <maximumf>, %55, %cst_22 [1] : vector<8x8xf32> to vector<8xf32>
    %57 = vector.shape_cast %56 : vector<8xf32> to vector<8x1xf32>
    %58 = vector.broadcast %57 : vector<8x1xf32> to vector<8x8xf32>
    %59 = arith.subf %55, %58 : vector<8x8xf32>
    %60 = math.exp %59 : vector<8x8xf32>
    %cst_23 = arith.constant dense<0.000000e+00> : vector<8xf32>
    %61 = vector.multi_reduction <add>, %60, %cst_23 [1] : vector<8x8xf32> to vector<8xf32>
    %62 = vector.shape_cast %61 : vector<8xf32> to vector<8x1xf32>
    %63 = tpu.reciprocal %62 {approx = true} : vector<8x1xf32> -> vector<8x1xf32>
    %64 = vector.broadcast %63 : vector<8x1xf32> to vector<8x8xf32>
    %65 = arith.mulf %60, %64 : vector<8x8xf32>
    %cst_24 = arith.constant dense<0.000000e+00> : vector<8x64xf32>
    %66 = tpu.matmul %65, %50, %cst_24 {dimension_numbers = #tpu.dot_dimension_numbers<[1], [0], [0], [1], [0, 0, 1, 1], [], []>} : vector<8x8xf32>, vector<8x64xf32>, vector<8x64xf32> -> vector<8x64xf32>
    %67 = vector.extract_strided_slice %25 {offsets = [0, 128], sizes = [8, 64], strides = [1, 1]} : vector<8x1152xf32> to vector<8x64xf32>
    %68 = vector.extract_strided_slice %25 {offsets = [0, 512], sizes = [8, 64], strides = [1, 1]} : vector<8x1152xf32> to vector<8x64xf32>
    %69 = vector.extract_strided_slice %25 {offsets = [0, 896], sizes = [8, 64], strides = [1, 1]} : vector<8x1152xf32> to vector<8x64xf32>
    %cst_25 = arith.constant dense<0.000000e+00> : vector<8x8xf32>
    %70 = tpu.matmul %67, %68, %cst_25 {dimension_numbers = #tpu.dot_dimension_numbers<[1], [1], [0], [0], [0, 0, 1, 0], [], []>} : vector<8x64xf32>, vector<8x64xf32>, vector<8x8xf32> -> vector<8x8xf32>
    %cst_26 = arith.constant 0.0510310382 : f32
    %71 = vector.broadcast %cst_26 : f32 to vector<8x8xf32>
    %72 = arith.mulf %70, %71 : vector<8x8xf32>
    %cst_27 = arith.constant -1.000000e+30 : f32
    %73 = vector.broadcast %cst_27 : f32 to vector<8x8xf32>
    %74 = arith.select %28, %72, %73 : vector<8x8xi1>, vector<8x8xf32>
    %cst_28 = arith.constant dense<0xFF800000> : vector<8xf32>
    %75 = vector.multi_reduction <maximumf>, %74, %cst_28 [1] : vector<8x8xf32> to vector<8xf32>
    %76 = vector.shape_cast %75 : vector<8xf32> to vector<8x1xf32>
    %77 = vector.broadcast %76 : vector<8x1xf32> to vector<8x8xf32>
    %78 = arith.subf %74, %77 : vector<8x8xf32>
    %79 = math.exp %78 : vector<8x8xf32>
    %cst_29 = arith.constant dense<0.000000e+00> : vector<8xf32>
    %80 = vector.multi_reduction <add>, %79, %cst_29 [1] : vector<8x8xf32> to vector<8xf32>
    %81 = vector.shape_cast %80 : vector<8xf32> to vector<8x1xf32>
    %82 = tpu.reciprocal %81 {approx = true} : vector<8x1xf32> -> vector<8x1xf32>
    %83 = vector.broadcast %82 : vector<8x1xf32> to vector<8x8xf32>
    %84 = arith.mulf %79, %83 : vector<8x8xf32>
    %cst_30 = arith.constant dense<0.000000e+00> : vector<8x64xf32>
    %85 = tpu.matmul %84, %69, %cst_30 {dimension_numbers = #tpu.dot_dimension_numbers<[1], [0], [0], [1], [0, 0, 1, 1], [], []>} : vector<8x8xf32>, vector<8x64xf32>, vector<8x64xf32> -> vector<8x64xf32>
    %86 = vector.extract_strided_slice %25 {offsets = [0, 192], sizes = [8, 64], strides = [1, 1]} : vector<8x1152xf32> to vector<8x64xf32>
    %87 = vector.extract_strided_slice %25 {offsets = [0, 576], sizes = [8, 64], strides = [1, 1]} : vector<8x1152xf32> to vector<8x64xf32>
    %88 = vector.extract_strided_slice %25 {offsets = [0, 960], sizes = [8, 64], strides = [1, 1]} : vector<8x1152xf32> to vector<8x64xf32>
    %cst_31 = arith.constant dense<0.000000e+00> : vector<8x8xf32>
    %89 = tpu.matmul %86, %87, %cst_31 {dimension_numbers = #tpu.dot_dimension_numbers<[1], [1], [0], [0], [0, 0, 1, 0], [], []>} : vector<8x64xf32>, vector<8x64xf32>, vector<8x8xf32> -> vector<8x8xf32>
    %cst_32 = arith.constant 0.0510310382 : f32
    %90 = vector.broadcast %cst_32 : f32 to vector<8x8xf32>
    %91 = arith.mulf %89, %90 : vector<8x8xf32>
    %cst_33 = arith.constant -1.000000e+30 : f32
    %92 = vector.broadcast %cst_33 : f32 to vector<8x8xf32>
    %93 = arith.select %28, %91, %92 : vector<8x8xi1>, vector<8x8xf32>
    %cst_34 = arith.constant dense<0xFF800000> : vector<8xf32>
    %94 = vector.multi_reduction <maximumf>, %93, %cst_34 [1] : vector<8x8xf32> to vector<8xf32>
    %95 = vector.shape_cast %94 : vector<8xf32> to vector<8x1xf32>
    %96 = vector.broadcast %95 : vector<8x1xf32> to vector<8x8xf32>
    %97 = arith.subf %93, %96 : vector<8x8xf32>
    %98 = math.exp %97 : vector<8x8xf32>
    %cst_35 = arith.constant dense<0.000000e+00> : vector<8xf32>
    %99 = vector.multi_reduction <add>, %98, %cst_35 [1] : vector<8x8xf32> to vector<8xf32>
    %100 = vector.shape_cast %99 : vector<8xf32> to vector<8x1xf32>
    %101 = tpu.reciprocal %100 {approx = true} : vector<8x1xf32> -> vector<8x1xf32>
    %102 = vector.broadcast %101 : vector<8x1xf32> to vector<8x8xf32>
    %103 = arith.mulf %98, %102 : vector<8x8xf32>
    %cst_36 = arith.constant dense<0.000000e+00> : vector<8x64xf32>
    %104 = tpu.matmul %103, %88, %cst_36 {dimension_numbers = #tpu.dot_dimension_numbers<[1], [0], [0], [1], [0, 0, 1, 1], [], []>} : vector<8x8xf32>, vector<8x64xf32>, vector<8x64xf32> -> vector<8x64xf32>
    %105 = vector.extract_strided_slice %25 {offsets = [0, 256], sizes = [8, 64], strides = [1, 1]} : vector<8x1152xf32> to vector<8x64xf32>
    %106 = vector.extract_strided_slice %25 {offsets = [0, 640], sizes = [8, 64], strides = [1, 1]} : vector<8x1152xf32> to vector<8x64xf32>
    %107 = vector.extract_strided_slice %25 {offsets = [0, 1024], sizes = [8, 64], strides = [1, 1]} : vector<8x1152xf32> to vector<8x64xf32>
    %cst_37 = arith.constant dense<0.000000e+00> : vector<8x8xf32>
    %108 = tpu.matmul %105, %106, %cst_37 {dimension_numbers = #tpu.dot_dimension_numbers<[1], [1], [0], [0], [0, 0, 1, 0], [], []>} : vector<8x64xf32>, vector<8x64xf32>, vector<8x8xf32> -> vector<8x8xf32>
    %cst_38 = arith.constant 0.0510310382 : f32
    %109 = vector.broadcast %cst_38 : f32 to vector<8x8xf32>
    %110 = arith.mulf %108, %109 : vector<8x8xf32>
    %cst_39 = arith.constant -1.000000e+30 : f32
    %111 = vector.broadcast %cst_39 : f32 to vector<8x8xf32>
    %112 = arith.select %28, %110, %111 : vector<8x8xi1>, vector<8x8xf32>
    %cst_40 = arith.constant dense<0xFF800000> : vector<8xf32>
    %113 = vector.multi_reduction <maximumf>, %112, %cst_40 [1] : vector<8x8xf32> to vector<8xf32>
    %114 = vector.shape_cast %113 : vector<8xf32> to vector<8x1xf32>
    %115 = vector.broadcast %114 : vector<8x1xf32> to vector<8x8xf32>
    %116 = arith.subf %112, %115 : vector<8x8xf32>
    %117 = math.exp %116 : vector<8x8xf32>
    %cst_41 = arith.constant dense<0.000000e+00> : vector<8xf32>
    %118 = vector.multi_reduction <add>, %117, %cst_41 [1] : vector<8x8xf32> to vector<8xf32>
    %119 = vector.shape_cast %118 : vector<8xf32> to vector<8x1xf32>
    %120 = tpu.reciprocal %119 {approx = true} : vector<8x1xf32> -> vector<8x1xf32>
    %121 = vector.broadcast %120 : vector<8x1xf32> to vector<8x8xf32>
    %122 = arith.mulf %117, %121 : vector<8x8xf32>
    %cst_42 = arith.constant dense<0.000000e+00> : vector<8x64xf32>
    %123 = tpu.matmul %122, %107, %cst_42 {dimension_numbers = #tpu.dot_dimension_numbers<[1], [0], [0], [1], [0, 0, 1, 1], [], []>} : vector<8x8xf32>, vector<8x64xf32>, vector<8x64xf32> -> vector<8x64xf32>
    %124 = vector.extract_strided_slice %25 {offsets = [0, 320], sizes = [8, 64], strides = [1, 1]} : vector<8x1152xf32> to vector<8x64xf32>
    %125 = vector.extract_strided_slice %25 {offsets = [0, 704], sizes = [8, 64], strides = [1, 1]} : vector<8x1152xf32> to vector<8x64xf32>
    %126 = vector.extract_strided_slice %25 {offsets = [0, 1088], sizes = [8, 64], strides = [1, 1]} : vector<8x1152xf32> to vector<8x64xf32>
    %cst_43 = arith.constant dense<0.000000e+00> : vector<8x8xf32>
    %127 = tpu.matmul %124, %125, %cst_43 {dimension_numbers = #tpu.dot_dimension_numbers<[1], [1], [0], [0], [0, 0, 1, 0], [], []>} : vector<8x64xf32>, vector<8x64xf32>, vector<8x8xf32> -> vector<8x8xf32>
    %cst_44 = arith.constant 0.0510310382 : f32
    %128 = vector.broadcast %cst_44 : f32 to vector<8x8xf32>
    %129 = arith.mulf %127, %128 : vector<8x8xf32>
    %cst_45 = arith.constant -1.000000e+30 : f32
    %130 = vector.broadcast %cst_45 : f32 to vector<8x8xf32>
    %131 = arith.select %28, %129, %130 : vector<8x8xi1>, vector<8x8xf32>
    %cst_46 = arith.constant dense<0xFF800000> : vector<8xf32>
    %132 = vector.multi_reduction <maximumf>, %131, %cst_46 [1] : vector<8x8xf32> to vector<8xf32>
    %133 = vector.shape_cast %132 : vector<8xf32> to vector<8x1xf32>
    %134 = vector.broadcast %133 : vector<8x1xf32> to vector<8x8xf32>
    %135 = arith.subf %131, %134 : vector<8x8xf32>
    %136 = math.exp %135 : vector<8x8xf32>
    %cst_47 = arith.constant dense<0.000000e+00> : vector<8xf32>
    %137 = vector.multi_reduction <add>, %136, %cst_47 [1] : vector<8x8xf32> to vector<8xf32>
    %138 = vector.shape_cast %137 : vector<8xf32> to vector<8x1xf32>
    %139 = tpu.reciprocal %138 {approx = true} : vector<8x1xf32> -> vector<8x1xf32>
    %140 = vector.broadcast %139 : vector<8x1xf32> to vector<8x8xf32>
    %141 = arith.mulf %136, %140 : vector<8x8xf32>
    %cst_48 = arith.constant dense<0.000000e+00> : vector<8x64xf32>
    %142 = tpu.matmul %141, %126, %cst_48 {dimension_numbers = #tpu.dot_dimension_numbers<[1], [0], [0], [1], [0, 0, 1, 1], [], []>} : vector<8x8xf32>, vector<8x64xf32>, vector<8x64xf32> -> vector<8x64xf32>
    %143 = tpu.concatenate %47, %66, %85, %104, %123, %142 in 1 : vector<8x64xf32>, vector<8x64xf32>, vector<8x64xf32>, vector<8x64xf32>, vector<8x64xf32>, vector<8x64xf32> -> vector<8x384xf32>
    %c0_49 = arith.constant 0 : index
    %c0_50 = arith.constant 0 : index
    %144 = vector.load %arg5[%c0_49, %c0_50] : memref<384x384xf32, #tpu.memory_space<vmem>>, vector<384x384xf32>
    %cst_51 = arith.constant dense<0.000000e+00> : vector<8x384xf32>
    %145 = tpu.matmul %143, %144, %cst_51 {dimension_numbers = #tpu.dot_dimension_numbers<[1], [0], [0], [1], [0, 0, 1, 1], [], []>} : vector<8x384xf32>, vector<384x384xf32>, vector<8x384xf32> -> vector<8x384xf32>
    %c0_52 = arith.constant 0 : index
    %c0_53 = arith.constant 0 : index
    %146 = vector.load %arg6[%c0_52, %c0_53] : memref<1x384xf32, #tpu.memory_space<vmem>>, vector<1x384xf32>
    %147 = vector.broadcast %146 : vector<1x384xf32> to vector<8x384xf32>
    %148 = arith.addf %145, %147 : vector<8x384xf32>
    %149 = arith.addf %1, %148 : vector<8x384xf32>
    %cst_54 = arith.constant dense<0.000000e+00> : vector<8xf32>
    %150 = vector.multi_reduction <add>, %149, %cst_54 [1] : vector<8x384xf32> to vector<8xf32>
    %151 = vector.shape_cast %150 : vector<8xf32> to vector<8x1xf32>
    %cst_55 = arith.constant 3.840000e+02 : f32
    %152 = vector.broadcast %cst_55 : f32 to vector<8x1xf32>
    %153 = arith.divf %151, %152 : vector<8x1xf32>
    %154 = vector.broadcast %153 : vector<8x1xf32> to vector<8x384xf32>
    %155 = arith.subf %149, %154 : vector<8x384xf32>
    %156 = arith.mulf %155, %155 : vector<8x384xf32>
    %cst_56 = arith.constant dense<0.000000e+00> : vector<8xf32>
    %157 = vector.multi_reduction <add>, %156, %cst_56 [1] : vector<8x384xf32> to vector<8xf32>
    %158 = vector.shape_cast %157 : vector<8xf32> to vector<8x1xf32>
    %cst_57 = arith.constant 3.840000e+02 : f32
    %159 = vector.broadcast %cst_57 : f32 to vector<8x1xf32>
    %160 = arith.divf %158, %159 : vector<8x1xf32>
    %cst_58 = arith.constant 9.99999974E-6 : f32
    %161 = vector.broadcast %cst_58 : f32 to vector<8x1xf32>
    %162 = arith.addf %160, %161 : vector<8x1xf32>
    %163 = math.rsqrt %162 : vector<8x1xf32>
    %164 = vector.broadcast %163 : vector<8x1xf32> to vector<8x384xf32>
    %165 = arith.mulf %155, %164 : vector<8x384xf32>
    %c0_59 = arith.constant 0 : index
    %c0_60 = arith.constant 0 : index
    %166 = vector.load %arg7[%c0_59, %c0_60] : memref<1x384xf32, #tpu.memory_space<vmem>>, vector<1x384xf32>
    %167 = vector.broadcast %166 : vector<1x384xf32> to vector<8x384xf32>
    %168 = arith.mulf %165, %167 : vector<8x384xf32>
    %c0_61 = arith.constant 0 : index
    %c0_62 = arith.constant 0 : index
    %169 = vector.load %arg8[%c0_61, %c0_62] : memref<1x384xf32, #tpu.memory_space<vmem>>, vector<1x384xf32>
    %170 = vector.broadcast %169 : vector<1x384xf32> to vector<8x384xf32>
    %171 = arith.addf %168, %170 : vector<8x384xf32>
    %c0_63 = arith.constant 0 : index
    %c0_64 = arith.constant 0 : index
    %172 = vector.load %arg9[%c0_63, %c0_64] : memref<384x1536xf32, #tpu.memory_space<vmem>>, vector<384x1536xf32>
    %cst_65 = arith.constant dense<0.000000e+00> : vector<8x1536xf32>
    %173 = tpu.matmul %171, %172, %cst_65 {dimension_numbers = #tpu.dot_dimension_numbers<[1], [0], [0], [1], [0, 0, 1, 1], [], []>} : vector<8x384xf32>, vector<384x1536xf32>, vector<8x1536xf32> -> vector<8x1536xf32>
    %c0_66 = arith.constant 0 : index
    %c0_67 = arith.constant 0 : index
    %174 = vector.load %arg10[%c0_66, %c0_67] : memref<1x1536xf32, #tpu.memory_space<vmem>>, vector<1x1536xf32>
    %175 = vector.broadcast %174 : vector<1x1536xf32> to vector<8x1536xf32>
    %176 = arith.addf %173, %175 : vector<8x1536xf32>
    %cst_68 = arith.constant 0.000000e+00 : f32
    %177 = vector.broadcast %cst_68 : f32 to vector<8x1536xf32>
    %178 = arith.maximumf %176, %177 : vector<8x1536xf32>
    %c0_69 = arith.constant 0 : index
    %c0_70 = arith.constant 0 : index
    %179 = vector.load %arg11[%c0_69, %c0_70] : memref<1536x384xf32, #tpu.memory_space<vmem>>, vector<1536x384xf32>
    %cst_71 = arith.constant dense<0.000000e+00> : vector<8x384xf32>
    %180 = tpu.matmul %178, %179, %cst_71 {dimension_numbers = #tpu.dot_dimension_numbers<[1], [0], [0], [1], [0, 0, 1, 1], [], []>} : vector<8x1536xf32>, vector<1536x384xf32>, vector<8x384xf32> -> vector<8x384xf32>
    %c0_72 = arith.constant 0 : index
    %c0_73 = arith.constant 0 : index
    %181 = vector.load %arg12[%c0_72, %c0_73] : memref<1x384xf32, #tpu.memory_space<vmem>>, vector<1x384xf32>
    %182 = vector.broadcast %181 : vector<1x384xf32> to vector<8x384xf32>
    %183 = arith.addf %180, %182 : vector<8x384xf32>
    %184 = arith.addf %149, %183 : vector<8x384xf32>
    %c0_74 = arith.constant 0 : index
    %c0_75 = arith.constant 0 : index
    %c0_76 = arith.constant 0 : index
    %185 = vector.load %arg13[%c0_74, %c0_75, %c0_76] : memref<1x8x384xf32, #tpu.memory_space<vmem>>, vector<1x8x384xf32>
    %186 = vector.shape_cast %185 : vector<1x8x384xf32> to vector<8x384xf32>
    %187 = vector.shape_cast %184 : vector<8x384xf32> to vector<1x8x384xf32>
    tpu.vector_store %arg13[%c0_74, %c0_75, %c0_76], %187 {strides = array<i32>} : memref<1x8x384xf32, #tpu.memory_space<vmem>>, vector<1x8x384xf32>,
    return
  }
  func.func @transform_0(%arg0: i32) -> (i32, i32, i32) {
    %c0_i32 = arith.constant 0 : i32
    %c0_i32_0 = arith.constant 0 : i32
    %c0_i32_1 = arith.constant 0 : i32
    return %arg0, %c0_i32, %c0_i32_0 : i32, i32, i32
  }
  func.func @transform_1(%arg0: i32) -> (i32, i32) {
    %c0_i32 = arith.constant 0 : i32
    %c0_i32_0 = arith.constant 0 : i32
    %c0_i32_1 = arith.constant 0 : i32
    return %c0_i32, %c0_i32_0 : i32, i32
  }
  func.func @transform_2(%arg0: i32) -> (i32, i32) {
    %c0_i32 = arith.constant 0 : i32
    %c0_i32_0 = arith.constant 0 : i32
    %c0_i32_1 = arith.constant 0 : i32
    return %c0_i32, %c0_i32_0 : i32, i32
  }
  func.func @transform_3(%arg0: i32) -> (i32, i32) {
    %c0_i32 = arith.constant 0 : i32
    %c0_i32_0 = arith.constant 0 : i32
    %c0_i32_1 = arith.constant 0 : i32
    return %c0_i32, %c0_i32_0 : i32, i32
  }
  func.func @transform_4(%arg0: i32) -> (i32, i32) {
    %c0_i32 = arith.constant 0 : i32
    %c0_i32_0 = arith.constant 0 : i32
    %c0_i32_1 = arith.constant 0 : i32
    return %c0_i32, %c0_i32_0 : i32, i32
  }
  func.func @transform_5(%arg0: i32) -> (i32, i32) {
    %c0_i32 = arith.constant 0 : i32
    %c0_i32_0 = arith.constant 0 : i32
    %c0_i32_1 = arith.constant 0 : i32
    return %c0_i32, %c0_i32_0 : i32, i32
  }
  func.func @transform_6(%arg0: i32) -> (i32, i32) {
    %c0_i32 = arith.constant 0 : i32
    %c0_i32_0 = arith.constant 0 : i32
    %c0_i32_1 = arith.constant 0 : i32
    return %c0_i32, %c0_i32_0 : i32, i32
  }
  func.func @transform_7(%arg0: i32) -> (i32, i32) {
    %c0_i32 = arith.constant 0 : i32
    %c0_i32_0 = arith.constant 0 : i32
    %c0_i32_1 = arith.constant 0 : i32
    return %c0_i32, %c0_i32_0 : i32, i32
  }
  func.func @transform_8(%arg0: i32) -> (i32, i32) {
    %c0_i32 = arith.constant 0 : i32
    %c0_i32_0 = arith.constant 0 : i32
    %c0_i32_1 = arith.constant 0 : i32
    return %c0_i32, %c0_i32_0 : i32, i32
  }
  func.func @transform_9(%arg0: i32) -> (i32, i32) {
    %c0_i32 = arith.constant 0 : i32
    %c0_i32_0 = arith.constant 0 : i32
    %c0_i32_1 = arith.constant 0 : i32
    return %c0_i32, %c0_i32_0 : i32, i32
  }
  func.func @transform_10(%arg0: i32) -> (i32, i32) {
    %c0_i32 = arith.constant 0 : i32
    %c0_i32_0 = arith.constant 0 : i32
    %c0_i32_1 = arith.constant 0 : i32
    return %c0_i32, %c0_i32_0 : i32, i32
  }
  func.func @transform_11(%arg0: i32) -> (i32, i32) {
    %c0_i32 = arith.constant 0 : i32
    %c0_i32_0 = arith.constant 0 : i32
    %c0_i32_1 = arith.constant 0 : i32
    return %c0_i32, %c0_i32_0 : i32, i32
  }
  func.func @transform_12(%arg0: i32) -> (i32, i32, i32) {
    %c0_i32 = arith.constant 0 : i32
    %c0_i32_0 = arith.constant 0 : i32
    %c0_i32_1 = arith.constant 0 : i32
    return %arg0, %c0_i32, %c0_i32_0 : i32, i32, i32
  }
}

</mosaic_0001>

<bundles_post_ra>
// kernel: tpu_custom_call.1
= control target key start
LH: loop header
LB: loop body
LE: loop exit
PB: predicated region body
PF: predicated region fallthrough
CT: control target
= control target key end

     0   :  { %s10349_s0 = inlined_call_operand.hbm [shape: f32[2,8,384], index: 0, kind: input, shape index: {}]   ;;  %s10350_s1 = inlined_call_operand.hbm [shape: f32[1,384], index: 1, kind: input, shape index: {}]   ;;  %s10351_s2 = inlined_call_operand.hbm [shape: f32[1,384], index: 2, kind: input, shape index: {}]   ;;  %s10352_s3 = inlined_call_operand.hbm [shape: f32[384,1152], index: 3, kind: input, shape index: {}]   ;;  %s10353_s4 = inlined_call_operand.hbm [shape: f32[384,384], index: 4, kind: input, shape index: {}]   ;;  %s10354_s5 = inlined_call_operand.hbm [shape: f32[1,384], index: 5, kind: input, shape index: {}]   ;;  %s10355_s6 = inlined_call_operand.hbm [shape: f32[1,384], index: 6, kind: input, shape index: {}]   ;;  %s10356_s7 = inlined_call_operand.hbm [shape: f32[1,384], index: 7, kind: input, shape index: {}]   ;;  %s10357_s8 = inlined_call_operand.hbm [shape: f32[384,1536], index: 8, kind: input, shape index: {}]   ;;  %s10358_s9 = inlined_call_operand.hbm [shape: f32[1,1536], index: 9, kind: input, shape index: {}]   ;;  %s10359_s10 = inlined_call_operand.hbm [shape: f32[1536,384], index: 10, kind: input, shape index: {}]   ;;  %s10360_s11 = inlined_call_operand.hbm [shape: f32[1,384], index: 11, kind: input, shape index: {}]   ;;  %s10361_s12 = inlined_call_operand.hbm [shape: f32[2,8,384], index: 12, kind: output, shape index: {}]  }
   0x1   :  { %10369 = sst [smem:[#allocation32_spill]] %s10350_s1 }
   0x2   :  { %10370 = sst [smem:[#allocation33_spill]] %s10351_s2 }
   0x3   :  { %10371 = sst [smem:[#allocation34_spill]] %s10352_s3 }
   0x4   :  { %10372 = sst [smem:[#allocation35_spill]] %s10354_s5 }
   0x5   :  { %10373 = sst [smem:[#allocation36_spill]] %s10361_s12 }
   0x6   :  { %17 = vsyncpa [#allocation3], 0 }
   0x7   :  { %19 = vsyncpa [#allocation3 + $0x1], 0 }
   0x8   :  { %20 = vsyncpa [#allocation6], 0 }
   0x9   :  { %21 = vsyncpa [#allocation9], 0 }
   0xa   :  { %22 = vsyncpa [#allocation12], 0 }
   0xb   :  { %23 = vsyncpa [#allocation15], 0 }
   0xc   :  { %24 = vsyncpa [#allocation18], 0 }
   0xd   :  { %25 = vsyncpa [#allocation21], 0 }
   0xe   :  { %26 = vsyncpa [#allocation4], 0 }
   0xf   :  { %28 = vsyncpa [#allocation4 + $0x1], 0  ;;  %s9473_s21 = smov 0   ;;  %s9475_s22 = smov 0  }
  0x10   :  { %s9477_s23 = smov 0   ;;  %s9479_s24 = smov 0  }
  0x11 LB: > { %s9385_s25 = smov [#allocation5]   ;;  %s9494_s27 = sadd.s32 4294967295, %s9383_s24   ;;  %s9383_s24 = sphi %s9479_s24, %s10412_s24   ;;  %s9379_s23 = sphi %s9477_s23, %s10411_s23   ;;  %s9375_s22 = sphi %s9475_s22, %s10410_s22   ;;  %s9371_s21 = sphi %s9473_s21, %s10409_s21  }
  0x12   : > { %s335_s26 = sshll.u32 %s9385_s25, 4  ;;  %p6440_p0 = scmp.ge.s32.totalorder %s9383_s24, 1  ;;  %s9499_s26 = int_to_ptr.vmem [resolvable:$true] %s335_s26 }
  0x13   : > { %p10364_p1 = scmp.eq.s32.totalorder %s9494_s27, 0  ;;  %p322_p2 = scmp.lt.s32.totalorder %s9383_s24, 3 }
  0x14   : > { %s9386_s29 = smov [#allocation8]   ;;  %s9387_s14 = smov [#allocation11]  }
  0x15   : > { %p9501_p3 = pnand %p6440_p0, %p322_p2  ;;  %s356_s30 = sshll.u32 %s9386_s29, 4  ;;  %s9508_s30 = int_to_ptr.vmem [resolvable:$true] %s356_s30 }
  0x16   : > { %s383_s15 = sshll.u32 %s9387_s14, 4  ;;  %s10377_s1 = sld [smem:[#allocation32_spill]]  ;;  %s9516_s15 = int_to_ptr.vmem [resolvable:$true] %s383_s15 }
  0x17   : > { %s10374_s28 = scalar_select %p9501_p3, 1, 0 }
  0x18   : > { %p8799_p5 = pneg %p9501_p3 }
  0x19   : > { %10375 = sst [smem:[#allocation31_spill]] %s10374_s28 }
  0x1a   : > { %p9512_p6 = pnand %p8799_p5, %p10364_p1 }
  0x1c   : > { %s8955_s18 = scalar_lea.hbm %s10377_s1, 48  ;;  %p9526_p8 = pneg %p9512_p6 }
  0x1d   : > { %p8956_p7 = scmp.ne.s32.totalorder %s10377_s1, %s8955_s18  ;;  %p8962_p11 = scmp.lt.u32.totalorder %s8955_s18, %s10377_s1 }
  0x1f   : > { %p8958_p9 = pnand %p9526_p8, %p8956_p7 }
  0x21   : > { %p8959_p10 = pneg %p8958_p9 }
  0x23   : > { %p8964_p12 = pnand %p8962_p11, %p8959_p10 }
  0x25   : > { %8967 = shalt.err (!%p8964_p12)
}
  0x26   : > { %s8968_s16 = scalar_lea.vmem %s9499_s26, 48  ;;  %s8975_s17 = scalar_lea.vmem %s9499_s26, 64 }
  0x27   : > { %p8969_p13 = scmp.ne.s32.totalorder %s9499_s26, %s8968_s16  ;;  %p8976_p5 = scmp.lt.s32.totalorder %s9499_s26, %s9499_s26 }
  0x28   : > { %p8977_p7 = scmp.lt.s32.totalorder %s8975_s17, %s8968_s16 }
  0x29   : > { %p8971_p0 = pnand %p8969_p13, %p9526_p8 }
  0x2a   : > { %p8978_p9 = por %p8977_p7, %p8976_p5 }
  0x2b   : > { %p8972_p2 = pneg %p8971_p0 }
  0x2d   : > { %p8979_p4 = pnand %p8978_p9, %p8972_p2 }
  0x2f   : > { %8982 = shalt.err (!%p8979_p4)
}
  0x30   : > { %8802 = dma.hbm_to_vmem [thread:$0]  (!%p9512_p6), %s10377_s1, 48, %s9499_s26, [#allocation6]  }
  0x31   : > { %s10379_s3 = sld [smem:[#allocation34_spill]] }
  0x37   : > { %s8983_s14 = scalar_lea.hbm %s10379_s3, 55296 }
  0x38   : > { %p8984_p10 = scmp.ne.s32.totalorder %s10379_s3, %s8983_s14  ;;  %p8990_p4 = scmp.lt.u32.totalorder %s8983_s14, %s10379_s3 }
  0x3a   : > { %p8986_p11 = pnand %p8984_p10, %p9526_p8 }
  0x3c   : > { %p8987_p12 = pneg %p8986_p11 }
  0x3e   : > { %p8992_p13 = pnand %p8990_p4, %p8987_p12 }
  0x40   : > { %8995 = shalt.err (!%p8992_p13)
}
  0x41   : > { %s8996_s26 = scalar_lea.vmem %s9508_s30, 55296  ;;  %p9004_p7 = scmp.lt.s32.totalorder %s9508_s30, %s9508_s30 }
  0x42   : > { %p8997_p0 = scmp.ne.s32.totalorder %s9508_s30, %s8996_s26  ;;  %p9005_p9 = scmp.lt.s32.totalorder %s8996_s26, %s8996_s26 }
  0x44   : > { %p8999_p2 = pnand %p8997_p0, %p9526_p8  ;;  %p9006_p10 = por %p9005_p9, %p9004_p7 }
  0x46   : > { %p9000_p5 = pneg %p8999_p2 }
  0x48   : > { %p9007_p11 = pnand %p9006_p10, %p9000_p5 }
  0x4a   : > { %9010 = shalt.err (!%p9007_p11)
}
  0x4b   : > { %s9388_s12 = smov 1152   ;;  %s9389_s28 = smov 72  }
  0x4c   : > { %8808 = dma.hbm_to_vmem [thread:$0]  (!%p9512_p6), %s10379_s3, 55296, %s9508_s30, [#allocation9], %s9388_s12, %s9388_s12, %s9389_s28  }
  0x4d   : > { %s10380_s5 = sld [smem:[#allocation35_spill]] }
  0x53   : > { %s9011_s14 = scalar_lea.hbm %s10380_s5, 48 }
  0x54   : > { %p9012_p12 = scmp.ne.s32.totalorder %s10380_s5, %s9011_s14  ;;  %p9018_p0 = scmp.lt.u32.totalorder %s9011_s14, %s10380_s5 }
  0x56   : > { %p9014_p4 = pnand %p9012_p12, %p9526_p8 }
  0x58   : > { %p9015_p13 = pneg %p9014_p4 }
  0x5a   : > { %p9020_p2 = pnand %p9018_p0, %p9015_p13 }
  0x5c   : > { %9023 = shalt.err (!%p9020_p2)
}
  0x5d   : > { %s9024_s30 = scalar_lea.vmem %s9516_s15, 48  ;;  %s9031_s12 = scalar_lea.vmem %s9516_s15, 64 }
  0x5e   : > { %p9025_p5 = scmp.ne.s32.totalorder %s9516_s15, %s9024_s30  ;;  %p9032_p10 = scmp.lt.s32.totalorder %s9516_s15, %s9516_s15 }
  0x5f   : > { %p9033_p11 = scmp.lt.s32.totalorder %s9031_s12, %s9024_s30 }
  0x60   : > { %p9027_p7 = pnand %p9025_p5, %p9526_p8 }
  0x61   : > { %p9034_p12 = por %p9033_p11, %p9032_p10 }
  0x62   : > { %p9028_p9 = pneg %p9027_p7 }
  0x64   : > { %p9035_p4 = pnand %p9034_p12, %p9028_p9 }
  0x66   : > { %9038 = shalt.err (!%p9035_p4)
}
  0x67   : > { %8814 = dma.hbm_to_vmem [thread:$0]  (!%p9512_p6), %s10380_s5, 48, %s9516_s15, [#allocation12]  }
  0x68   : > { %s9390_s18 = smov [#allocation14]   ;;  %s9391_s20 = smov [#allocation17]  }
  0x69   : > { %s405_s19 = sshll.u32 %s9390_s18, 4  ;;  %s429_s29 = sshll.u32 %s9391_s20, 4  ;;  %s406_s19 = int_to_ptr.vmem [resolvable:$true] %s405_s19  ;;  %s430_s29 = int_to_ptr.vmem [resolvable:$true] %s429_s29 }
  0x6a   : > { %s9039_s17 = scalar_lea.hbm %s10356_s7, 48 }
  0x6b   : > { %p9040_p13 = scmp.ne.s32.totalorder %s10356_s7, %s9039_s17  ;;  %p9046_p5 = scmp.lt.u32.totalorder %s9039_s17, %s10356_s7 }
  0x6d   : > { %p9042_p0 = pnand %p9040_p13, %p9526_p8 }
  0x6f   : > { %p9043_p2 = pneg %p9042_p0 }
  0x71   : > { %p9048_p7 = pnand %p9046_p5, %p9043_p2 }
  0x73   : > { %9051 = shalt.err (!%p9048_p7)
}
  0x74   : > { %s9052_s15 = scalar_lea.vmem %s406_s19, 48  ;;  %s9059_s28 = scalar_lea.vmem %s406_s19, 64 }
  0x75   : > { %p9053_p9 = scmp.ne.s32.totalorder %s406_s19, %s9052_s15  ;;  %p9060_p12 = scmp.lt.s32.totalorder %s406_s19, %s406_s19 }
  0x76   : > { %p9061_p4 = scmp.lt.s32.totalorder %s9059_s28, %s9052_s15 }
  0x77   : > { %p9055_p10 = pnand %p9053_p9, %p9526_p8 }
  0x78   : > { %p9062_p1 = por %p9061_p4, %p9060_p12 }
  0x79   : > { %p9056_p11 = pneg %p9055_p10 }
  0x7b   : > { %p9063_p3 = pnand %p9062_p1, %p9056_p11 }
  0x7d   : > { %9066 = shalt.err (!%p9063_p3)
}
  0x7e   : > { %8820 = dma.hbm_to_vmem [thread:$0]  (!%p9512_p6), %s10356_s7, 48, %s406_s19, [#allocation15]  }
  0x7f   : > { %s9067_s17 = scalar_lea.hbm %s10358_s9, 192 }
  0x80   : > { %p9068_p13 = scmp.ne.s32.totalorder %s10358_s9, %s9067_s17  ;;  %p9074_p3 = scmp.lt.u32.totalorder %s9067_s17, %s10358_s9 }
  0x82   : > { %p9070_p0 = pnand %p9068_p13, %p9526_p8 }
  0x84   : > { %p9071_p1 = pneg %p9070_p0 }
  0x86   : > { %p9076_p2 = pnand %p9074_p3, %p9071_p1 }
  0x88   : > { %9079 = shalt.err (!%p9076_p2)
}
  0x89   : > { %s9080_s15 = scalar_lea.vmem %s430_s29, 192  ;;  %p9088_p10 = scmp.lt.s32.totalorder %s430_s29, %s430_s29 }
  0x8a   : > { %p9081_p5 = scmp.ne.s32.totalorder %s430_s29, %s9080_s15  ;;  %p9089_p11 = scmp.lt.s32.totalorder %s9080_s15, %s9080_s15 }
  0x8c   : > { %p9083_p7 = pnand %p9081_p5, %p9526_p8  ;;  %p9090_p12 = por %p9089_p11, %p9088_p10 }
  0x8e   : > { %p9084_p9 = pneg %p9083_p7 }
  0x90   : > { %p9091_p4 = pnand %p9090_p12, %p9084_p9 }
  0x92   : > { %9094 = shalt.err (!%p9091_p4)
}
  0x93   : > { %8826 = dma.hbm_to_vmem [thread:$0]  (!%p9512_p6), %s10358_s9, 192, %s430_s29, [#allocation18]  }
  0x94   : > { %s9392_s18 = smov [#allocation7]   ;;  %s9393_s14 = smov [#allocation10]  }
  0x95   : > { %s346_s20 = sshll.u32 %s9392_s18, 4  ;;  %s369_s16 = sshll.u32 %s9393_s14, 4  ;;  %s347_s20 = int_to_ptr.vmem [resolvable:$true] %s346_s20  ;;  %s370_s16 = int_to_ptr.vmem [resolvable:$true] %s369_s16 }
  0x96   : > { %s10381_s2 = sld [smem:[#allocation33_spill]] }
  0x9c   : > { %s9095_s30 = scalar_lea.hbm %s10381_s2, 48 }
  0x9d   : > { %p9096_p13 = scmp.ne.s32.totalorder %s10381_s2, %s9095_s30  ;;  %p9102_p3 = scmp.lt.u32.totalorder %s9095_s30, %s10381_s2 }
  0x9f   : > { %p9098_p0 = pnand %p9096_p13, %p9526_p8 }
  0xa1   : > { %p9099_p1 = pneg %p9098_p0 }
  0xa3   : > { %p9104_p2 = pnand %p9102_p3, %p9099_p1 }
  0xa5   : > { %9107 = shalt.err (!%p9104_p2)
}
  0xa6   : > { %s9108_s29 = scalar_lea.vmem %s347_s20, 48  ;;  %s9115_s28 = scalar_lea.vmem %s347_s20, 64 }
  0xa7   : > { %p9109_p5 = scmp.ne.s32.totalorder %s347_s20, %s9108_s29  ;;  %p9116_p10 = scmp.lt.s32.totalorder %s347_s20, %s347_s20 }
  0xa8   : > { %p9117_p11 = scmp.lt.s32.totalorder %s9115_s28, %s9108_s29 }
  0xa9   : > { %p9111_p7 = pnand %p9109_p5, %p9526_p8 }
  0xaa   : > { %p9118_p12 = por %p9117_p11, %p9116_p10 }
  0xab   : > { %p9112_p9 = pneg %p9111_p7 }
  0xad   : > { %p9119_p4 = pnand %p9118_p12, %p9112_p9 }
  0xaf   : > { %9122 = shalt.err (!%p9119_p4)
}
  0xb0   : > { %8805 = dma.hbm_to_vmem [thread:$0]  (!%p9512_p6), %s10381_s2, 48, %s347_s20, [#allocation6]  }
  0xb1   : > { %s9123_s30 = scalar_lea.hbm %s10353_s4, 18432 }
  0xb2   : > { %p9124_p13 = scmp.ne.s32.totalorder %s10353_s4, %s9123_s30  ;;  %p9130_p3 = scmp.lt.u32.totalorder %s9123_s30, %s10353_s4 }
  0xb4   : > { %p9126_p0 = pnand %p9124_p13, %p9526_p8 }
  0xb6   : > { %p9127_p1 = pneg %p9126_p0 }
  0xb8   : > { %p9132_p2 = pnand %p9130_p3, %p9127_p1 }
  0xba   : > { %9135 = shalt.err (!%p9132_p2)
}
  0xbb   : > { %s9136_s29 = scalar_lea.vmem %s370_s16, 18432  ;;  %p9144_p10 = scmp.lt.s32.totalorder %s370_s16, %s370_s16 }
  0xbc   : > { %p9137_p5 = scmp.ne.s32.totalorder %s370_s16, %s9136_s29  ;;  %p9145_p11 = scmp.lt.s32.totalorder %s9136_s29, %s9136_s29 }
  0xbe   : > { %p9139_p7 = pnand %p9137_p5, %p9526_p8  ;;  %p9146_p12 = por %p9145_p11, %p9144_p10 }
  0xc0   : > { %p9140_p9 = pneg %p9139_p7 }
  0xc2   : > { %p9147_p4 = pnand %p9146_p12, %p9140_p9 }
  0xc4   : > { %9150 = shalt.err (!%p9147_p4)
}
  0xc5   : > { %s10366_s20 = smov 384   ;;  %s10367_s28 = smov 24  }
  0xc6   : > { %8811 = dma.hbm_to_vmem [thread:$0]  (!%p9512_p6), %s10353_s4, 18432, %s370_s16, [#allocation9], %s10366_s20, %s10366_s20, %s10367_s28  }
  0xc7   : > { %s9396_s17 = smov [#allocation13]   ;;  %s9397_s30 = smov [#allocation16]  }
  0xc8   : > { %s394_s26 = sshll.u32 %s9396_s17, 4  ;;  %s415_s12 = sshll.u32 %s9397_s30, 4  ;;  %s395_s26 = int_to_ptr.vmem [resolvable:$true] %s394_s26  ;;  %s416_s12 = int_to_ptr.vmem [resolvable:$true] %s415_s12 }
  0xc9   : > { %s9151_s19 = scalar_lea.hbm %s10355_s6, 48 }
  0xca   : > { %p9152_p13 = scmp.ne.s32.totalorder %s10355_s6, %s9151_s19  ;;  %p9158_p3 = scmp.lt.u32.totalorder %s9151_s19, %s10355_s6 }
  0xcc   : > { %p9154_p0 = pnand %p9152_p13, %p9526_p8 }
  0xce   : > { %p9155_p1 = pneg %p9154_p0 }
  0xd0   : > { %p9160_p2 = pnand %p9158_p3, %p9155_p1 }
  0xd2   : > { %9163 = shalt.err (!%p9160_p2)
}
  0xd3   : > { %s9164_s16 = scalar_lea.vmem %s395_s26, 48  ;;  %s9171_s18 = scalar_lea.vmem %s395_s26, 64 }
  0xd4   : > { %p9165_p5 = scmp.ne.s32.totalorder %s395_s26, %s9164_s16  ;;  %p9172_p10 = scmp.lt.s32.totalorder %s395_s26, %s395_s26 }
  0xd5   : > { %p9173_p11 = scmp.lt.s32.totalorder %s9171_s18, %s9164_s16 }
  0xd6   : > { %p9167_p7 = pnand %p9165_p5, %p9526_p8 }
  0xd7   : > { %p9174_p12 = por %p9173_p11, %p9172_p10 }
  0xd8   : > { %p9168_p9 = pneg %p9167_p7 }
  0xda   : > { %p9175_p4 = pnand %p9174_p12, %p9168_p9 }
  0xdc   : > { %9178 = shalt.err (!%p9175_p4)
}
  0xdd   : > { %8817 = dma.hbm_to_vmem [thread:$0]  (!%p9512_p6), %s10355_s6, 48, %s395_s26, [#allocation12]  }
  0xde   : > { %s9179_s17 = scalar_lea.hbm %s10357_s8, 73728 }
  0xdf   : > { %p9180_p13 = scmp.ne.s32.totalorder %s10357_s8, %s9179_s17  ;;  %p9186_p3 = scmp.lt.u32.totalorder %s9179_s17, %s10357_s8 }
  0xe1   : > { %p9182_p0 = pnand %p9180_p13, %p9526_p8 }
  0xe3   : > { %p9183_p1 = pneg %p9182_p0 }
  0xe5   : > { %p9188_p2 = pnand %p9186_p3, %p9183_p1 }
  0xe7   : > { %9191 = shalt.err (!%p9188_p2)
}
  0xe8   : > { %s9192_s29 = scalar_lea.vmem %s416_s12, 73728  ;;  %p9200_p10 = scmp.lt.s32.totalorder %s416_s12, %s416_s12 }
  0xe9   : > { %p9193_p5 = scmp.ne.s32.totalorder %s416_s12, %s9192_s29  ;;  %p9201_p11 = scmp.lt.s32.totalorder %s9192_s29, %s9192_s29 }
  0xeb   : > { %p9195_p7 = pnand %p9193_p5, %p9526_p8  ;;  %p9202_p12 = por %p9201_p11, %p9200_p10 }
  0xed   : > { %p9196_p9 = pneg %p9195_p7 }
  0xef   : > { %p9203_p4 = pnand %p9202_p12, %p9196_p9 }
  0xf1   : > { %9206 = shalt.err (!%p9203_p4)
}
  0xf2   : > { %s9398_s26 = smov 1536   ;;  %s9399_s16 = smov 96  }
  0xf3   : > { %8823 = dma.hbm_to_vmem [thread:$0]  (!%p9512_p6), %s10357_s8, 73728, %s416_s12, [#allocation15], %s9398_s26, %s9398_s26, %s9399_s16  }
  0xf4   : > { %s9400_s14 = smov [#allocation19]   ;;  %s9401_s5 = smov [#allocation20]  }
  0xf5   : > { %s439_s3 = sshll.u32 %s9400_s14, 4  ;;  %s453_s17 = sshll.u32 %s9401_s5, 4  ;;  %s440_s3 = int_to_ptr.vmem [resolvable:$true] %s439_s3  ;;  %s454_s17 = int_to_ptr.vmem [resolvable:$true] %s453_s17 }
  0xf6   : > { %s9207_s15 = scalar_lea.hbm %s10359_s10, 73728 }
  0xf7   : > { %p9208_p13 = scmp.ne.s32.totalorder %s10359_s10, %s9207_s15  ;;  %p9214_p3 = scmp.lt.u32.totalorder %s9207_s15, %s10359_s10 }
  0xf9   : > { %p9210_p0 = pnand %p9208_p13, %p9526_p8 }
  0xfb   : > { %p9211_p1 = pneg %p9210_p0 }
  0xfd   : > { %p9216_p2 = pnand %p9214_p3, %p9211_p1 }
  0xff   : > { %9219 = shalt.err (!%p9216_p2)
}
 0x100   : > { %s9220_s12 = scalar_lea.vmem %s440_s3, 73728  ;;  %p9228_p10 = scmp.lt.s32.totalorder %s440_s3, %s440_s3 }
 0x101   : > { %p9221_p5 = scmp.ne.s32.totalorder %s440_s3, %s9220_s12  ;;  %p9229_p11 = scmp.lt.s32.totalorder %s9220_s12, %s9220_s12 }
 0x103   : > { %p9223_p7 = pnand %p9221_p5, %p9526_p8  ;;  %p9230_p12 = por %p9229_p11, %p9228_p10 }
 0x105   : > { %p9224_p9 = pneg %p9223_p7 }
 0x107   : > { %p9231_p4 = pnand %p9230_p12, %p9224_p9 }
 0x109   : > { %9234 = shalt.err (!%p9231_p4)
}
 0x10a   : > { %s10382_s26 = smov 24   ;;  %s10383_s16 = smov 384  }
 0x10b   : > { %8829 = dma.hbm_to_vmem [thread:$0]  (!%p9512_p6), %s10359_s10, 73728, %s440_s3, [#allocation18], %s10383_s16, %s10383_s16, %s10382_s26  }
 0x10c   : > { %s9235_s14 = scalar_lea.hbm %s10360_s11, 48 }
 0x10d   : > { %p9236_p13 = scmp.ne.s32.totalorder %s10360_s11, %s9235_s14  ;;  %p9242_p3 = scmp.lt.u32.totalorder %s9235_s14, %s10360_s11 }
 0x10f   : > { %p9238_p0 = pnand %p9236_p13, %p9526_p8 }
 0x111   : > { %p9239_p1 = pneg %p9238_p0 }
 0x113   : > { %p9244_p2 = pnand %p9242_p3, %p9239_p1 }
 0x115   : > { %9247 = shalt.err (!%p9244_p2)
}
 0x116   : > { %s9248_s19 = scalar_lea.vmem %s454_s17, 48  ;;  %s9255_s3 = scalar_lea.vmem %s454_s17, 64 }
 0x117   : > { %p9249_p5 = scmp.ne.s32.totalorder %s454_s17, %s9248_s19  ;;  %p9256_p10 = scmp.lt.s32.totalorder %s454_s17, %s454_s17 }
 0x118   : > { %p9257_p11 = scmp.lt.s32.totalorder %s9255_s3, %s9248_s19 }
 0x119   : > { %p9251_p7 = pnand %p9249_p5, %p9526_p8 }
 0x11a   : > { %p9258_p12 = por %p9257_p11, %p9256_p10 }
 0x11b   : > { %p9252_p9 = pneg %p9251_p7 }
 0x11d   : > { %p9259_p4 = pnand %p9258_p12, %p9252_p9 }
 0x11f   : > { %9262 = shalt.err (!%p9259_p4)
}
 0x120   : > { %8832 = dma.hbm_to_vmem [thread:$0]  (!%p9512_p6), %s10360_s11, 48, %s454_s17, [#allocation21]  }
 0x121   : > { %s6439_s25 = sadd.s32 4294967294, %s9383_s24   ;;  %s9747_s13 = sadd.s32 1, %s9383_s24  }
 0x122   : > { %s41_s26 = sadd.s32 1, %s9379_s23  ;;  %s38_s16 = ssub.s32 %s9383_s24, %s9747_s13 }
 0x123   : > { %p48_p8 = scmp.ne.s32.totalorder %s9379_s23, %s9375_s22  ;;  %p39_p13 = scmp.eq.s32.totalorder %s38_s16, 0 }
 0x124   : > { %p49_p0 = scmp.eq.s32.totalorder %s9383_s24, 0  ;;  %p54_p1 = scmp.ne.s32.totalorder %s9375_s22, %s9371_s21 }
 0x125   : > { %p309_p3 = scmp.eq.s32.totalorder %s9494_s27, 1  ;;  %p10384_p5 = scmp.eq.s32.totalorder %s9494_s27, 0 }
 0x126   : > { %s9759_s20 = scalar_select %p39_p13, %s9379_s23, %s41_s26  }
 0x127   : > { %p50_p2 = por %p49_p0, %p48_p8  ;;  %p9763_p7 = por %p10384_p5, %p54_p1 }
 0x128   : > { %p9767_p6 = por %p309_p3, %p48_p8  ;;  %p315_p9 = scmp.eq.s32.totalorder %s6439_s25, 1 }
 0x129   : > { %p8852_p10 = scmp.lt.s32.totalorder %s9383_s24, 2  ;;  %s464_s18 = sand.u32 1, %s9379_s23  }
 0x12a   : > { %s10386_s17 = scalar_select %p9767_p6, 1, 0 }
 0x12b   : > { %p9773_p11 = por %p315_p9, %p54_p1  ;;  %s8747_s14 = smul.u32 24, %s464_s18 }
 0x12c   : > { %p9777_p12 = pnand %p8852_p10, %p50_p2  ;;  %s8748_s30 = smul.u32 384, %s9383_s24 }
 0x12d   : > { %s10387_s2 = scalar_select %p9773_p11, 1, 0 }
 0x12e   : > { %s9785_s19 = scalar_lea.hbm %s10349_s0, %s8748_s30  ;;  %s468_s3 = scalar_lea.vmem [#allocation2], %s8747_s14 }
 0x12f   : > { %s476_s29 = sshll.u32 %s468_s3, 4  ;;  %s465_s12 = scalar_lea.sflag [#allocation3], %s464_s18  ;;  %s9787_s29 = int_to_ptr.vmem [resolvable:$true] %s476_s29 }
 0x130   : > { %s9263_s25 = scalar_lea.hbm %s9785_s19, 384  ;;  %p9265_p8 = pneg %p9777_p12 }
 0x131   : > { %p9264_p4 = scmp.ne.s32.totalorder %s9785_s19, %s9263_s25  ;;  %s9268_s30 = scalar_lea.hbm %s10349_s0, 768 }
 0x132   : > { %p9269_p1 = scmp.lt.u32.totalorder %s9785_s19, %s10349_s0  ;;  %p9270_p3 = scmp.lt.u32.totalorder %s9268_s30, %s9263_s25 }
 0x133   : > { %p9266_p13 = pnand %p9265_p8, %p9264_p4  ;;  %p9272_p5 = scmp.lt.u32.totalorder %s9263_s25, %s9785_s19 }
 0x134   : > { %p9271_p2 = por %p9270_p3, %p9269_p1 }
 0x135   : > { %p9267_p0 = pneg %p9266_p13 }
 0x136   : > { %p9273_p9 = por %p9272_p5, %p9271_p2 }
 0x138   : > { %p9274_p10 = pnand %p9273_p9, %p9267_p0 }
 0x13a   : > { %9277 = shalt.err (!%p9274_p10)
}
 0x13b   : > { %s9278_s18 = scalar_lea.vmem %s9787_s29, 384  ;;  %s9402_s14 = smov [#allocation2]  }
 0x13c   : > { %p9279_p4 = scmp.ne.s32.totalorder %s9787_s29, %s9278_s18  ;;  %s9283_s3 = sshll.u32 %s9402_s14, 4  ;;  %s9284_s3 = int_to_ptr.vmem [resolvable:$false] %s9283_s3 }
 0x13d   : > { %s9285_s26 = scalar_lea.vmem %s9284_s3, 768  ;;  %p9286_p6 = scmp.lt.s32.totalorder %s9787_s29, %s9284_s3 }
 0x13e   : > { %p9281_p13 = pnand %p9279_p4, %p9265_p8  ;;  %p9287_p1 = scmp.lt.s32.totalorder %s9285_s26, %s9278_s18 }
 0x140   : > { %p9282_p11 = pneg %p9281_p13  ;;  %p9288_p3 = por %p9287_p1, %p9286_p6 }
 0x142   : > { %p9289_p2 = pnand %p9288_p3, %p9282_p11 }
 0x144   : > { %9292 = shalt.err (!%p9289_p2)
}
 0x145   : > { %8836 = dma.hbm_to_vmem [thread:$0]  (!%p9777_p12), %s9785_s19, 384, %s9787_s29, %s465_s12  }
 0x146   : > { %s10389_s25 = sld [smem:[#allocation31_spill]] }
 0x14c   : > { %p10390_p0 = scmp.ne.s32.totalorder %s10389_s25, 0 }
 0x14d   : > { %s9817_s16 = sand.u32 (!%p10390_p0), 1, %s9375_s22  }
 0x14e   : > { %485 = sbr.rel (%p10390_p0) target bundleno = 5364 (0x14f4), region = 68  ;;  %s488_s1 = scalar_lea.sflag (!%p10390_p0), [#allocation3], %s9817_s16 }
 0x14f   : > { %s8749_s30 = smul.u32 (!%p10390_p0), 24, %s9817_s16 }
 0x151   : > { %s9823_s15 = scalar_lea.vmem (!%p10390_p0), [#allocation2], %s8749_s30 }
 0x155   : > { %9338 = dma.done.wait (%p9763_p7), %s488_s1, 384  }
 0x156   : > { %9340 = vsyncadd (%p9763_p7), %s488_s1, 4294966912  ;;  %p10391_p6 = scmp.eq.s32.totalorder %s9494_s27, 0 }
 0x158   : > { %9342 = dma.done.wait (%p10391_p6), [#allocation6], 96   ;;  %p10392_p11 = pmov %p10391_p6 }
 0x159   : > { %p10393_p12 = pmov %p10391_p6 }
 0x15a   : > { %9344 = vsyncadd (%p10392_p11), [#allocation6], 4294967200 }
 0x15b   : > { %9346 = dma.done.wait (%p10393_p12), [#allocation9], 73728   ;;  %p10394_p8 = pmov %p10391_p6 }
 0x15c   : > { %p10395_p5 = pmov %p10391_p6 }
 0x15d   : > { %9348 = vsyncadd (%p10394_p8), [#allocation9], 4294893568 }
 0x15e   : > { %9350 = dma.done.wait (%p10395_p5), [#allocation12], 96   ;;  %p10396_p9 = pmov %p10395_p5 }
 0x15f   : > { %p10397_p7 = pmov %p10395_p5 }
 0x160   : > { %9352 = vsyncadd (%p10396_p9), [#allocation12], 4294967200 }
 0x161   : > { %9354 = dma.done.wait (%p10397_p7), [#allocation15], 73776   ;;  %p10398_p10 = pmov %p10395_p5 }
 0x162   : > { %p10399_p4 = pmov %p10395_p5 }
 0x163   : > { %9356 = vsyncadd (%p10398_p10), [#allocation15], 4294893520 }
 0x164   : > { %9358 = dma.done.wait (%p10399_p4), [#allocation18], 73920   ;;  %p10400_p13 = pmov %p10399_p4 }
 0x165   : > { %p10401_p1 = pmov %p10399_p4 }
 0x166   : > { %9360 = vsyncadd (%p10400_p13), [#allocation18], 4294893376 }
 0x167   : > { %9362 = dma.done.wait (%p10401_p1), [#allocation21], 48   ;;  %p10402_p3 = pmov %p10401_p1 }
 0x168   : > { %v9854_v0 = vld [vmem:[%s9823_s15] sm:$0xff]  ;;  %v9857_v1 = vld [vmem:[%s9823_s15 + $0x8] sm:$0xff]  ;;  %v9860_v2 = vld [vmem:[%s9823_s15 + $0x10] sm:$0xff]  ;;  %vm9405_vm0 = vmmov 0   ;;  %vm1786_vm1 = vcmask 523264   ;;  %s9406_s28 = smov 64  }
 0x169   : > { %9364 = vsyncadd (%p10402_p3), [#allocation21], 4294967248  ;;  %v579_v3 = vadd.f32 %v9857_v1, %v9854_v0  ;;  %v642_v5 = vld [vmem:[#allocation8 + $0x8] sm:$0xff]  ;;  %v651_v6 = vld [vmem:[#allocation8 + $0x50] sm:$0xff]  ;;  %vm1865_vm3 = vcmask 64512   ;;  %s575_s5 = scalar_lea.vmem [#allocation22], %s8749_s30 }
 0x16a   : > { %v641_v7 = vld [vmem:[#allocation8] sm:$0xff]  ;;  %v6955_v8 = vpack.c.bf16 %v651_v6, %v642_v5  ;;  %v650_v9 = vld [vmem:[#allocation8 + $0x48] sm:$0xff]  ;;  %v660_v10 = vld [vmem:[#allocation8 + $0x98] sm:$0xff]  ;;  %s8750_s19 = smul.u32 384, %s9494_s27  ;;  %s6264_s29 = sshll.u32 %s575_s5, 4  ;;  %s10307_s29 = int_to_ptr.vmem [resolvable:$true] %s6264_s29 }
 0x16b   : > { %v580_v4 = vadd.f32 %v579_v3, %v9860_v2  ;;  %v669_v11 = vld [vmem:[#allocation8 + $0xe0] sm:$0xff]  ;;  %v6957_v12 = vpack.c.bf16 %v650_v9, %v641_v7  ;;  %v659_v14 = vld [vmem:[#allocation8 + $0x90] sm:$0xff]  ;;  %v668_v15 = vld [vmem:[#allocation8 + $0xd8] sm:$0xff]  ;;  %s10405_s14 = sld [smem:[#allocation36_spill]]  ;;  %s6250_s27 = scalar_lea.sflag [#allocation4], %s9817_s16 }
 0x16c   : > { %v6959_v13 = vpack.c.bf16 %v669_v11, %v660_v10  ;;  %v678_v16 = vld [vmem:[#allocation8 + $0x128] sm:$0xff]  ;;  %6956 = vmatprep.subr.bf16.mxu0 %v6955_v8  ;;  %v687_v17 = vld [vmem:[#allocation8 + $0x170] sm:$0xff]  ;;  %v6961_v18 = vpack.c.bf16 %v668_v15, %v659_v14  ;;  %v677_v20 = vld [vmem:[#allocation8 + $0x120] sm:$0xff]  ;;  %s9293_s26 = scalar_lea.vmem %s10307_s29, 384  ;;  %p10406_p0 = scmp.ne.s32.totalorder %s10386_s17, 0 }
 0x16d   : > { %581 = vadd.xlane.f32.xlu0 %v580_v4  ;;  %6958 = vmatpush1.bf16.msra.mxu0 %v6957_v12  ;;  %v6963_v19 = vpack.c.bf16 %v687_v17, %v678_v16  ;;  %v686_v21 = vld [vmem:[#allocation8 + $0x168] sm:$0xff]  ;;  %v696_v22 = vld [vmem:[#allocation8 + $0x1b8] sm:$0xff]  ;;  %v705_v23 = vld [vmem:[#allocation8 + $0x200] sm:$0xff]  ;;  %p9294_p2 = scmp.ne.s32.totalorder %s10307_s29, %s9293_s26  ;;  %s9407_s25 = smov [#allocation22]  }
 0x16e   : > { %6960 = vmatprep.subr.bf16.mxu0 %v6959_v13  ;;  %v6965_v24 = vpack.c.bf16 %v686_v21, %v677_v20  ;;  %v6967_v25 = vpack.c.bf16 %v705_v23, %v696_v22  ;;  %v695_v26 = vld [vmem:[#allocation8 + $0x1b0] sm:$0xff]  ;;  %v704_v27 = vld [vmem:[#allocation8 + $0x1f8] sm:$0xff]  ;;  %v714_v28 = vld [vmem:[#allocation8 + $0x248] sm:$0xff]  ;;  %s9297_s30 = sshll.u32 %s9407_s25, 4  ;;  %s9298_s30 = int_to_ptr.vmem [resolvable:$false] %s9297_s30 }
 0x16f   : > { %v723_v29 = vld [vmem:[#allocation8 + $0x290] sm:$0xff]  ;;  %v932_v30 = vld [vmem:[#allocation8 + $0x918] sm:$0xff]  ;;  %v941_v31 = vld [vmem:[#allocation8 + $0x960] sm:$0xff]  ;;  %v6969_v32 = vpack.c.bf16 %v704_v27, %v695_v26  ;;  %p9295_p6 = pnand %p9294_p2, %p10406_p0  ;;  %s9299_s1 = scalar_lea.vmem %s9298_s30, 768 }
 0x170   : > { %v713_v33 = vld [vmem:[#allocation8 + $0x240] sm:$0xff]  ;;  %v7115_v34 = vpack.c.bf16 %v941_v31, %v932_v30  ;;  %v931_v35 = vld [vmem:[#allocation8 + $0x910] sm:$0xff]  ;;  %v940_v36 = vld [vmem:[#allocation8 + $0x958] sm:$0xff]  ;;  %v6971_v37 = vpack.c.bf16 %v723_v29, %v714_v28  ;;  %p9300_p12 = scmp.lt.s32.totalorder %s10307_s29, %s9298_s30  ;;  %p9301_p8 = scmp.lt.s32.totalorder %s9299_s1, %s9293_s26 }
 0x171   : > { %6962 = vmatpush1.bf16.msra.mxu0 %v6961_v18  ;;  %v722_v38 = vld [vmem:[#allocation8 + $0x288] sm:$0xff]  ;;  %v7117_v39 = vpack.c.bf16 %v940_v36, %v931_v35  ;;  %v959_v41 = vld [vmem:[#allocation8 + $0x9f0] sm:$0xff]  ;;  %v732_v42 = vld [vmem:[#allocation8 + $0x2d8] sm:$0xff]  ;;  %s10305_s3 = scalar_lea.hbm %s10405_s14, %s8750_s19  ;;  %p9296_p11 = pneg %p9295_p6 }
 0x172   : > { %6964 = vmatprep.subr.bf16.mxu0 %v6963_v19  ;;  %v950_v40 = vld [vmem:[#allocation8 + $0x9a8] sm:$0xff]  ;;  %v741_v43 = vld [vmem:[#allocation8 + $0x320] sm:$0xff]  ;;  %7116 = vmatprep.subr.bf16.mxu1 %v7115_v34  ;;  %v6973_v47 = vpack.c.bf16 %v722_v38, %v713_v33  ;;  %v731_v48 = vld [vmem:[#allocation8 + $0x2d0] sm:$0xff]  ;;  %p9302_p5 = por %p9301_p8, %p9300_p12 }
 0x173   : > { %v7119_v44 = vpack.c.bf16 %v959_v41, %v950_v40  ;;  %v949_v45 = vld [vmem:[#allocation8 + $0x9a0] sm:$0xff]  ;;  %7118 = vmatpush1.bf16.msra.mxu1 %v7117_v39  ;;  %v958_v46 = vld [vmem:[#allocation8 + $0x9e8] sm:$0xff]  ;;  %v968_v50 = vld [vmem:[#allocation8 + $0xa38] sm:$0xff]  ;;  %v6975_v52 = vpack.c.bf16 %v741_v43, %v732_v42 }
 0x174   : > { %v7121_v49 = vpack.c.bf16 %v958_v46, %v949_v45  ;;  %v977_v51 = vld [vmem:[#allocation8 + $0xa80] sm:$0xff]  ;;  %v740_v53 = vld [vmem:[#allocation8 + $0x318] sm:$0xff]  ;;  %v967_v55 = vld [vmem:[#allocation8 + $0xa30] sm:$0xff]  ;;  %p9303_p9 = pnand %p9302_p5, %p9296_p11 }
 0x175   : > { %6966 = vmatpush1.bf16.msra.mxu0 %v6965_v24  ;;  %7120 = vmatprep.subr.bf16.mxu1 %v7119_v44  ;;  %v7123_v54 = vpack.c.bf16 %v977_v51, %v968_v50  ;;  %v976_v56 = vld [vmem:[#allocation8 + $0xa78] sm:$0xff]  ;;  %v750_v57 = vld [vmem:[#allocation8 + $0x368] sm:$0xff]  ;;  %v759_v58 = vld [vmem:[#allocation8 + $0x3b0] sm:$0xff]  ;;  %v6977_v60 = vpack.c.bf16 %v740_v53, %v731_v48 }
 0x176   : > { %6968 = vmatprep.subr.bf16.mxu0 %v6967_v25  ;;  %v7125_v59 = vpack.c.bf16 %v976_v56, %v967_v55  ;;  %v6979_v61 = vpack.c.bf16 %v759_v58, %v750_v57  ;;  %v749_v62 = vld [vmem:[#allocation8 + $0x360] sm:$0xff]  ;;  %v758_v63 = vld [vmem:[#allocation8 + $0x3a8] sm:$0xff]  ;;  %v768_v3 = vld [vmem:[#allocation8 + $0x3f8] sm:$0xff] }
 0x177   : > { %7122 = vmatpush1.bf16.msra.mxu1 %v7121_v49  ;;  %v777_v4 = vld [vmem:[#allocation8 + $0x440] sm:$0xff]  ;;  %v6981_v5 = vpack.c.bf16 %v758_v63, %v749_v62  ;;  %v767_v7 = vld [vmem:[#allocation8 + $0x3f0] sm:$0xff]  ;;  %v776_v8 = vld [vmem:[#allocation8 + $0x438] sm:$0xff] }
 0x178   : > { %7124 = vmatprep.subr.bf16.mxu1 %v7123_v54  ;;  %v6983_v6 = vpack.c.bf16 %v777_v4, %v768_v3  ;;  %v786_v9 = vld [vmem:[#allocation8 + $0x488] sm:$0xff]  ;;  %v795_v10 = vld [vmem:[#allocation8 + $0x4d0] sm:$0xff]  ;;  %v6985_v11 = vpack.c.bf16 %v776_v8, %v767_v7  ;;  %v785_v13 = vld [vmem:[#allocation8 + $0x480] sm:$0xff] }
 0x179   : > { %6970 = vmatpush1.bf16.msra.mxu0 %v6969_v32  ;;  %v6987_v12 = vpack.c.bf16 %v795_v10, %v786_v9  ;;  %v794_v14 = vld [vmem:[#allocation8 + $0x4c8] sm:$0xff]  ;;  %v804_v15 = vld [vmem:[#allocation8 + $0x518] sm:$0xff]  ;;  %v813_v16 = vld [vmem:[#allocation8 + $0x560] sm:$0xff] }
 0x17a   : > { %6972 = vmatprep.subr.bf16.mxu0 %v6971_v37  ;;  %v6989_v17 = vpack.c.bf16 %v794_v14, %v785_v13  ;;  %v6991_v18 = vpack.c.bf16 %v813_v16, %v804_v15  ;;  %v803_v19 = vld [vmem:[#allocation8 + $0x510] sm:$0xff]  ;;  %v812_v20 = vld [vmem:[#allocation8 + $0x558] sm:$0xff]  ;;  %v822_v21 = vld [vmem:[#allocation8 + $0x5a8] sm:$0xff] }
 0x17b   : > { %7126 = vmatpush1.bf16.msra.mxu1 %v7125_v59  ;;  %v831_v22 = vld [vmem:[#allocation8 + $0x5f0] sm:$0xff]  ;;  %v6993_v23 = vpack.c.bf16 %v812_v20, %v803_v19  ;;  %v821_v25 = vld [vmem:[#allocation8 + $0x5a0] sm:$0xff]  ;;  %v830_v26 = vld [vmem:[#allocation8 + $0x5e8] sm:$0xff] }
 0x17c   : > { %v6995_v24 = vpack.c.bf16 %v831_v22, %v822_v21  ;;  %v6997_v27 = vpack.c.bf16 %v830_v26, %v821_v25  ;;  %v995_v38 = vld [vmem:[#allocation8 + $0xb10] sm:$0xff]  ;;  %v849_v40 = vld [vmem:[#allocation8 + $0x680] sm:$0xff]  ;;  %v994_v42 = vld [vmem:[#allocation8 + $0xb08] sm:$0xff] }
 0x17d   : > { %6974 = vmatpush1.bf16.msra.mxu0 %v6973_v47  ;;  %v985_v41 = vld [vmem:[#allocation8 + $0xac0] sm:$0xff]  ;;  %v839_v43 = vld [vmem:[#allocation8 + $0x630] sm:$0xff]  ;;  %v848_v44 = vld [vmem:[#allocation8 + $0x678] sm:$0xff] }
 0x17e   : > { %6976 = vmatprep.subr.bf16.mxu0 %v6975_v52  ;;  %v7129_v45 = vpack.c.bf16 %v994_v42, %v985_v41  ;;  %v7001_v46 = vpack.c.bf16 %v848_v44, %v839_v43  ;;  %v1004_v47 = vld [vmem:[#allocation8 + $0xb58] sm:$0xff]  ;;  %v1013_v48 = vld [vmem:[#allocation8 + $0xba0] sm:$0xff]  ;;  %v858_v50 = vld [vmem:[#allocation8 + $0x6c8] sm:$0xff]  ;;  %v603_v43 = vlaneseq }
 0x17f   : > { %v7131_v49 = vpack.c.bf16 %v1013_v48, %v1004_v47  ;;  %v867_v51 = vld [vmem:[#allocation8 + $0x710] sm:$0xff]  ;;  %v1012_v54 = vld [vmem:[#allocation8 + $0xb98] sm:$0xff]  ;;  %v857_v55 = vld [vmem:[#allocation8 + $0x6c0] sm:$0xff] }
 0x180   : > { %v1003_v52 = vld [vmem:[#allocation8 + $0xb50] sm:$0xff]  ;;  %v7003_v53 = vpack.c.bf16 %v867_v51, %v858_v50  ;;  %v866_v56 = vld [vmem:[#allocation8 + $0x708] sm:$0xff]  ;;  %v885_v63 = vld [vmem:[#allocation8 + $0x7a0] sm:$0xff] }
 0x181   : > { %6978 = vmatpush1.bf16.msra.mxu0 %v6977_v60  ;;  %v7133_v57 = vpack.c.bf16 %v1012_v54, %v1003_v52  ;;  %v7005_v58 = vpack.c.bf16 %v866_v56, %v857_v55  ;;  %v1022_v59 = vld [vmem:[#allocation8 + $0xbe8] sm:$0xff]  ;;  %v1031_v60 = vld [vmem:[#allocation8 + $0xc30] sm:$0xff]  ;;  %v1021_v3 = vld [vmem:[#allocation8 + $0xbe0] sm:$0xff] }
 0x182   : > { %6980 = vmatprep.subr.bf16.mxu0 %v6979_v61  ;;  %v876_v61 = vld [vmem:[#allocation8 + $0x758] sm:$0xff]  ;;  %v7135_v62 = vpack.c.bf16 %v1031_v60, %v1022_v59  ;;  %v1030_v4 = vld [vmem:[#allocation8 + $0xc28] sm:$0xff]  ;;  %v875_v8 = vld [vmem:[#allocation8 + $0x750] sm:$0xff] }
 0x183   : > { %v7137_v7 = vpack.c.bf16 %v1030_v4, %v1021_v3  ;;  %v884_v9 = vld [vmem:[#allocation8 + $0x798] sm:$0xff]  ;;  %v894_v13 = vld [vmem:[#allocation8 + $0x7e8] sm:$0xff]  ;;  %v903_v14 = vld [vmem:[#allocation8 + $0x830] sm:$0xff] }
 0x184   : > { %v1040_v10 = vld [vmem:[#allocation8 + $0xc78] sm:$0xff]  ;;  %v7011_v16 = vpack.c.bf16 %v903_v14, %v894_v13  ;;  %v893_v19 = vld [vmem:[#allocation8 + $0x7e0] sm:$0xff]  ;;  %v902_v20 = vld [vmem:[#allocation8 + $0x828] sm:$0xff] }
 0x185   : > { %6982 = vmatpush1.bf16.msra.mxu0 %v6981_v5  ;;  %v9403_v5 = vmov 0.0   ;;  %v1058_v21 = vld [vmem:[#allocation8 + $0xd08] sm:$0xff]  ;;  %v1067_v22 = vld [vmem:[#allocation8 + $0xd50] sm:$0xff]  ;;  %v912_v25 = vld [vmem:[#allocation8 + $0x878] sm:$0xff] }
 0x186   : > { %6984 = vmatprep.subr.bf16.mxu0 %v6983_v6  ;;  %1350 = vmatprep.mubr.f32.mxu1 %v9403_v5  ;;  %v7007_v6 = vpack.c.bf16 %v885_v63, %v876_v61  ;;  %v921_v26 = vld [vmem:[#allocation8 + $0x8c0] sm:$0xff]  ;;  %v621_v50 = vld [vmem:[#allocation7] sm:$0x7]  ;;  %v647_v59 = vld [vmem:[#allocation8 + $0x30] sm:$0xff] }
 0x187   : > { %v656_v60 = vld [vmem:[#allocation8 + $0x78] sm:$0xff]  ;;  %v929_v63 = vld [vmem:[#allocation8 + $0x900] sm:$0xff]  ;;  %v938_v3 = vld [vmem:[#allocation8 + $0x948] sm:$0xff] }
 0x188   : > { %v666_v4 = vld [vmem:[#allocation8 + $0xc8] sm:$0xff]  ;;  %v7021_v14 = vpack.c.bf16 %v938_v3, %v929_v63  ;;  %v1020_v63 = vld [vmem:[#allocation8 + $0xbd8] sm:$0xff]  ;;  %v1029_v3 = vld [vmem:[#allocation8 + $0xc20] sm:$0xff] }
 0x189   : > { %6986 = vmatpush1.bf16.msra.mxu0 %v6985_v11  ;;  %v7009_v11 = vpack.c.bf16 %v884_v9, %v875_v8  ;;  %v675_v9 = vld [vmem:[#allocation8 + $0x110] sm:$0xff] }
 0x18a   : > { %6988 = vmatprep.subr.bf16.mxu0 %v6987_v12  ;;  %v1049_v12 = vld [vmem:[#allocation8 + $0xcc0] sm:$0xff] }
 0x18b   : > { %v7139_v15 = vpack.c.bf16 %v1049_v12, %v1040_v10  ;;  %v948_v10 = vld [vmem:[#allocation8 + $0x998] sm:$0xff]  ;;  %v7245_v12 = vpack.c.bf16 %v656_v60, %v647_v59  ;;  %v1010_v60 = vld [vmem:[#allocation8 + $0xb88] sm:$0xff] }
 0x18d   : > { %6990 = vmatpush1.bf16.msra.mxu0 %v6989_v17  ;;  %v1039_v17 = vld [vmem:[#allocation8 + $0xc70] sm:$0xff] }
 0x18e   : > { %6992 = vmatprep.subr.bf16.mxu0 %v6991_v18  ;;  %v1048_v18 = vld [vmem:[#allocation8 + $0xcb8] sm:$0xff] }
 0x191   : > { %6994 = vmatpush1.bf16.msra.mxu0 %v6993_v23  ;;  %v7141_v23 = vpack.c.bf16 %v1048_v18, %v1039_v17  ;;  %v7247_v17 = vpack.c.bf16 %v675_v9, %v666_v4  ;;  %v746_v9 = vld [vmem:[#allocation8 + $0x348] sm:$0xff] }
 0x192   : > { %6996 = vmatprep.subr.bf16.mxu0 %v6995_v24  ;;  %v7013_v24 = vpack.c.bf16 %v902_v20, %v893_v19  ;;  %v956_v19 = vld [vmem:[#allocation8 + $0x9d8] sm:$0xff] }
 0x193   : > { %v684_v20 = vld [vmem:[#allocation8 + $0x158] sm:$0xff] }
 0x195   : > { %6998 = vmatpush1.bf16.msra.mxu0 %v6997_v27  ;;  %v1057_v27 = vld [vmem:[#allocation8 + $0xd00] sm:$0xff] }
 0x1fa   : > { %v582_v28 = vpop.xlane.xlu0 %581 }
 0x1fb   : > { %v584_v29 = vmul.f32 0.0026041667, %v582_v28  ;;  %v7143_v28 = vpack.c.bf16 %v1067_v22, %v1058_v21  ;;  %v693_v21 = vld [vmem:[#allocation8 + $0x1a0] sm:$0xff]  ;;  %v966_v22 = vld [vmem:[#allocation8 + $0xa28] sm:$0xff] }
 0x1fd   : > { %v9866_v30 = vsub.f32 %v9854_v0, %v584_v29  ;;  %v9869_v31 = vsub.f32 %v9857_v1, %v584_v29  ;;  %v9872_v32 = vsub.f32 %v9860_v2, %v584_v29  ;;  %v986_v0 = vld [vmem:[#allocation8 + $0xac8] sm:$0xff]  ;;  %v840_v1 = vld [vmem:[#allocation8 + $0x638] sm:$0xff]  ;;  %v7015_v29 = vpack.c.bf16 %v921_v26, %v912_v25 }
 0x1fe   : > { %v7127_v39 = vpack.c.bf16 %v995_v38, %v986_v0  ;;  %v6999_v2 = vpack.c.bf16 %v849_v40, %v840_v1  ;;  %v930_v1 = vld [vmem:[#allocation8 + $0x908] sm:$0xff]  ;;  %v939_v40 = vld [vmem:[#allocation8 + $0x950] sm:$0xff]  ;;  %v7251_v26 = vpack.c.bf16 %v693_v21, %v684_v20  ;;  %v764_v21 = vld [vmem:[#allocation8 + $0x3d8] sm:$0xff] }
 0x1ff   : > { %v588_v33 = vmul.f32 %v9866_v30, %v9866_v30  ;;  %v589_v34 = vmul.f32 %v9869_v31, %v9869_v31  ;;  %v590_v35 = vmul.f32 %v9872_v32, %v9872_v32  ;;  %v7019_v41 = vpack.c.bf16 %v939_v40, %v930_v1  ;;  %v701_v40 = vld [vmem:[#allocation8 + $0x1e0] sm:$0xff]  ;;  %v755_v20 = vld [vmem:[#allocation8 + $0x390] sm:$0xff] }
 0x200   : > { %7128 = vmatprep.subr.bf16.mxu1 %v7127_v39  ;;  %7000 = vmatprep.subr.bf16.mxu0 %v6999_v2 }
 0x201   : > { %v591_v36 = vadd.f32 %v589_v34, %v588_v33  ;;  %7130 = vmatpush1.bf16.msra.mxu1 %v7129_v45  ;;  %7002 = vmatpush1.bf16.msra.mxu0 %v7001_v46  ;;  %v1066_v33 = vld [vmem:[#allocation8 + $0xd48] sm:$0xff]  ;;  %v911_v34 = vld [vmem:[#allocation8 + $0x870] sm:$0xff]  ;;  %v9882_v45 = vshrl.u32 %v603_v43, 7 }
 0x202   : > { %7132 = vmatprep.subr.bf16.mxu1 %v7131_v49  ;;  %7004 = vmatprep.subr.bf16.mxu0 %v7003_v53  ;;  %v7145_v0 = vpack.c.bf16 %v1066_v33, %v1057_v27  ;;  %v601_v49 = vld [vmem:[#allocation5] sm:$0x7]  ;;  %v683_v27 = vld [vmem:[#allocation8 + $0x150] sm:$0xff] }
 0x203   : > { %v592_v37 = vadd.f32 %v591_v36, %v590_v35  ;;  %v920_v35 = vld [vmem:[#allocation8 + $0x8b8] sm:$0xff]  ;;  %v9885_v46 = vsub.s32 1, %v9882_v45  ;;  %v9888_v47 = vsub.s32 2, %v9882_v45  ;;  %v9891_v48 = vsub.s32 0, %v9882_v45 }
 0x204   : > { %v648_v36 = vld [vmem:[#allocation8 + $0x38] sm:$0xff]  ;;  %v7017_v38 = vpack.c.bf16 %v920_v35, %v911_v34  ;;  %v974_v34 = vld [vmem:[#allocation8 + $0xa68] sm:$0xff] }
 0x205   : > { %593 = vadd.xlane.f32.xlu0 %v592_v37  ;;  %7134 = vmatpush1.bf16.msra.mxu1 %v7133_v57  ;;  %v657_v37 = vld [vmem:[#allocation8 + $0x80] sm:$0xff]  ;;  %v610_v51 = vrot.slane %v601_v49, %v9885_v46  ;;  %v614_v52 = vrot.slane %v601_v49, %v9888_v47  ;;  %v606_v53 = vrot.slane %v601_v49, %v9891_v48  ;;  %v702_v35 = vld [vmem:[#allocation8 + $0x1e8] sm:$0xff]  ;;  %v720_v49 = vld [vmem:[#allocation8 + $0x278] sm:$0xff] }
 0x206   : > { %7006 = vmatpush1.bf16.msra.mxu0 %v7005_v58  ;;  %7136 = vmatprep.subr.bf16.mxu1 %v7135_v62  ;;  %v7243_v39 = vpack.c.bf16 %v657_v37, %v648_v36  ;;  %v630_v55 = vrot.slane %v621_v50, %v9885_v46  ;;  %v634_v56 = vrot.slane %v621_v50, %v9888_v47  ;;  %v711_v36 = vld [vmem:[#allocation8 + $0x230] sm:$0xff]  ;;  %v984_v37 = vld [vmem:[#allocation8 + $0xab8] sm:$0xff] }
 0x207   : > { %7008 = vmatprep.subr.bf16.mxu0 %v7007_v6  ;;  %v626_v62 = vrot.slane %v621_v50, %v9891_v48  ;;  %v7255_v1 = vpack.c.bf16 %v711_v36, %v702_v35  ;;  %v729_v50 = vld [vmem:[#allocation8 + $0x2c0] sm:$0xff]  ;;  %v782_v36 = vld [vmem:[#allocation8 + $0x468] sm:$0xff] }
 0x208   : > { %v773_v35 = vld [vmem:[#allocation8 + $0x420] sm:$0xff] }
 0x209   : > { %7138 = vmatpush1.bf16.msra.mxu1 %v7137_v7 }
 0x20a   : > { %7010 = vmatpush1.bf16.msra.mxu0 %v7009_v11  ;;  %7140 = vmatprep.subr.bf16.mxu1 %v7139_v15  ;;  %v957_v11 = vld [vmem:[#allocation8 + $0x9e0] sm:$0xff]  ;;  %v674_v15 = vld [vmem:[#allocation8 + $0x108] sm:$0xff] }
 0x20b   : > { %7012 = vmatprep.subr.bf16.mxu0 %v7011_v16  ;;  %v947_v16 = vld [vmem:[#allocation8 + $0x990] sm:$0xff]  ;;  %v7023_v18 = vpack.c.bf16 %v957_v11, %v948_v10  ;;  %v7039_v11 = vpack.c.bf16 %v1029_v3, %v1020_v63 }
 0x20c   : > { %v7025_v25 = vpack.c.bf16 %v956_v19, %v947_v16  ;;  %v1019_v10 = vld [vmem:[#allocation8 + $0xbd0] sm:$0xff] }
 0x20d   : > { %7142 = vmatpush1.bf16.msra.mxu1 %v7141_v23  ;;  %v975_v23 = vld [vmem:[#allocation8 + $0xa70] sm:$0xff] }
 0x20e   : > { %7014 = vmatpush1.bf16.msra.mxu0 %v7013_v24  ;;  %7144 = vmatprep.subr.bf16.mxu1 %v7143_v28  ;;  %v692_v28 = vld [vmem:[#allocation8 + $0x198] sm:$0xff]  ;;  %v7027_v33 = vpack.c.bf16 %v975_v23, %v966_v22  ;;  %v1047_v16 = vld [vmem:[#allocation8 + $0xcb0] sm:$0xff]  ;;  %v1037_v22 = vld [vmem:[#allocation8 + $0xc60] sm:$0xff] }
 0x20f   : > { %7016 = vmatprep.subr.bf16.mxu0 %v7015_v29  ;;  %v965_v29 = vld [vmem:[#allocation8 + $0xa20] sm:$0xff] }
 0x211   : > { %7146 = vmatpush1.bf16.msra.mxu1 %v7145_v0  ;;  %v993_v0 = vld [vmem:[#allocation8 + $0xb00] sm:$0xff] }
 0x212   : > { %7018 = vmatpush1.bf16.msra.mxu0 %v7017_v38  ;;  %7244 = vmatprep.subr.bf16.mxu1 %v7243_v39  ;;  %v7253_v38 = vpack.c.bf16 %v692_v28, %v683_v27  ;;  %v7029_v39 = vpack.c.bf16 %v974_v34, %v965_v29  ;;  %v1056_v27 = vld [vmem:[#allocation8 + $0xcf8] sm:$0xff]  ;;  %v1065_v28 = vld [vmem:[#allocation8 + $0xd40] sm:$0xff]  ;;  %v7269_v29 = vpack.c.bf16 %v764_v21, %v755_v20  ;;  %v698_v20 = vld [vmem:[#allocation8 + $0x1c8] sm:$0xff] }
 0x213   : > { %7020 = vmatprep.subr.bf16.mxu0 %v7019_v41  ;;  %v710_v41 = vld [vmem:[#allocation8 + $0x228] sm:$0xff]  ;;  %v707_v21 = vld [vmem:[#allocation8 + $0x210] sm:$0xff] }
 0x292   : > { %v594_v2 = vpop.xlane.xlu0 %593 }
 0x293   : > { %v595_v42 = vmul.f32 0.0026041667, %v594_v2  ;;  %v983_v2 = vld [vmem:[#allocation8 + $0xab0] sm:$0xff] }
 0x295   : > { %v596_v44 = vadd.f32 1e-05, %v595_v42  ;;  %v7031_v42 = vpack.c.bf16 %v993_v0, %v984_v37  ;;  %v1055_v37 = vld [vmem:[#allocation8 + $0xcf0] sm:$0xff]  ;;  %v7047_v0 = vpack.c.bf16 %v1065_v28, %v1056_v27  ;;  %v697_v27 = vld [vmem:[#allocation8 + $0x1c0] sm:$0xff]  ;;  %v7063_v28 = vpack.c.bf16 %v707_v21, %v698_v20 }
 0x296   : > { %v769_v20 = vld [vmem:[#allocation8 + $0x400] sm:$0xff] }
 0x297   : > { %8923 = vrsqrt.f32 %v596_v44  ;;  %v992_v44 = vld [vmem:[#allocation8 + $0xaf8] sm:$0xff] }
 0x2a1   : > { %v8924_v54 = vpop.eup %8923 }
 0x2a2   : > { %v599_v57 = vmul.f32 %v8924_v54, %v9869_v31  ;;  %v600_v58 = vmul.f32 %v8924_v54, %v9872_v32  ;;  %v598_v61 = vmul.f32 %v8924_v54, %v9866_v30  ;;  %v665_v30 = vld [vmem:[#allocation8 + $0xc0] sm:$0xff]  ;;  %v7033_v54 = vpack.c.bf16 %v992_v44, %v983_v2 }
 0x2a3   : > { %v7249_v24 = vpack.c.bf16 %v674_v15, %v665_v30  ;;  %v765_v30 = vld [vmem:[#allocation8 + $0x3e0] sm:$0xff]  ;;  %v1038_v15 = vld [vmem:[#allocation8 + $0xc68] sm:$0xff]  ;;  %v7273_v2 = vpack.c.bf16 %v782_v36, %v773_v35  ;;  %v716_v35 = vld [vmem:[#allocation8 + $0x258] sm:$0xff] }
 0x2a4   : > { %v619_v6 = vmul.f32 %v610_v51, %v599_v57  ;;  %v620_v7 = vmul.f32 %v614_v52, %v600_v58  ;;  %v618_v8 = vmul.f32 %v606_v53, %v598_v61  ;;  %v1002_v51 = vld [vmem:[#allocation8 + $0xb48] sm:$0xff]  ;;  %v1011_v52 = vld [vmem:[#allocation8 + $0xb90] sm:$0xff]  ;;  %v7257_v53 = vpack.c.bf16 %v710_v41, %v701_v40  ;;  %v728_v57 = vld [vmem:[#allocation8 + $0x2b8] sm:$0xff] }
 0x2a5   : > { %v1001_v58 = vld [vmem:[#allocation8 + $0xb40] sm:$0xff]  ;;  %v7035_v59 = vpack.c.bf16 %v1011_v52, %v1002_v51  ;;  %v738_v61 = vld [vmem:[#allocation8 + $0x308] sm:$0xff]  ;;  %v7043_v23 = vpack.c.bf16 %v1047_v16, %v1038_v15  ;;  %v644_v40 = vld [vmem:[#allocation8 + $0x18] sm:$0xff] }
 0x2a6   : > { %v9902_v13 = vadd.f32 %v630_v55, %v619_v6  ;;  %v9904_v31 = vadd.f32 %v634_v56, %v620_v7  ;;  %v9906_v32 = vadd.f32 %v626_v62, %v618_v8  ;;  %v7259_v55 = vpack.c.bf16 %v729_v50, %v720_v49  ;;  %v719_v56 = vld [vmem:[#allocation8 + $0x270] sm:$0xff]  ;;  %v737_v8 = vld [vmem:[#allocation8 + $0x300] sm:$0xff]  ;;  %v800_v50 = vld [vmem:[#allocation8 + $0x4f8] sm:$0xff] }
 0x2a7   : > { %v747_v62 = vld [vmem:[#allocation8 + $0x350] sm:$0xff]  ;;  %v7261_v4 = vpack.c.bf16 %v728_v57, %v719_v56  ;;  %v7037_v6 = vpack.c.bf16 %v1010_v60, %v1001_v58  ;;  %v653_v41 = vld [vmem:[#allocation8 + $0x60] sm:$0xff]  ;;  %v662_v56 = vld [vmem:[#allocation8 + $0xa8] sm:$0xff] }
 0x2a8   : > { %1137 = vmatprep.mubr.f32.mxu0 %v9902_v13  ;;  %1351 = vmatmul.mubr.f32.vlgmr.msra.gmra.mrb[0].mxu1 %v9904_v31  ;;  %v7263_v7 = vpack.c.bf16 %v747_v62, %v738_v61  ;;  %v791_v49 = vld [vmem:[#allocation8 + $0x4b0] sm:$0xff]  ;;  %v7051_v51 = vpack.c.bf16 %v653_v41, %v644_v40  ;;  %v809_v60 = vld [vmem:[#allocation8 + $0x540] sm:$0xff]  ;;  %v818_v61 = vld [vmem:[#allocation8 + $0x588] sm:$0xff] }
 0x2a9   : > { %7246 = vmatpush1.bf16.msra.mxu1 %v7245_v12  ;;  %1138 = vmatmul.mubr.f32.vlgmr.msra.gmra.mrb[0].mxu0 %v9906_v32  ;;  %v1028_v12 = vld [vmem:[#allocation8 + $0xc18] sm:$0xff]  ;;  %v643_v52 = vld [vmem:[#allocation8 + $0x10] sm:$0xff]  ;;  %v7277_v58 = vpack.c.bf16 %v800_v50, %v791_v49  ;;  %v661_v62 = vld [vmem:[#allocation8 + $0xa0] sm:$0xff] }
 0x2aa   : > { %7022 = vmatpush1.bf16.msra.mxu0 %v7021_v14  ;;  %1563 = vmatprep.mubr.f32.mxu1 %v9902_v13  ;;  %v756_v14 = vld [vmem:[#allocation8 + $0x398] sm:$0xff]  ;;  %v671_v57 = vld [vmem:[#allocation8 + $0xf0] sm:$0xff]  ;;  %v725_v36 = vld [vmem:[#allocation8 + $0x2a0] sm:$0xff] }
 0x2ab   : > { %7248 = vmatprep.subr.bf16.mxu1 %v7247_v17  ;;  %7024 = vmatprep.subr.bf16.mxu0 %v7023_v18  ;;  %v7265_v17 = vpack.c.bf16 %v746_v9, %v737_v8  ;;  %v7041_v18 = vpack.c.bf16 %v1028_v12, %v1019_v10  ;;  %v7267_v19 = vpack.c.bf16 %v765_v30, %v756_v14  ;;  %v680_v8 = vld [vmem:[#allocation8 + $0x138] sm:$0xff]  ;;  %v689_v9 = vld [vmem:[#allocation8 + $0x180] sm:$0xff]  ;;  %v827_v14 = vld [vmem:[#allocation8 + $0x5d0] sm:$0xff] }
 0x2ac   : > { %1208 = vmatprep.mubr.f32.mxu0 %v9403_v5  ;;  %v7055_v3 = vpack.c.bf16 %v671_v57, %v662_v56  ;;  %v7281_v10 = vpack.c.bf16 %v818_v61, %v809_v60  ;;  %v836_v30 = vld [vmem:[#allocation8 + $0x618] sm:$0xff]  ;;  %v679_v15 = vld [vmem:[#allocation8 + $0x130] sm:$0xff]  ;;  %v7059_v16 = vpack.c.bf16 %v689_v9, %v680_v8  ;;  %v7067_v41 = vpack.c.bf16 %v725_v36, %v716_v35  ;;  %v734_v49 = vld [vmem:[#allocation8 + $0x2e8] sm:$0xff] }
 0x2ad   : > { %7250 = vmatpush1.bf16.msra.mxu1 %v7249_v24  ;;  %v1046_v24 = vld [vmem:[#allocation8 + $0xca8] sm:$0xff]  ;;  %v715_v40 = vld [vmem:[#allocation8 + $0x250] sm:$0xff]  ;;  %v733_v56 = vld [vmem:[#allocation8 + $0x2e0] sm:$0xff] }
 0x2ae   : > { %7026 = vmatpush1.bf16.msra.mxu0 %v7025_v25  ;;  %7252 = vmatprep.subr.bf16.mxu1 %v7251_v26  ;;  %v774_v25 = vld [vmem:[#allocation8 + $0x428] sm:$0xff]  ;;  %v783_v26 = vld [vmem:[#allocation8 + $0x470] sm:$0xff]  ;;  %v909_v60 = vld [vmem:[#allocation8 + $0x860] sm:$0xff] }
 0x2af   : > { %7028 = vmatprep.subr.bf16.mxu0 %v7027_v33  ;;  %v7045_v33 = vpack.c.bf16 %v1046_v24, %v1037_v22  ;;  %v7271_v34 = vpack.c.bf16 %v783_v26, %v774_v25  ;;  %v7285_v22 = vpack.c.bf16 %v836_v30, %v827_v14  ;;  %v845_v25 = vld [vmem:[#allocation8 + $0x660] sm:$0xff]  ;;  %v854_v26 = vld [vmem:[#allocation8 + $0x6a8] sm:$0xff]  ;;  %v743_v50 = vld [vmem:[#allocation8 + $0x330] sm:$0xff] }
 0x2b0   : > { %v7071_v57 = vpack.c.bf16 %v743_v50, %v734_v49  ;;  %v752_v61 = vld [vmem:[#allocation8 + $0x378] sm:$0xff]  ;;  %v751_v8 = vld [vmem:[#allocation8 + $0x370] sm:$0xff]  ;;  %v770_v14 = vld [vmem:[#allocation8 + $0x408] sm:$0xff] }
 0x2b1   : > { %7254 = vmatpush1.bf16.msra.mxu1 %v7253_v38  ;;  %v1064_v38 = vld [vmem:[#allocation8 + $0xd38] sm:$0xff]  ;;  %v779_v30 = vld [vmem:[#allocation8 + $0x450] sm:$0xff]  ;;  %v805_v49 = vld [vmem:[#allocation8 + $0x520] sm:$0xff] }
 0x2b2   : > { %7030 = vmatpush1.bf16.msra.mxu0 %v7029_v39  ;;  %7256 = vmatprep.subr.bf16.mxu1 %v7255_v1  ;;  %v792_v39 = vld [vmem:[#allocation8 + $0x4b8] sm:$0xff]  ;;  %v801_v1 = vld [vmem:[#allocation8 + $0x500] sm:$0xff]  ;;  %v7079_v21 = vpack.c.bf16 %v779_v30, %v770_v14  ;;  %v787_v35 = vld [vmem:[#allocation8 + $0x490] sm:$0xff] }
 0x2b3   : > { %7032 = vmatprep.subr.bf16.mxu0 %v7031_v42  ;;  %v7049_v42 = vpack.c.bf16 %v1064_v38, %v1055_v37  ;;  %v7275_v44 = vpack.c.bf16 %v801_v1, %v792_v39  ;;  %v7289_v37 = vpack.c.bf16 %v854_v26, %v845_v25  ;;  %v863_v39 = vld [vmem:[#allocation8 + $0x6f0] sm:$0xff]  ;;  %v872_v1 = vld [vmem:[#allocation8 + $0x738] sm:$0xff]  ;;  %v797_v26 = vld [vmem:[#allocation8 + $0x4e0] sm:$0xff] }
 0x2b4   : > { %v788_v25 = vld [vmem:[#allocation8 + $0x498] sm:$0xff]  ;;  %v841_v14 = vld [vmem:[#allocation8 + $0x640] sm:$0xff] }
 0x2b5   : > { %7258 = vmatpush1.bf16.msra.mxu1 %v7257_v53  ;;  %v652_v53 = vld [vmem:[#allocation8 + $0x58] sm:$0xff]  ;;  %v7083_v36 = vpack.c.bf16 %v797_v26, %v788_v25  ;;  %v859_v25 = vld [vmem:[#allocation8 + $0x6d0] sm:$0xff] }
 0x2b6   : > { %7034 = vmatpush1.bf16.msra.mxu0 %v7033_v54  ;;  %7260 = vmatprep.subr.bf16.mxu1 %v7259_v55  ;;  %v810_v54 = vld [vmem:[#allocation8 + $0x548] sm:$0xff]  ;;  %v819_v55 = vld [vmem:[#allocation8 + $0x590] sm:$0xff] }
 0x2b7   : > { %7036 = vmatprep.subr.bf16.mxu0 %v7035_v59  ;;  %v7053_v59 = vpack.c.bf16 %v652_v53, %v643_v52  ;;  %v7279_v63 = vpack.c.bf16 %v819_v55, %v810_v54  ;;  %v881_v54 = vld [vmem:[#allocation8 + $0x780] sm:$0xff]  ;;  %v890_v55 = vld [vmem:[#allocation8 + $0x7c8] sm:$0xff] }
 0x2b9   : > { %7262 = vmatpush1.bf16.msra.mxu1 %v7261_v4  ;;  %v670_v4 = vld [vmem:[#allocation8 + $0xe8] sm:$0xff] }
 0x2ba   : > { %7038 = vmatpush1.bf16.msra.mxu0 %v7037_v6  ;;  %7264 = vmatprep.subr.bf16.mxu1 %v7263_v7  ;;  %v828_v6 = vld [vmem:[#allocation8 + $0x5d8] sm:$0xff]  ;;  %v837_v7 = vld [vmem:[#allocation8 + $0x620] sm:$0xff] }
 0x2bb   : > { %7040 = vmatprep.subr.bf16.mxu0 %v7039_v11  ;;  %v7057_v11 = vpack.c.bf16 %v670_v4, %v661_v62  ;;  %v7283_v12 = vpack.c.bf16 %v837_v7, %v828_v6  ;;  %v761_v62 = vld [vmem:[#allocation8 + $0x3c0] sm:$0xff]  ;;  %v899_v6 = vld [vmem:[#allocation8 + $0x810] sm:$0xff]  ;;  %v908_v7 = vld [vmem:[#allocation8 + $0x858] sm:$0xff] }
 0x2bc   : > { %v7075_v9 = vpack.c.bf16 %v761_v62, %v752_v61  ;;  %v823_v61 = vld [vmem:[#allocation8 + $0x5b0] sm:$0xff] }
 0x2bd   : > { %7266 = vmatpush1.bf16.msra.mxu1 %v7265_v17  ;;  %v688_v17 = vld [vmem:[#allocation8 + $0x178] sm:$0xff] }
 0x2be   : > { %7042 = vmatpush1.bf16.msra.mxu0 %v7041_v18  ;;  %7268 = vmatprep.subr.bf16.mxu1 %v7267_v19  ;;  %v846_v18 = vld [vmem:[#allocation8 + $0x668] sm:$0xff]  ;;  %v855_v19 = vld [vmem:[#allocation8 + $0x6b0] sm:$0xff] }
 0x2bf   : > { %7044 = vmatprep.subr.bf16.mxu0 %v7043_v23  ;;  %v7061_v23 = vpack.c.bf16 %v688_v17, %v679_v15  ;;  %v7287_v24 = vpack.c.bf16 %v855_v19, %v846_v18  ;;  %v7301_v15 = vpack.c.bf16 %v908_v7, %v899_v6  ;;  %v917_v18 = vld [vmem:[#allocation8 + $0x8a0] sm:$0xff]  ;;  %v926_v19 = vld [vmem:[#allocation8 + $0x8e8] sm:$0xff]  ;;  %v851_v7 = vld [vmem:[#allocation8 + $0x690] sm:$0xff] }
 0x2c0   : > { %v842_v6 = vld [vmem:[#allocation8 + $0x648] sm:$0xff] }
 0x2c1   : > { %7270 = vmatpush1.bf16.msra.mxu1 %v7269_v29  ;;  %v706_v29 = vld [vmem:[#allocation8 + $0x208] sm:$0xff]  ;;  %v7095_v30 = vpack.c.bf16 %v851_v7, %v842_v6  ;;  %v913_v7 = vld [vmem:[#allocation8 + $0x880] sm:$0xff] }
 0x2c2   : > { %7046 = vmatpush1.bf16.msra.mxu0 %v7045_v33  ;;  %7272 = vmatprep.subr.bf16.mxu1 %v7271_v34  ;;  %v864_v33 = vld [vmem:[#allocation8 + $0x6f8] sm:$0xff]  ;;  %v873_v34 = vld [vmem:[#allocation8 + $0x740] sm:$0xff] }
 0x2c3   : > { %7048 = vmatprep.subr.bf16.mxu0 %v7047_v0  ;;  %v7065_v0 = vpack.c.bf16 %v706_v29, %v697_v27  ;;  %v7291_v38 = vpack.c.bf16 %v873_v34, %v864_v33  ;;  %v7305_v27 = vpack.c.bf16 %v926_v19, %v917_v18  ;;  %v935_v33 = vld [vmem:[#allocation8 + $0x930] sm:$0xff]  ;;  %v944_v34 = vld [vmem:[#allocation8 + $0x978] sm:$0xff]  ;;  %v869_v19 = vld [vmem:[#allocation8 + $0x720] sm:$0xff] }
 0x2c4   : > { %v860_v18 = vld [vmem:[#allocation8 + $0x6d8] sm:$0xff] }
 0x2c5   : > { %7274 = vmatpush1.bf16.msra.mxu1 %v7273_v2  ;;  %v724_v2 = vld [vmem:[#allocation8 + $0x298] sm:$0xff]  ;;  %v7099_v26 = vpack.c.bf16 %v869_v19, %v860_v18  ;;  %v673_v19 = vld [vmem:[#allocation8 + $0x100] sm:$0xff] }
 0x2c6   : > { %7050 = vmatpush1.bf16.msra.mxu0 %v7049_v42  ;;  %7276 = vmatprep.subr.bf16.mxu1 %v7275_v44  ;;  %v882_v42 = vld [vmem:[#allocation8 + $0x788] sm:$0xff]  ;;  %v891_v44 = vld [vmem:[#allocation8 + $0x7d0] sm:$0xff]  ;;  %v7069_v52 = vpack.c.bf16 %v724_v2, %v715_v40  ;;  %v7309_v40 = vpack.c.bf16 %v944_v34, %v935_v33  ;;  %v664_v18 = vld [vmem:[#allocation8 + $0xb8] sm:$0xff] }
 0x2c7   : > { %7052 = vmatprep.subr.bf16.mxu0 %v7051_v51  ;;  %v7293_v51 = vpack.c.bf16 %v872_v1, %v863_v39  ;;  %v7295_v53 = vpack.c.bf16 %v891_v44, %v882_v42  ;;  %v806_v39 = vld [vmem:[#allocation8 + $0x528] sm:$0xff]  ;;  %v815_v1 = vld [vmem:[#allocation8 + $0x570] sm:$0xff]  ;;  %v953_v42 = vld [vmem:[#allocation8 + $0x9c0] sm:$0xff] }
 0x2c8   : > { %v962_v44 = vld [vmem:[#allocation8 + $0xa08] sm:$0xff]  ;;  %v7087_v50 = vpack.c.bf16 %v815_v1, %v806_v39  ;;  %v887_v34 = vld [vmem:[#allocation8 + $0x7b0] sm:$0xff]  ;;  %v877_v39 = vld [vmem:[#allocation8 + $0x760] sm:$0xff] }
 0x2c9   : > { %1209 = vmatmul.mubr.f32.vlgmr.msra.gmra.mrb[0].mxu0 %v9904_v31  ;;  %7278 = vmatpush1.bf16.msra.mxu1 %v7277_v58  ;;  %v742_v58 = vld [vmem:[#allocation8 + $0x328] sm:$0xff] }
 0x2ca   : > { %7054 = vmatpush1.bf16.msra.mxu0 %v7053_v59  ;;  %1279 = vmatprep.mubr.f32.mxu0 %v9902_v13  ;;  %v900_v59 = vld [vmem:[#allocation8 + $0x818] sm:$0xff]  ;;  %v878_v33 = vld [vmem:[#allocation8 + $0x768] sm:$0xff] }
 0x2cb   : > { %7280 = vmatprep.subr.bf16.mxu1 %v7279_v63  ;;  %7056 = vmatprep.subr.bf16.mxu0 %v7055_v3  ;;  %v7297_v63 = vpack.c.bf16 %v890_v55, %v881_v54  ;;  %v7073_v3 = vpack.c.bf16 %v742_v58, %v733_v56  ;;  %v7299_v4 = vpack.c.bf16 %v909_v60, %v900_v59  ;;  %v824_v54 = vld [vmem:[#allocation8 + $0x5b8] sm:$0xff]  ;;  %v833_v55 = vld [vmem:[#allocation8 + $0x600] sm:$0xff]  ;;  %v971_v59 = vld [vmem:[#allocation8 + $0xa50] sm:$0xff] }
 0x2cc   : > { %v7313_v56 = vpack.c.bf16 %v962_v44, %v953_v42  ;;  %v980_v60 = vld [vmem:[#allocation8 + $0xa98] sm:$0xff]  ;;  %v7091_v62 = vpack.c.bf16 %v833_v55, %v824_v54  ;;  %v7103_v1 = vpack.c.bf16 %v887_v34, %v878_v33  ;;  %v905_v44 = vld [vmem:[#allocation8 + $0x840] sm:$0xff]  ;;  %v895_v54 = vld [vmem:[#allocation8 + $0x7f0] sm:$0xff] }
 0x2cd   : > { %7282 = vmatpush1.bf16.msra.mxu1 %v7281_v10  ;;  %v760_v10 = vld [vmem:[#allocation8 + $0x3b8] sm:$0xff] }
 0x2ce   : > { %7058 = vmatpush1.bf16.msra.mxu0 %v7057_v11  ;;  %7284 = vmatprep.subr.bf16.mxu1 %v7283_v12  ;;  %v918_v11 = vld [vmem:[#allocation8 + $0x8a8] sm:$0xff]  ;;  %v927_v12 = vld [vmem:[#allocation8 + $0x8f0] sm:$0xff]  ;;  %v896_v42 = vld [vmem:[#allocation8 + $0x7f8] sm:$0xff] }
 0x2cf   : > { %7060 = vmatprep.subr.bf16.mxu0 %v7059_v16  ;;  %v7077_v16 = vpack.c.bf16 %v760_v10, %v751_v8  ;;  %v7303_v17 = vpack.c.bf16 %v927_v12, %v918_v11  ;;  %v7317_v8 = vpack.c.bf16 %v980_v60, %v971_v59  ;;  %v989_v11 = vld [vmem:[#allocation8 + $0xae0] sm:$0xff]  ;;  %v998_v12 = vld [vmem:[#allocation8 + $0xb28] sm:$0xff]  ;;  %v7107_v55 = vpack.c.bf16 %v905_v44, %v896_v42  ;;  %v923_v60 = vld [vmem:[#allocation8 + $0x8d0] sm:$0xff] }
 0x2d0   : > { %v914_v59 = vld [vmem:[#allocation8 + $0x888] sm:$0xff]  ;;  %v1000_v42 = vld [vmem:[#allocation8 + $0xb38] sm:$0xff] }
 0x2d1   : > { %7286 = vmatpush1.bf16.msra.mxu1 %v7285_v22  ;;  %v778_v22 = vld [vmem:[#allocation8 + $0x448] sm:$0xff]  ;;  %v7111_v6 = vpack.c.bf16 %v923_v60, %v914_v59  ;;  %v736_v60 = vld [vmem:[#allocation8 + $0x2f8] sm:$0xff] }
 0x2d2   : > { %7062 = vmatpush1.bf16.msra.mxu0 %v7061_v23  ;;  %7288 = vmatprep.subr.bf16.mxu1 %v7287_v24  ;;  %v936_v23 = vld [vmem:[#allocation8 + $0x938] sm:$0xff]  ;;  %v945_v24 = vld [vmem:[#allocation8 + $0x980] sm:$0xff]  ;;  %v726_v59 = vld [vmem:[#allocation8 + $0x2a8] sm:$0xff] }
 0x2d3   : > { %7064 = vmatprep.subr.bf16.mxu0 %v7063_v28  ;;  %v7081_v28 = vpack.c.bf16 %v778_v22, %v769_v20  ;;  %v7307_v29 = vpack.c.bf16 %v945_v24, %v936_v23  ;;  %v7321_v20 = vpack.c.bf16 %v998_v12, %v989_v11  ;;  %v1007_v23 = vld [vmem:[#allocation8 + $0xb70] sm:$0xff]  ;;  %v1016_v24 = vld [vmem:[#allocation8 + $0xbb8] sm:$0xff] }
 0x2d5   : > { %7290 = vmatpush1.bf16.msra.mxu1 %v7289_v37  ;;  %v796_v37 = vld [vmem:[#allocation8 + $0x4d8] sm:$0xff] }
 0x2d6   : > { %7066 = vmatpush1.bf16.msra.mxu0 %v7065_v0  ;;  %7292 = vmatprep.subr.bf16.mxu1 %v7291_v38  ;;  %v954_v0 = vld [vmem:[#allocation8 + $0x9c8] sm:$0xff]  ;;  %v963_v38 = vld [vmem:[#allocation8 + $0xa10] sm:$0xff] }
 0x2d7   : > { %7068 = vmatprep.subr.bf16.mxu0 %v7067_v41  ;;  %v7085_v41 = vpack.c.bf16 %v796_v37, %v787_v35  ;;  %v7311_v2 = vpack.c.bf16 %v963_v38, %v954_v0  ;;  %v7325_v35 = vpack.c.bf16 %v1016_v24, %v1007_v23  ;;  %v1025_v0 = vld [vmem:[#allocation8 + $0xc00] sm:$0xff]  ;;  %v1034_v38 = vld [vmem:[#allocation8 + $0xc48] sm:$0xff]  ;;  %v955_v23 = vld [vmem:[#allocation8 + $0x9d0] sm:$0xff] }
 0x2d8   : > { %v964_v24 = vld [vmem:[#allocation8 + $0xa18] sm:$0xff] }
 0x2d9   : > { %7294 = vmatpush1.bf16.msra.mxu1 %v7293_v51  ;;  %v814_v51 = vld [vmem:[#allocation8 + $0x568] sm:$0xff]  ;;  %v7375_v33 = vpack.c.bf16 %v964_v24, %v955_v23  ;;  %v1063_v23 = vld [vmem:[#allocation8 + $0xd30] sm:$0xff]  ;;  %v1072_v24 = vld [vmem:[#allocation8 + $0xd78] sm:$0xff] }
 0x2da   : > { %7070 = vmatpush1.bf16.msra.mxu0 %v7069_v52  ;;  %7296 = vmatprep.subr.bf16.mxu1 %v7295_v53  ;;  %v972_v52 = vld [vmem:[#allocation8 + $0xa58] sm:$0xff]  ;;  %v981_v53 = vld [vmem:[#allocation8 + $0xaa0] sm:$0xff] }
 0x2db   : > { %7072 = vmatprep.subr.bf16.mxu0 %v7071_v57  ;;  %v7089_v57 = vpack.c.bf16 %v814_v51, %v805_v49  ;;  %v7315_v58 = vpack.c.bf16 %v981_v53, %v972_v52  ;;  %v7329_v49 = vpack.c.bf16 %v1034_v38, %v1025_v0  ;;  %v1043_v52 = vld [vmem:[#allocation8 + $0xc90] sm:$0xff]  ;;  %v1052_v53 = vld [vmem:[#allocation8 + $0xcd8] sm:$0xff]  ;;  %v681_v0 = vld [vmem:[#allocation8 + $0x140] sm:$0xff] }
 0x2dc   : > { %v690_v38 = vld [vmem:[#allocation8 + $0x188] sm:$0xff] }
 0x2dd   : > { %7298 = vmatpush1.bf16.msra.mxu1 %v7297_v63  ;;  %v832_v63 = vld [vmem:[#allocation8 + $0x5f8] sm:$0xff] }
 0x2de   : > { %7074 = vmatpush1.bf16.msra.mxu0 %v7073_v3  ;;  %7300 = vmatprep.subr.bf16.mxu1 %v7299_v4  ;;  %v990_v3 = vld [vmem:[#allocation8 + $0xae8] sm:$0xff]  ;;  %v999_v4 = vld [vmem:[#allocation8 + $0xb30] sm:$0xff] }
 0x2df   : > { %7076 = vmatprep.subr.bf16.mxu0 %v7075_v9  ;;  %v7093_v9 = vpack.c.bf16 %v832_v63, %v823_v61  ;;  %v7319_v10 = vpack.c.bf16 %v999_v4, %v990_v3  ;;  %v7333_v61 = vpack.c.bf16 %v1052_v53, %v1043_v52  ;;  %v1061_v3 = vld [vmem:[#allocation8 + $0xd20] sm:$0xff]  ;;  %v1070_v4 = vld [vmem:[#allocation8 + $0xd68] sm:$0xff]  ;;  %v727_v52 = vld [vmem:[#allocation8 + $0x2b0] sm:$0xff] }
 0x2e0   : > { %v7337_v11 = vpack.c.bf16 %v1070_v4, %v1061_v3  ;;  %v1027_v3 = vld [vmem:[#allocation8 + $0xc10] sm:$0xff]  ;;  %v1036_v4 = vld [vmem:[#allocation8 + $0xc58] sm:$0xff] }
 0x2e1   : > { %7302 = vmatpush1.bf16.msra.mxu1 %v7301_v15  ;;  %v850_v15 = vld [vmem:[#allocation8 + $0x688] sm:$0xff] }
 0x2e2   : > { %7078 = vmatpush1.bf16.msra.mxu0 %v7077_v16  ;;  %7304 = vmatprep.subr.bf16.mxu1 %v7303_v17  ;;  %v1008_v16 = vld [vmem:[#allocation8 + $0xb78] sm:$0xff]  ;;  %v1017_v17 = vld [vmem:[#allocation8 + $0xbc0] sm:$0xff] }
 0x2e3   : > { %7080 = vmatprep.subr.bf16.mxu0 %v7079_v21  ;;  %v7097_v21 = vpack.c.bf16 %v850_v15, %v841_v14  ;;  %v7323_v22 = vpack.c.bf16 %v1017_v17, %v1008_v16  ;;  %v937_v14 = vld [vmem:[#allocation8 + $0x940] sm:$0xff]  ;;  %v654_v17 = vld [vmem:[#allocation8 + $0x68] sm:$0xff] }
 0x2e4   : > { %v645_v16 = vld [vmem:[#allocation8 + $0x20] sm:$0xff] }
 0x2e5   : > { %7306 = vmatpush1.bf16.msra.mxu1 %v7305_v27  ;;  %v868_v27 = vld [vmem:[#allocation8 + $0x718] sm:$0xff] }
 0x2e6   : > { %7082 = vmatpush1.bf16.msra.mxu0 %v7081_v28  ;;  %7308 = vmatprep.subr.bf16.mxu1 %v7307_v29  ;;  %v1026_v28 = vld [vmem:[#allocation8 + $0xc08] sm:$0xff]  ;;  %v1035_v29 = vld [vmem:[#allocation8 + $0xc50] sm:$0xff] }
 0x2e7   : > { %7084 = vmatprep.subr.bf16.mxu0 %v7083_v36  ;;  %v7101_v36 = vpack.c.bf16 %v868_v27, %v859_v25  ;;  %v7327_v37 = vpack.c.bf16 %v1035_v29, %v1026_v28  ;;  %v7151_v25 = vpack.c.bf16 %v673_v19, %v664_v18  ;;  %v672_v27 = vld [vmem:[#allocation8 + $0xf8] sm:$0xff]  ;;  %v682_v28 = vld [vmem:[#allocation8 + $0x148] sm:$0xff]  ;;  %v691_v29 = vld [vmem:[#allocation8 + $0x190] sm:$0xff] }
 0x2e8   : > { %1564 = vmatmul.mubr.f32.vlgmr.msra.gmra.mrb[2].mxu1 %v9906_v32  ;;  %v772_v18 = vld [vmem:[#allocation8 + $0x418] sm:$0xff]  ;;  %v781_v19 = vld [vmem:[#allocation8 + $0x460] sm:$0xff] }
 0x2e9   : > { %7310 = vmatpush1.bf16.msra.mxu1 %v7309_v40  ;;  %1634 = vmatprep.mubr.f32.mxu1 %v9403_v5  ;;  %v886_v40 = vld [vmem:[#allocation8 + $0x7a8] sm:$0xff] }
 0x2ea   : > { %7086 = vmatpush1.bf16.msra.mxu0 %v7085_v41  ;;  %7312 = vmatprep.subr.bf16.mxu1 %v7311_v2  ;;  %v1044_v41 = vld [vmem:[#allocation8 + $0xc98] sm:$0xff]  ;;  %v1053_v2 = vld [vmem:[#allocation8 + $0xce0] sm:$0xff] }
 0x2eb   : > { %7088 = vmatprep.subr.bf16.mxu0 %v7087_v50  ;;  %v7105_v50 = vpack.c.bf16 %v886_v40, %v877_v39  ;;  %v7331_v51 = vpack.c.bf16 %v1053_v2, %v1044_v41  ;;  %v700_v39 = vld [vmem:[#allocation8 + $0x1d8] sm:$0xff]  ;;  %v7157_v41 = vpack.c.bf16 %v690_v38, %v681_v0  ;;  %v991_v2 = vld [vmem:[#allocation8 + $0xaf0] sm:$0xff]  ;;  %v817_v38 = vld [vmem:[#allocation8 + $0x580] sm:$0xff] }
 0x2ec   : > { %v7381_v53 = vpack.c.bf16 %v1000_v42, %v991_v2  ;;  %v808_v0 = vld [vmem:[#allocation8 + $0x538] sm:$0xff]  ;;  %v826_v2 = vld [vmem:[#allocation8 + $0x5c8] sm:$0xff]  ;;  %v835_v42 = vld [vmem:[#allocation8 + $0x610] sm:$0xff] }
 0x2ed   : > { %7314 = vmatpush1.bf16.msra.mxu1 %v7313_v56  ;;  %v904_v56 = vld [vmem:[#allocation8 + $0x838] sm:$0xff] }
 0x2ee   : > { %7090 = vmatpush1.bf16.msra.mxu0 %v7089_v57  ;;  %7316 = vmatprep.subr.bf16.mxu1 %v7315_v58  ;;  %v1062_v57 = vld [vmem:[#allocation8 + $0xd28] sm:$0xff]  ;;  %v1071_v58 = vld [vmem:[#allocation8 + $0xd70] sm:$0xff] }
 0x2ef   : > { %7092 = vmatprep.subr.bf16.mxu0 %v7091_v62  ;;  %v7109_v62 = vpack.c.bf16 %v904_v56, %v895_v54  ;;  %v7335_v63 = vpack.c.bf16 %v1071_v58, %v1062_v57  ;;  %v1018_v56 = vld [vmem:[#allocation8 + $0xbc8] sm:$0xff]  ;;  %v717_v58 = vld [vmem:[#allocation8 + $0x260] sm:$0xff] }
 0x2f1   : > { %7318 = vmatpush1.bf16.msra.mxu1 %v7317_v8  ;;  %v922_v8 = vld [vmem:[#allocation8 + $0x8c8] sm:$0xff] }
 0x2f2   : > { %7094 = vmatpush1.bf16.msra.mxu0 %v7093_v9  ;;  %7320 = vmatprep.subr.bf16.mxu1 %v7319_v10  ;;  %v646_v9 = vld [vmem:[#allocation8 + $0x28] sm:$0xff]  ;;  %v655_v10 = vld [vmem:[#allocation8 + $0x70] sm:$0xff]  ;;  %v7113_v12 = vpack.c.bf16 %v922_v8, %v913_v7  ;;  %v744_v8 = vld [vmem:[#allocation8 + $0x338] sm:$0xff] }
 0x2f3   : > { %7096 = vmatprep.subr.bf16.mxu0 %v7095_v30  ;;  %v946_v30 = vld [vmem:[#allocation8 + $0x988] sm:$0xff]  ;;  %v7147_v15 = vpack.c.bf16 %v655_v10, %v646_v9  ;;  %v735_v7 = vld [vmem:[#allocation8 + $0x2f0] sm:$0xff] }
 0x2f4   : > { %v754_v9 = vld [vmem:[#allocation8 + $0x388] sm:$0xff]  ;;  %v763_v10 = vld [vmem:[#allocation8 + $0x3d0] sm:$0xff] }
 0x2f5   : > { %7322 = vmatpush1.bf16.msra.mxu1 %v7321_v20  ;;  %v7372_v20 = vpack.c.bf16 %v946_v30, %v937_v14  ;;  %v1045_v14 = vld [vmem:[#allocation8 + $0xca0] sm:$0xff]  ;;  %v1054_v30 = vld [vmem:[#allocation8 + $0xce8] sm:$0xff] }
 0x2f6   : > { %7098 = vmatpush1.bf16.msra.mxu0 %v7097_v21  ;;  %7324 = vmatprep.subr.bf16.mxu1 %v7323_v22  ;;  %v9404_v21 = vmov 0.0|0.0   ;;  %v7149_v22 = vpack.c.bf16 %v654_v17, %v645_v16  ;;  %v753_v16 = vld [vmem:[#allocation8 + $0x380] sm:$0xff]  ;;  %v762_v17 = vld [vmem:[#allocation8 + $0x3c8] sm:$0xff] }
 0x2f7   : > { %7100 = vmatprep.subr.bf16.mxu0 %v7099_v26  ;;  %v663_v26 = vld [vmem:[#allocation8 + $0xb0] sm:$0xff] }
 0x2f8   : > { %v7153_v34 = vpack.c.bf16 %v672_v27, %v663_v26  ;;  %v771_v26 = vld [vmem:[#allocation8 + $0x410] sm:$0xff]  ;;  %v780_v27 = vld [vmem:[#allocation8 + $0x458] sm:$0xff] }
 0x2f9   : > { %7326 = vmatpush1.bf16.msra.mxu1 %v7325_v35  ;;  %v973_v35 = vld [vmem:[#allocation8 + $0xa60] sm:$0xff] }
 0x2fa   : > { %7102 = vmatpush1.bf16.msra.mxu0 %v7101_v36  ;;  %7328 = vmatprep.subr.bf16.mxu1 %v7327_v37  ;;  %v982_v36 = vld [vmem:[#allocation8 + $0xaa8] sm:$0xff]  ;;  %v7155_v37 = vpack.c.bf16 %v691_v29, %v682_v28  ;;  %v799_v29 = vld [vmem:[#allocation8 + $0x4f0] sm:$0xff] }
 0x2fb   : > { %7104 = vmatprep.subr.bf16.mxu0 %v7103_v1  ;;  %v709_v1 = vld [vmem:[#allocation8 + $0x220] sm:$0xff]  ;;  %v7378_v40 = vpack.c.bf16 %v982_v36, %v973_v35  ;;  %v790_v28 = vld [vmem:[#allocation8 + $0x4a8] sm:$0xff] }
 0x2fc   : > { %v7159_v44 = vpack.c.bf16 %v709_v1, %v700_v39  ;;  %v7179_v35 = vpack.c.bf16 %v799_v29, %v790_v28  ;;  %v789_v36 = vld [vmem:[#allocation8 + $0x4a0] sm:$0xff]  ;;  %v7183_v1 = vpack.c.bf16 %v817_v38, %v808_v0  ;;  %v942_v28 = vld [vmem:[#allocation8 + $0x968] sm:$0xff]  ;;  %v952_v29 = vld [vmem:[#allocation8 + $0x9b8] sm:$0xff] }
 0x2fd   : > { %7330 = vmatpush1.bf16.msra.mxu1 %v7329_v49  ;;  %v699_v49 = vld [vmem:[#allocation8 + $0x1d0] sm:$0xff]  ;;  %v970_v0 = vld [vmem:[#allocation8 + $0xa48] sm:$0xff] }
 0x2fe   : > { %7106 = vmatpush1.bf16.msra.mxu0 %v7105_v50  ;;  %7332 = vmatprep.subr.bf16.mxu1 %v7331_v51  ;;  %v708_v50 = vld [vmem:[#allocation8 + $0x218] sm:$0xff]  ;;  %v718_v51 = vld [vmem:[#allocation8 + $0x268] sm:$0xff]  ;;  %v979_v38 = vld [vmem:[#allocation8 + $0xa90] sm:$0xff] }
 0x2ff   : > { %7108 = vmatprep.subr.bf16.mxu0 %v7107_v55  ;;  %v7161_v54 = vpack.c.bf16 %v708_v50, %v699_v49  ;;  %v1009_v55 = vld [vmem:[#allocation8 + $0xb80] sm:$0xff]  ;;  %v7163_v57 = vpack.c.bf16 %v727_v52, %v718_v51  ;;  %v7187_v49 = vpack.c.bf16 %v835_v42, %v826_v2  ;;  %v834_v51 = vld [vmem:[#allocation8 + $0x608] sm:$0xff]  ;;  %v844_v52 = vld [vmem:[#allocation8 + $0x658] sm:$0xff] }
 0x300   : > { %v825_v50 = vld [vmem:[#allocation8 + $0x5c0] sm:$0xff]  ;;  %v988_v2 = vld [vmem:[#allocation8 + $0xad8] sm:$0xff] }
 0x301   : > { %7334 = vmatpush1.bf16.msra.mxu1 %v7333_v61  ;;  %v745_v61 = vld [vmem:[#allocation8 + $0x340] sm:$0xff] }
 0x302   : > { %7110 = vmatpush1.bf16.msra.mxu0 %v7109_v62  ;;  %7336 = vmatprep.subr.bf16.mxu1 %v7335_v63  ;;  %v7384_v62 = vpack.c.bf16 %v1018_v56, %v1009_v55  ;;  %v7165_v63 = vpack.c.bf16 %v726_v59, %v717_v58  ;;  %v843_v56 = vld [vmem:[#allocation8 + $0x650] sm:$0xff]  ;;  %v862_v58 = vld [vmem:[#allocation8 + $0x6e8] sm:$0xff]  ;;  %v997_v42 = vld [vmem:[#allocation8 + $0xb20] sm:$0xff] }
 0x303   : > { %7112 = vmatprep.subr.bf16.mxu0 %v7111_v6  ;;  %v7167_v6 = vpack.c.bf16 %v745_v61, %v736_v60  ;;  %v871_v59 = vld [vmem:[#allocation8 + $0x730] sm:$0xff] }
 0x304   : > { %v7195_v61 = vpack.c.bf16 %v871_v59, %v862_v58  ;;  %v1024_v58 = vld [vmem:[#allocation8 + $0xbf8] sm:$0xff]  ;;  %v1033_v59 = vld [vmem:[#allocation8 + $0xc40] sm:$0xff] }
 0x305   : > { %7338 = vmatpush1.bf16.msra.mxu1 %v7337_v11  ;;  %v7387_v11 = vpack.c.bf16 %v1036_v4, %v1027_v3  ;;  %v880_v3 = vld [vmem:[#allocation8 + $0x778] sm:$0xff]  ;;  %v889_v4 = vld [vmem:[#allocation8 + $0x7c0] sm:$0xff] }
 0x306   : > { %7114 = vmatpush1.bf16.msra.mxu0 %v7113_v12  ;;  %7371 = vmatprep.subr.bf16.mxu1 %v9404_v21  ;;  %v7169_v12 = vpack.c.bf16 %v744_v8, %v735_v7  ;;  %v7199_v7 = vpack.c.bf16 %v889_v4, %v880_v3  ;;  %v879_v8 = vld [vmem:[#allocation8 + $0x770] sm:$0xff]  ;;  %v1042_v3 = vld [vmem:[#allocation8 + $0xc88] sm:$0xff] }
 0x307   : > { %7148 = vmatprep.subr.bf16.mxu0 %v7147_v15  ;;  %v7171_v15 = vpack.c.bf16 %v763_v10, %v754_v9  ;;  %v888_v9 = vld [vmem:[#allocation8 + $0x7b8] sm:$0xff]  ;;  %v898_v10 = vld [vmem:[#allocation8 + $0x808] sm:$0xff]  ;;  %v1051_v4 = vld [vmem:[#allocation8 + $0xcd0] sm:$0xff] }
 0x308   : > { %1635 = vmatmul.mubr.f32.vlgmr.msra.gmra.mrb[2].mxu1 %v9904_v31 }
 0x309   : > { %1280 = vmatmul.mubr.f32.vlgmr.msra.gmra.mrb[2].mxu0 %v9906_v32  ;;  %7373 = vmatpush3.bf16.msra.mxu1 %v7372_v20  ;;  %v7390_v20 = vpack.c.bf16 %v1054_v30, %v1045_v14  ;;  %v897_v30 = vld [vmem:[#allocation8 + $0x800] sm:$0xff] }
 0x30a   : > { %7150 = vmatpush1.bf16.msra.mxu0 %v7149_v22  ;;  %1421 = vmatprep.mubr.f32.mxu0 %v9902_v13  ;;  %v7173_v22 = vpack.c.bf16 %v762_v17, %v753_v16  ;;  %v916_v16 = vld [vmem:[#allocation8 + $0x898] sm:$0xff]  ;;  %v925_v17 = vld [vmem:[#allocation8 + $0x8e0] sm:$0xff] }
 0x30b   : > { %7374 = vmatprep.subr.bf16.mxu1 %v9404_v21  ;;  %7152 = vmatprep.subr.bf16.mxu0 %v7151_v25  ;;  %v7175_v25 = vpack.c.bf16 %v781_v19, %v772_v18  ;;  %v7207_v19 = vpack.c.bf16 %v925_v17, %v916_v16  ;;  %v793_v16 = vld [vmem:[#allocation8 + $0x4c0] sm:$0xff]  ;;  %v802_v17 = vld [vmem:[#allocation8 + $0x508] sm:$0xff] }
 0x30c   : > { %6857 = vmatprep.mubr.msk.f32.mxu1 %vm9405_vm0, %v9403_v5 }
 0x30d   : > { %7376 = vmatpush3.bf16.msra.mxu1 %v7375_v33  ;;  %v7393_v33 = vpack.c.bf16 %v1072_v24, %v1063_v23  ;;  %v934_v23 = vld [vmem:[#allocation8 + $0x928] sm:$0xff]  ;;  %v943_v24 = vld [vmem:[#allocation8 + $0x970] sm:$0xff] }
 0x30e   : > { %7154 = vmatpush1.bf16.msra.mxu0 %v7153_v34  ;;  %7377 = vmatprep.subr.bf16.mxu1 %v9404_v21  ;;  %v7177_v34 = vpack.c.bf16 %v780_v27, %v771_v26  ;;  %v7211_v26 = vpack.c.bf16 %v943_v24, %v934_v23  ;;  %v933_v27 = vld [vmem:[#allocation8 + $0x920] sm:$0xff]  ;;  %v811_v23 = vld [vmem:[#allocation8 + $0x550] sm:$0xff]  ;;  %v820_v24 = vld [vmem:[#allocation8 + $0x598] sm:$0xff] }
 0x30f   : > { %7156 = vmatprep.subr.bf16.mxu0 %v7155_v37  ;;  %v798_v37 = vld [vmem:[#allocation8 + $0x4e8] sm:$0xff] }
 0x310   : > { %v7181_v39 = vpack.c.bf16 %v798_v37, %v789_v36  ;;  %v951_v36 = vld [vmem:[#allocation8 + $0x9b0] sm:$0xff]  ;;  %v960_v37 = vld [vmem:[#allocation8 + $0x9f8] sm:$0xff] }
 0x311   : > { %7379 = vmatpush3.bf16.msra.mxu1 %v7378_v40  ;;  %v807_v40 = vld [vmem:[#allocation8 + $0x530] sm:$0xff] }
 0x312   : > { %7158 = vmatpush1.bf16.msra.mxu0 %v7157_v41  ;;  %7380 = vmatprep.subr.bf16.mxu1 %v9404_v21  ;;  %v816_v41 = vld [vmem:[#allocation8 + $0x578] sm:$0xff] }
 0x313   : > { %7160 = vmatprep.subr.bf16.mxu0 %v7159_v44  ;;  %v7185_v44 = vpack.c.bf16 %v816_v41, %v807_v40  ;;  %v969_v40 = vld [vmem:[#allocation8 + $0xa40] sm:$0xff]  ;;  %v978_v41 = vld [vmem:[#allocation8 + $0xa88] sm:$0xff] }
 0x315   : > { %7382 = vmatpush3.bf16.msra.mxu1 %v7381_v53  ;;  %v853_v53 = vld [vmem:[#allocation8 + $0x6a0] sm:$0xff] }
 0x316   : > { %7162 = vmatpush1.bf16.msra.mxu0 %v7161_v54  ;;  %7383 = vmatprep.subr.bf16.mxu1 %v9404_v21  ;;  %v7189_v54 = vpack.c.bf16 %v834_v51, %v825_v50  ;;  %v7191_v55 = vpack.c.bf16 %v853_v53, %v844_v52  ;;  %v987_v50 = vld [vmem:[#allocation8 + $0xad0] sm:$0xff]  ;;  %v996_v51 = vld [vmem:[#allocation8 + $0xb18] sm:$0xff]  ;;  %v1006_v52 = vld [vmem:[#allocation8 + $0xb68] sm:$0xff] }
 0x317   : > { %7164 = vmatprep.subr.bf16.mxu0 %v7163_v57  ;;  %v852_v57 = vld [vmem:[#allocation8 + $0x698] sm:$0xff]  ;;  %v1015_v53 = vld [vmem:[#allocation8 + $0xbb0] sm:$0xff] }
 0x318   : > { %v7193_v60 = vpack.c.bf16 %v852_v57, %v843_v56  ;;  %v1005_v56 = vld [vmem:[#allocation8 + $0xb60] sm:$0xff]  ;;  %v1014_v57 = vld [vmem:[#allocation8 + $0xba8] sm:$0xff] }
 0x319   : > { %7385 = vmatpush3.bf16.msra.mxu1 %v7384_v62  ;;  %v861_v62 = vld [vmem:[#allocation8 + $0x6e0] sm:$0xff] }
 0x31a   : > { %7166 = vmatpush1.bf16.msra.mxu0 %v7165_v63  ;;  %7386 = vmatprep.subr.bf16.mxu1 %v9404_v21  ;;  %v870_v63 = vld [vmem:[#allocation8 + $0x728] sm:$0xff] }
 0x31b   : > { %7168 = vmatprep.subr.bf16.mxu0 %v7167_v6  ;;  %v7197_v6 = vpack.c.bf16 %v870_v63, %v861_v62  ;;  %v1023_v62 = vld [vmem:[#allocation8 + $0xbf0] sm:$0xff]  ;;  %v1032_v63 = vld [vmem:[#allocation8 + $0xc38] sm:$0xff] }
 0x31d   : > { %7388 = vmatpush3.bf16.msra.mxu1 %v7387_v11  ;;  %v907_v11 = vld [vmem:[#allocation8 + $0x850] sm:$0xff] }
 0x31e   : > { %7170 = vmatpush1.bf16.msra.mxu0 %v7169_v12  ;;  %7389 = vmatprep.subr.bf16.mxu1 %v9404_v21  ;;  %v7201_v12 = vpack.c.bf16 %v888_v9, %v879_v8  ;;  %v7203_v14 = vpack.c.bf16 %v907_v11, %v898_v10  ;;  %v1041_v8 = vld [vmem:[#allocation8 + $0xc80] sm:$0xff]  ;;  %v1050_v9 = vld [vmem:[#allocation8 + $0xcc8] sm:$0xff]  ;;  %v1060_v10 = vld [vmem:[#allocation8 + $0xd18] sm:$0xff] }
 0x31f   : > { %7172 = vmatprep.subr.bf16.mxu0 %v7171_v15  ;;  %v906_v15 = vld [vmem:[#allocation8 + $0x848] sm:$0xff]  ;;  %v1069_v11 = vld [vmem:[#allocation8 + $0xd60] sm:$0xff] }
 0x320   : > { %v7205_v18 = vpack.c.bf16 %v906_v15, %v897_v30  ;;  %v1059_v30 = vld [vmem:[#allocation8 + $0xd10] sm:$0xff]  ;;  %v1068_v15 = vld [vmem:[#allocation8 + $0xd58] sm:$0xff] }
 0x321   : > { %7391 = vmatpush3.bf16.msra.mxu1 %v7390_v20  ;;  %v915_v20 = vld [vmem:[#allocation8 + $0x890] sm:$0xff] }
 0x322   : > { %7174 = vmatpush1.bf16.msra.mxu0 %v7173_v22  ;;  %7392 = vmatprep.subr.bf16.mxu1 %v9404_v21  ;;  %v924_v22 = vld [vmem:[#allocation8 + $0x8d8] sm:$0xff] }
 0x323   : > { %7176 = vmatprep.subr.bf16.mxu0 %v7175_v25  ;;  %v7209_v25 = vpack.c.bf16 %v924_v22, %v915_v20  ;;  %v649_v20 = vld [vmem:[#allocation8 + $0x40] sm:$0xff]  ;;  %v658_v22 = vld [vmem:[#allocation8 + $0x88] sm:$0xff] }
 0x325   : > { %7394 = vmatpush3.bf16.msra.mxu1 %v7393_v33  ;;  %v961_v33 = vld [vmem:[#allocation8 + $0xa00] sm:$0xff] }
 0x326   : > { %7178 = vmatpush1.bf16.msra.mxu0 %v7177_v34  ;;  %6905 = vmatprep.subr.mxu1 %v9403_v5  ;;  %v7213_v34 = vpack.c.bf16 %v942_v28, %v933_v27  ;;  %v667_v27 = vld [vmem:[#allocation8 + $0xd0] sm:$0xff]  ;;  %v676_v28 = vld [vmem:[#allocation8 + $0x118] sm:$0xff] }
 0x327   : > { %7180 = vmatprep.subr.bf16.mxu0 %v7179_v35  ;;  %v7215_v35 = vpack.c.bf16 %v961_v33, %v952_v29  ;;  %v829_v29 = vld [vmem:[#allocation8 + $0x5e0] sm:$0xff]  ;;  %v838_v33 = vld [vmem:[#allocation8 + $0x628] sm:$0xff] }
 0x328   : > { %6858 = vmatmul.mubr.f32.vlgmr.msra.gmra.mrb[4].mxu1 %v9904_v31 }
 0x329   : > { %6907 = vmatprep.mubr.msk.f32.mxu1 %vm9405_vm0, %v9403_v5 }
 0x32a   : > { %7182 = vmatpush1.bf16.msra.mxu0 %v7181_v39  ;;  %v7217_v39 = vpack.c.bf16 %v960_v37, %v951_v36  ;;  %v685_v36 = vld [vmem:[#allocation8 + $0x160] sm:$0xff]  ;;  %v694_v37 = vld [vmem:[#allocation8 + $0x1a8] sm:$0xff] }
 0x32b   : > { %7184 = vmatprep.subr.bf16.mxu0 %v7183_v1  ;;  %v7219_v1 = vpack.c.bf16 %v979_v38, %v970_v0  ;;  %v847_v0 = vld [vmem:[#allocation8 + $0x670] sm:$0xff]  ;;  %v856_v38 = vld [vmem:[#allocation8 + $0x6b8] sm:$0xff] }
 0x32e   : > { %7186 = vmatpush1.bf16.msra.mxu0 %v7185_v44  ;;  %v7221_v44 = vpack.c.bf16 %v978_v41, %v969_v40  ;;  %v703_v40 = vld [vmem:[#allocation8 + $0x1f0] sm:$0xff]  ;;  %v712_v41 = vld [vmem:[#allocation8 + $0x238] sm:$0xff] }
 0x32f   : > { %7188 = vmatprep.subr.bf16.mxu0 %v7187_v49  ;;  %v7223_v49 = vpack.c.bf16 %v997_v42, %v988_v2  ;;  %v865_v2 = vld [vmem:[#allocation8 + $0x700] sm:$0xff]  ;;  %v874_v42 = vld [vmem:[#allocation8 + $0x748] sm:$0xff] }
 0x332   : > { %7190 = vmatpush1.bf16.msra.mxu0 %v7189_v54  ;;  %v7225_v54 = vpack.c.bf16 %v996_v51, %v987_v50  ;;  %v883_v50 = vld [vmem:[#allocation8 + $0x790] sm:$0xff]  ;;  %v892_v51 = vld [vmem:[#allocation8 + $0x7d8] sm:$0xff] }
 0x333   : > { %7192 = vmatprep.subr.bf16.mxu0 %v7191_v55  ;;  %v7227_v55 = vpack.c.bf16 %v1015_v53, %v1006_v52  ;;  %v7359_v53 = vpack.c.bf16 %v892_v51, %v883_v50 }
 0x336   : > { %7194 = vmatpush1.bf16.msra.mxu0 %v7193_v60  ;;  %v7229_v60 = vpack.c.bf16 %v1014_v57, %v1005_v56  ;;  %v901_v56 = vld [vmem:[#allocation8 + $0x820] sm:$0xff]  ;;  %v910_v57 = vld [vmem:[#allocation8 + $0x868] sm:$0xff] }
 0x337   : > { %7196 = vmatprep.subr.bf16.mxu0 %v7195_v61  ;;  %v7231_v61 = vpack.c.bf16 %v1033_v59, %v1024_v58 }
 0x33a   : > { %7198 = vmatpush1.bf16.msra.mxu0 %v7197_v6  ;;  %v7233_v6 = vpack.c.bf16 %v1032_v63, %v1023_v62  ;;  %v766_v62 = vld [vmem:[#allocation8 + $0x3e8] sm:$0xff] }
 0x33b   : > { %7200 = vmatprep.subr.bf16.mxu0 %v7199_v7  ;;  %v7235_v7 = vpack.c.bf16 %v1051_v4, %v1042_v3  ;;  %v919_v3 = vld [vmem:[#allocation8 + $0x8b0] sm:$0xff]  ;;  %v928_v4 = vld [vmem:[#allocation8 + $0x8f8] sm:$0xff] }
 0x33e   : > { %7202 = vmatpush1.bf16.msra.mxu0 %v7201_v12  ;;  %v7237_v12 = vpack.c.bf16 %v1050_v9, %v1041_v8  ;;  %v775_v8 = vld [vmem:[#allocation8 + $0x430] sm:$0xff]  ;;  %v784_v9 = vld [vmem:[#allocation8 + $0x478] sm:$0xff] }
 0x33f   : > { %7204 = vmatprep.subr.bf16.mxu0 %v7203_v14  ;;  %v7239_v14 = vpack.c.bf16 %v1069_v11, %v1060_v10  ;;  %v7369_v10 = vpack.c.bf16 %v784_v9, %v775_v8 }
 0x342   : > { %7206 = vmatpush1.bf16.msra.mxu0 %v7205_v18  ;;  %v7241_v18 = vpack.c.bf16 %v1068_v15, %v1059_v30 }
 0x343   : > { %7208 = vmatprep.subr.bf16.mxu0 %v7207_v19  ;;  %v7339_v19 = vpack.c.bf16 %v802_v17, %v793_v16 }
 0x346   : > { %7210 = vmatpush1.bf16.msra.mxu0 %v7209_v25  ;;  %v7341_v25 = vpack.c.bf16 %v658_v22, %v649_v20 }
 0x347   : > { %7212 = vmatprep.subr.bf16.mxu0 %v7211_v26  ;;  %v7343_v26 = vpack.c.bf16 %v820_v24, %v811_v23 }
 0x349   : > { %1422 = vmatmul.mubr.f32.vlgmr.msra.gmra.mrb[4].mxu0 %v9906_v32 }
 0x34a   : > { %7214 = vmatpush1.bf16.msra.mxu0 %v7213_v34  ;;  %1492 = vmatprep.mubr.f32.mxu0 %v9403_v5  ;;  %v7345_v34 = vpack.c.bf16 %v676_v28, %v667_v27  ;;  %v1784_v27 = vand.u32 127, %v603_v43 }
 0x34b   : > { %7216 = vmatprep.subr.bf16.mxu0 %v7215_v35  ;;  %v7347_v35 = vpack.c.bf16 %v838_v33, %v829_v29  ;;  %v2884_v29 = vld [vmem:[#allocation10 + $0x2d8] sm:$0xff] }
 0x34c   : > { %vm9968_vm2 = vcmp.le.s32.totalorder %v1784_v27, %v9882_v45 }
 0x34e   : > { %7218 = vmatpush1.bf16.msra.mxu0 %v7217_v39  ;;  %v7349_v39 = vpack.c.bf16 %v694_v37, %v685_v36 }
 0x34f   : > { %7220 = vmatprep.subr.bf16.mxu0 %v7219_v1  ;;  %v7351_v1 = vpack.c.bf16 %v856_v38, %v847_v0 }
 0x352   : > { %7222 = vmatpush1.bf16.msra.mxu0 %v7221_v44  ;;  %v7355_v44 = vpack.c.bf16 %v874_v42, %v865_v2 }
 0x353   : > { %7224 = vmatprep.subr.bf16.mxu0 %v7223_v49  ;;  %v730_v49 = vld [vmem:[#allocation8 + $0x2c8] sm:$0xff] }
 0x356   : > { %7226 = vmatpush1.bf16.msra.mxu0 %v7225_v54  ;;  %v739_v54 = vld [vmem:[#allocation8 + $0x310] sm:$0xff] }
 0x357   : > { %7228 = vmatprep.subr.bf16.mxu0 %v7227_v55  ;;  %v748_v55 = vld [vmem:[#allocation8 + $0x358] sm:$0xff] }
 0x358   : > { %v7361_v58 = vpack.c.bf16 %v748_v55, %v739_v54 }
 0x35a   : > { %7230 = vmatpush1.bf16.msra.mxu0 %v7229_v60  ;;  %v7363_v60 = vpack.c.bf16 %v910_v57, %v901_v56 }
 0x35b   : > { %7232 = vmatprep.subr.bf16.mxu0 %v7231_v61  ;;  %v757_v61 = vld [vmem:[#allocation8 + $0x3a0] sm:$0xff] }
 0x35e   : > { %7234 = vmatpush1.bf16.msra.mxu0 %v7233_v6  ;;  %v7365_v6 = vpack.c.bf16 %v766_v62, %v757_v61 }
 0x35f   : > { %7236 = vmatprep.subr.bf16.mxu0 %v7235_v7  ;;  %v7367_v7 = vpack.c.bf16 %v928_v4, %v919_v3 }
 0x362   : > { %7238 = vmatpush1.bf16.msra.mxu0 %v7237_v12 }
 0x363   : > { %7240 = vmatprep.subr.bf16.mxu0 %v7239_v14 }
 0x366   : > { %7242 = vmatpush1.bf16.msra.mxu0 %v7241_v18 }
 0x367   : > { %7340 = vmatprep.subr.bf16.mxu0 %v7339_v19 }
 0x369   : > { %1493 = vmatmul.mubr.f32.vlgmr.msra.gmra.mrb[4].mxu0 %v9904_v31  ;;  %v7353_v31 = vpack.c.bf16 %v712_v41, %v703_v40 }
 0x36a   : > { %7342 = vmatpush3.bf16.msra.mxu0 %v7341_v25  ;;  %1705 = vmatprep.mubr.f32.mxu0 %v9902_v13  ;;  %v721_v13 = vld [vmem:[#allocation8 + $0x280] sm:$0xff] }
 0x36b   : > { %7344 = vmatprep.subr.bf16.mxu0 %v7343_v26  ;;  %v7357_v52 = vpack.c.bf16 %v730_v49, %v721_v13 }
 0x36e   : > { %7346 = vmatpush3.bf16.msra.mxu0 %v7345_v34 }
 0x36f   : > { %7348 = vmatprep.subr.bf16.mxu0 %v7347_v35 }
 0x372   : > { %7350 = vmatpush3.bf16.msra.mxu0 %v7349_v39 }
 0x373   : > { %7352 = vmatprep.subr.bf16.mxu0 %v7351_v1 }
 0x376   : > { %7354 = vmatpush3.bf16.msra.mxu0 %v7353_v31 }
 0x377   : > { %7356 = vmatprep.subr.bf16.mxu0 %v7355_v44 }
 0x37a   : > { %7358 = vmatpush3.bf16.msra.mxu0 %v7357_v52 }
 0x37b   : > { %v1352_v59 = vpop.f32.mrb[0].mxu1  ;;  %7360 = vmatprep.subr.bf16.mxu0 %v7359_v53 }
 0x37c   : > { %v1354_v63 = vpop.f32.mrb[1].mxu1 }
 0x37e   : > { %7362 = vmatpush3.bf16.msra.mxu0 %v7361_v58 }
 0x37f   : > { %7364 = vmatprep.subr.bf16.mxu0 %v7363_v60 }
 0x382   : > { %7366 = vmatpush3.bf16.msra.mxu0 %v7365_v6 }
 0x383   : > { %7368 = vmatprep.subr.bf16.mxu0 %v7367_v7 }
 0x386   : > { %7370 = vmatpush3.bf16.msra.mxu0 %v7369_v10 }
 0x387   : > { %6860 = vmatprep.subr.mxu0 %v9403_v5 }
 0x389   : > { %1706 = vmatmul.mubr.f32.vlgmr.msra.gmra.mrb[6].mxu0 %v9906_v32 }
 0x38a   : > { %6862 = vmatprep.mubr.msk.f32.mxu0 %vm9405_vm0, %v9403_v5 }
 0x39c   : > { %v1210_v11 = vpop.f32.mrb[0].mxu0 }
 0x39d   : > { %v9942_v12 = vpop.f32.mrb[1].mxu0 }
 0x3db   : > { %v9944_v14 = vpop.f32.mrb[2].mxu1 }
 0x3dc   : > { %v1281_v30 = vpop.f32.mrb[2].mxu0  ;;  %v9946_v15 = vpop.f32.mrb[3].mxu1 }
 0x3dd   : > { %v9948_v16 = vadd.f32 %v1352_v59, %v1281_v30  ;;  %v1283_v17 = vpop.f32.mrb[3].mxu0 }
 0x3de   : > { %v1355_v18 = vadd.f32 %v1354_v63, %v1283_v17 }
 0x3e0   : > { %1952 = vrot.lane.b32.xlu0 %v1355_v18, %s9406_s28  ;;  %6861 = vmatpush3.xpose.msk.msra.mxu0 %vm1786_vm1, %v1355_v18 }
 0x3e1   : > { %6865 = vmatprep.subr.mxu0 %v9403_v5 }
 0x3e3   : > { %6863 = vmatmul.mubr.msk.f32.vlgmr.msra.gmra.mrb[8].mxu0 %vm1786_vm1, %v1210_v11 }
 0x3e4   : > { %6866 = vmatpush3.msra.mxu0 %v9944_v14  ;;  %6867 = vmatprep.mubr.msk.f32.mxu0 %vm9405_vm0, %v9403_v5 }
 0x3e5   : > { %6870 = vmatprep.subr.mxu0 %v9403_v5 }
 0x3fb   : > { %v1777_v32 = vpop.f32.mrb[4].mxu1 }
 0x3fc   : > { %v6859_v19 = vpop.f32.mrb[5].mxu1 }
 0x43c   : > { %v9958_v20 = vpop.f32.mrb[4].mxu0 }
 0x43d   : > { %v9960_v22 = vpop.f32.mrb[5].mxu0 }
 0x452   : > { %v1953_v2 = vpop.permute.xlu0 %1952 }
 0x45c   : > { %v6519_v23 = vpop.f32.mrb[6].mxu0 }
 0x45d   : > { %v6520_v24 = vpop.f32.mrb[7].mxu0 }
 0x45e   : > { %v6521_v25 = vadd.f32 %v6520_v24, %v6519_v23 }
 0x460   : > { %v9962_v26 = vadd.f32 %v6521_v25, %v1777_v32 }
 0x462   : > { %6906 = vmatpush3.msra.mxu1 %v9962_v26 }
 0x463   : > { %6915 = vmatprep.subr.mxu1 %v9403_v5 }
 0x4b6   : > { %v1859_v28 = vpop.f32.mrb[8].mxu0 }
 0x4b7   : > { %v1863_v33 = vmul.f32 0.05103104, %v1859_v28  ;;  %v6864_v34 = vpop.f32.mrb[9].mxu0 }
 0x4b9   : > { %v1864_v35 = vsel %vm9968_vm2, %v1863_v33, -1e+30 }
 0x4ba   : > { %v1866_v36 = vsel %vm1865_vm3, %v1864_v35, -inf }
 0x4bb   : > { %1867 = vmax.xlane.f32.xlu1 %v1866_v36 }
 0x548   : > { %v1868_v37 = vpop.xlane.xlu1 %1867 }
 0x549   : > { %v1869_v0 = vsub.f32 %v1864_v35, %v1868_v37 }
 0x54b   : > { %v1870_v38 = vmul.f32 1.442695, %v1869_v0 }
 0x54d   : > { %8925 = vpow2.f32 %v1870_v38 }
 0x557   : > { %v8926_v43 = vpop.eup %8925 }
 0x558   : > { %v1872_v39 = vsel %vm1865_vm3, %v8926_v43, 0.0 }
 0x559   : > { %1873 = vadd.xlane.f32.xlu1 %v1872_v39 }
 0x56a   : > { %1950 = vrot.lane.b32.xlu1 %v1210_v11, %s9406_s28 }
 0x5e6   : > { %v1874_v1 = vpop.xlane.xlu1 %1873 }
 0x5e7   : > { %8927 = vrcp.f32 %v1874_v1 }
 0x5ea   : > { %v1951_v42 = vpop.permute.xlu1 %1950 }
 0x5f1   : > { %v8928_v40 = vpop.eup %8927 }
 0x5f2   : > { %v1876_v41 = vmul.f32 %v8928_v40, %v8926_v43 }
 0x5f4   : > { %6868 = vmatmul.mubr.msk.f32.vlgmr.msra.gmra.mrb[10].mxu0 %vm1865_vm3, %v1876_v41  ;;  %v2794_v41 = vld [vmem:[#allocation10 + $0x8] sm:$0xff] }
 0x5f5   : > { %6871 = vmatpush3.xpose.msk.msra.mxu0 %vm1786_vm1, %v1953_v2  ;;  %6872 = vmatprep.mubr.msk.f32.mxu0 %vm9405_vm0, %v9403_v5  ;;  %v2797_v2 = vld [vmem:[#allocation10 + $0x20] sm:$0xff] }
 0x5f6   : > { %6875 = vmatprep.subr.mxu0 %v9403_v5 }
 0x5f8   : > { %6873 = vmatmul.mubr.msk.f32.vlgmr.msra.gmra.mrb[12].mxu0 %vm1786_vm1, %v1951_v42  ;;  %v2793_v42 = vld [vmem:[#allocation10] sm:$0xff] }
 0x5f9   : > { %6877 = vmatprep.mubr.msk.f32.mxu0 %vm9405_vm0, %v9403_v5 }
 0x6c7   : > { %v9985_v31 = vpop.f32.mrb[10].mxu0 }
 0x6c8   : > { %v6869_v44 = vpop.f32.mrb[11].mxu0 }
 0x6c9   : > { %v2796_v44 = vld [vmem:[#allocation10 + $0x18] sm:$0xff] }
 0x6cb   : > { %v2024_v13 = vpop.f32.mrb[12].mxu0 }
 0x6cc   : > { %v2028_v49 = vmul.f32 0.05103104, %v2024_v13  ;;  %v6874_v50 = vpop.f32.mrb[13].mxu0  ;;  %v2800_v13 = vld [vmem:[#allocation10 + $0x38] sm:$0xff] }
 0x6cd   : > { %v7397_v50 = vpack.c.bf16 %v2796_v44, %v2793_v42  ;;  %v2847_v44 = vld [vmem:[#allocation10 + $0x1b0] sm:$0xff] }
 0x6ce   : > { %v2029_v51 = vsel %vm9968_vm2, %v2028_v49, -1e+30  ;;  %v2803_v49 = vld [vmem:[#allocation10 + $0x50] sm:$0xff] }
 0x6cf   : > { %v2030_v52 = vsel %vm1865_vm3, %v2029_v51, -inf }
 0x6d0   : > { %2031 = vmax.xlane.f32.xlu1 %v2030_v52  ;;  %v2799_v52 = vld [vmem:[#allocation10 + $0x30] sm:$0xff] }
 0x75d   : > { %v2032_v53 = vpop.xlane.xlu1 %2031 }
 0x75e   : > { %v2033_v54 = vsub.f32 %v2029_v51, %v2032_v53  ;;  %v7399_v51 = vpack.c.bf16 %v2803_v49, %v2800_v13  ;;  %v2802_v53 = vld [vmem:[#allocation10 + $0x48] sm:$0xff] }
 0x75f   : > { %v2850_v13 = vld [vmem:[#allocation10 + $0x1c8] sm:$0xff] }
 0x760   : > { %v2034_v55 = vmul.f32 1.442695, %v2033_v54  ;;  %v2809_v54 = vld [vmem:[#allocation10 + $0x80] sm:$0xff]  ;;  %v2854_v49 = vld [vmem:[#allocation10 + $0x1e8] sm:$0xff] }
 0x762   : > { %8929 = vpow2.f32 %v2034_v55  ;;  %v7401_v55 = vpack.c.bf16 %v2802_v53, %v2799_v52  ;;  %v2853_v53 = vld [vmem:[#allocation10 + $0x1e0] sm:$0xff] }
 0x76c   : > { %v8930_v56 = vpop.eup %8929 }
 0x76d   : > { %v2036_v57 = vsel %vm1865_vm3, %v8930_v56, 0.0 }
 0x76e   : > { %2037 = vadd.xlane.f32.xlu0 %v2036_v57  ;;  %v2805_v57 = vld [vmem:[#allocation10 + $0x60] sm:$0xff] }
 0x784   : > { %2042 = vrot.lane.b32.xlu0 %v9944_v14, %s9406_s28 }
 0x788   : > { %2280 = vrot.lane.b32.xlu0 %v9942_v12, %s9406_s28 }
 0x7fb   : > { %v2038_v58 = vpop.xlane.xlu0 %2037 }
 0x7fc   : > { %8931 = vrcp.f32 %v2038_v58  ;;  %v2808_v58 = vld [vmem:[#allocation10 + $0x78] sm:$0xff] }
 0x7ff   : > { %v2043_v59 = vpop.permute.xlu0 %2042 }
 0x800   : > { %6876 = vmatpush3.msra.mxu0 %v2043_v59  ;;  %v2812_v59 = vld [vmem:[#allocation10 + $0x98] sm:$0xff] }
 0x801   : > { %6880 = vmatprep.subr.mxu0 %v9403_v5 }
 0x803   : > { %v2281_v19 = vpop.permute.xlu0 %2280 }
 0x806   : > { %v8932_v60 = vpop.eup %8931 }
 0x807   : > { %v2040_v61 = vmul.f32 %v8932_v60, %v8930_v56  ;;  %v2815_v60 = vld [vmem:[#allocation10 + $0xb0] sm:$0xff] }
 0x809   : > { %6878 = vmatmul.mubr.msk.f32.vlgmr.msra.gmra.mrb[14].mxu0 %vm1865_vm3, %v2040_v61  ;;  %v7405_v61 = vpack.c.bf16 %v2808_v58, %v2805_v57  ;;  %v2859_v58 = vld [vmem:[#allocation10 + $0x210] sm:$0xff] }
 0x80a   : > { %6881 = vmatpush3.xpose.msk.msra.mxu0 %vm1786_vm1, %v9958_v20  ;;  %6882 = vmatprep.mubr.msk.f32.mxu0 %vm9405_vm0, %v9403_v5 }
 0x80b   : > { %6885 = vmatprep.subr.mxu0 %v9403_v5 }
 0x80d   : > { %6883 = vmatmul.mubr.msk.f32.vlgmr.msra.gmra.mrb[16].mxu0 %vm1786_vm1, %v9942_v12 }
 0x80e   : > { %6886 = vmatpush3.msra.mxu0 %v9946_v15  ;;  %6887 = vmatprep.mubr.msk.f32.mxu0 %vm9405_vm0, %v9403_v5 }
 0x80f   : > { %6890 = vmatprep.subr.mxu0 %v9403_v5 }
 0x8dc   : > { %v10008_v62 = vpop.f32.mrb[14].mxu0 }
 0x8dd   : > { %v6879_v63 = vpop.f32.mrb[15].mxu0 }
 0x8de   : > { %v7407_v63 = vpack.c.bf16 %v2815_v60, %v2812_v59  ;;  %v2862_v59 = vld [vmem:[#allocation10 + $0x228] sm:$0xff] }
 0x8df   : > { %v2866_v60 = vld [vmem:[#allocation10 + $0x248] sm:$0xff] }
 0x8e0   : > { %v2190_v3 = vpop.f32.mrb[16].mxu0 }
 0x8e1   : > { %v2194_v4 = vmul.f32 0.05103104, %v2190_v3  ;;  %v6884_v6 = vpop.f32.mrb[17].mxu0  ;;  %v2811_v3 = vld [vmem:[#allocation10 + $0x90] sm:$0xff] }
 0x8e2   : > { %v2818_v6 = vld [vmem:[#allocation10 + $0xc8] sm:$0xff] }
 0x8e3   : > { %v2195_v7 = vsel %vm9968_vm2, %v2194_v4, -1e+30  ;;  %v2814_v4 = vld [vmem:[#allocation10 + $0xa8] sm:$0xff] }
 0x8e4   : > { %v2196_v8 = vsel %vm1865_vm3, %v2195_v7, -inf }
 0x8e5   : > { %2197 = vmax.xlane.f32.xlu1 %v2196_v8  ;;  %v7409_v8 = vpack.c.bf16 %v2814_v4, %v2811_v3  ;;  %v2865_v4 = vld [vmem:[#allocation10 + $0x240] sm:$0xff] }
 0x972   : > { %v2198_v9 = vpop.xlane.xlu1 %2197 }
 0x973   : > { %v2199_v10 = vsub.f32 %v2195_v7, %v2198_v9  ;;  %v2821_v7 = vld [vmem:[#allocation10 + $0xe0] sm:$0xff] }
 0x974   : > { %v7411_v9 = vpack.c.bf16 %v2821_v7, %v2818_v6  ;;  %v2868_v6 = vld [vmem:[#allocation10 + $0x258] sm:$0xff] }
 0x975   : > { %v2200_v11 = vmul.f32 1.442695, %v2199_v10  ;;  %v2817_v10 = vld [vmem:[#allocation10 + $0xc0] sm:$0xff]  ;;  %v7445_v7 = vpack.c.bf16 %v2868_v6, %v2865_v4  ;;  %v2798_v4 = vld [vmem:[#allocation10 + $0x28] sm:$0xff] }
 0x976   : > { %v2849_v6 = vld [vmem:[#allocation10 + $0x1c0] sm:$0xff] }
 0x977   : > { %8933 = vpow2.f32 %v2200_v11  ;;  %v2820_v11 = vld [vmem:[#allocation10 + $0xd8] sm:$0xff] }
 0x981   : > { %v8934_v12 = vpop.eup %8933 }
 0x982   : > { %v2202_v14 = vsel %vm1865_vm3, %v8934_v12, 0.0 }
 0x983   : > { %2203 = vadd.xlane.f32.xlu1 %v2202_v14  ;;  %v2827_v14 = vld [vmem:[#allocation10 + $0x110] sm:$0xff] }
 0x994   : > { %2282 = vrot.lane.b32.xlu1 %v9958_v20, %s9406_s28 }
 0xa10   : > { %v2204_v30 = vpop.xlane.xlu1 %2203 }
 0xa11   : > { %8935 = vrcp.f32 %v2204_v30  ;;  %v7413_v30 = vpack.c.bf16 %v2820_v11, %v2817_v10 }
 0xa14   : > { %v2283_v32 = vpop.permute.xlu1 %2282 }
 0xa1b   : > { %v8936_v17 = vpop.eup %8935 }
 0xa1c   : > { %v2206_v18 = vmul.f32 %v8936_v17, %v8934_v12  ;;  %v2824_v12 = vld [vmem:[#allocation10 + $0xf8] sm:$0xff] }
 0xa1d   : > { %v7415_v17 = vpack.c.bf16 %v2827_v14, %v2824_v12 }
 0xa1e   : > { %6888 = vmatmul.mubr.msk.f32.vlgmr.msra.gmra.mrb[18].mxu0 %vm1865_vm3, %v2206_v18  ;;  %v2823_v18 = vld [vmem:[#allocation10 + $0xf0] sm:$0xff] }
 0xa1f   : > { %6891 = vmatpush3.xpose.msk.msra.mxu0 %vm1786_vm1, %v2283_v32  ;;  %6892 = vmatprep.mubr.msk.f32.mxu0 %vm9405_vm0, %v9403_v5  ;;  %v2826_v32 = vld [vmem:[#allocation10 + $0x108] sm:$0xff] }
 0xa20   : > { %6895 = vmatprep.subr.mxu0 %v9403_v5 }
 0xa22   : > { %6893 = vmatmul.mubr.msk.f32.vlgmr.msra.gmra.mrb[20].mxu0 %vm1786_vm1, %v2281_v19  ;;  %v2830_v19 = vld [vmem:[#allocation10 + $0x128] sm:$0xff] }
 0xa23   : > { %6897 = vmatprep.mubr.msk.f32.mxu0 %vm9405_vm0, %v9403_v5 }
 0xaf1   : > { %v10024_v20 = vpop.f32.mrb[18].mxu0 }
 0xaf2   : > { %v6889_v23 = vpop.f32.mrb[19].mxu0 }
 0xaf3   : > { %v2833_v23 = vld [vmem:[#allocation10 + $0x140] sm:$0xff] }
 0xaf5   : > { %v2354_v24 = vpop.f32.mrb[20].mxu0 }
 0xaf6   : > { %v2358_v25 = vmul.f32 0.05103104, %v2354_v24  ;;  %v6894_v27 = vpop.f32.mrb[21].mxu0  ;;  %v7417_v24 = vpack.c.bf16 %v2826_v32, %v2823_v18 }
 0xaf7   : > { %v2829_v27 = vld [vmem:[#allocation10 + $0x120] sm:$0xff] }
 0xaf8   : > { %v2359_v28 = vsel %vm9968_vm2, %v2358_v25, -1e+30  ;;  %v7419_v25 = vpack.c.bf16 %v2833_v23, %v2830_v19 }
 0xaf9   : > { %v2360_v33 = vsel %vm1865_vm3, %v2359_v28, -inf }
 0xafa   : > { %2361 = vmax.xlane.f32.xlu1 %v2360_v33  ;;  %v2836_v33 = vld [vmem:[#allocation10 + $0x158] sm:$0xff] }
 0xb0b   : > { %2612 = vrot.lane.b32.xlu1 %v9960_v22, %s9406_s28 }
 0xb0f   : > { %2610 = vrot.lane.b32.xlu1 %v9948_v16, %s9406_s28 }
 0xb87   : > { %v2362_v34 = vpop.xlane.xlu1 %2361 }
 0xb88   : > { %v2363_v35 = vsub.f32 %v2359_v28, %v2362_v34  ;;  %v2832_v28 = vld [vmem:[#allocation10 + $0x138] sm:$0xff]  ;;  %v2839_v34 = vld [vmem:[#allocation10 + $0x170] sm:$0xff] }
 0xb8a   : > { %v2364_v36 = vmul.f32 1.442695, %v2363_v35  ;;  %v7421_v35 = vpack.c.bf16 %v2832_v28, %v2829_v27  ;;  %v2871_v28 = vld [vmem:[#allocation10 + $0x270] sm:$0xff] }
 0xb8b   : > { %v2613_v40 = vpop.permute.xlu1 %2612 }
 0xb8c   : > { %8937 = vpow2.f32 %v2364_v36  ;;  %v7423_v36 = vpack.c.bf16 %v2839_v34, %v2836_v33  ;;  %v2874_v33 = vld [vmem:[#allocation10 + $0x288] sm:$0xff] }
 0xb8d   : > { %v7449_v34 = vpack.c.bf16 %v2874_v33, %v2871_v28  ;;  %v2813_v28 = vld [vmem:[#allocation10 + $0xa0] sm:$0xff]  ;;  %v2816_v33 = vld [vmem:[#allocation10 + $0xb8] sm:$0xff] }
 0xb96   : > { %v8938_v37 = vpop.eup %8937 }
 0xb97   : > { %v2366_v0 = vsel %vm1865_vm3, %v8938_v37, 0.0 }
 0xb98   : > { %2367 = vadd.xlane.f32.xlu0 %v2366_v0  ;;  %v2838_v0 = vld [vmem:[#allocation10 + $0x168] sm:$0xff] }
 0xbae   : > { %2372 = vrot.lane.b32.xlu0 %v9946_v15, %s9406_s28  ;;  %v2611_v15 = vpop.permute.xlu1 %2610 }
 0xc25   : > { %v2368_v38 = vpop.xlane.xlu0 %2367 }
 0xc26   : > { %8939 = vrcp.f32 %v2368_v38  ;;  %v2842_v38 = vld [vmem:[#allocation10 + $0x188] sm:$0xff] }
 0xc29   : > { %v2373_v43 = vpop.permute.xlu0 %2372 }
 0xc2a   : > { %6896 = vmatpush3.msra.mxu0 %v2373_v43  ;;  %v2845_v43 = vld [vmem:[#allocation10 + $0x1a0] sm:$0xff] }
 0xc2b   : > { %6900 = vmatprep.subr.mxu0 %v9403_v5 }
 0xc30   : > { %v8940_v39 = vpop.eup %8939 }
 0xc31   : > { %v2370_v1 = vmul.f32 %v8940_v39, %v8938_v37  ;;  %v2835_v37 = vld [vmem:[#allocation10 + $0x150] sm:$0xff] }
 0xc32   : > { %v7425_v39 = vpack.c.bf16 %v2838_v0, %v2835_v37  ;;  %v2877_v0 = vld [vmem:[#allocation10 + $0x2a0] sm:$0xff] }
 0xc33   : > { %6898 = vmatmul.mubr.msk.f32.vlgmr.msra.gmra.mrb[22].mxu0 %vm1865_vm3, %v2370_v1  ;;  %v7427_v1 = vpack.c.bf16 %v2845_v43, %v2842_v38  ;;  %v2880_v38 = vld [vmem:[#allocation10 + $0x2b8] sm:$0xff] }
 0xc34   : > { %6901 = vmatpush3.xpose.msk.msra.mxu0 %vm1786_vm1, %v9960_v22  ;;  %6902 = vmatprep.mubr.msk.f32.mxu0 %vm9405_vm0, %v9403_v5  ;;  %v7395_v22 = vpack.c.bf16 %v2797_v2, %v2794_v41  ;;  %v2848_v41 = vld [vmem:[#allocation10 + $0x1b8] sm:$0xff]  ;;  %v2851_v2 = vld [vmem:[#allocation10 + $0x1d0] sm:$0xff]  ;;  %v7453_v43 = vpack.c.bf16 %v2880_v38, %v2877_v0  ;;  %v2822_v38 = vld [vmem:[#allocation10 + $0xe8] sm:$0xff] }
 0xc35   : > { %6910 = vmatprep.subr.mxu0 %v9403_v5  ;;  %v2819_v0 = vld [vmem:[#allocation10 + $0xd0] sm:$0xff] }
 0xc37   : > { %6903 = vmatmul.mubr.msk.f32.vlgmr.msra.gmra.mrb[24].mxu0 %vm1786_vm1, %v9948_v16  ;;  %v2806_v16 = vld [vmem:[#allocation10 + $0x68] sm:$0xff] }
 0xc38   : > { %6911 = vmatpush3.xpose.msk.msra.mxu0 %vm1786_vm1, %v2613_v40  ;;  %6912 = vmatprep.mubr.msk.f32.mxu0 %vm9405_vm0, %v9403_v5  ;;  %v7403_v56 = vpack.c.bf16 %v2809_v54, %v2806_v16  ;;  %v2841_v40 = vld [vmem:[#allocation10 + $0x180] sm:$0xff]  ;;  %v2856_v16 = vld [vmem:[#allocation10 + $0x1f8] sm:$0xff] }
 0xc39   : > { %7396 = vmatprep.subr.bf16.mxu0 %v7395_v22  ;;  %v7431_v22 = vpack.c.bf16 %v2851_v2, %v2848_v41  ;;  %v2860_v54 = vld [vmem:[#allocation10 + $0x218] sm:$0xff] }
 0xc3b   : > { %6913 = vmatmul.mubr.msk.f32.vlgmr.msra.gmra.mrb[26].mxu0 %vm1786_vm1, %v2611_v15  ;;  %v2844_v15 = vld [vmem:[#allocation10 + $0x198] sm:$0xff] }
 0xc3c   : > { %7398 = vmatpush1.bf16.msra.mxu0 %v7397_v50  ;;  %v7429_v42 = vpack.c.bf16 %v2844_v15, %v2841_v40  ;;  %v2857_v50 = vld [vmem:[#allocation10 + $0x200] sm:$0xff]  ;;  %v2883_v40 = vld [vmem:[#allocation10 + $0x2d0] sm:$0xff]  ;;  %v2886_v15 = vld [vmem:[#allocation10 + $0x2e8] sm:$0xff] }
 0xc3d   : > { %7400 = vmatprep.subr.bf16.mxu0 %v7399_v51  ;;  %v7433_v51 = vpack.c.bf16 %v2850_v13, %v2847_v44  ;;  %v7435_v52 = vpack.c.bf16 %v2857_v50, %v2854_v49  ;;  %v7457_v41 = vpack.c.bf16 %v2886_v15, %v2883_v40  ;;  %v2825_v40 = vld [vmem:[#allocation10 + $0x100] sm:$0xff]  ;;  %v2828_v15 = vld [vmem:[#allocation10 + $0x118] sm:$0xff] }
 0xc40   : > { %7402 = vmatpush1.bf16.msra.mxu0 %v7401_v55  ;;  %v2863_v55 = vld [vmem:[#allocation10 + $0x230] sm:$0xff] }
 0xc41   : > { %7404 = vmatprep.subr.bf16.mxu0 %v7403_v56  ;;  %v7437_v56 = vpack.c.bf16 %v2856_v16, %v2853_v53  ;;  %v7439_v57 = vpack.c.bf16 %v2863_v55, %v2860_v54 }
 0xc44   : > { %7406 = vmatpush1.bf16.msra.mxu0 %v7405_v61  ;;  %v2869_v61 = vld [vmem:[#allocation10 + $0x260] sm:$0xff] }
 0xc45   : > { %7408 = vmatprep.subr.bf16.mxu0 %v7407_v63  ;;  %v7441_v63 = vpack.c.bf16 %v2862_v59, %v2859_v58  ;;  %v7443_v3 = vpack.c.bf16 %v2869_v61, %v2866_v60  ;;  %v2843_v58 = vld [vmem:[#allocation10 + $0x190] sm:$0xff]  ;;  %v2846_v59 = vld [vmem:[#allocation10 + $0x1a8] sm:$0xff] }
 0xc48   : > { %7410 = vmatpush1.bf16.msra.mxu0 %v7409_v8 }
 0xc49   : > { %7412 = vmatprep.subr.bf16.mxu0 %v7411_v9 }
 0xc4c   : > { %7414 = vmatpush1.bf16.msra.mxu0 %v7413_v30 }
 0xc4d   : > { %7416 = vmatprep.subr.bf16.mxu0 %v7415_v17 }
 0xc50   : > { %7418 = vmatpush1.bf16.msra.mxu0 %v7417_v24 }
 0xc51   : > { %7420 = vmatprep.subr.bf16.mxu0 %v7419_v25  ;;  %v2875_v25 = vld [vmem:[#allocation10 + $0x290] sm:$0xff] }
 0xc54   : > { %7422 = vmatpush1.bf16.msra.mxu0 %v7421_v35  ;;  %v2878_v35 = vld [vmem:[#allocation10 + $0x2a8] sm:$0xff] }
 0xc55   : > { %7424 = vmatprep.subr.bf16.mxu0 %v7423_v36  ;;  %v2881_v36 = vld [vmem:[#allocation10 + $0x2c0] sm:$0xff] }
 0xc56   : > { %v7451_v37 = vpack.c.bf16 %v2881_v36, %v2878_v35  ;;  %v2870_v35 = vld [vmem:[#allocation10 + $0x268] sm:$0xff]  ;;  %v7505_v36 = vpack.c.bf16 %v2816_v33, %v2813_v28  ;;  %v2909_v33 = vld [vmem:[#allocation10 + $0x3a0] sm:$0xff] }
 0xc57   : > { %v2910_v28 = vld [vmem:[#allocation10 + $0x3a8] sm:$0xff] }
 0xc58   : > { %7426 = vmatpush1.bf16.msra.mxu0 %v7425_v39  ;;  %v2887_v39 = vld [vmem:[#allocation10 + $0x2f0] sm:$0xff] }
 0xc59   : > { %7428 = vmatprep.subr.bf16.mxu0 %v7427_v1  ;;  %v7455_v1 = vpack.c.bf16 %v2887_v39, %v2884_v29  ;;  %v2876_v29 = vld [vmem:[#allocation10 + $0x298] sm:$0xff]  ;;  %v7509_v39 = vpack.c.bf16 %v2822_v38, %v2819_v0  ;;  %v2913_v38 = vld [vmem:[#allocation10 + $0x3c0] sm:$0xff] }
 0xc5c   : > { %7430 = vmatpush1.bf16.msra.mxu0 %v7429_v42 }
 0xc5d   : > { %7432 = vmatprep.subr.bf16.mxu0 %v7431_v22 }
 0xc60   : > { %7434 = vmatpush1.bf16.msra.mxu0 %v7433_v51 }
 0xc61   : > { %7436 = vmatprep.subr.bf16.mxu0 %v7435_v52 }
 0xc64   : > { %7438 = vmatpush1.bf16.msra.mxu0 %v7437_v56 }
 0xc65   : > { %7440 = vmatprep.subr.bf16.mxu0 %v7439_v57 }
 0xc68   : > { %7442 = vmatpush1.bf16.msra.mxu0 %v7441_v63  ;;  %v7491_v63 = vpack.c.bf16 %v2846_v59, %v2843_v58  ;;  %v2892_v58 = vld [vmem:[#allocation10 + $0x318] sm:$0xff]  ;;  %v2891_v59 = vld [vmem:[#allocation10 + $0x310] sm:$0xff] }
 0xc69   : > { %7444 = vmatprep.subr.bf16.mxu0 %v7443_v3  ;;  %v2795_v3 = vld [vmem:[#allocation10 + $0x10] sm:$0xff] }
 0xc6c   : > { %7446 = vmatpush1.bf16.msra.mxu0 %v7445_v7  ;;  %v2852_v7 = vld [vmem:[#allocation10 + $0x1d8] sm:$0xff] }
 0xd06   : > { %v2444_v8 = vpop.f32.mrb[22].mxu0 }
 0xd07   : > { %v8918_v9 = vpack.i.bf16 %v10008_v62, %v2444_v8  ;;  %v6899_v10 = vpop.f32.mrb[23].mxu0  ;;  %v2872_v62 = vld [vmem:[#allocation10 + $0x278] sm:$0xff] }
 0xd08   : > { %v7447_v27 = vpack.c.bf16 %v2875_v25, %v2872_v62  ;;  %v2864_v62 = vld [vmem:[#allocation10 + $0x238] sm:$0xff] }
 0xd0a   : > { %v2520_v11 = vpop.f32.mrb[24].mxu0  ;;  %7448 = vmatprep.subr.bf16.mxu0 %v7447_v27 }
 0xd0b   : > { %v2524_v12 = vmul.f32 0.05103104, %v2520_v11  ;;  %v6904_v14 = vpop.f32.mrb[25].mxu0  ;;  %7450 = vmatpush1.bf16.msra.mxu0 %v7449_v34  ;;  %v7495_v11 = vpack.c.bf16 %v2852_v7, %v2849_v6  ;;  %v2867_v34 = vld [vmem:[#allocation10 + $0x250] sm:$0xff] }
 0xd0c   : > { %7452 = vmatprep.subr.bf16.mxu0 %v7451_v37  ;;  %v2804_v14 = vld [vmem:[#allocation10 + $0x58] sm:$0xff]  ;;  %v7507_v37 = vpack.c.bf16 %v2870_v35, %v2867_v34  ;;  %v2895_v6 = vld [vmem:[#allocation10 + $0x330] sm:$0xff]  ;;  %v2914_v35 = vld [vmem:[#allocation10 + $0x3c8] sm:$0xff] }
 0xd0d   : > { %v2525_v30 = vsel %vm9968_vm2, %v2524_v12, -1e+30  ;;  %v2801_v12 = vld [vmem:[#allocation10 + $0x40] sm:$0xff]  ;;  %v2912_v34 = vld [vmem:[#allocation10 + $0x3b8] sm:$0xff] }
 0xd0e   : > { %v2684_v17 = vpop.f32.mrb[26].mxu0  ;;  %v2526_v18 = vsel %vm1865_vm3, %v2525_v30, -inf  ;;  %v7533_v0 = vpack.c.bf16 %v2912_v34, %v2909_v33 }
 0xd0f   : > { %v2688_v32 = vmul.f32 0.05103104, %v2684_v17  ;;  %2527 = vmax.xlane.f32.xlu0 %v2526_v18  ;;  %v6914_v19 = vpop.f32.mrb[27].mxu0  ;;  %7454 = vmatpush1.bf16.msra.mxu0 %v7453_v43  ;;  %v2858_v17 = vld [vmem:[#allocation10 + $0x208] sm:$0xff]  ;;  %v7497_v18 = vpack.c.bf16 %v2804_v14, %v2801_v12  ;;  %v2873_v43 = vld [vmem:[#allocation10 + $0x280] sm:$0xff] }
 0xd10   : > { %7456 = vmatprep.subr.bf16.mxu0 %v7455_v1  ;;  %v2807_v19 = vld [vmem:[#allocation10 + $0x70] sm:$0xff]  ;;  %v7511_v1 = vpack.c.bf16 %v2876_v29, %v2873_v43  ;;  %v2905_v12 = vld [vmem:[#allocation10 + $0x380] sm:$0xff]  ;;  %v2916_v29 = vld [vmem:[#allocation10 + $0x3d8] sm:$0xff] }
 0xd11   : > { %v2689_v23 = vsel %vm9968_vm2, %v2688_v32, -1e+30  ;;  %v2901_v14 = vld [vmem:[#allocation10 + $0x360] sm:$0xff] }
 0xd12   : > { %v2690_v24 = vsel %vm1865_vm3, %v2689_v23, -inf }
 0xd13   : > { %2691 = vmax.xlane.f32.xlu1 %v2690_v24  ;;  %7458 = vmatpush1.bf16.msra.mxu0 %v7457_v41  ;;  %v2861_v24 = vld [vmem:[#allocation10 + $0x220] sm:$0xff]  ;;  %v2879_v41 = vld [vmem:[#allocation10 + $0x2b0] sm:$0xff] }
 0xd14   : > { %v7503_v27 = vpack.c.bf16 %v2864_v62, %v2861_v24 }
 0xd24   : > { %8919 = vrot.lane.b32.xlu1 %v8918_v9, %s9406_s28 }
 0xd9c   : > { %v2528_v2 = vpop.xlane.xlu0 %2527 }
 0xd9d   : > { %v2529_v42 = vsub.f32 %v2525_v30, %v2528_v2  ;;  %v2855_v30 = vld [vmem:[#allocation10 + $0x1f0] sm:$0xff]  ;;  %v2882_v2 = vld [vmem:[#allocation10 + $0x2c8] sm:$0xff] }
 0xd9e   : > { %v7499_v32 = vpack.c.bf16 %v2858_v17, %v2855_v30  ;;  %v2904_v17 = vld [vmem:[#allocation10 + $0x378] sm:$0xff] }
 0xd9f   : > { %v2530_v22 = vmul.f32 1.442695, %v2529_v42  ;;  %v7513_v42 = vpack.c.bf16 %v2828_v15, %v2825_v40  ;;  %v7469_v24 = vpack.c.bf16 %v2904_v17, %v2901_v14  ;;  %v2920_v40 = vld [vmem:[#allocation10 + $0x3f8] sm:$0xff]  ;;  %v2923_v15 = vld [vmem:[#allocation10 + $0x410] sm:$0xff] }
 0xda0   : > { %v2692_v44 = vpop.xlane.xlu1 %2691 }
 0xda1   : > { %8941 = vpow2.f32 %v2530_v22  ;;  %v2693_v13 = vsub.f32 %v2689_v23, %v2692_v44  ;;  %v2810_v23 = vld [vmem:[#allocation10 + $0x88] sm:$0xff]  ;;  %v7515_v22 = vpack.c.bf16 %v2882_v2, %v2879_v41  ;;  %v2831_v44 = vld [vmem:[#allocation10 + $0x130] sm:$0xff]  ;;  %v7477_v41 = vpack.c.bf16 %v2916_v29, %v2913_v38 }
 0xda2   : > { %v7501_v25 = vpack.c.bf16 %v2810_v23, %v2807_v19  ;;  %v2908_v19 = vld [vmem:[#allocation10 + $0x398] sm:$0xff]  ;;  %v2911_v23 = vld [vmem:[#allocation10 + $0x3b0] sm:$0xff] }
 0xda3   : > { %v2694_v49 = vmul.f32 1.442695, %v2693_v13  ;;  %v2834_v13 = vld [vmem:[#allocation10 + $0x148] sm:$0xff]  ;;  %v8953_v38 = vld [vmem:[%s9823_s15 + $0x10] sm:$0xff] }
 0xda4   : > { %v8920_v50 = vpop.permute.xlu1 %8919 }
 0xda5   : > { %8943 = vpow2.f32 %v2694_v49  ;;  %v8922_v51 = vunpack.i.h.bf16 %v8920_v50  ;;  %v8921_v52 = vunpack.i.l.bf16 %v8920_v50  ;;  %v2885_v49 = vld [vmem:[#allocation10 + $0x2e0] sm:$0xff]  ;;  %v2888_v50 = vld [vmem:[#allocation10 + $0x2f8] sm:$0xff] }
 0xda7   : > { %v2791_v53 = vsel %vm1786_vm1, %v10024_v20, %v8921_v52  ;;  %v10061_v16 = vsel %vm1786_vm1, %v9985_v31, %v8922_v51  ;;  %v7517_v51 = vpack.c.bf16 %v2834_v13, %v2831_v44  ;;  %v7519_v52 = vpack.c.bf16 %v2888_v50, %v2885_v49  ;;  %v2922_v44 = vld [vmem:[#allocation10 + $0x408] sm:$0xff]  ;;  %v2921_v13 = vld [vmem:[#allocation10 + $0x400] sm:$0xff]  ;;  %v2924_v49 = vld [vmem:[#allocation10 + $0x418] sm:$0xff] }
 0xda8   : > { %3018 = vmatprep.mubr.f32.mxu0 %v2791_v53  ;;  %v2926_v50 = vld [vmem:[#allocation10 + $0x428] sm:$0xff] }
 0xda9   : > { %3019 = vmatmul.mubr.f32.vlgmr.msra.gmra.mrb[28].mxu0 %v10061_v16 }
 0xdaa   : > { %3089 = vmatprep.mubr.f32.mxu0 %v9403_v5 }
 0xdab   : > { %v8942_v54 = vpop.eup %8941 }
 0xdac   : > { %v2532_v55 = vsel %vm1865_vm3, %v8942_v54, 0.0 }
 0xdad   : > { %2533 = vadd.xlane.f32.xlu0 %v2532_v55 }
 0xdaf   : > { %v8944_v56 = vpop.eup %8943 }
 0xdb0   : > { %v2696_v57 = vsel %vm1865_vm3, %v8944_v56, 0.0 }
 0xdb1   : > { %2697 = vadd.xlane.f32.xlu0 %v2696_v57  ;;  %v2893_v57 = vld [vmem:[#allocation10 + $0x320] sm:$0xff] }
 0xdc7   : > { %2702 = vrot.lane.b32.xlu0 %v9962_v26, %s9406_s28  ;;  %v7493_v26 = vpack.c.bf16 %v2798_v4, %v2795_v3  ;;  %v2896_v3 = vld [vmem:[#allocation10 + $0x338] sm:$0xff]  ;;  %v2899_v4 = vld [vmem:[#allocation10 + $0x350] sm:$0xff] }
 0xdc8   : > { %v7463_v7 = vpack.c.bf16 %v2899_v4, %v2896_v3  ;;  %v2934_v3 = vld [vmem:[#allocation10 + $0x468] sm:$0xff]  ;;  %v2933_v4 = vld [vmem:[#allocation10 + $0x460] sm:$0xff] }
 0xe3a   : > { %v2534_v20 = vpop.xlane.xlu0 %2533 }
 0xe3b   : > { %8945 = vrcp.f32 %v2534_v20  ;;  %v2889_v20 = vld [vmem:[#allocation10 + $0x300] sm:$0xff] }
 0xe3e   : > { %v2698_v31 = vpop.xlane.xlu0 %2697 }
 0xe3f   : > { %8947 = vrcp.f32 %v2698_v31 }
 0xe42   : > { %v2703_v8 = vpop.permute.xlu0 %2702 }
 0xe45   : > { %v8946_v60 = vpop.eup %8945 }
 0xe46   : > { %v2536_v61 = vmul.f32 %v8946_v60, %v8942_v54  ;;  %v2840_v54 = vld [vmem:[#allocation10 + $0x178] sm:$0xff]  ;;  %v2894_v60 = vld [vmem:[#allocation10 + $0x328] sm:$0xff] }
 0xe48   : > { %6908 = vmatmul.mubr.msk.f32.vlgmr.msra.gmra.mrb[6].mxu1 %vm1865_vm3, %v2536_v61  ;;  %v7461_v61 = vpack.c.bf16 %v2892_v58, %v2889_v20  ;;  %v2930_v20 = vld [vmem:[#allocation10 + $0x448] sm:$0xff]  ;;  %v2935_v58 = vld [vmem:[#allocation10 + $0x470] sm:$0xff] }
 0xe49   : > { %v8948_v9 = vpop.eup %8947  ;;  %6916 = vmatpush3.msra.mxu1 %v2703_v8  ;;  %6917 = vmatprep.mubr.msk.f32.mxu1 %vm9405_vm0, %v9403_v5  ;;  %v2898_v8 = vld [vmem:[#allocation10 + $0x348] sm:$0xff] }
 0xe4a   : > { %v2700_v10 = vmul.f32 %v8948_v9, %v8944_v56  ;;  %7492 = vmatprep.subr.bf16.mxu1 %v7491_v63  ;;  %v2890_v56 = vld [vmem:[#allocation10 + $0x308] sm:$0xff]  ;;  %v7524_v63 = vpack.c.bf16 %v2894_v60, %v2891_v59  ;;  %v2897_v9 = vld [vmem:[#allocation10 + $0x340] sm:$0xff] }
 0xe4b   : > { %v7459_v31 = vpack.c.bf16 %v2893_v57, %v2890_v56  ;;  %v2928_v56 = vld [vmem:[#allocation10 + $0x438] sm:$0xff]  ;;  %v2927_v57 = vld [vmem:[#allocation10 + $0x430] sm:$0xff] }
 0xe4c   : > { %6918 = vmatmul.mubr.msk.f32.vlgmr.msra.gmra.mrb[8].mxu1 %vm1865_vm3, %v2700_v10  ;;  %v7542_v60 = vpack.c.bf16 %v2930_v20, %v2927_v57  ;;  %v3324_v20 = vld [vmem:[#allocation16 + $0xc0] sm:$0xff] }
 0xe4d   : > { %7494 = vmatpush3.bf16.msra.mxu1 %v7493_v26  ;;  %3160 = vmatprep.mubr.f32.mxu1 %v2791_v53  ;;  %v2837_v53 = vld [vmem:[#allocation10 + $0x160] sm:$0xff]  ;;  %v7465_v26 = vpack.c.bf16 %v2898_v8, %v2895_v6  ;;  %v2936_v6 = vld [vmem:[#allocation10 + $0x478] sm:$0xff] }
 0xe4e   : > { %7496 = vmatprep.subr.bf16.mxu1 %v7495_v11  ;;  %v7521_v55 = vpack.c.bf16 %v2840_v54, %v2837_v53  ;;  %7460 = vmatprep.subr.bf16.mxu0 %v7459_v31  ;;  %v2902_v11 = vld [vmem:[#allocation10 + $0x368] sm:$0xff]  ;;  %v7539_v53 = vpack.c.bf16 %v2924_v49, %v2921_v13  ;;  %v2925_v54 = vld [vmem:[#allocation10 + $0x420] sm:$0xff]  ;;  %v2932_v31 = vld [vmem:[#allocation10 + $0x458] sm:$0xff]  ;;  %v7545_v8 = vpack.c.bf16 %v2936_v6, %v2933_v4 }
 0xe4f   : > { %7462 = vmatpush1.bf16.msra.mxu0 %v7461_v61  ;;  %v7467_v30 = vpack.c.bf16 %v2905_v12, %v2902_v11  ;;  %v7485_v59 = vpack.c.bf16 %v2928_v56, %v2925_v54  ;;  %v2931_v61 = vld [vmem:[#allocation10 + $0x450] sm:$0xff]  ;;  %v3302_v49 = vld [vmem:[#allocation16 + $0x10] sm:$0xff]  ;;  %v3327_v54 = vld [vmem:[#allocation16 + $0xd8] sm:$0xff] }
 0xe50   : > { %7464 = vmatprep.subr.bf16.mxu0 %v7463_v7  ;;  %v7489_v7 = vpack.c.bf16 %v2934_v3, %v2931_v61  ;;  %v3349_v61 = vld [vmem:[#allocation16 + $0x188] sm:$0xff]  ;;  %v3351_v6 = vld [vmem:[#allocation16 + $0x198] sm:$0xff] }
 0xe51   : > { %7498 = vmatpush3.bf16.msra.mxu1 %v7497_v18  ;;  %v2903_v18 = vld [vmem:[#allocation10 + $0x370] sm:$0xff] }
 0xe52   : > { %7500 = vmatprep.subr.bf16.mxu1 %v7499_v32  ;;  %v2906_v32 = vld [vmem:[#allocation10 + $0x388] sm:$0xff] }
 0xe53   : > { %7466 = vmatpush1.bf16.msra.mxu0 %v7465_v26  ;;  %v7530_v62 = vpack.c.bf16 %v2906_v32, %v2903_v18  ;;  %v2937_v18 = vld [vmem:[#allocation11] sm:$0x7] }
 0xe54   : > { %7468 = vmatprep.subr.bf16.mxu0 %v7467_v30  ;;  %v2942_v32 = vrot.slane %v2937_v18, %v9891_v48 }
 0xe55   : > { %7502 = vmatpush3.bf16.msra.mxu1 %v7501_v25  ;;  %v2907_v25 = vld [vmem:[#allocation10 + $0x390] sm:$0xff] }
 0xe56   : > { %7504 = vmatprep.subr.bf16.mxu1 %v7503_v27  ;;  %v7471_v27 = vpack.c.bf16 %v2911_v23, %v2908_v19  ;;  %v2946_v19 = vrot.slane %v2937_v18, %v9885_v46 }
 0xe57   : > { %7470 = vmatpush1.bf16.msra.mxu0 %v7469_v24 }
 0xe58   : > { %7472 = vmatprep.subr.bf16.mxu0 %v7471_v27 }
 0xe59   : > { %7506 = vmatpush3.bf16.msra.mxu1 %v7505_v36  ;;  %v2917_v36 = vld [vmem:[#allocation10 + $0x3e0] sm:$0xff] }
 0xe5a   : > { %7508 = vmatprep.subr.bf16.mxu1 %v7507_v37  ;;  %v7473_v37 = vpack.c.bf16 %v2910_v28, %v2907_v25  ;;  %v7475_v43 = vpack.c.bf16 %v2917_v36, %v2914_v35  ;;  %v8951_v35 = vld [vmem:[%s9823_s15] sm:$0xff] }
 0xe5c   : > { %7474 = vmatpush1.bf16.msra.mxu0 %v7473_v37  ;;  %v8952_v37 = vld [vmem:[%s9823_s15 + $0x8] sm:$0xff] }
 0xe5d   : > { %7510 = vmatpush3.bf16.msra.mxu1 %v7509_v39  ;;  %v2915_v39 = vld [vmem:[#allocation10 + $0x3d0] sm:$0xff]  ;;  %7476 = vmatprep.subr.bf16.mxu0 %v7475_v43 }
 0xe5e   : > { %7512 = vmatprep.subr.bf16.mxu1 %v7511_v1  ;;  %v2918_v1 = vld [vmem:[#allocation10 + $0x3e8] sm:$0xff] }
 0xe5f   : > { %v7536_v2 = vpack.c.bf16 %v2918_v1, %v2915_v39  ;;  %v3301_v1 = vld [vmem:[#allocation16 + $0x8] sm:$0xff] }
 0xe60   : > { %7478 = vmatpush1.bf16.msra.mxu0 %v7477_v41 }
 0xe61   : > { %7514 = vmatpush3.bf16.msra.mxu1 %v7513_v42  ;;  %v2919_v42 = vld [vmem:[#allocation10 + $0x3f0] sm:$0xff] }
 0xe62   : > { %7516 = vmatprep.subr.bf16.mxu1 %v7515_v22  ;;  %v7479_v22 = vpack.c.bf16 %v2923_v15, %v2920_v40  ;;  %v3313_v40 = vld [vmem:[#allocation16 + $0x68] sm:$0xff]  ;;  %v3303_v15 = vld [vmem:[#allocation16 + $0x18] sm:$0xff] }
 0xe63   : > { %v7547_v41 = vpack.c.bf16 %v3313_v40, %v3301_v1  ;;  %v3410_v40 = vld [vmem:[#allocation16 + $0x370] sm:$0xff] }
 0xe64   : > { %7480 = vmatprep.subr.bf16.mxu0 %v7479_v22  ;;  %v3312_v22 = vld [vmem:[#allocation16 + $0x60] sm:$0xff] }
 0xe65   : > { %7518 = vmatpush3.bf16.msra.mxu1 %v7517_v51  ;;  %v2929_v51 = vld [vmem:[#allocation10 + $0x440] sm:$0xff] }
 0xe66   : > { %7520 = vmatprep.subr.bf16.mxu1 %v7519_v52  ;;  %v7481_v52 = vpack.c.bf16 %v2922_v44, %v2919_v42  ;;  %v3300_v42 = vld [vmem:[#allocation16] sm:$0xff] }
 0xe67   : > { %v7549_v13 = vpack.c.bf16 %v3312_v22, %v3300_v42  ;;  %v3435_v42 = vld [vmem:[#allocation16 + $0x438] sm:$0xff] }
 0xe68   : > { %7482 = vmatpush1.bf16.msra.mxu0 %v7481_v52 }
 0xe69   : > { %7522 = vmatpush3.bf16.msra.mxu1 %v7521_v55  ;;  %v7483_v55 = vpack.c.bf16 %v2929_v51, %v2926_v50  ;;  %v3314_v50 = vld [vmem:[#allocation16 + $0x70] sm:$0xff]  ;;  %v3325_v51 = vld [vmem:[#allocation16 + $0xc8] sm:$0xff] }
 0xe6a   : > { %7523 = vmatprep.subr.bf16.mxu1 %v9404_v21  ;;  %v7645_v52 = vpack.c.bf16 %v3314_v50, %v3302_v49  ;;  %v3420_v49 = vld [vmem:[#allocation16 + $0x3c0] sm:$0xff] }
 0xe6b   : > { %7484 = vmatprep.subr.bf16.mxu0 %v7483_v55  ;;  %v3339_v55 = vld [vmem:[#allocation16 + $0x138] sm:$0xff]  ;;  %v3432_v50 = vld [vmem:[#allocation16 + $0x420] sm:$0xff] }
 0xe6c   : > { %3161 = vmatmul.mubr.f32.vlgmr.msra.gmra.mrb[10].mxu1 %v10061_v16  ;;  %v2900_v16 = vld [vmem:[#allocation10 + $0x358] sm:$0xff]  ;;  %7486 = vmatpush1.bf16.msra.mxu0 %v7485_v59  ;;  %v7647_v57 = vpack.c.bf16 %v3339_v55, %v3327_v54 }
 0xe6d   : > { %6952 = vmatprep.mubr.msk.f32.mxu1 %vm9405_vm0, %v9403_v5  ;;  %7525 = vmatpush3.bf16.msra.mxu1 %v7524_v63  ;;  %v7527_v10 = vpack.c.bf16 %v2900_v16, %v2897_v9  ;;  %v7487_v63 = vpack.c.bf16 %v2935_v58, %v2932_v31  ;;  %v3336_v31 = vld [vmem:[#allocation16 + $0x120] sm:$0xff]  ;;  %v3326_v58 = vld [vmem:[#allocation16 + $0xd0] sm:$0xff]  ;;  %v3445_v54 = vld [vmem:[#allocation16 + $0x488] sm:$0xff] }
 0xe6e   : > { %7526 = vmatprep.subr.bf16.mxu1 %v9404_v21  ;;  %v7553_v59 = vpack.c.bf16 %v3336_v31, %v3324_v20  ;;  %v3457_v55 = vld [vmem:[#allocation16 + $0x4e8] sm:$0xff]  ;;  %v7569_v20 = vpack.c.bf16 %v3432_v50, %v3420_v49  ;;  %v3555_v49 = vld [vmem:[#allocation16 + $0x7f8] sm:$0xff] }
 0xe6f   : > { %7488 = vmatprep.subr.bf16.mxu0 %v7487_v63  ;;  %v3361_v63 = vld [vmem:[#allocation16 + $0x1e8] sm:$0xff] }
 0xe70   : > { %7490 = vmatpush1.bf16.msra.mxu0 %v7489_v7  ;;  %v7555_v4 = vpack.c.bf16 %v3361_v63, %v3349_v61  ;;  %v3363_v7 = vld [vmem:[#allocation16 + $0x1f8] sm:$0xff]  ;;  %v3446_v61 = vld [vmem:[#allocation16 + $0x490] sm:$0xff] }
 0xe71   : > { %7528 = vmatpush3.bf16.msra.mxu1 %v7527_v10 }
 0xe72   : > { %7529 = vmatprep.subr.bf16.mxu1 %v9404_v21 }
 0xe75   : > { %7531 = vmatpush3.bf16.msra.mxu1 %v7530_v62 }
 0xe76   : > { %7532 = vmatprep.subr.bf16.mxu1 %v9404_v21 }
 0xe79   : > { %7534 = vmatpush3.bf16.msra.mxu1 %v7533_v0 }
 0xe7a   : > { %7535 = vmatprep.subr.bf16.mxu1 %v9404_v21 }
 0xe7d   : > { %7537 = vmatpush3.bf16.msra.mxu1 %v7536_v2  ;;  %v3315_v2 = vld [vmem:[#allocation16 + $0x78] sm:$0xff] }
 0xe7e   : > { %7538 = vmatprep.subr.bf16.mxu1 %v9404_v21  ;;  %v7643_v44 = vpack.c.bf16 %v3315_v2, %v3303_v15  ;;  %v3421_v15 = vld [vmem:[#allocation16 + $0x3c8] sm:$0xff]  ;;  %v3423_v2 = vld [vmem:[#allocation16 + $0x3d8] sm:$0xff] }
 0xe80   : > { %7644 = vmatprep.subr.bf16.mxu0 %v7643_v44 }
 0xe81   : > { %7540 = vmatpush3.bf16.msra.mxu1 %v7539_v53  ;;  %v3337_v53 = vld [vmem:[#allocation16 + $0x128] sm:$0xff] }
 0xe82   : > { %7541 = vmatprep.subr.bf16.mxu1 %v9404_v21  ;;  %v7551_v56 = vpack.c.bf16 %v3337_v53, %v3325_v51  ;;  %v3422_v51 = vld [vmem:[#allocation16 + $0x3d0] sm:$0xff] }
 0xe83   : > { %v3434_v53 = vld [vmem:[#allocation16 + $0x430] sm:$0xff] }
 0xe84   : > { %v7665_v31 = vpack.c.bf16 %v3434_v53, %v3422_v51  ;;  %v3540_v53 = vld [vmem:[#allocation16 + $0x780] sm:$0xff] }
 0xe85   : > { %7543 = vmatpush3.bf16.msra.mxu1 %v7542_v60  ;;  %v3338_v60 = vld [vmem:[#allocation16 + $0x130] sm:$0xff] }
 0xe86   : > { %7544 = vmatprep.subr.bf16.mxu1 %v9404_v21  ;;  %v2950_v21 = vrot.slane %v2937_v18, %v9888_v47  ;;  %v7649_v3 = vpack.c.bf16 %v3338_v60, %v3326_v58  ;;  %v7571_v58 = vpack.c.bf16 %v3457_v55, %v3445_v54  ;;  %v3456_v60 = vld [vmem:[#allocation16 + $0x4e0] sm:$0xff] }
 0xe87   : > { %v3552_v54 = vld [vmem:[#allocation16 + $0x7e0] sm:$0xff] }
 0xe89   : > { %7546 = vmatpush3.bf16.msra.mxu1 %v7545_v8  ;;  %v3348_v8 = vld [vmem:[#allocation16 + $0x180] sm:$0xff] }
 0xe8a   : > { %7548 = vmatprep.subr.bf16.mxu1 %v7547_v41  ;;  %v3433_v41 = vld [vmem:[#allocation16 + $0x428] sm:$0xff] }
 0xf1b   : > { %v2606_v9 = vpop.f32.mrb[6].mxu1 }
 0xf1c   : > { %v6909_v16 = vpop.f32.mrb[7].mxu1 }
 0xf1d   : > { %v3360_v16 = vld [vmem:[#allocation16 + $0x1e0] sm:$0xff] }
 0xf1f   : > { %v2774_v26 = vpop.f32.mrb[8].mxu1 }
 0xf20   : > { %2787 = vrot.lane.b32.xlu1 %v2774_v26, %s9406_s28  ;;  %v6919_v10 = vpop.f32.mrb[9].mxu1  ;;  %v3350_v26 = vld [vmem:[#allocation16 + $0x190] sm:$0xff] }
 0xf21   : > { %v3362_v10 = vld [vmem:[#allocation16 + $0x1f0] sm:$0xff] }
 0xf3f   : > { %v6595_v11 = vpop.f32.mrb[10].mxu1 }
 0xf40   : > { %v6596_v12 = vpop.f32.mrb[11].mxu1 }
 0xf41   : > { %v6597_v14 = vadd.f32 %v6596_v12, %v6595_v11  ;;  %v7557_v11 = vpack.c.bf16 %v3360_v16, %v3348_v8  ;;  %v3373_v12 = vld [vmem:[#allocation16 + $0x248] sm:$0xff]  ;;  %v3483_v8 = vld [vmem:[#allocation16 + $0x5b8] sm:$0xff] }
 0xf43   : > { %v3163_v23 = vadd.f32 %v6597_v14, %v2950_v21  ;;  %v3385_v14 = vld [vmem:[#allocation16 + $0x2a8] sm:$0xff]  ;;  %v3387_v21 = vld [vmem:[#allocation16 + $0x2b8] sm:$0xff] }
 0xf44   : > { %v7559_v18 = vpack.c.bf16 %v3385_v14, %v3373_v12  ;;  %v3470_v12 = vld [vmem:[#allocation16 + $0x550] sm:$0xff] }
 0xf92   : > { %v2788_v30 = vpop.permute.xlu1 %2787 }
 0xf93   : > { %v2792_v17 = vsel %vm1786_vm1, %v2606_v9, %v2788_v30  ;;  %v7651_v9 = vpack.c.bf16 %v3363_v7, %v3351_v6  ;;  %v3375_v30 = vld [vmem:[#allocation16 + $0x258] sm:$0xff]  ;;  %v3481_v6 = vld [vmem:[#allocation16 + $0x5a8] sm:$0xff] }
 0xf94   : > { %3090 = vmatmul.mubr.f32.vlgmr.msra.gmra.mrb[28].mxu0 %v2792_v17  ;;  %6953 = vmatmul.mubr.f32.vlgmr.msra.gmra.mrb[12].mxu1 %v2792_v17  ;;  %v7653_v17 = vpack.c.bf16 %v3362_v10, %v3350_v26  ;;  %v3471_v7 = vld [vmem:[#allocation16 + $0x558] sm:$0xff]  ;;  %v3468_v10 = vld [vmem:[#allocation16 + $0x540] sm:$0xff] }
 0xf95   : > { %7550 = vmatpush1.bf16.msra.mxu1 %v7549_v13  ;;  %7646 = vmatpush1.bf16.msra.mxu0 %v7645_v52  ;;  %v7567_v13 = vpack.c.bf16 %v3433_v41, %v3421_v15  ;;  %v7663_v52 = vpack.c.bf16 %v3435_v42, %v3423_v2  ;;  %v7671_v14 = vpack.c.bf16 %v3483_v8, %v3471_v7  ;;  %v3528_v15 = vld [vmem:[#allocation16 + $0x720] sm:$0xff]  ;;  %v3518_v41 = vld [vmem:[#allocation16 + $0x6d0] sm:$0xff] }
 0xf96   : > { %7552 = vmatprep.subr.bf16.mxu1 %v7551_v56  ;;  %7648 = vmatprep.subr.bf16.mxu0 %v7647_v57  ;;  %v3447_v56 = vld [vmem:[#allocation16 + $0x498] sm:$0xff]  ;;  %v3530_v42 = vld [vmem:[#allocation16 + $0x730] sm:$0xff] }
 0xf97   : > { %v3459_v57 = vld [vmem:[#allocation16 + $0x4f8] sm:$0xff]  ;;  %v7681_v51 = vpack.c.bf16 %v3530_v42, %v3518_v41  ;;  %v3624_v42 = vld [vmem:[#allocation16 + $0xa20] sm:$0xff] }
 0xf98   : > { %v7667_v63 = vpack.c.bf16 %v3459_v57, %v3447_v56  ;;  %v3542_v56 = vld [vmem:[#allocation16 + $0x790] sm:$0xff] }
 0xf99   : > { %7554 = vmatpush1.bf16.msra.mxu1 %v7553_v59  ;;  %7650 = vmatpush1.bf16.msra.mxu0 %v7649_v3  ;;  %v3444_v59 = vld [vmem:[#allocation16 + $0x480] sm:$0xff]  ;;  %v3458_v3 = vld [vmem:[#allocation16 + $0x4f0] sm:$0xff] }
 0xf9a   : > { %7556 = vmatprep.subr.bf16.mxu1 %v7555_v4  ;;  %7652 = vmatprep.subr.bf16.mxu0 %v7651_v9  ;;  %v3469_v4 = vld [vmem:[#allocation16 + $0x548] sm:$0xff]  ;;  %v7573_v9 = vpack.c.bf16 %v3456_v60, %v3444_v59  ;;  %v7669_v16 = vpack.c.bf16 %v3458_v3, %v3446_v61  ;;  %v3554_v57 = vld [vmem:[#allocation16 + $0x7f0] sm:$0xff] }
 0xf9b   : > { %v7575_v26 = vpack.c.bf16 %v3481_v6, %v3469_v4 }
 0xf9d   : > { %7558 = vmatpush1.bf16.msra.mxu1 %v7557_v11  ;;  %7654 = vmatpush1.bf16.msra.mxu0 %v7653_v17  ;;  %v3480_v11 = vld [vmem:[#allocation16 + $0x5a0] sm:$0xff]  ;;  %v3493_v17 = vld [vmem:[#allocation16 + $0x608] sm:$0xff] }
 0xf9e   : > { %7560 = vmatprep.subr.bf16.mxu1 %v7559_v18  ;;  %v3505_v18 = vld [vmem:[#allocation16 + $0x668] sm:$0xff] }
0x1067   : > { %v3091_v24 = vpop.f32.mrb[28].mxu0  ;;  %v3232_v62 = vpop.f32.mrb[12].mxu1 }
0x1068   : > { %v8701_v25 = vadd.f32 %v3091_v24, %v2942_v32  ;;  %v3233_v27 = vadd.f32 %v3232_v62, %v3163_v23  ;;  %v3093_v28 = vpop.f32.mrb[29].mxu0  ;;  %v6954_v33 = vpop.f32.mrb[13].mxu1  ;;  %v3372_v32 = vld [vmem:[#allocation16 + $0x240] sm:$0xff]  ;;  %v7655_v23 = vpack.c.bf16 %v3387_v21, %v3375_v30  ;;  %v3374_v24 = vld [vmem:[#allocation16 + $0x250] sm:$0xff]  ;;  %v3495_v21 = vld [vmem:[#allocation16 + $0x618] sm:$0xff] }
0x1069   : > { %v8702_v34 = vadd.f32 %v3093_v28, %v2946_v19  ;;  %v3384_v19 = vld [vmem:[#allocation16 + $0x2a0] sm:$0xff]  ;;  %v3386_v62 = vld [vmem:[#allocation16 + $0x2b0] sm:$0xff]  ;;  %v3399_v28 = vld [vmem:[#allocation16 + $0x318] sm:$0xff] }
0x106a   : > { %v10090_v36 = vadd.f32 %v8951_v35, %v8701_v25  ;;  %v10096_v43 = vadd.f32 %v8953_v38, %v3233_v27  ;;  %v3397_v25 = vld [vmem:[#allocation16 + $0x308] sm:$0xff]  ;;  %v3411_v33 = vld [vmem:[#allocation16 + $0x378] sm:$0xff]  ;;  %v7657_v35 = vpack.c.bf16 %v3386_v62, %v3374_v24  ;;  %v3396_v38 = vld [vmem:[#allocation16 + $0x300] sm:$0xff]  ;;  %7656 = vmatprep.subr.bf16.mxu0 %v7655_v23  ;;  %v7579_v24 = vpack.c.bf16 %v3505_v18, %v3493_v17 }
0x106b   : > { %v10093_v0 = vadd.f32 %v8952_v37, %v8702_v34  ;;  %v3409_v27 = vld [vmem:[#allocation16 + $0x368] sm:$0xff]  ;;  %v7561_v34 = vpack.c.bf16 %v3384_v19, %v3372_v32  ;;  %v7659_v1 = vpack.c.bf16 %v3411_v33, %v3399_v28  ;;  %v3482_v30 = vld [vmem:[#allocation16 + $0x5b0] sm:$0xff]  ;;  %v3507_v32 = vld [vmem:[#allocation16 + $0x678] sm:$0xff]  ;;  %v7577_v19 = vpack.c.bf16 %v3480_v11, %v3468_v10 }
0x106c   : > { %v7563_v37 = vpack.c.bf16 %v3409_v27, %v3397_v25  ;;  %7658 = vmatpush1.bf16.msra.mxu0 %v7657_v35  ;;  %v7673_v23 = vpack.c.bf16 %v3482_v30, %v3470_v12  ;;  %v3492_v62 = vld [vmem:[#allocation16 + $0x600] sm:$0xff]  ;;  %v3494_v27 = vld [vmem:[#allocation16 + $0x610] sm:$0xff]  ;;  %v7675_v28 = vpack.c.bf16 %v3507_v32, %v3495_v21  ;;  %v3529_v35 = vld [vmem:[#allocation16 + $0x728] sm:$0xff] }
0x106d   : > { %v3239_v29 = vadd.f32 %v10093_v0, %v10090_v36  ;;  %7562 = vmatpush1.bf16.msra.mxu1 %v7561_v34  ;;  %7660 = vmatprep.subr.bf16.mxu0 %v7659_v1  ;;  %v3504_v25 = vld [vmem:[#allocation16 + $0x660] sm:$0xff]  ;;  %v3506_v33 = vld [vmem:[#allocation16 + $0x670] sm:$0xff]  ;;  %v3517_v34 = vld [vmem:[#allocation16 + $0x6c8] sm:$0xff] }
0x106e   : > { %7564 = vmatprep.subr.bf16.mxu1 %v7563_v37  ;;  %v3519_v37 = vld [vmem:[#allocation16 + $0x6d8] sm:$0xff]  ;;  %v7583_v1 = vpack.c.bf16 %v3529_v35, %v3517_v34  ;;  %v3564_v12 = vld [vmem:[#allocation16 + $0x840] sm:$0xff]  ;;  %v3566_v18 = vld [vmem:[#allocation16 + $0x850] sm:$0xff] }
0x106f   : > { %v3240_v39 = vadd.f32 %v3239_v29, %v10096_v43  ;;  %v3408_v29 = vld [vmem:[#allocation16 + $0x360] sm:$0xff]  ;;  %v3579_v11 = vld [vmem:[#allocation16 + $0x8b8] sm:$0xff]  ;;  %v3578_v21 = vld [vmem:[#allocation16 + $0x8b0] sm:$0xff] }
0x1070   : > { %v7565_v22 = vpack.c.bf16 %v3408_v29, %v3396_v38  ;;  %v3531_v38 = vld [vmem:[#allocation16 + $0x738] sm:$0xff]  ;;  %v7581_v29 = vpack.c.bf16 %v3504_v25, %v3492_v62  ;;  %v7689_v32 = vpack.c.bf16 %v3578_v21, %v3566_v18  ;;  %v3590_v35 = vld [vmem:[#allocation16 + $0x910] sm:$0xff] }
0x1071   : > { %3241 = vadd.xlane.f32.xlu1 %v3240_v39  ;;  %v3398_v39 = vld [vmem:[#allocation16 + $0x310] sm:$0xff]  ;;  %v7679_v2 = vpack.c.bf16 %v3531_v38, %v3519_v37  ;;  %v3603_v25 = vld [vmem:[#allocation16 + $0x978] sm:$0xff]  ;;  %v3613_v38 = vld [vmem:[#allocation16 + $0x9c8] sm:$0xff] }
0x1072   : > { %v7661_v44 = vpack.c.bf16 %v3410_v40, %v3398_v39  ;;  %7566 = vmatpush1.bf16.msra.mxu1 %v7565_v22  ;;  %v7677_v39 = vpack.c.bf16 %v3506_v33, %v3494_v27  ;;  %v3516_v40 = vld [vmem:[#allocation16 + $0x6c0] sm:$0xff]  ;;  %v3541_v22 = vld [vmem:[#allocation16 + $0x788] sm:$0xff]  ;;  %v3602_v37 = vld [vmem:[#allocation16 + $0x970] sm:$0xff] }
0x1073   : > { %7568 = vmatprep.subr.bf16.mxu1 %v7567_v13  ;;  %v3543_v13 = vld [vmem:[#allocation16 + $0x798] sm:$0xff]  ;;  %v7585_v50 = vpack.c.bf16 %v3528_v15, %v3516_v40  ;;  %v3588_v27 = vld [vmem:[#allocation16 + $0x900] sm:$0xff] }
0x1074   : > { %7662 = vmatpush1.bf16.msra.mxu0 %v7661_v44  ;;  %v3553_v44 = vld [vmem:[#allocation16 + $0x7e8] sm:$0xff]  ;;  %v7683_v55 = vpack.c.bf16 %v3555_v49, %v3543_v13  ;;  %v3627_v40 = vld [vmem:[#allocation16 + $0xa38] sm:$0xff]  ;;  %v3626_v13 = vld [vmem:[#allocation16 + $0xa30] sm:$0xff] }
0x1075   : > { %7664 = vmatprep.subr.bf16.mxu0 %v7663_v52  ;;  %v7587_v52 = vpack.c.bf16 %v3553_v44, %v3541_v22  ;;  %v3614_v22 = vld [vmem:[#allocation16 + $0x9d0] sm:$0xff]  ;;  %v3637_v49 = vld [vmem:[#allocation16 + $0xa88] sm:$0xff]  ;;  %v3687_v18 = vld [vmem:[#allocation16 + $0xc18] sm:$0xff] }
0x1076   : > { %7570 = vmatpush1.bf16.msra.mxu1 %v7569_v20  ;;  %v7589_v20 = vpack.c.bf16 %v3552_v54, %v3540_v53  ;;  %v3639_v53 = vld [vmem:[#allocation16 + $0xa98] sm:$0xff] }
0x1077   : > { %7572 = vmatprep.subr.bf16.mxu1 %v7571_v58  ;;  %v3651_v54 = vld [vmem:[#allocation16 + $0xaf8] sm:$0xff] }
0x1078   : > { %7666 = vmatpush1.bf16.msra.mxu0 %v7665_v31  ;;  %v7685_v31 = vpack.c.bf16 %v3554_v57, %v3542_v56  ;;  %v7699_v56 = vpack.c.bf16 %v3651_v54, %v3639_v53  ;;  %v3648_v57 = vld [vmem:[#allocation16 + $0xae0] sm:$0xff] }
0x1079   : > { %7668 = vmatprep.subr.bf16.mxu0 %v7667_v63 }
0x107a   : > { %7574 = vmatpush1.bf16.msra.mxu1 %v7573_v9  ;;  %v3565_v9 = vld [vmem:[#allocation16 + $0x848] sm:$0xff] }
0x107b   : > { %7576 = vmatprep.subr.bf16.mxu1 %v7575_v26  ;;  %v3567_v26 = vld [vmem:[#allocation16 + $0x858] sm:$0xff] }
0x107c   : > { %7670 = vmatpush1.bf16.msra.mxu0 %v7669_v16  ;;  %v3577_v16 = vld [vmem:[#allocation16 + $0x8a8] sm:$0xff]  ;;  %v7687_v30 = vpack.c.bf16 %v3579_v11, %v3567_v26  ;;  %v3674_v11 = vld [vmem:[#allocation16 + $0xbb0] sm:$0xff] }
0x107d   : > { %7672 = vmatprep.subr.bf16.mxu0 %v7671_v14  ;;  %v7591_v10 = vpack.c.bf16 %v3577_v16, %v3565_v9  ;;  %v3576_v14 = vld [vmem:[#allocation16 + $0x8a0] sm:$0xff] }
0x107e   : > { %7578 = vmatpush1.bf16.msra.mxu1 %v7577_v19  ;;  %v7593_v17 = vpack.c.bf16 %v3576_v14, %v3564_v12  ;;  %v3589_v19 = vld [vmem:[#allocation16 + $0x908] sm:$0xff]  ;;  %v3660_v9 = vld [vmem:[#allocation16 + $0xb40] sm:$0xff] }
0x107f   : > { %7580 = vmatprep.subr.bf16.mxu1 %v7579_v24  ;;  %v3591_v24 = vld [vmem:[#allocation16 + $0x918] sm:$0xff]  ;;  %v3672_v16 = vld [vmem:[#allocation16 + $0xba0] sm:$0xff] }
0x1080   : > { %7674 = vmatpush1.bf16.msra.mxu0 %v7673_v23  ;;  %v3601_v23 = vld [vmem:[#allocation16 + $0x968] sm:$0xff]  ;;  %v7691_v33 = vpack.c.bf16 %v3603_v25, %v3591_v24  ;;  %v7609_v12 = vpack.c.bf16 %v3672_v16, %v3660_v9  ;;  %v10116_v25 = vld [vmem:[#allocation13] sm:$0x7]  ;;  %v3734_v9 = vld [vmem:[#allocation16 + $0xd90] sm:$0xff] }
0x1081   : > { %7676 = vmatprep.subr.bf16.mxu0 %v7675_v28  ;;  %v7595_v62 = vpack.c.bf16 %v3601_v23, %v3589_v19  ;;  %v3600_v28 = vld [vmem:[#allocation16 + $0x960] sm:$0xff]  ;;  %v3746_v16 = vld [vmem:[#allocation16 + $0xdf0] sm:$0xff] }
0x1082   : > { %7582 = vmatpush1.bf16.msra.mxu1 %v7581_v29  ;;  %v7597_v34 = vpack.c.bf16 %v3600_v28, %v3588_v27  ;;  %v7693_v29 = vpack.c.bf16 %v3602_v37, %v3590_v35  ;;  %v10118_v27 = vld [vmem:[#allocation14] sm:$0x7]  ;;  %v3269_v28 = vrot.slane %v10116_v25, %v9885_v46 }
0x1083   : > { %7584 = vmatprep.subr.bf16.mxu1 %v7583_v1  ;;  %v3615_v1 = vld [vmem:[#allocation16 + $0x9d8] sm:$0xff]  ;;  %v3289_v37 = vrot.slane %v10118_v27, %v9885_v46 }
0x1084   : > { %7678 = vmatpush1.bf16.msra.mxu0 %v7677_v39  ;;  %v3625_v39 = vld [vmem:[#allocation16 + $0xa28] sm:$0xff]  ;;  %v7695_v41 = vpack.c.bf16 %v3627_v40, %v3615_v1  ;;  %v3696_v1 = vld [vmem:[#allocation16 + $0xc60] sm:$0xff]  ;;  %v3686_v40 = vld [vmem:[#allocation16 + $0xc10] sm:$0xff] }
0x1085   : > { %7680 = vmatprep.subr.bf16.mxu0 %v7679_v2  ;;  %v7599_v15 = vpack.c.bf16 %v3625_v39, %v3613_v38  ;;  %v3612_v2 = vld [vmem:[#allocation16 + $0x9c0] sm:$0xff] }
0x1086   : > { %7586 = vmatpush1.bf16.msra.mxu1 %v7585_v50  ;;  %v7601_v44 = vpack.c.bf16 %v3624_v42, %v3612_v2  ;;  %v3649_v50 = vld [vmem:[#allocation16 + $0xae8] sm:$0xff]  ;;  %v3684_v39 = vld [vmem:[#allocation16 + $0xc00] sm:$0xff] }
0x1087   : > { %7588 = vmatprep.subr.bf16.mxu1 %v7587_v52  ;;  %v7603_v52 = vpack.c.bf16 %v3649_v50, %v3637_v49  ;;  %v7613_v50 = vpack.c.bf16 %v3696_v1, %v3684_v39 }
0x1088   : > { %7682 = vmatpush1.bf16.msra.mxu0 %v7681_v51  ;;  %v7697_v51 = vpack.c.bf16 %v3626_v13, %v3614_v22  ;;  %v3721_v22 = vld [vmem:[#allocation16 + $0xd28] sm:$0xff]  ;;  %v3723_v13 = vld [vmem:[#allocation16 + $0xd38] sm:$0xff] }
0x1089   : > { %7684 = vmatprep.subr.bf16.mxu0 %v7683_v55  ;;  %v3636_v55 = vld [vmem:[#allocation16 + $0xa80] sm:$0xff] }
0x108a   : > { %7590 = vmatpush1.bf16.msra.mxu1 %v7589_v20  ;;  %v3638_v20 = vld [vmem:[#allocation16 + $0xa90] sm:$0xff] }
0x108b   : > { %7592 = vmatprep.subr.bf16.mxu1 %v7591_v10  ;;  %v3662_v10 = vld [vmem:[#allocation16 + $0xb50] sm:$0xff] }
0x108c   : > { %7686 = vmatpush1.bf16.msra.mxu0 %v7685_v31  ;;  %v3650_v31 = vld [vmem:[#allocation16 + $0xaf0] sm:$0xff]  ;;  %v7705_v14 = vpack.c.bf16 %v3674_v11, %v3662_v10  ;;  %v3769_v10 = vld [vmem:[#allocation16 + $0xea8] sm:$0xff]  ;;  %v3759_v11 = vld [vmem:[#allocation16 + $0xe58] sm:$0xff] }
0x108d   : > { %7688 = vmatprep.subr.bf16.mxu0 %v7687_v30  ;;  %v3685_v30 = vld [vmem:[#allocation16 + $0xc08] sm:$0xff] }
0x108e   : > { %7594 = vmatpush1.bf16.msra.mxu1 %v7593_v17  ;;  %v3697_v17 = vld [vmem:[#allocation16 + $0xc68] sm:$0xff] }
0x108f   : > { %7596 = vmatprep.subr.bf16.mxu1 %v7595_v62  ;;  %v7611_v21 = vpack.c.bf16 %v3697_v17, %v3685_v30  ;;  %v7717_v30 = vpack.c.bf16 %v3746_v16, %v3734_v9  ;;  %v3756_v17 = vld [vmem:[#allocation16 + $0xe40] sm:$0xff]  ;;  %v3853_v9 = vld [vmem:[#allocation16 + $0x1148] sm:$0xff] }
0x1090   : > { %7690 = vmatpush1.bf16.msra.mxu0 %v7689_v32  ;;  %v3699_v32 = vld [vmem:[#allocation16 + $0xc78] sm:$0xff]  ;;  %v3865_v16 = vld [vmem:[#allocation16 + $0x11a8] sm:$0xff] }
0x1091   : > { %7692 = vmatprep.subr.bf16.mxu0 %v7691_v33  ;;  %v7707_v19 = vpack.c.bf16 %v3699_v32, %v3687_v18  ;;  %v3265_v33 = vrot.slane %v10116_v25, %v9891_v48  ;;  %v3768_v18 = vld [vmem:[#allocation16 + $0xea0] sm:$0xff] }
0x1092   : > { %7598 = vmatpush1.bf16.msra.mxu1 %v7597_v34 }
0x1093   : > { %7600 = vmatprep.subr.bf16.mxu1 %v7599_v15  ;;  %v3698_v15 = vld [vmem:[#allocation16 + $0xc70] sm:$0xff] }
0x1094   : > { %7694 = vmatpush1.bf16.msra.mxu0 %v7693_v29  ;;  %v3285_v29 = vrot.slane %v10118_v27, %v9891_v48 }
0x1095   : > { %7696 = vmatprep.subr.bf16.mxu0 %v7695_v41  ;;  %v3709_v41 = vld [vmem:[#allocation16 + $0xcc8] sm:$0xff] }
0x1096   : > { %7602 = vmatpush1.bf16.msra.mxu1 %v7601_v44  ;;  %v3711_v44 = vld [vmem:[#allocation16 + $0xcd8] sm:$0xff]  ;;  %v7615_v53 = vpack.c.bf16 %v3721_v22, %v3709_v41  ;;  %v3805_v41 = vld [vmem:[#allocation16 + $0xfc8] sm:$0xff] }
0x1097   : > { %7604 = vmatprep.subr.bf16.mxu1 %v7603_v52  ;;  %v3720_v52 = vld [vmem:[#allocation16 + $0xd20] sm:$0xff]  ;;  %v7711_v54 = vpack.c.bf16 %v3723_v13, %v3711_v44  ;;  %v3819_v22 = vld [vmem:[#allocation16 + $0x1038] sm:$0xff] }
0x1098   : > { %7698 = vmatpush1.bf16.msra.mxu0 %v7697_v51  ;;  %v7709_v51 = vpack.c.bf16 %v3698_v15, %v3686_v40  ;;  %v3782_v40 = vld [vmem:[#allocation16 + $0xf10] sm:$0xff] }
0x1099   : > { %7700 = vmatprep.subr.bf16.mxu0 %v7699_v56  ;;  %v3722_v56 = vld [vmem:[#allocation16 + $0xd30] sm:$0xff] }
0x109a   : > { %v3794_v15 = vld [vmem:[#allocation16 + $0xf70] sm:$0xff] }
0x109b   : > { %v7725_v13 = vpack.c.bf16 %v3794_v15, %v3782_v40  ;;  %v3316_v40 = vld [vmem:[#allocation16 + $0x80] sm:$0xff]  ;;  %v3306_v15 = vld [vmem:[#allocation16 + $0x30] sm:$0xff] }
0x10fe   : > { %v3242_v58 = vpop.xlane.xlu1 %3241 }
0x10ff   : > { %v3243_v59 = vmul.f32 0.0026041667, %v3242_v58  ;;  %v7605_v58 = vpack.c.bf16 %v3648_v57, %v3636_v55  ;;  %v3710_v55 = vld [vmem:[#allocation16 + $0xcd0] sm:$0xff]  ;;  %v3733_v57 = vld [vmem:[#allocation16 + $0xd88] sm:$0xff] }
0x1101   : > { %v10102_v60 = vsub.f32 %v10090_v36, %v3243_v59  ;;  %v10105_v61 = vsub.f32 %v10093_v0, %v3243_v59  ;;  %v10108_v63 = vsub.f32 %v10096_v43, %v3243_v59  ;;  %v3661_v59 = vld [vmem:[#allocation16 + $0xb48] sm:$0xff]  ;;  %7606 = vmatpush1.bf16.msra.mxu1 %v7605_v58  ;;  %v3747_v58 = vld [vmem:[#allocation16 + $0xdf8] sm:$0xff] }
0x1103   : > { %v3247_v3 = vmul.f32 %v10102_v60, %v10102_v60  ;;  %v3248_v4 = vmul.f32 %v10105_v61, %v10105_v61  ;;  %v3249_v6 = vmul.f32 %v10108_v63, %v10108_v63 }
0x1105   : > { %v3250_v7 = vadd.f32 %v3248_v4, %v3247_v3  ;;  %v3673_v3 = vld [vmem:[#allocation16 + $0xba8] sm:$0xff]  ;;  %v3663_v4 = vld [vmem:[#allocation16 + $0xb58] sm:$0xff] }
0x1107   : > { %v3251_v8 = vadd.f32 %v3250_v7, %v3249_v6  ;;  %v7701_v6 = vpack.c.bf16 %v3650_v31, %v3638_v20  ;;  %v7607_v7 = vpack.c.bf16 %v3673_v3, %v3661_v59  ;;  %v3745_v20 = vld [vmem:[#allocation16 + $0xde8] sm:$0xff]  ;;  %v3735_v31 = vld [vmem:[#allocation16 + $0xd98] sm:$0xff]  ;;  %v7713_v3 = vpack.c.bf16 %v3722_v56, %v3710_v55 }
0x1108   : > { %v3829_v55 = vld [vmem:[#allocation16 + $0x1088] sm:$0xff] }
0x1109   : > { %3252 = vadd.xlane.f32.xlu0 %v3251_v8  ;;  %v3675_v8 = vld [vmem:[#allocation16 + $0xbb8] sm:$0xff]  ;;  %7702 = vmatpush1.bf16.msra.mxu0 %v7701_v6  ;;  %v3744_v6 = vld [vmem:[#allocation16 + $0xde0] sm:$0xff]  ;;  %v3841_v56 = vld [vmem:[#allocation16 + $0x10e8] sm:$0xff] }
0x110a   : > { %v7703_v26 = vpack.c.bf16 %v3675_v8, %v3663_v4  ;;  %7608 = vmatprep.subr.bf16.mxu1 %v7607_v7  ;;  %v3732_v4 = vld [vmem:[#allocation16 + $0xd80] sm:$0xff]  ;;  %v7619_v7 = vpack.c.bf16 %v3745_v20, %v3733_v57  ;;  %v7715_v8 = vpack.c.bf16 %v3747_v58, %v3735_v31  ;;  %v3831_v57 = vld [vmem:[#allocation16 + $0x1098] sm:$0xff] }
0x110b   : > { %7610 = vmatpush1.bf16.msra.mxu1 %v7609_v12  ;;  %v3771_v12 = vld [vmem:[#allocation16 + $0xeb8] sm:$0xff] }
0x110c   : > { %7704 = vmatprep.subr.bf16.mxu0 %v7703_v26  ;;  %7612 = vmatprep.subr.bf16.mxu1 %v7611_v21  ;;  %v3757_v26 = vld [vmem:[#allocation16 + $0xe48] sm:$0xff]  ;;  %v7719_v32 = vpack.c.bf16 %v3771_v12, %v3759_v11  ;;  %v3843_v20 = vld [vmem:[#allocation16 + $0x10f8] sm:$0xff] }
0x110d   : > { %7706 = vmatpush1.bf16.msra.mxu0 %v7705_v14  ;;  %v7621_v14 = vpack.c.bf16 %v3744_v6, %v3732_v4  ;;  %v7623_v21 = vpack.c.bf16 %v3769_v10, %v3757_v26  ;;  %v7635_v4 = vpack.c.bf16 %v3841_v56, %v3829_v55  ;;  %v7731_v6 = vpack.c.bf16 %v3843_v20, %v3831_v57  ;;  %v3855_v26 = vld [vmem:[#allocation16 + $0x1158] sm:$0xff]  ;;  %v3365_v55 = vld [vmem:[#allocation16 + $0x208] sm:$0xff] }
0x110e   : > { %7708 = vmatprep.subr.bf16.mxu0 %v7707_v19  ;;  %v3758_v19 = vld [vmem:[#allocation16 + $0xe50] sm:$0xff]  ;;  %v3867_v10 = vld [vmem:[#allocation16 + $0x11b8] sm:$0xff] }
0x110f   : > { %v3355_v56 = vld [vmem:[#allocation16 + $0x1b8] sm:$0xff] }
0x1110   : > { %v3367_v57 = vld [vmem:[#allocation16 + $0x218] sm:$0xff] }
0x1196   : > { %v3253_v23 = vpop.xlane.xlu0 %3252 }
0x1197   : > { %v3254_v24 = vmul.f32 0.0026041667, %v3253_v23  ;;  %v3770_v23 = vld [vmem:[#allocation16 + $0xeb0] sm:$0xff] }
0x1199   : > { %v3255_v62 = vadd.f32 1e-05, %v3254_v24  ;;  %v3781_v24 = vld [vmem:[#allocation16 + $0xf08] sm:$0xff] }
0x119b   : > { %8949 = vrsqrt.f32 %v3255_v62  ;;  %v3793_v62 = vld [vmem:[#allocation16 + $0xf68] sm:$0xff] }
0x119c   : > { %v7627_v39 = vpack.c.bf16 %v3793_v62, %v3781_v24  ;;  %v3305_v24 = vld [vmem:[#allocation16 + $0x28] sm:$0xff] }
0x119d   : > { %v3317_v62 = vld [vmem:[#allocation16 + $0x88] sm:$0xff] }
0x11a5   : > { %v10124_v34 = vpop.eup %8949 }
0x11a6   : > { %v3258_v35 = vmul.f32 %v10124_v34, %v10105_v61  ;;  %v3257_v38 = vmul.f32 %v10124_v34, %v10102_v60  ;;  %v3708_v60 = vld [vmem:[#allocation16 + $0xcc0] sm:$0xff] }
0x11a7   : > { %v7617_v59 = vpack.c.bf16 %v3720_v52, %v3708_v60 }
0x11a8   : > { %v3278_v2 = vmul.f32 %v3269_v28, %v3258_v35  ;;  %v3277_v42 = vmul.f32 %v3265_v33, %v3257_v38  ;;  %v3783_v28 = vld [vmem:[#allocation16 + $0xf18] sm:$0xff]  ;;  %v7625_v35 = vpack.c.bf16 %v3768_v18, %v3756_v17  ;;  %v3780_v38 = vld [vmem:[#allocation16 + $0xf00] sm:$0xff]  ;;  %v3273_v17 = vrot.slane %v10116_v25, %v9888_v47 }
0x11a9   : > { %v3795_v33 = vld [vmem:[#allocation16 + $0xf78] sm:$0xff]  ;;  %v7639_v18 = vpack.c.bf16 %v3865_v16, %v3853_v9  ;;  %v3293_v25 = vrot.slane %v10118_v27, %v9888_v47  ;;  %v3389_v9 = vld [vmem:[#allocation16 + $0x2c8] sm:$0xff] }
0x11aa   : > { %v10134_v61 = vadd.f32 %v3289_v37, %v3278_v2  ;;  %v10136_v49 = vadd.f32 %v3285_v29, %v3277_v42  ;;  %v7721_v37 = vpack.c.bf16 %v3770_v23, %v3758_v19  ;;  %v3792_v29 = vld [vmem:[#allocation16 + $0xf60] sm:$0xff]  ;;  %v7723_v1 = vpack.c.bf16 %v3795_v33, %v3783_v28  ;;  %v3817_v2 = vld [vmem:[#allocation16 + $0x1028] sm:$0xff]  ;;  %v3807_v42 = vld [vmem:[#allocation16 + $0xfd8] sm:$0xff] }
0x11ab   : > { %v7629_v44 = vpack.c.bf16 %v3792_v29, %v3780_v38  ;;  %v7631_v60 = vpack.c.bf16 %v3817_v2, %v3805_v41  ;;  %v7727_v52 = vpack.c.bf16 %v3819_v22, %v3807_v42  ;;  %v3866_v19 = vld [vmem:[#allocation16 + $0x11b0] sm:$0xff]  ;;  %v3259_v23 = vmul.f32 %v10124_v34, %v10108_v63  ;;  %v3307_v28 = vld [vmem:[#allocation16 + $0x38] sm:$0xff]  ;;  %v3329_v34 = vld [vmem:[#allocation16 + $0xe8] sm:$0xff] }
0x11ac   : > { %4004 = vmatprep.mubr.f32.mxu1 %v10134_v61  ;;  %4146 = vmatprep.mubr.f32.mxu0 %v10134_v61  ;;  %v3319_v33 = vld [vmem:[#allocation16 + $0x98] sm:$0xff]  ;;  %v7739_v29 = vpack.c.bf16 %v3317_v62, %v3305_v24  ;;  %v3318_v63 = vld [vmem:[#allocation16 + $0x90] sm:$0xff]  ;;  %v3341_v41 = vld [vmem:[#allocation16 + $0x148] sm:$0xff] }
0x11ad   : > { %4005 = vmatmul.mubr.f32.vlgmr.msra.gmra.mrb[14].mxu1 %v10136_v49  ;;  %4147 = vmatmul.mubr.f32.vlgmr.msra.gmra.mrb[30].mxu0 %v10136_v49  ;;  %v3279_v38 = vmul.f32 %v3273_v17, %v3259_v23  ;;  %v3331_v2 = vld [vmem:[#allocation16 + $0xf8] sm:$0xff]  ;;  %v7837_v27 = vpack.c.bf16 %v3318_v63, %v3306_v15  ;;  %v3378_v17 = vld [vmem:[#allocation16 + $0x270] sm:$0xff] }
0x11ae   : > { %7614 = vmatpush1.bf16.msra.mxu1 %v7613_v50  ;;  %7710 = vmatpush1.bf16.msra.mxu0 %v7709_v51  ;;  %v3804_v50 = vld [vmem:[#allocation16 + $0xfc0] sm:$0xff]  ;;  %v3343_v42 = vld [vmem:[#allocation16 + $0x158] sm:$0xff] }
0x11af   : > { %7616 = vmatprep.subr.bf16.mxu1 %v7615_v53  ;;  %7712 = vmatprep.subr.bf16.mxu0 %v7711_v54  ;;  %v3816_v51 = vld [vmem:[#allocation16 + $0x1020] sm:$0xff]  ;;  %v3806_v53 = vld [vmem:[#allocation16 + $0xfd0] sm:$0xff]  ;;  %v3379_v16 = vld [vmem:[#allocation16 + $0x278] sm:$0xff] }
0x11b0   : > { %4075 = vmatprep.mubr.f32.mxu1 %v9403_v5  ;;  %4217 = vmatprep.mubr.f32.mxu0 %v9403_v5  ;;  %v3818_v54 = vld [vmem:[#allocation16 + $0x1030] sm:$0xff]  ;;  %v7633_v31 = vpack.c.bf16 %v3816_v51, %v3804_v50  ;;  %v3340_v50 = vld [vmem:[#allocation16 + $0x140] sm:$0xff]  ;;  %v3403_v23 = vld [vmem:[#allocation16 + $0x338] sm:$0xff] }
0x11b1   : > { %v7729_v58 = vpack.c.bf16 %v3818_v54, %v3806_v53  ;;  %v3330_v51 = vld [vmem:[#allocation16 + $0xf0] sm:$0xff]  ;;  %v3353_v54 = vld [vmem:[#allocation16 + $0x1a8] sm:$0xff]  ;;  %v3415_v24 = vld [vmem:[#allocation16 + $0x398] sm:$0xff] }
0x11b2   : > { %7618 = vmatpush1.bf16.msra.mxu1 %v7617_v59  ;;  %7714 = vmatpush1.bf16.msra.mxu0 %v7713_v3  ;;  %v3828_v59 = vld [vmem:[#allocation16 + $0x1080] sm:$0xff]  ;;  %v3342_v53 = vld [vmem:[#allocation16 + $0x150] sm:$0xff]  ;;  %v3439_v15 = vld [vmem:[#allocation16 + $0x458] sm:$0xff] }
0x11b3   : > { %7620 = vmatprep.subr.bf16.mxu1 %v7619_v7  ;;  %7716 = vmatprep.subr.bf16.mxu0 %v7715_v8  ;;  %v3840_v3 = vld [vmem:[#allocation16 + $0x10e0] sm:$0xff]  ;;  %v3830_v7 = vld [vmem:[#allocation16 + $0x1090] sm:$0xff] }
0x11b4   : > { %v3842_v8 = vld [vmem:[#allocation16 + $0x10f0] sm:$0xff]  ;;  %v7637_v11 = vpack.c.bf16 %v3840_v3, %v3828_v59  ;;  %v3352_v59 = vld [vmem:[#allocation16 + $0x1a0] sm:$0xff] }
0x11b5   : > { %v7733_v12 = vpack.c.bf16 %v3842_v8, %v3830_v7  ;;  %v3364_v3 = vld [vmem:[#allocation16 + $0x200] sm:$0xff]  ;;  %v3366_v7 = vld [vmem:[#allocation16 + $0x210] sm:$0xff]  ;;  %v3377_v8 = vld [vmem:[#allocation16 + $0x268] sm:$0xff] }
0x11b6   : > { %7622 = vmatpush1.bf16.msra.mxu1 %v7621_v14  ;;  %7718 = vmatpush1.bf16.msra.mxu0 %v7717_v30  ;;  %v3852_v14 = vld [vmem:[#allocation16 + $0x1140] sm:$0xff] }
0x11b7   : > { %7624 = vmatprep.subr.bf16.mxu1 %v7623_v21  ;;  %7720 = vmatprep.subr.bf16.mxu0 %v7719_v32  ;;  %v3864_v30 = vld [vmem:[#allocation16 + $0x11a0] sm:$0xff]  ;;  %v7735_v21 = vpack.c.bf16 %v3867_v10, %v3855_v26  ;;  %v3854_v32 = vld [vmem:[#allocation16 + $0x1150] sm:$0xff]  ;;  %v3391_v26 = vld [vmem:[#allocation16 + $0x2d8] sm:$0xff]  ;;  %v7749_v10 = vpack.c.bf16 %v3364_v3, %v3352_v59 }
0x11b8   : > { %v3473_v59 = vld [vmem:[#allocation16 + $0x568] sm:$0xff] }
0x11b9   : > { %v3485_v3 = vld [vmem:[#allocation16 + $0x5c8] sm:$0xff] }
0x11ba   : > { %7626 = vmatpush1.bf16.msra.mxu1 %v7625_v35  ;;  %7722 = vmatpush1.bf16.msra.mxu0 %v7721_v37  ;;  %v7641_v35 = vpack.c.bf16 %v3864_v30, %v3852_v14  ;;  %v7737_v37 = vpack.c.bf16 %v3866_v19, %v3854_v32  ;;  %v3376_v14 = vld [vmem:[#allocation16 + $0x260] sm:$0xff]  ;;  %v3401_v32 = vld [vmem:[#allocation16 + $0x328] sm:$0xff] }
0x11bb   : > { %7628 = vmatprep.subr.bf16.mxu1 %v7627_v39  ;;  %7724 = vmatprep.subr.bf16.mxu0 %v7723_v1  ;;  %v7835_v39 = vpack.c.bf16 %v3319_v33, %v3307_v28  ;;  %v3304_v1 = vld [vmem:[#allocation16 + $0x20] sm:$0xff]  ;;  %v3413_v19 = vld [vmem:[#allocation16 + $0x388] sm:$0xff] }
0x11bc   : > { %v7741_v22 = vpack.c.bf16 %v3316_v40, %v3304_v1  ;;  %v3388_v30 = vld [vmem:[#allocation16 + $0x2c0] sm:$0xff]  ;;  %v7755_v33 = vpack.c.bf16 %v3413_v19, %v3401_v32  ;;  %v3437_v1 = vld [vmem:[#allocation16 + $0x448] sm:$0xff]  ;;  %v3427_v40 = vld [vmem:[#allocation16 + $0x3f8] sm:$0xff] }
0x11bd   : > { %v7753_v62 = vpack.c.bf16 %v3388_v30, %v3376_v14  ;;  %v3497_v14 = vld [vmem:[#allocation16 + $0x628] sm:$0xff] }
0x11be   : > { %7630 = vmatpush1.bf16.msra.mxu1 %v7629_v44  ;;  %7726 = vmatpush1.bf16.msra.mxu0 %v7725_v13  ;;  %v10150_v44 = vadd.f32 %v3293_v25, %v3279_v38  ;;  %v3328_v13 = vld [vmem:[#allocation16 + $0xe0] sm:$0xff]  ;;  %v3402_v25 = vld [vmem:[#allocation16 + $0x330] sm:$0xff]  ;;  %v7851_v38 = vpack.c.bf16 %v3415_v24, %v3403_v23  ;;  %v3509_v30 = vld [vmem:[#allocation16 + $0x688] sm:$0xff] }
0x11bf   : > { %7632 = vmatprep.subr.bf16.mxu1 %v7631_v60  ;;  %7728 = vmatprep.subr.bf16.mxu0 %v7727_v52  ;;  %v7743_v60 = vpack.c.bf16 %v3341_v41, %v3329_v34  ;;  %v7839_v52 = vpack.c.bf16 %v3343_v42, %v3331_v2  ;;  %v7745_v20 = vpack.c.bf16 %v3340_v50, %v3328_v13  ;;  %v3424_v2 = vld [vmem:[#allocation16 + $0x3e0] sm:$0xff]  ;;  %v3438_v13 = vld [vmem:[#allocation16 + $0x450] sm:$0xff]  ;;  %v3449_v50 = vld [vmem:[#allocation16 + $0x4a8] sm:$0xff] }
0x11c0   : > { %v3436_v42 = vld [vmem:[#allocation16 + $0x440] sm:$0xff]  ;;  %v7771_v19 = vpack.c.bf16 %v3509_v30, %v3497_v14 }
0x11c1   : > { %v3496_v23 = vld [vmem:[#allocation16 + $0x620] sm:$0xff] }
0x11c2   : > { %7634 = vmatpush1.bf16.msra.mxu1 %v7633_v31  ;;  %7730 = vmatpush1.bf16.msra.mxu0 %v7729_v58  ;;  %v7841_v31 = vpack.c.bf16 %v3342_v53, %v3330_v51  ;;  %v7747_v58 = vpack.c.bf16 %v3365_v55, %v3353_v54  ;;  %v3461_v51 = vld [vmem:[#allocation16 + $0x508] sm:$0xff]  ;;  %v7761_v53 = vpack.c.bf16 %v3436_v42, %v3424_v2  ;;  %v3508_v24 = vld [vmem:[#allocation16 + $0x680] sm:$0xff] }
0x11c3   : > { %7636 = vmatprep.subr.bf16.mxu1 %v7635_v4  ;;  %7732 = vmatprep.subr.bf16.mxu0 %v7731_v6  ;;  %v3354_v4 = vld [vmem:[#allocation16 + $0x1b0] sm:$0xff]  ;;  %v7843_v6 = vpack.c.bf16 %v3367_v57, %v3355_v56  ;;  %v7763_v55 = vpack.c.bf16 %v3461_v51, %v3449_v50  ;;  %v3448_v56 = vld [vmem:[#allocation16 + $0x4a0] sm:$0xff]  ;;  %v3545_v2 = vld [vmem:[#allocation16 + $0x7a8] sm:$0xff] }
0x11c4   : > { %v3460_v57 = vld [vmem:[#allocation16 + $0x500] sm:$0xff]  ;;  %v3557_v42 = vld [vmem:[#allocation16 + $0x808] sm:$0xff] }
0x11c5   : > { %v7779_v51 = vpack.c.bf16 %v3557_v42, %v3545_v2 }
0x11c6   : > { %7638 = vmatpush1.bf16.msra.mxu1 %v7637_v11  ;;  %7734 = vmatpush1.bf16.msra.mxu0 %v7733_v12  ;;  %v7845_v11 = vpack.c.bf16 %v3366_v7, %v3354_v4  ;;  %v7751_v12 = vpack.c.bf16 %v3389_v9, %v3377_v8  ;;  %v3475_v4 = vld [vmem:[#allocation16 + $0x578] sm:$0xff]  ;;  %v7765_v7 = vpack.c.bf16 %v3460_v57, %v3448_v56  ;;  %v3569_v56 = vld [vmem:[#allocation16 + $0x868] sm:$0xff] }
0x11c7   : > { %7640 = vmatprep.subr.bf16.mxu1 %v7639_v18  ;;  %7736 = vmatprep.subr.bf16.mxu0 %v7735_v21  ;;  %v7847_v18 = vpack.c.bf16 %v3391_v26, %v3379_v16  ;;  %v3390_v21 = vld [vmem:[#allocation16 + $0x2d0] sm:$0xff]  ;;  %v7767_v9 = vpack.c.bf16 %v3485_v3, %v3473_v59  ;;  %v3472_v16 = vld [vmem:[#allocation16 + $0x560] sm:$0xff]  ;;  %v3581_v57 = vld [vmem:[#allocation16 + $0x8c8] sm:$0xff] }
0x11c8   : > { %v7849_v28 = vpack.c.bf16 %v3390_v21, %v3378_v17  ;;  %v3484_v26 = vld [vmem:[#allocation16 + $0x5c0] sm:$0xff]  ;;  %v3499_v17 = vld [vmem:[#allocation16 + $0x638] sm:$0xff]  ;;  %v7783_v3 = vpack.c.bf16 %v3581_v57, %v3569_v56 }
0x11c9   : > { %v7769_v21 = vpack.c.bf16 %v3484_v26, %v3472_v16  ;;  %v3593_v16 = vld [vmem:[#allocation16 + $0x928] sm:$0xff] }
0x11ca   : > { %7642 = vmatpush1.bf16.msra.mxu1 %v7641_v35  ;;  %7738 = vmatpush1.bf16.msra.mxu0 %v7737_v37  ;;  %v3400_v35 = vld [vmem:[#allocation16 + $0x320] sm:$0xff]  ;;  %v3605_v26 = vld [vmem:[#allocation16 + $0x988] sm:$0xff] }
0x11cb   : > { %7740 = vmatprep.subr.bf16.mxu1 %v7739_v29  ;;  %7836 = vmatprep.subr.bf16.mxu0 %v7835_v39  ;;  %v3412_v37 = vld [vmem:[#allocation16 + $0x380] sm:$0xff]  ;;  %v3414_v29 = vld [vmem:[#allocation16 + $0x390] sm:$0xff]  ;;  %v3425_v39 = vld [vmem:[#allocation16 + $0x3e8] sm:$0xff]  ;;  %v7787_v30 = vpack.c.bf16 %v3605_v26, %v3593_v16 }
0x11cc   : > { %v7757_v63 = vpack.c.bf16 %v3412_v37, %v3400_v35  ;;  %v7853_v34 = vpack.c.bf16 %v3414_v29, %v3402_v25  ;;  %v7759_v41 = vpack.c.bf16 %v3437_v1, %v3425_v39  ;;  %v3521_v35 = vld [vmem:[#allocation16 + $0x6e8] sm:$0xff]  ;;  %v3523_v25 = vld [vmem:[#allocation16 + $0x6f8] sm:$0xff]  ;;  %v7773_v29 = vpack.c.bf16 %v3508_v24, %v3496_v23 }
0x11cd   : > { %4076 = vmatmul.mubr.f32.vlgmr.msra.gmra.mrb[14].mxu1 %v10150_v44  ;;  %4218 = vmatmul.mubr.f32.vlgmr.msra.gmra.mrb[30].mxu0 %v10150_v44  ;;  %v3533_v37 = vld [vmem:[#allocation16 + $0x748] sm:$0xff] }
0x11ce   : > { %7742 = vmatpush1.bf16.msra.mxu1 %v7741_v22  ;;  %4288 = vmatprep.mubr.f32.mxu1 %v10134_v61  ;;  %v3426_v22 = vld [vmem:[#allocation16 + $0x3f0] sm:$0xff]  ;;  %v7775_v1 = vpack.c.bf16 %v3533_v37, %v3521_v35  ;;  %v3617_v23 = vld [vmem:[#allocation16 + $0x9e8] sm:$0xff] }
0x11cf   : > { %7838 = vmatpush1.bf16.msra.mxu0 %v7837_v27  ;;  %4430 = vmatprep.mubr.f32.mxu0 %v10134_v61  ;;  %v7855_v27 = vpack.c.bf16 %v3439_v15, %v3427_v40  ;;  %v7857_v54 = vpack.c.bf16 %v3438_v13, %v3426_v22  ;;  %v3520_v40 = vld [vmem:[#allocation16 + $0x6e0] sm:$0xff]  ;;  %v3547_v22 = vld [vmem:[#allocation16 + $0x7b8] sm:$0xff]  ;;  %v3629_v24 = vld [vmem:[#allocation16 + $0xa48] sm:$0xff] }
0x11d0   : > { %7744 = vmatprep.subr.bf16.mxu1 %v7743_v60  ;;  %7840 = vmatprep.subr.bf16.mxu0 %v7839_v52  ;;  %v3451_v60 = vld [vmem:[#allocation16 + $0x4b8] sm:$0xff]  ;;  %v3532_v15 = vld [vmem:[#allocation16 + $0x740] sm:$0xff]  ;;  %v7791_v37 = vpack.c.bf16 %v3629_v24, %v3617_v23 }
0x11d1   : > { %v3463_v52 = vld [vmem:[#allocation16 + $0x518] sm:$0xff]  ;;  %v7777_v13 = vpack.c.bf16 %v3532_v15, %v3520_v40  ;;  %v3641_v40 = vld [vmem:[#allocation16 + $0xaa8] sm:$0xff] }
0x11d2   : > { %7746 = vmatpush1.bf16.msra.mxu1 %v7745_v20  ;;  %v3450_v20 = vld [vmem:[#allocation16 + $0x4b0] sm:$0xff]  ;;  %v3653_v15 = vld [vmem:[#allocation16 + $0xb08] sm:$0xff] }
0x11d3   : > { %7842 = vmatpush1.bf16.msra.mxu0 %v7841_v31  ;;  %7748 = vmatprep.subr.bf16.mxu1 %v7747_v58  ;;  %v7859_v31 = vpack.c.bf16 %v3463_v52, %v3451_v60  ;;  %v3462_v58 = vld [vmem:[#allocation16 + $0x510] sm:$0xff]  ;;  %v3544_v60 = vld [vmem:[#allocation16 + $0x7a0] sm:$0xff]  ;;  %v7795_v42 = vpack.c.bf16 %v3653_v15, %v3641_v40 }
0x11d4   : > { %7844 = vmatprep.subr.bf16.mxu0 %v7843_v6  ;;  %v3487_v6 = vld [vmem:[#allocation16 + $0x5d8] sm:$0xff]  ;;  %v7861_v8 = vpack.c.bf16 %v3462_v58, %v3450_v20  ;;  %v3556_v52 = vld [vmem:[#allocation16 + $0x800] sm:$0xff] }
0x11d5   : > { %v3571_v20 = vld [vmem:[#allocation16 + $0x878] sm:$0xff]  ;;  %v7781_v58 = vpack.c.bf16 %v3556_v52, %v3544_v60  ;;  %v3665_v60 = vld [vmem:[#allocation16 + $0xb68] sm:$0xff] }
0x11d6   : > { %7750 = vmatpush1.bf16.msra.mxu1 %v7749_v10  ;;  %v3474_v10 = vld [vmem:[#allocation16 + $0x570] sm:$0xff]  ;;  %v3677_v52 = vld [vmem:[#allocation16 + $0xbc8] sm:$0xff] }
0x11d7   : > { %7846 = vmatpush1.bf16.msra.mxu0 %v7845_v11  ;;  %7752 = vmatprep.subr.bf16.mxu1 %v7751_v12  ;;  %v7863_v11 = vpack.c.bf16 %v3487_v6, %v3475_v4  ;;  %v3486_v12 = vld [vmem:[#allocation16 + $0x5d0] sm:$0xff]  ;;  %v3568_v4 = vld [vmem:[#allocation16 + $0x860] sm:$0xff]  ;;  %v7799_v57 = vpack.c.bf16 %v3677_v52, %v3665_v60 }
0x11d8   : > { %7848 = vmatprep.subr.bf16.mxu0 %v7847_v18  ;;  %v3511_v18 = vld [vmem:[#allocation16 + $0x698] sm:$0xff]  ;;  %v7865_v32 = vpack.c.bf16 %v3486_v12, %v3474_v10  ;;  %v3580_v6 = vld [vmem:[#allocation16 + $0x8c0] sm:$0xff] }
0x11d9   : > { %v3595_v10 = vld [vmem:[#allocation16 + $0x938] sm:$0xff]  ;;  %v7785_v12 = vpack.c.bf16 %v3580_v6, %v3568_v4  ;;  %v3689_v4 = vld [vmem:[#allocation16 + $0xc28] sm:$0xff] }
0x11da   : > { %7754 = vmatpush1.bf16.msra.mxu1 %v7753_v62  ;;  %v3498_v62 = vld [vmem:[#allocation16 + $0x630] sm:$0xff]  ;;  %v3701_v6 = vld [vmem:[#allocation16 + $0xc88] sm:$0xff] }
0x11db   : > { %7850 = vmatpush1.bf16.msra.mxu0 %v7849_v28  ;;  %7756 = vmatprep.subr.bf16.mxu1 %v7755_v33  ;;  %v7867_v28 = vpack.c.bf16 %v3511_v18, %v3499_v17  ;;  %v3510_v33 = vld [vmem:[#allocation16 + $0x690] sm:$0xff]  ;;  %v3592_v17 = vld [vmem:[#allocation16 + $0x920] sm:$0xff]  ;;  %v7803_v26 = vpack.c.bf16 %v3701_v6, %v3689_v4 }
0x11dc   : > { %7852 = vmatprep.subr.bf16.mxu0 %v7851_v38  ;;  %v3535_v38 = vld [vmem:[#allocation16 + $0x758] sm:$0xff]  ;;  %v7869_v39 = vpack.c.bf16 %v3510_v33, %v3498_v62  ;;  %v3604_v18 = vld [vmem:[#allocation16 + $0x980] sm:$0xff] }
0x11dd   : > { %v3619_v62 = vld [vmem:[#allocation16 + $0x9f8] sm:$0xff]  ;;  %v7789_v33 = vpack.c.bf16 %v3604_v18, %v3592_v17  ;;  %v3713_v17 = vld [vmem:[#allocation16 + $0xce8] sm:$0xff] }
0x11de   : > { %7758 = vmatpush1.bf16.msra.mxu1 %v7757_v63  ;;  %v3522_v63 = vld [vmem:[#allocation16 + $0x6f0] sm:$0xff]  ;;  %v3725_v18 = vld [vmem:[#allocation16 + $0xd48] sm:$0xff] }
0x11df   : > { %7854 = vmatpush1.bf16.msra.mxu0 %v7853_v34  ;;  %7760 = vmatprep.subr.bf16.mxu1 %v7759_v41  ;;  %v7871_v34 = vpack.c.bf16 %v3535_v38, %v3523_v25  ;;  %v3534_v41 = vld [vmem:[#allocation16 + $0x750] sm:$0xff]  ;;  %v3616_v25 = vld [vmem:[#allocation16 + $0x9e0] sm:$0xff]  ;;  %v7807_v24 = vpack.c.bf16 %v3725_v18, %v3713_v17 }
0x11e0   : > { %7856 = vmatprep.subr.bf16.mxu0 %v7855_v27  ;;  %v3559_v27 = vld [vmem:[#allocation16 + $0x818] sm:$0xff]  ;;  %v7873_v50 = vpack.c.bf16 %v3534_v41, %v3522_v63  ;;  %v3628_v38 = vld [vmem:[#allocation16 + $0xa40] sm:$0xff] }
0x11e1   : > { %v3643_v63 = vld [vmem:[#allocation16 + $0xab8] sm:$0xff]  ;;  %v7793_v41 = vpack.c.bf16 %v3628_v38, %v3616_v25  ;;  %v3737_v25 = vld [vmem:[#allocation16 + $0xda8] sm:$0xff] }
0x11e2   : > { %7762 = vmatpush1.bf16.msra.mxu1 %v7761_v53  ;;  %v3546_v53 = vld [vmem:[#allocation16 + $0x7b0] sm:$0xff]  ;;  %v3749_v38 = vld [vmem:[#allocation16 + $0xe08] sm:$0xff] }
0x11e3   : > { %7858 = vmatpush1.bf16.msra.mxu0 %v7857_v54  ;;  %7764 = vmatprep.subr.bf16.mxu1 %v7763_v55  ;;  %v7875_v54 = vpack.c.bf16 %v3559_v27, %v3547_v22  ;;  %v3558_v55 = vld [vmem:[#allocation16 + $0x810] sm:$0xff]  ;;  %v3640_v22 = vld [vmem:[#allocation16 + $0xaa0] sm:$0xff]  ;;  %v7811_v15 = vpack.c.bf16 %v3749_v38, %v3737_v25 }
0x11e4   : > { %7860 = vmatprep.subr.bf16.mxu0 %v7859_v31  ;;  %v3583_v31 = vld [vmem:[#allocation16 + $0x8d8] sm:$0xff]  ;;  %v7877_v59 = vpack.c.bf16 %v3558_v55, %v3546_v53  ;;  %v3652_v27 = vld [vmem:[#allocation16 + $0xb00] sm:$0xff] }
0x11e5   : > { %v3667_v53 = vld [vmem:[#allocation16 + $0xb78] sm:$0xff]  ;;  %v7797_v55 = vpack.c.bf16 %v3652_v27, %v3640_v22  ;;  %v3761_v22 = vld [vmem:[#allocation16 + $0xe68] sm:$0xff] }
0x11e6   : > { %7766 = vmatpush1.bf16.msra.mxu1 %v7765_v7  ;;  %v3570_v7 = vld [vmem:[#allocation16 + $0x870] sm:$0xff]  ;;  %v3773_v27 = vld [vmem:[#allocation16 + $0xec8] sm:$0xff] }
0x11e7   : > { %7862 = vmatpush1.bf16.msra.mxu0 %v7861_v8  ;;  %7768 = vmatprep.subr.bf16.mxu1 %v7767_v9  ;;  %v7879_v8 = vpack.c.bf16 %v3583_v31, %v3571_v20  ;;  %v3582_v9 = vld [vmem:[#allocation16 + $0x8d0] sm:$0xff]  ;;  %v3664_v20 = vld [vmem:[#allocation16 + $0xb60] sm:$0xff]  ;;  %v7815_v52 = vpack.c.bf16 %v3773_v27, %v3761_v22 }
0x11e8   : > { %7864 = vmatprep.subr.bf16.mxu0 %v7863_v11  ;;  %v3607_v11 = vld [vmem:[#allocation16 + $0x998] sm:$0xff]  ;;  %v7881_v14 = vpack.c.bf16 %v3582_v9, %v3570_v7  ;;  %v3676_v31 = vld [vmem:[#allocation16 + $0xbc0] sm:$0xff] }
0x11e9   : > { %v3691_v7 = vld [vmem:[#allocation16 + $0xc38] sm:$0xff]  ;;  %v7801_v9 = vpack.c.bf16 %v3676_v31, %v3664_v20  ;;  %v3785_v20 = vld [vmem:[#allocation16 + $0xf28] sm:$0xff] }
0x11ea   : > { %7770 = vmatpush1.bf16.msra.mxu1 %v7769_v21  ;;  %v3594_v21 = vld [vmem:[#allocation16 + $0x930] sm:$0xff]  ;;  %v3797_v31 = vld [vmem:[#allocation16 + $0xf88] sm:$0xff] }
0x11eb   : > { %7866 = vmatpush1.bf16.msra.mxu0 %v7865_v32  ;;  %7772 = vmatprep.subr.bf16.mxu1 %v7771_v19  ;;  %v7883_v32 = vpack.c.bf16 %v3607_v11, %v3595_v10  ;;  %v3606_v19 = vld [vmem:[#allocation16 + $0x990] sm:$0xff]  ;;  %v3688_v10 = vld [vmem:[#allocation16 + $0xc20] sm:$0xff]  ;;  %v7819_v6 = vpack.c.bf16 %v3797_v31, %v3785_v20 }
0x11ec   : > { %7868 = vmatprep.subr.bf16.mxu0 %v7867_v28  ;;  %v3631_v28 = vld [vmem:[#allocation16 + $0xa58] sm:$0xff]  ;;  %v7885_v35 = vpack.c.bf16 %v3606_v19, %v3594_v21  ;;  %v3700_v11 = vld [vmem:[#allocation16 + $0xc80] sm:$0xff] }
0x11ed   : > { %v3715_v21 = vld [vmem:[#allocation16 + $0xcf8] sm:$0xff]  ;;  %v7805_v19 = vpack.c.bf16 %v3700_v11, %v3688_v10  ;;  %v3809_v10 = vld [vmem:[#allocation16 + $0xfe8] sm:$0xff] }
0x11ee   : > { %7774 = vmatpush1.bf16.msra.mxu1 %v7773_v29  ;;  %v3618_v29 = vld [vmem:[#allocation16 + $0x9f0] sm:$0xff]  ;;  %v3821_v11 = vld [vmem:[#allocation16 + $0x1048] sm:$0xff] }
0x11ef   : > { %7870 = vmatpush1.bf16.msra.mxu0 %v7869_v39  ;;  %7776 = vmatprep.subr.bf16.mxu1 %v7775_v1  ;;  %v7887_v39 = vpack.c.bf16 %v3631_v28, %v3619_v62  ;;  %v3630_v1 = vld [vmem:[#allocation16 + $0xa50] sm:$0xff]  ;;  %v3712_v62 = vld [vmem:[#allocation16 + $0xce0] sm:$0xff]  ;;  %v7823_v18 = vpack.c.bf16 %v3821_v11, %v3809_v10 }
0x11f0   : > { %7872 = vmatprep.subr.bf16.mxu0 %v7871_v34  ;;  %v3655_v34 = vld [vmem:[#allocation16 + $0xb18] sm:$0xff]  ;;  %v7889_v2 = vpack.c.bf16 %v3630_v1, %v3618_v29  ;;  %v3724_v28 = vld [vmem:[#allocation16 + $0xd40] sm:$0xff] }
0x11f1   : > { %v3739_v29 = vld [vmem:[#allocation16 + $0xdb8] sm:$0xff]  ;;  %v7809_v1 = vpack.c.bf16 %v3724_v28, %v3712_v62  ;;  %v3833_v62 = vld [vmem:[#allocation16 + $0x10a8] sm:$0xff]  ;;  %v3332_v11 = vld [vmem:[#allocation16 + $0x100] sm:$0xff] }
0x11f2   : > { %7778 = vmatpush1.bf16.msra.mxu1 %v7777_v13  ;;  %v3642_v13 = vld [vmem:[#allocation16 + $0xab0] sm:$0xff]  ;;  %v3845_v28 = vld [vmem:[#allocation16 + $0x1108] sm:$0xff] }
0x11f3   : > { %7874 = vmatpush1.bf16.msra.mxu0 %v7873_v50  ;;  %7780 = vmatprep.subr.bf16.mxu1 %v7779_v51  ;;  %v7891_v50 = vpack.c.bf16 %v3655_v34, %v3643_v63  ;;  %v3654_v51 = vld [vmem:[#allocation16 + $0xb10] sm:$0xff]  ;;  %v3736_v63 = vld [vmem:[#allocation16 + $0xda0] sm:$0xff]  ;;  %v7827_v38 = vpack.c.bf16 %v3845_v28, %v3833_v62 }
0x11f4   : > { %7876 = vmatprep.subr.bf16.mxu0 %v7875_v54  ;;  %v3679_v54 = vld [vmem:[#allocation16 + $0xbd8] sm:$0xff]  ;;  %v7893_v56 = vpack.c.bf16 %v3654_v51, %v3642_v13  ;;  %v3748_v34 = vld [vmem:[#allocation16 + $0xe00] sm:$0xff] }
0x11f5   : > { %v3763_v13 = vld [vmem:[#allocation16 + $0xe78] sm:$0xff]  ;;  %v7813_v51 = vpack.c.bf16 %v3748_v34, %v3736_v63  ;;  %v3857_v63 = vld [vmem:[#allocation16 + $0x1168] sm:$0xff] }
0x11f6   : > { %7782 = vmatpush1.bf16.msra.mxu1 %v7781_v58  ;;  %v3666_v58 = vld [vmem:[#allocation16 + $0xb70] sm:$0xff]  ;;  %v3869_v34 = vld [vmem:[#allocation16 + $0x11c8] sm:$0xff] }
0x11f7   : > { %7878 = vmatpush1.bf16.msra.mxu0 %v7877_v59  ;;  %7784 = vmatprep.subr.bf16.mxu1 %v7783_v3  ;;  %v7895_v59 = vpack.c.bf16 %v3679_v54, %v3667_v53  ;;  %v3678_v3 = vld [vmem:[#allocation16 + $0xbd0] sm:$0xff]  ;;  %v3760_v53 = vld [vmem:[#allocation16 + $0xe60] sm:$0xff]  ;;  %v7831_v27 = vpack.c.bf16 %v3869_v34, %v3857_v63 }
0x11f8   : > { %7880 = vmatprep.subr.bf16.mxu0 %v7879_v8  ;;  %v3703_v8 = vld [vmem:[#allocation16 + $0xc98] sm:$0xff]  ;;  %v7897_v16 = vpack.c.bf16 %v3678_v3, %v3666_v58  ;;  %v3772_v54 = vld [vmem:[#allocation16 + $0xec0] sm:$0xff] }
0x11f9   : > { %v3787_v58 = vld [vmem:[#allocation16 + $0xf38] sm:$0xff]  ;;  %v7817_v3 = vpack.c.bf16 %v3772_v54, %v3760_v53  ;;  %v3309_v53 = vld [vmem:[#allocation16 + $0x48] sm:$0xff] }
0x11fa   : > { %7786 = vmatpush1.bf16.msra.mxu1 %v7785_v12  ;;  %v3690_v12 = vld [vmem:[#allocation16 + $0xc30] sm:$0xff]  ;;  %v3321_v54 = vld [vmem:[#allocation16 + $0xa8] sm:$0xff] }
0x11fb   : > { %7882 = vmatpush1.bf16.msra.mxu0 %v7881_v14  ;;  %7788 = vmatprep.subr.bf16.mxu1 %v7787_v30  ;;  %v7899_v14 = vpack.c.bf16 %v3703_v8, %v3691_v7  ;;  %v3702_v30 = vld [vmem:[#allocation16 + $0xc90] sm:$0xff]  ;;  %v3784_v7 = vld [vmem:[#allocation16 + $0xf20] sm:$0xff]  ;;  %v7931_v31 = vpack.c.bf16 %v3321_v54, %v3309_v53 }
0x11fc   : > { %7884 = vmatprep.subr.bf16.mxu0 %v7883_v32  ;;  %v3727_v32 = vld [vmem:[#allocation16 + $0xd58] sm:$0xff]  ;;  %v7901_v23 = vpack.c.bf16 %v3702_v30, %v3690_v12  ;;  %v3796_v8 = vld [vmem:[#allocation16 + $0xf80] sm:$0xff] }
0x11fd   : > { %v3811_v12 = vld [vmem:[#allocation16 + $0xff8] sm:$0xff]  ;;  %v7821_v30 = vpack.c.bf16 %v3796_v8, %v3784_v7  ;;  %v3333_v7 = vld [vmem:[#allocation16 + $0x108] sm:$0xff]  ;;  %v3404_v54 = vld [vmem:[#allocation16 + $0x340] sm:$0xff] }
0x11fe   : > { %7790 = vmatpush1.bf16.msra.mxu1 %v7789_v33  ;;  %v3714_v33 = vld [vmem:[#allocation16 + $0xcf0] sm:$0xff]  ;;  %v3345_v8 = vld [vmem:[#allocation16 + $0x168] sm:$0xff] }
0x11ff   : > { %7886 = vmatpush1.bf16.msra.mxu0 %v7885_v35  ;;  %7792 = vmatprep.subr.bf16.mxu1 %v7791_v37  ;;  %v7903_v35 = vpack.c.bf16 %v3727_v32, %v3715_v21  ;;  %v3726_v37 = vld [vmem:[#allocation16 + $0xd50] sm:$0xff]  ;;  %v3808_v21 = vld [vmem:[#allocation16 + $0xfe0] sm:$0xff] }
0x1200   : > { %7888 = vmatprep.subr.bf16.mxu0 %v7887_v39  ;;  %v3751_v39 = vld [vmem:[#allocation16 + $0xe18] sm:$0xff]  ;;  %v7905_v40 = vpack.c.bf16 %v3726_v37, %v3714_v33  ;;  %v3820_v32 = vld [vmem:[#allocation16 + $0x1040] sm:$0xff] }
0x1201   : > { %v3835_v33 = vld [vmem:[#allocation16 + $0x10b8] sm:$0xff]  ;;  %v7825_v37 = vpack.c.bf16 %v3820_v32, %v3808_v21  ;;  %v3369_v21 = vld [vmem:[#allocation16 + $0x228] sm:$0xff] }
0x1202   : > { %7794 = vmatpush1.bf16.msra.mxu1 %v7793_v41  ;;  %v3738_v41 = vld [vmem:[#allocation16 + $0xdb0] sm:$0xff] }
0x1203   : > { %7890 = vmatpush1.bf16.msra.mxu0 %v7889_v2  ;;  %7796 = vmatprep.subr.bf16.mxu1 %v7795_v42  ;;  %v7907_v2 = vpack.c.bf16 %v3751_v39, %v3739_v29  ;;  %v3750_v42 = vld [vmem:[#allocation16 + $0xe10] sm:$0xff]  ;;  %v3832_v29 = vld [vmem:[#allocation16 + $0x10a0] sm:$0xff] }
0x1204   : > { %7892 = vmatprep.subr.bf16.mxu0 %v7891_v50  ;;  %v3775_v50 = vld [vmem:[#allocation16 + $0xed8] sm:$0xff]  ;;  %v7909_v60 = vpack.c.bf16 %v3750_v42, %v3738_v41  ;;  %v3844_v39 = vld [vmem:[#allocation16 + $0x1100] sm:$0xff] }
0x1205   : > { %v3859_v41 = vld [vmem:[#allocation16 + $0x1178] sm:$0xff]  ;;  %v7829_v42 = vpack.c.bf16 %v3844_v39, %v3832_v29  ;;  %v3381_v29 = vld [vmem:[#allocation16 + $0x288] sm:$0xff] }
0x1206   : > { %7798 = vmatpush1.bf16.msra.mxu1 %v7797_v55  ;;  %v3762_v55 = vld [vmem:[#allocation16 + $0xe70] sm:$0xff]  ;;  %v3393_v39 = vld [vmem:[#allocation16 + $0x2e8] sm:$0xff] }
0x1207   : > { %7894 = vmatpush1.bf16.msra.mxu0 %v7893_v56  ;;  %7800 = vmatprep.subr.bf16.mxu1 %v7799_v57  ;;  %v7911_v56 = vpack.c.bf16 %v3775_v50, %v3763_v13  ;;  %v3774_v57 = vld [vmem:[#allocation16 + $0xed0] sm:$0xff]  ;;  %v3856_v13 = vld [vmem:[#allocation16 + $0x1160] sm:$0xff]  ;;  %v7943_v34 = vpack.c.bf16 %v3393_v39, %v3381_v29 }
0x1208   : > { %7896 = vmatprep.subr.bf16.mxu0 %v7895_v59  ;;  %v3799_v59 = vld [vmem:[#allocation16 + $0xf98] sm:$0xff]  ;;  %v7913_v4 = vpack.c.bf16 %v3774_v57, %v3762_v55  ;;  %v3868_v50 = vld [vmem:[#allocation16 + $0x11c0] sm:$0xff] }
0x1209   : > { %v3311_v55 = vld [vmem:[#allocation16 + $0x58] sm:$0xff]  ;;  %v7833_v57 = vpack.c.bf16 %v3868_v50, %v3856_v13  ;;  %v3417_v13 = vld [vmem:[#allocation16 + $0x3a8] sm:$0xff]  ;;  %v3476_v39 = vld [vmem:[#allocation16 + $0x580] sm:$0xff] }
0x120a   : > { %7802 = vmatpush1.bf16.msra.mxu1 %v7801_v9  ;;  %v3786_v9 = vld [vmem:[#allocation16 + $0xf30] sm:$0xff]  ;;  %v3407_v50 = vld [vmem:[#allocation16 + $0x358] sm:$0xff] }
0x120b   : > { %7898 = vmatpush1.bf16.msra.mxu0 %v7897_v16  ;;  %7804 = vmatprep.subr.bf16.mxu1 %v7803_v26  ;;  %v7915_v16 = vpack.c.bf16 %v3799_v59, %v3787_v58  ;;  %v3798_v26 = vld [vmem:[#allocation16 + $0xf90] sm:$0xff]  ;;  %v3308_v58 = vld [vmem:[#allocation16 + $0x40] sm:$0xff] }
0x120c   : > { %7900 = vmatprep.subr.bf16.mxu0 %v7899_v14  ;;  %v3823_v14 = vld [vmem:[#allocation16 + $0x1058] sm:$0xff]  ;;  %v7917_v17 = vpack.c.bf16 %v3798_v26, %v3786_v9  ;;  %v3320_v59 = vld [vmem:[#allocation16 + $0xa0] sm:$0xff] }
0x120d   : > { %4289 = vmatmul.mubr.f32.vlgmr.msra.gmra.mrb[16].mxu1 %v10136_v49  ;;  %v7933_v9 = vpack.c.bf16 %v3320_v59, %v3308_v58  ;;  %v3347_v26 = vld [vmem:[#allocation16 + $0x178] sm:$0xff]  ;;  %v3441_v58 = vld [vmem:[#allocation16 + $0x468] sm:$0xff] }
0x120e   : > { %4431 = vmatmul.mubr.f32.vlgmr.msra.gmra.mrb[32].mxu0 %v10136_v49  ;;  %7806 = vmatpush1.bf16.msra.mxu1 %v7805_v19  ;;  %v3810_v19 = vld [vmem:[#allocation16 + $0xff0] sm:$0xff]  ;;  %v3431_v59 = vld [vmem:[#allocation16 + $0x418] sm:$0xff] }
0x120f   : > { %7902 = vmatpush1.bf16.msra.mxu0 %v7901_v23  ;;  %7808 = vmatprep.subr.bf16.mxu1 %v7807_v24  ;;  %v7919_v23 = vpack.c.bf16 %v3823_v14, %v3811_v12  ;;  %v3822_v24 = vld [vmem:[#allocation16 + $0x1050] sm:$0xff]  ;;  %v3344_v12 = vld [vmem:[#allocation16 + $0x160] sm:$0xff] }
0x1210   : > { %7904 = vmatprep.subr.bf16.mxu0 %v7903_v35  ;;  %4359 = vmatprep.mubr.f32.mxu1 %v9403_v5  ;;  %v3847_v35 = vld [vmem:[#allocation16 + $0x1118] sm:$0xff]  ;;  %v7921_v25 = vpack.c.bf16 %v3822_v24, %v3810_v19  ;;  %v3334_v14 = vld [vmem:[#allocation16 + $0x110] sm:$0xff]  ;;  %v7937_v24 = vpack.c.bf16 %v3344_v12, %v3332_v11  ;;  %v3453_v11 = vld [vmem:[#allocation16 + $0x4c8] sm:$0xff] }
0x1211   : > { %4501 = vmatprep.mubr.f32.mxu0 %v9403_v5  ;;  %v3359_v19 = vld [vmem:[#allocation16 + $0x1d8] sm:$0xff]  ;;  %v3465_v12 = vld [vmem:[#allocation16 + $0x528] sm:$0xff] }
0x1212   : > { %7810 = vmatpush1.bf16.msra.mxu1 %v7809_v1  ;;  %v3834_v1 = vld [vmem:[#allocation16 + $0x10b0] sm:$0xff] }
0x1213   : > { %7906 = vmatpush1.bf16.msra.mxu0 %v7905_v40  ;;  %7812 = vmatprep.subr.bf16.mxu1 %v7811_v15  ;;  %v7923_v40 = vpack.c.bf16 %v3847_v35, %v3835_v33  ;;  %v3846_v15 = vld [vmem:[#allocation16 + $0x1110] sm:$0xff]  ;;  %v3356_v33 = vld [vmem:[#allocation16 + $0x1c0] sm:$0xff] }
0x1214   : > { %7908 = vmatprep.subr.bf16.mxu0 %v7907_v2  ;;  %v3871_v2 = vld [vmem:[#allocation16 + $0x11d8] sm:$0xff]  ;;  %v7925_v22 = vpack.c.bf16 %v3846_v15, %v3834_v1  ;;  %v3368_v35 = vld [vmem:[#allocation16 + $0x220] sm:$0xff] }
0x1215   : > { %v3383_v1 = vld [vmem:[#allocation16 + $0x298] sm:$0xff]  ;;  %v7941_v15 = vpack.c.bf16 %v3368_v35, %v3356_v33  ;;  %v3489_v33 = vld [vmem:[#allocation16 + $0x5e8] sm:$0xff] }
0x1216   : > { %7814 = vmatpush1.bf16.msra.mxu1 %v7813_v51  ;;  %v3858_v51 = vld [vmem:[#allocation16 + $0x1170] sm:$0xff]  ;;  %v3479_v35 = vld [vmem:[#allocation16 + $0x598] sm:$0xff] }
0x1217   : > { %7910 = vmatpush1.bf16.msra.mxu0 %v7909_v60  ;;  %7816 = vmatprep.subr.bf16.mxu1 %v7815_v52  ;;  %v7927_v60 = vpack.c.bf16 %v3871_v2, %v3859_v41  ;;  %v3870_v52 = vld [vmem:[#allocation16 + $0x11d0] sm:$0xff]  ;;  %v3380_v41 = vld [vmem:[#allocation16 + $0x280] sm:$0xff] }
0x1218   : > { %7912 = vmatprep.subr.bf16.mxu0 %v7911_v56  ;;  %v3323_v56 = vld [vmem:[#allocation16 + $0xb8] sm:$0xff]  ;;  %v7929_v20 = vpack.c.bf16 %v3870_v52, %v3858_v51  ;;  %v3392_v2 = vld [vmem:[#allocation16 + $0x2e0] sm:$0xff] }
0x1219   : > { %v3419_v51 = vld [vmem:[#allocation16 + $0x3b8] sm:$0xff] }
0x121a   : > { %7818 = vmatpush1.bf16.msra.mxu1 %v7817_v3  ;;  %v8027_v3 = vpack.c.bf16 %v3323_v56, %v3311_v55  ;;  %v3416_v55 = vld [vmem:[#allocation16 + $0x3a0] sm:$0xff]  ;;  %v3406_v56 = vld [vmem:[#allocation16 + $0x350] sm:$0xff] }
0x121b   : > { %7914 = vmatpush1.bf16.msra.mxu0 %v7913_v4  ;;  %7820 = vmatprep.subr.bf16.mxu1 %v7819_v6  ;;  %v3310_v4 = vld [vmem:[#allocation16 + $0x50] sm:$0xff] }
0x121c   : > { %7916 = vmatprep.subr.bf16.mxu0 %v7915_v16  ;;  %v3322_v6 = vld [vmem:[#allocation16 + $0xb0] sm:$0xff]  ;;  %v3335_v16 = vld [vmem:[#allocation16 + $0x118] sm:$0xff] }
0x121d   : > { %v8029_v10 = vpack.c.bf16 %v3322_v6, %v3310_v4  ;;  %v8031_v32 = vpack.c.bf16 %v3347_v26, %v3335_v16  ;;  %v7949_v4 = vpack.c.bf16 %v3416_v55, %v3404_v54  ;;  %v3430_v16 = vld [vmem:[#allocation16 + $0x410] sm:$0xff]  ;;  %v3537_v54 = vld [vmem:[#allocation16 + $0x768] sm:$0xff]  ;;  %v3527_v55 = vld [vmem:[#allocation16 + $0x718] sm:$0xff] }
0x121e   : > { %7822 = vmatpush1.bf16.msra.mxu1 %v7821_v30  ;;  %v7935_v30 = vpack.c.bf16 %v3345_v8, %v3333_v7  ;;  %v3428_v8 = vld [vmem:[#allocation16 + $0x400] sm:$0xff] }
0x121f   : > { %7918 = vmatpush1.bf16.msra.mxu0 %v7917_v17  ;;  %7824 = vmatprep.subr.bf16.mxu1 %v7823_v18  ;;  %v3346_v17 = vld [vmem:[#allocation16 + $0x170] sm:$0xff]  ;;  %v3357_v18 = vld [vmem:[#allocation16 + $0x1c8] sm:$0xff] }
0x1220   : > { %7920 = vmatprep.subr.bf16.mxu0 %v7919_v23  ;;  %v3371_v23 = vld [vmem:[#allocation16 + $0x238] sm:$0xff]  ;;  %v8033_v62 = vpack.c.bf16 %v3346_v17, %v3334_v14  ;;  %v7939_v28 = vpack.c.bf16 %v3369_v21, %v3357_v18  ;;  %v7955_v21 = vpack.c.bf16 %v3465_v12, %v3453_v11  ;;  %v3548_v12 = vld [vmem:[#allocation16 + $0x7c0] sm:$0xff] }
0x1221   : > { %v3455_v14 = vld [vmem:[#allocation16 + $0x4d8] sm:$0xff] }
0x1222   : > { %7826 = vmatpush1.bf16.msra.mxu1 %v7825_v37  ;;  %v3358_v37 = vld [vmem:[#allocation16 + $0x1d0] sm:$0xff] }
0x1223   : > { %7922 = vmatpush1.bf16.msra.mxu0 %v7921_v25  ;;  %7828 = vmatprep.subr.bf16.mxu1 %v7827_v38  ;;  %v8035_v25 = vpack.c.bf16 %v3371_v23, %v3359_v19  ;;  %v3370_v38 = vld [vmem:[#allocation16 + $0x230] sm:$0xff]  ;;  %v3464_v19 = vld [vmem:[#allocation16 + $0x520] sm:$0xff] }
0x1224   : > { %7924 = vmatprep.subr.bf16.mxu0 %v7923_v40  ;;  %v3395_v40 = vld [vmem:[#allocation16 + $0x2f8] sm:$0xff]  ;;  %v8037_v63 = vpack.c.bf16 %v3370_v38, %v3358_v37  ;;  %v3454_v23 = vld [vmem:[#allocation16 + $0x4d0] sm:$0xff] }
0x1225   : > { %v3491_v37 = vld [vmem:[#allocation16 + $0x5f8] sm:$0xff] }
0x1226   : > { %7830 = vmatpush1.bf16.msra.mxu1 %v7829_v42  ;;  %v3382_v42 = vld [vmem:[#allocation16 + $0x290] sm:$0xff] }
0x1227   : > { %7926 = vmatpush1.bf16.msra.mxu0 %v7925_v22  ;;  %7832 = vmatprep.subr.bf16.mxu1 %v7831_v27  ;;  %v8039_v22 = vpack.c.bf16 %v3395_v40, %v3383_v1  ;;  %v3405_v27 = vld [vmem:[#allocation16 + $0x348] sm:$0xff]  ;;  %v3488_v1 = vld [vmem:[#allocation16 + $0x5e0] sm:$0xff]  ;;  %v3478_v40 = vld [vmem:[#allocation16 + $0x590] sm:$0xff] }
0x1228   : > { %7928 = vmatprep.subr.bf16.mxu0 %v7927_v60  ;;  %v7945_v60 = vpack.c.bf16 %v3392_v2, %v3380_v41  ;;  %v7947_v53 = vpack.c.bf16 %v3417_v13, %v3405_v27  ;;  %v3513_v41 = vld [vmem:[#allocation16 + $0x6a8] sm:$0xff]  ;;  %v3503_v2 = vld [vmem:[#allocation16 + $0x658] sm:$0xff]  ;;  %v3500_v13 = vld [vmem:[#allocation16 + $0x640] sm:$0xff] }
0x122a   : > { %7834 = vmatpush1.bf16.msra.mxu1 %v7833_v57  ;;  %v8043_v57 = vpack.c.bf16 %v3419_v51, %v3407_v50  ;;  %v3512_v50 = vld [vmem:[#allocation16 + $0x6a0] sm:$0xff]  ;;  %v3502_v51 = vld [vmem:[#allocation16 + $0x650] sm:$0xff] }
0x122b   : > { %7930 = vmatpush1.bf16.msra.mxu0 %v7929_v20  ;;  %7932 = vmatprep.subr.bf16.mxu1 %v7931_v31  ;;  %v3418_v20 = vld [vmem:[#allocation16 + $0x3b0] sm:$0xff]  ;;  %v3429_v31 = vld [vmem:[#allocation16 + $0x408] sm:$0xff] }
0x122c   : > { %8028 = vmatprep.subr.bf16.mxu0 %v8027_v3  ;;  %v3443_v3 = vld [vmem:[#allocation16 + $0x478] sm:$0xff]  ;;  %v8045_v6 = vpack.c.bf16 %v3418_v20, %v3406_v56  ;;  %v7951_v7 = vpack.c.bf16 %v3441_v58, %v3429_v31  ;;  %v3524_v58 = vld [vmem:[#allocation16 + $0x700] sm:$0xff] }
0x122d   : > { %4360 = vmatmul.mubr.f32.vlgmr.msra.gmra.mrb[16].mxu1 %v10150_v44  ;;  %v8047_v26 = vpack.c.bf16 %v3443_v3, %v3431_v59  ;;  %v3539_v56 = vld [vmem:[#allocation16 + $0x778] sm:$0xff]  ;;  %v3536_v59 = vld [vmem:[#allocation16 + $0x760] sm:$0xff]  ;;  %v3526_v3 = vld [vmem:[#allocation16 + $0x710] sm:$0xff] }
0x122e   : > { %4502 = vmatmul.mubr.f32.vlgmr.msra.gmra.mrb[32].mxu0 %v10150_v44  ;;  %7934 = vmatpush1.bf16.msra.mxu1 %v7933_v9  ;;  %v3440_v9 = vld [vmem:[#allocation16 + $0x460] sm:$0xff] }
0x122f   : > { %4572 = vmatprep.mubr.f32.mxu1 %v10134_v61  ;;  %8030 = vmatpush1.bf16.msra.mxu0 %v8029_v10  ;;  %v3442_v10 = vld [vmem:[#allocation16 + $0x470] sm:$0xff]  ;;  %v7953_v17 = vpack.c.bf16 %v3440_v9, %v3428_v8  ;;  %v3561_v8 = vld [vmem:[#allocation16 + $0x828] sm:$0xff]  ;;  %v3551_v9 = vld [vmem:[#allocation16 + $0x7d8] sm:$0xff] }
0x1230   : > { %4714 = vmatprep.mubr.f32.mxu0 %v10134_v61  ;;  %7936 = vmatprep.subr.bf16.mxu1 %v7935_v30  ;;  %v3394_v61 = vld [vmem:[#allocation16 + $0x2f0] sm:$0xff]  ;;  %v3467_v30 = vld [vmem:[#allocation16 + $0x538] sm:$0xff]  ;;  %v8049_v18 = vpack.c.bf16 %v3442_v10, %v3430_v16 }
0x1231   : > { %8032 = vmatprep.subr.bf16.mxu0 %v8031_v32  ;;  %v8041_v52 = vpack.c.bf16 %v3394_v61, %v3382_v42  ;;  %v3452_v32 = vld [vmem:[#allocation16 + $0x4c0] sm:$0xff]  ;;  %v3515_v42 = vld [vmem:[#allocation16 + $0x6b8] sm:$0xff] }
0x1232   : > { %7938 = vmatpush1.bf16.msra.mxu1 %v7937_v24  ;;  %v8051_v24 = vpack.c.bf16 %v3467_v30, %v3455_v14  ;;  %v3563_v16 = vld [vmem:[#allocation16 + $0x838] sm:$0xff]  ;;  %v3560_v14 = vld [vmem:[#allocation16 + $0x820] sm:$0xff]  ;;  %v3550_v30 = vld [vmem:[#allocation16 + $0x7d0] sm:$0xff] }
0x1233   : > { %8034 = vmatpush1.bf16.msra.mxu0 %v8033_v62  ;;  %7940 = vmatprep.subr.bf16.mxu1 %v7939_v28  ;;  %v3466_v62 = vld [vmem:[#allocation16 + $0x530] sm:$0xff]  ;;  %v3477_v28 = vld [vmem:[#allocation16 + $0x588] sm:$0xff] }
0x1234   : > { %8036 = vmatprep.subr.bf16.mxu0 %v8035_v25  ;;  %v7957_v25 = vpack.c.bf16 %v3464_v19, %v3452_v32  ;;  %v8053_v38 = vpack.c.bf16 %v3466_v62, %v3454_v23  ;;  %v7959_v29 = vpack.c.bf16 %v3489_v33, %v3477_v28  ;;  %v3585_v32 = vld [vmem:[#allocation16 + $0x8e8] sm:$0xff]  ;;  %v3575_v19 = vld [vmem:[#allocation16 + $0x898] sm:$0xff]  ;;  %v3572_v33 = vld [vmem:[#allocation16 + $0x880] sm:$0xff] }
0x1235   : > { %v3587_v23 = vld [vmem:[#allocation16 + $0x8f8] sm:$0xff] }
0x1236   : > { %7942 = vmatpush1.bf16.msra.mxu1 %v7941_v15  ;;  %v8055_v15 = vpack.c.bf16 %v3491_v37, %v3479_v35  ;;  %v3584_v35 = vld [vmem:[#allocation16 + $0x8e0] sm:$0xff]  ;;  %v3574_v37 = vld [vmem:[#allocation16 + $0x890] sm:$0xff] }
0x1237   : > { %8038 = vmatpush1.bf16.msra.mxu0 %v8037_v63  ;;  %7944 = vmatprep.subr.bf16.mxu1 %v7943_v34  ;;  %v3490_v63 = vld [vmem:[#allocation16 + $0x5f0] sm:$0xff]  ;;  %v3501_v34 = vld [vmem:[#allocation16 + $0x648] sm:$0xff] }
0x1238   : > { %8040 = vmatprep.subr.bf16.mxu0 %v8039_v22  ;;  %v7961_v22 = vpack.c.bf16 %v3488_v1, %v3476_v39  ;;  %v8057_v61 = vpack.c.bf16 %v3490_v63, %v3478_v40  ;;  %v7963_v27 = vpack.c.bf16 %v3513_v41, %v3501_v34  ;;  %v3609_v39 = vld [vmem:[#allocation16 + $0x9a8] sm:$0xff]  ;;  %v3599_v1 = vld [vmem:[#allocation16 + $0x958] sm:$0xff]  ;;  %v3596_v41 = vld [vmem:[#allocation16 + $0x940] sm:$0xff] }
0x1239   : > { %v3611_v40 = vld [vmem:[#allocation16 + $0x9b8] sm:$0xff] }
0x123a   : > { %7946 = vmatpush1.bf16.msra.mxu1 %v7945_v60  ;;  %v8059_v60 = vpack.c.bf16 %v3515_v42, %v3503_v2  ;;  %v3608_v2 = vld [vmem:[#allocation16 + $0x9a0] sm:$0xff]  ;;  %v3598_v42 = vld [vmem:[#allocation16 + $0x950] sm:$0xff] }
0x123b   : > { %8042 = vmatpush1.bf16.msra.mxu0 %v8041_v52  ;;  %7948 = vmatprep.subr.bf16.mxu1 %v7947_v53  ;;  %v3514_v52 = vld [vmem:[#allocation16 + $0x6b0] sm:$0xff]  ;;  %v3525_v53 = vld [vmem:[#allocation16 + $0x708] sm:$0xff] }
0x123c   : > { %8044 = vmatprep.subr.bf16.mxu0 %v8043_v57  ;;  %v7965_v57 = vpack.c.bf16 %v3512_v50, %v3500_v13  ;;  %v8061_v20 = vpack.c.bf16 %v3514_v52, %v3502_v51  ;;  %v7967_v31 = vpack.c.bf16 %v3537_v54, %v3525_v53  ;;  %v3633_v13 = vld [vmem:[#allocation16 + $0xa68] sm:$0xff]  ;;  %v3623_v50 = vld [vmem:[#allocation16 + $0xa18] sm:$0xff]  ;;  %v3620_v54 = vld [vmem:[#allocation16 + $0xa00] sm:$0xff] }
0x123d   : > { %v3635_v51 = vld [vmem:[#allocation16 + $0xa78] sm:$0xff] }
0x123e   : > { %7950 = vmatpush1.bf16.msra.mxu1 %v7949_v4  ;;  %v8063_v4 = vpack.c.bf16 %v3539_v56, %v3527_v55  ;;  %v3632_v55 = vld [vmem:[#allocation16 + $0xa60] sm:$0xff]  ;;  %v3622_v56 = vld [vmem:[#allocation16 + $0xa10] sm:$0xff] }
0x123f   : > { %8046 = vmatpush1.bf16.msra.mxu0 %v8045_v6  ;;  %7952 = vmatprep.subr.bf16.mxu1 %v7951_v7  ;;  %v3538_v6 = vld [vmem:[#allocation16 + $0x770] sm:$0xff]  ;;  %v3549_v7 = vld [vmem:[#allocation16 + $0x7c8] sm:$0xff] }
0x1240   : > { %8048 = vmatprep.subr.bf16.mxu0 %v8047_v26  ;;  %v7969_v26 = vpack.c.bf16 %v3536_v59, %v3524_v58  ;;  %v8065_v10 = vpack.c.bf16 %v3538_v6, %v3526_v3  ;;  %v7971_v11 = vpack.c.bf16 %v3561_v8, %v3549_v7  ;;  %v3657_v58 = vld [vmem:[#allocation16 + $0xb28] sm:$0xff]  ;;  %v3647_v59 = vld [vmem:[#allocation16 + $0xad8] sm:$0xff]  ;;  %v3644_v8 = vld [vmem:[#allocation16 + $0xac0] sm:$0xff] }
0x1241   : > { %v3659_v3 = vld [vmem:[#allocation16 + $0xb38] sm:$0xff] }
0x1242   : > { %7954 = vmatpush1.bf16.msra.mxu1 %v7953_v17  ;;  %v8067_v17 = vpack.c.bf16 %v3563_v16, %v3551_v9  ;;  %v3656_v9 = vld [vmem:[#allocation16 + $0xb20] sm:$0xff]  ;;  %v3646_v16 = vld [vmem:[#allocation16 + $0xad0] sm:$0xff] }
0x1243   : > { %8050 = vmatpush1.bf16.msra.mxu0 %v8049_v18  ;;  %7956 = vmatprep.subr.bf16.mxu1 %v7955_v21  ;;  %v3562_v18 = vld [vmem:[#allocation16 + $0x830] sm:$0xff]  ;;  %v3573_v21 = vld [vmem:[#allocation16 + $0x888] sm:$0xff] }
0x1244   : > { %8052 = vmatprep.subr.bf16.mxu0 %v8051_v24  ;;  %v7973_v24 = vpack.c.bf16 %v3560_v14, %v3548_v12  ;;  %v8069_v62 = vpack.c.bf16 %v3562_v18, %v3550_v30  ;;  %v7975_v28 = vpack.c.bf16 %v3585_v32, %v3573_v21  ;;  %v3681_v12 = vld [vmem:[#allocation16 + $0xbe8] sm:$0xff]  ;;  %v3671_v14 = vld [vmem:[#allocation16 + $0xb98] sm:$0xff]  ;;  %v3668_v32 = vld [vmem:[#allocation16 + $0xb80] sm:$0xff] }
0x1245   : > { %v3683_v30 = vld [vmem:[#allocation16 + $0xbf8] sm:$0xff] }
0x1246   : > { %7958 = vmatpush1.bf16.msra.mxu1 %v7957_v25  ;;  %v8071_v25 = vpack.c.bf16 %v3587_v23, %v3575_v19  ;;  %v3680_v19 = vld [vmem:[#allocation16 + $0xbe0] sm:$0xff]  ;;  %v3670_v23 = vld [vmem:[#allocation16 + $0xb90] sm:$0xff] }
0x1247   : > { %8054 = vmatpush1.bf16.msra.mxu0 %v8053_v38  ;;  %7960 = vmatprep.subr.bf16.mxu1 %v7959_v29  ;;  %v3586_v38 = vld [vmem:[#allocation16 + $0x8f0] sm:$0xff]  ;;  %v3597_v29 = vld [vmem:[#allocation16 + $0x948] sm:$0xff] }
0x1248   : > { %8056 = vmatprep.subr.bf16.mxu0 %v8055_v15  ;;  %v7977_v15 = vpack.c.bf16 %v3584_v35, %v3572_v33  ;;  %v8073_v63 = vpack.c.bf16 %v3586_v38, %v3574_v37  ;;  %v7979_v34 = vpack.c.bf16 %v3609_v39, %v3597_v29  ;;  %v3705_v33 = vld [vmem:[#allocation16 + $0xca8] sm:$0xff]  ;;  %v3695_v35 = vld [vmem:[#allocation16 + $0xc58] sm:$0xff]  ;;  %v3692_v39 = vld [vmem:[#allocation16 + $0xc40] sm:$0xff] }
0x1249   : > { %v3707_v37 = vld [vmem:[#allocation16 + $0xcb8] sm:$0xff] }
0x124a   : > { %7962 = vmatpush1.bf16.msra.mxu1 %v7961_v22  ;;  %v8075_v22 = vpack.c.bf16 %v3611_v40, %v3599_v1  ;;  %v3704_v1 = vld [vmem:[#allocation16 + $0xca0] sm:$0xff]  ;;  %v3694_v40 = vld [vmem:[#allocation16 + $0xc50] sm:$0xff] }
0x124b   : > { %8058 = vmatpush1.bf16.msra.mxu0 %v8057_v61  ;;  %7964 = vmatprep.subr.bf16.mxu1 %v7963_v27  ;;  %v3610_v61 = vld [vmem:[#allocation16 + $0x9b0] sm:$0xff]  ;;  %v3621_v27 = vld [vmem:[#allocation16 + $0xa08] sm:$0xff] }
0x124c   : > { %8060 = vmatprep.subr.bf16.mxu0 %v8059_v60  ;;  %v7981_v60 = vpack.c.bf16 %v3608_v2, %v3596_v41  ;;  %v8077_v52 = vpack.c.bf16 %v3610_v61, %v3598_v42  ;;  %v7983_v53 = vpack.c.bf16 %v3633_v13, %v3621_v27  ;;  %v3729_v41 = vld [vmem:[#allocation16 + $0xd68] sm:$0xff]  ;;  %v3719_v2 = vld [vmem:[#allocation16 + $0xd18] sm:$0xff]  ;;  %v3716_v13 = vld [vmem:[#allocation16 + $0xd00] sm:$0xff] }
0x124d   : > { %v3731_v42 = vld [vmem:[#allocation16 + $0xd78] sm:$0xff] }
0x124e   : > { %7966 = vmatpush1.bf16.msra.mxu1 %v7965_v57  ;;  %v8079_v57 = vpack.c.bf16 %v3635_v51, %v3623_v50  ;;  %v3728_v50 = vld [vmem:[#allocation16 + $0xd60] sm:$0xff]  ;;  %v3718_v51 = vld [vmem:[#allocation16 + $0xd10] sm:$0xff] }
0x124f   : > { %8062 = vmatpush1.bf16.msra.mxu0 %v8061_v20  ;;  %7968 = vmatprep.subr.bf16.mxu1 %v7967_v31  ;;  %v3634_v20 = vld [vmem:[#allocation16 + $0xa70] sm:$0xff]  ;;  %v3645_v31 = vld [vmem:[#allocation16 + $0xac8] sm:$0xff] }
0x1250   : > { %8064 = vmatprep.subr.bf16.mxu0 %v8063_v4  ;;  %v7985_v4 = vpack.c.bf16 %v3632_v55, %v3620_v54  ;;  %v8081_v6 = vpack.c.bf16 %v3634_v20, %v3622_v56  ;;  %v7987_v7 = vpack.c.bf16 %v3657_v58, %v3645_v31  ;;  %v3753_v54 = vld [vmem:[#allocation16 + $0xe28] sm:$0xff]  ;;  %v3743_v55 = vld [vmem:[#allocation16 + $0xdd8] sm:$0xff]  ;;  %v3740_v58 = vld [vmem:[#allocation16 + $0xdc0] sm:$0xff] }
0x1251   : > { %v3755_v56 = vld [vmem:[#allocation16 + $0xe38] sm:$0xff] }
0x1252   : > { %7970 = vmatpush1.bf16.msra.mxu1 %v7969_v26  ;;  %v8083_v26 = vpack.c.bf16 %v3659_v3, %v3647_v59  ;;  %v3752_v59 = vld [vmem:[#allocation16 + $0xe20] sm:$0xff]  ;;  %v3742_v3 = vld [vmem:[#allocation16 + $0xdd0] sm:$0xff] }
0x1253   : > { %8066 = vmatpush1.bf16.msra.mxu0 %v8065_v10  ;;  %7972 = vmatprep.subr.bf16.mxu1 %v7971_v11  ;;  %v3658_v10 = vld [vmem:[#allocation16 + $0xb30] sm:$0xff]  ;;  %v3669_v11 = vld [vmem:[#allocation16 + $0xb88] sm:$0xff] }
0x1254   : > { %8068 = vmatprep.subr.bf16.mxu0 %v8067_v17  ;;  %v7989_v17 = vpack.c.bf16 %v3656_v9, %v3644_v8  ;;  %v8085_v18 = vpack.c.bf16 %v3658_v10, %v3646_v16  ;;  %v7991_v21 = vpack.c.bf16 %v3681_v12, %v3669_v11  ;;  %v3777_v8 = vld [vmem:[#allocation16 + $0xee8] sm:$0xff]  ;;  %v3767_v9 = vld [vmem:[#allocation16 + $0xe98] sm:$0xff]  ;;  %v3764_v11 = vld [vmem:[#allocation16 + $0xe80] sm:$0xff] }
0x1255   : > { %v3779_v16 = vld [vmem:[#allocation16 + $0xef8] sm:$0xff]  ;;  %v3776_v12 = vld [vmem:[#allocation16 + $0xee0] sm:$0xff] }
0x1256   : > { %7974 = vmatpush1.bf16.msra.mxu1 %v7973_v24  ;;  %v8087_v24 = vpack.c.bf16 %v3683_v30, %v3671_v14  ;;  %v3766_v14 = vld [vmem:[#allocation16 + $0xe90] sm:$0xff]  ;;  %v8103_v30 = vpack.c.bf16 %v3779_v16, %v3767_v9 }
0x1257   : > { %8070 = vmatpush1.bf16.msra.mxu0 %v8069_v62  ;;  %7976 = vmatprep.subr.bf16.mxu1 %v7975_v28  ;;  %v3682_v62 = vld [vmem:[#allocation16 + $0xbf0] sm:$0xff]  ;;  %v3693_v28 = vld [vmem:[#allocation16 + $0xc48] sm:$0xff] }
0x1258   : > { %8072 = vmatprep.subr.bf16.mxu0 %v8071_v25  ;;  %v7993_v25 = vpack.c.bf16 %v3680_v19, %v3668_v32  ;;  %v8089_v38 = vpack.c.bf16 %v3682_v62, %v3670_v23  ;;  %v7995_v29 = vpack.c.bf16 %v3705_v33, %v3693_v28  ;;  %v3791_v32 = vld [vmem:[#allocation16 + $0xf58] sm:$0xff]  ;;  %v8009_v23 = vpack.c.bf16 %v3776_v12, %v3764_v11  ;;  %v3788_v62 = vld [vmem:[#allocation16 + $0xf40] sm:$0xff]  ;;  %v3790_v33 = vld [vmem:[#allocation16 + $0xf50] sm:$0xff] }
0x1259   : > { %v3803_v19 = vld [vmem:[#allocation16 + $0xfb8] sm:$0xff]  ;;  %v3800_v28 = vld [vmem:[#allocation16 + $0xfa0] sm:$0xff]  ;;  %v3874_v16 = vld [vmem:[#allocation16 + $0x11f0] sm:$0xff] }
0x125a   : > { %7978 = vmatpush1.bf16.msra.mxu1 %v7977_v15  ;;  %v8091_v15 = vpack.c.bf16 %v3707_v37, %v3695_v35  ;;  %v8107_v35 = vpack.c.bf16 %v3803_v19, %v3791_v32  ;;  %v3802_v37 = vld [vmem:[#allocation16 + $0xfb0] sm:$0xff] }
0x125b   : > { %8074 = vmatpush1.bf16.msra.mxu0 %v8073_v63  ;;  %7980 = vmatprep.subr.bf16.mxu1 %v7979_v34  ;;  %v3706_v63 = vld [vmem:[#allocation16 + $0xcb0] sm:$0xff]  ;;  %v3717_v34 = vld [vmem:[#allocation16 + $0xd08] sm:$0xff] }
0x125c   : > { %8076 = vmatprep.subr.bf16.mxu0 %v8075_v22  ;;  %v7997_v22 = vpack.c.bf16 %v3704_v1, %v3692_v39  ;;  %v8093_v61 = vpack.c.bf16 %v3706_v63, %v3694_v40  ;;  %v7999_v27 = vpack.c.bf16 %v3729_v41, %v3717_v34  ;;  %v3827_v39 = vld [vmem:[#allocation16 + $0x1078] sm:$0xff]  ;;  %v8013_v1 = vpack.c.bf16 %v3800_v28, %v3788_v62  ;;  %v3812_v63 = vld [vmem:[#allocation16 + $0x1000] sm:$0xff]  ;;  %v3814_v41 = vld [vmem:[#allocation16 + $0x1010] sm:$0xff] }
0x125d   : > { %v8109_v40 = vpack.c.bf16 %v3802_v37, %v3790_v33  ;;  %v3824_v34 = vld [vmem:[#allocation16 + $0x1060] sm:$0xff]  ;;  %v4857_v11 = vld [vmem:[#allocation19 + $0x1a8] sm:$0xff] }
0x125e   : > { %7982 = vmatpush1.bf16.msra.mxu1 %v7981_v60  ;;  %v8095_v60 = vpack.c.bf16 %v3731_v42, %v3719_v2  ;;  %v3826_v42 = vld [vmem:[#allocation16 + $0x1070] sm:$0xff]  ;;  %v4863_v62 = vld [vmem:[#allocation19 + $0x1d8] sm:$0xff]  ;;  %v4810_v37 = vld [vmem:[#allocation19 + $0x30] sm:$0xff] }
0x125f   : > { %8078 = vmatpush1.bf16.msra.mxu0 %v8077_v52  ;;  %7984 = vmatprep.subr.bf16.mxu1 %v7983_v53  ;;  %v3730_v52 = vld [vmem:[#allocation16 + $0xd70] sm:$0xff]  ;;  %v3741_v53 = vld [vmem:[#allocation16 + $0xdc8] sm:$0xff] }
0x1260   : > { %8080 = vmatprep.subr.bf16.mxu0 %v8079_v57  ;;  %v8001_v57 = vpack.c.bf16 %v3728_v50, %v3716_v13  ;;  %v8097_v20 = vpack.c.bf16 %v3730_v52, %v3718_v51  ;;  %v8003_v31 = vpack.c.bf16 %v3753_v54, %v3741_v53  ;;  %v3851_v13 = vld [vmem:[#allocation16 + $0x1138] sm:$0xff]  ;;  %v8017_v50 = vpack.c.bf16 %v3824_v34, %v3812_v63  ;;  %v3836_v52 = vld [vmem:[#allocation16 + $0x10c0] sm:$0xff]  ;;  %v3838_v54 = vld [vmem:[#allocation16 + $0x10d0] sm:$0xff] }
0x1261   : > { %v8113_v51 = vpack.c.bf16 %v3826_v42, %v3814_v41  ;;  %v3848_v53 = vld [vmem:[#allocation16 + $0x1120] sm:$0xff]  ;;  %v4809_v19 = vld [vmem:[#allocation19 + $0x28] sm:$0xff]  ;;  %v4816_v42 = vld [vmem:[#allocation19 + $0x60] sm:$0xff] }
0x1262   : > { %7986 = vmatpush1.bf16.msra.mxu1 %v7985_v4  ;;  %v8099_v4 = vpack.c.bf16 %v3755_v56, %v3743_v55  ;;  %v3850_v56 = vld [vmem:[#allocation16 + $0x1130] sm:$0xff] }
0x1263   : > { %8082 = vmatpush1.bf16.msra.mxu0 %v8081_v6  ;;  %7988 = vmatprep.subr.bf16.mxu1 %v7987_v7  ;;  %v3754_v6 = vld [vmem:[#allocation16 + $0xe30] sm:$0xff]  ;;  %v3765_v7 = vld [vmem:[#allocation16 + $0xe88] sm:$0xff] }
0x1264   : > { %8084 = vmatprep.subr.bf16.mxu0 %v8083_v26  ;;  %v8101_v26 = vpack.c.bf16 %v3754_v6, %v3742_v3  ;;  %v8007_v10 = vpack.c.bf16 %v3777_v8, %v3765_v7  ;;  %v8117_v3 = vpack.c.bf16 %v3850_v56, %v3838_v54  ;;  %v3860_v6 = vld [vmem:[#allocation16 + $0x1180] sm:$0xff]  ;;  %v3862_v8 = vld [vmem:[#allocation16 + $0x1190] sm:$0xff] }
0x1265   : > { %v3872_v7 = vld [vmem:[#allocation16 + $0x11e0] sm:$0xff]  ;;  %v4869_v63 = vld [vmem:[#allocation19 + $0x208] sm:$0xff] }
0x1266   : > { %7990 = vmatpush1.bf16.msra.mxu1 %v7989_v17  ;;  %v3778_v17 = vld [vmem:[#allocation16 + $0xef0] sm:$0xff]  ;;  %v8025_v12 = vpack.c.bf16 %v3872_v7, %v3860_v6 }
0x1267   : > { %8086 = vmatpush1.bf16.msra.mxu0 %v8085_v18  ;;  %7992 = vmatprep.subr.bf16.mxu1 %v7991_v21  ;;  %v3789_v18 = vld [vmem:[#allocation16 + $0xf48] sm:$0xff]  ;;  %v4825_v56 = vld [vmem:[#allocation19 + $0xa8] sm:$0xff] }
0x1268   : > { %8088 = vmatprep.subr.bf16.mxu0 %v8087_v24  ;;  %v3801_v21 = vld [vmem:[#allocation16 + $0xfa8] sm:$0xff] }
0x1269   : > { %v8011_v24 = vpack.c.bf16 %v3801_v21, %v3789_v18  ;;  %v4807_v18 = vld [vmem:[#allocation19 + $0x18] sm:$0xff]  ;;  %v4806_v21 = vld [vmem:[#allocation19 + $0x10] sm:$0xff] }
0x126a   : > { %7994 = vmatpush1.bf16.msra.mxu1 %v7993_v25  ;;  %v3813_v25 = vld [vmem:[#allocation16 + $0x1008] sm:$0xff]  ;;  %v8509_v33 = vpack.c.bf16 %v4809_v19, %v4806_v21  ;;  %v4834_v19 = vld [vmem:[#allocation19 + $0xf0] sm:$0xff] }
0x126b   : > { %8090 = vmatpush1.bf16.msra.mxu0 %v8089_v38  ;;  %7996 = vmatprep.subr.bf16.mxu1 %v7995_v29  ;;  %v3825_v38 = vld [vmem:[#allocation16 + $0x1068] sm:$0xff]  ;;  %v3815_v29 = vld [vmem:[#allocation16 + $0x1018] sm:$0xff] }
0x126c   : > { %8092 = vmatprep.subr.bf16.mxu0 %v8091_v15  ;;  %v8015_v15 = vpack.c.bf16 %v3825_v38, %v3813_v25  ;;  %v8111_v2 = vpack.c.bf16 %v3827_v39, %v3815_v29  ;;  %v4813_v25 = vld [vmem:[#allocation19 + $0x48] sm:$0xff]  ;;  %v4812_v38 = vld [vmem:[#allocation19 + $0x40] sm:$0xff]  ;;  %v4815_v39 = vld [vmem:[#allocation19 + $0x58] sm:$0xff] }
0x126d   : > { %4573 = vmatmul.mubr.f32.vlgmr.msra.gmra.mrb[18].mxu1 %v10136_v49  ;;  %v8129_v34 = vpack.c.bf16 %v4813_v25, %v4810_v37  ;;  %v8513_v41 = vpack.c.bf16 %v4815_v39, %v4812_v38  ;;  %v4893_v37 = vld [vmem:[#allocation19 + $0x2c8] sm:$0xff] }
0x126e   : > { %4715 = vmatmul.mubr.f32.vlgmr.msra.gmra.mrb[34].mxu0 %v10136_v49  ;;  %7998 = vmatpush1.bf16.msra.mxu1 %v7997_v22  ;;  %v8005_v49 = vpack.c.bf16 %v3752_v59, %v3740_v58  ;;  %v3837_v22 = vld [vmem:[#allocation16 + $0x10c8] sm:$0xff]  ;;  %v3875_v58 = vld [vmem:[#allocation16 + $0x11f8] sm:$0xff]  ;;  %v8021_v59 = vpack.c.bf16 %v3848_v53, %v3836_v52 }
0x126f   : > { %8094 = vmatpush1.bf16.msra.mxu0 %v8093_v61  ;;  %8000 = vmatprep.subr.bf16.mxu1 %v7999_v27  ;;  %v3849_v61 = vld [vmem:[#allocation16 + $0x1128] sm:$0xff]  ;;  %v3839_v27 = vld [vmem:[#allocation16 + $0x10d8] sm:$0xff] }
0x1270   : > { %8096 = vmatprep.subr.bf16.mxu0 %v8095_v60  ;;  %4643 = vmatprep.mubr.f32.mxu1 %v9403_v5  ;;  %v8019_v60 = vpack.c.bf16 %v3849_v61, %v3837_v22  ;;  %v8115_v55 = vpack.c.bf16 %v3851_v13, %v3839_v27  ;;  %v4819_v22 = vld [vmem:[#allocation19 + $0x78] sm:$0xff]  ;;  %v4818_v61 = vld [vmem:[#allocation19 + $0x70] sm:$0xff]  ;;  %v4821_v13 = vld [vmem:[#allocation19 + $0x88] sm:$0xff] }
0x1271   : > { %4785 = vmatprep.mubr.f32.mxu0 %v9403_v5  ;;  %v8105_v5 = vpack.c.bf16 %v3778_v17, %v3766_v14  ;;  %v8121_v14 = vpack.c.bf16 %v3874_v16, %v3862_v8  ;;  %v4804_v17 = vld [vmem:[#allocation19] sm:$0xff]  ;;  %v4875_v52 = vld [vmem:[#allocation19 + $0x238] sm:$0xff]  ;;  %v8133_v53 = vpack.c.bf16 %v4819_v22, %v4816_v42 }
0x1272   : > { %8002 = vmatpush1.bf16.msra.mxu1 %v8001_v57  ;;  %v3861_v57 = vld [vmem:[#allocation16 + $0x1188] sm:$0xff]  ;;  %v8125_v28 = vpack.c.bf16 %v4807_v18, %v4804_v17  ;;  %v10170_v18 = vld [vmem:[#allocation17] sm:$0xff] }
0x1273   : > { %8098 = vmatpush1.bf16.msra.mxu0 %v8097_v20  ;;  %8004 = vmatprep.subr.bf16.mxu1 %v8003_v31  ;;  %v3873_v20 = vld [vmem:[#allocation16 + $0x11e8] sm:$0xff]  ;;  %v3863_v31 = vld [vmem:[#allocation16 + $0x1198] sm:$0xff]  ;;  %v3887_v25 = vrot.slane %v10170_v18, %v9885_v46 }
0x1274   : > { %8100 = vmatprep.subr.bf16.mxu0 %v8099_v4  ;;  %v8023_v4 = vpack.c.bf16 %v3873_v20, %v3861_v57  ;;  %v8119_v9 = vpack.c.bf16 %v3875_v58, %v3863_v31  ;;  %v4824_v57 = vld [vmem:[#allocation19 + $0xa0] sm:$0xff]  ;;  %v4827_v31 = vld [vmem:[#allocation19 + $0xb8] sm:$0xff]  ;;  %v4829_v58 = vld [vmem:[#allocation19 + $0xc8] sm:$0xff] }
0x1275   : > { %v8521_v7 = vpack.c.bf16 %v4827_v31, %v4824_v57  ;;  %v4831_v16 = vld [vmem:[#allocation19 + $0xd8] sm:$0xff] }
0x1276   : > { %8006 = vmatpush1.bf16.msra.mxu1 %v8005_v49  ;;  %v4805_v49 = vld [vmem:[#allocation19 + $0x8] sm:$0xff]  ;;  %v4847_v42 = vld [vmem:[#allocation19 + $0x158] sm:$0xff] }
0x1277   : > { %8102 = vmatpush1.bf16.msra.mxu0 %v8101_v26  ;;  %8008 = vmatprep.subr.bf16.mxu1 %v8007_v10  ;;  %v4808_v26 = vld [vmem:[#allocation19 + $0x20] sm:$0xff]  ;;  %v4854_v10 = vld [vmem:[#allocation19 + $0x190] sm:$0xff] }
0x1278   : > { %8104 = vmatprep.subr.bf16.mxu0 %v8103_v30  ;;  %v8123_v30 = vpack.c.bf16 %v4808_v26, %v4805_v49  ;;  %v8507_v32 = vpack.c.bf16 %v4857_v11, %v4854_v10  ;;  %v4830_v49 = vld [vmem:[#allocation19 + $0xd0] sm:$0xff]  ;;  %v4833_v10 = vld [vmem:[#allocation19 + $0xe8] sm:$0xff]  ;;  %v4835_v11 = vld [vmem:[#allocation19 + $0xf8] sm:$0xff] }
0x1279   : > { %v8525_v21 = vpack.c.bf16 %v4833_v10, %v4830_v49  ;;  %v4852_v49 = vld [vmem:[#allocation19 + $0x180] sm:$0xff] }
0x127a   : > { %8010 = vmatpush1.bf16.msra.mxu1 %v8009_v23  ;;  %v4811_v23 = vld [vmem:[#allocation19 + $0x38] sm:$0xff] }
0x127b   : > { %8106 = vmatpush1.bf16.msra.mxu0 %v8105_v5  ;;  %8012 = vmatprep.subr.bf16.mxu1 %v8011_v24  ;;  %v4814_v5 = vld [vmem:[#allocation19 + $0x50] sm:$0xff]  ;;  %v4860_v24 = vld [vmem:[#allocation19 + $0x1c0] sm:$0xff] }
0x127c   : > { %8108 = vmatprep.subr.bf16.mxu0 %v8107_v35  ;;  %v8127_v35 = vpack.c.bf16 %v4814_v5, %v4811_v23  ;;  %v8511_v29 = vpack.c.bf16 %v4863_v62, %v4860_v24  ;;  %v4837_v23 = vld [vmem:[#allocation19 + $0x108] sm:$0xff]  ;;  %v4836_v5 = vld [vmem:[#allocation19 + $0x100] sm:$0xff]  ;;  %v4839_v62 = vld [vmem:[#allocation19 + $0x118] sm:$0xff] }
0x127d   : > { %v8145_v38 = vpack.c.bf16 %v4837_v23, %v4834_v19  ;;  %v4959_v19 = vld [vmem:[#allocation19 + $0x4d8] sm:$0xff] }
0x127e   : > { %8014 = vmatpush1.bf16.msra.mxu1 %v8013_v1  ;;  %v4817_v1 = vld [vmem:[#allocation19 + $0x68] sm:$0xff] }
0x127f   : > { %8110 = vmatpush1.bf16.msra.mxu0 %v8109_v40  ;;  %8016 = vmatprep.subr.bf16.mxu1 %v8015_v15  ;;  %v4820_v40 = vld [vmem:[#allocation19 + $0x80] sm:$0xff]  ;;  %v4866_v15 = vld [vmem:[#allocation19 + $0x1f0] sm:$0xff] }
0x1280   : > { %8112 = vmatprep.subr.bf16.mxu0 %v8111_v2  ;;  %v8131_v2 = vpack.c.bf16 %v4820_v40, %v4817_v1  ;;  %v8515_v27 = vpack.c.bf16 %v4869_v63, %v4866_v15  ;;  %v4840_v1 = vld [vmem:[#allocation19 + $0x120] sm:$0xff]  ;;  %v4843_v40 = vld [vmem:[#allocation19 + $0x138] sm:$0xff] }
0x1282   : > { %8018 = vmatpush1.bf16.msra.mxu1 %v8017_v50  ;;  %v4823_v50 = vld [vmem:[#allocation19 + $0x98] sm:$0xff] }
0x1283   : > { %8114 = vmatpush1.bf16.msra.mxu0 %v8113_v51  ;;  %8020 = vmatprep.subr.bf16.mxu1 %v8019_v60  ;;  %v4826_v51 = vld [vmem:[#allocation19 + $0xb0] sm:$0xff]  ;;  %v4872_v60 = vld [vmem:[#allocation19 + $0x220] sm:$0xff] }
0x1284   : > { %8116 = vmatprep.subr.bf16.mxu0 %v8115_v55  ;;  %v8135_v54 = vpack.c.bf16 %v4826_v51, %v4823_v50  ;;  %v4822_v55 = vld [vmem:[#allocation19 + $0x90] sm:$0xff]  ;;  %v8519_v20 = vpack.c.bf16 %v4875_v52, %v4872_v60  ;;  %v4896_v50 = vld [vmem:[#allocation19 + $0x2e0] sm:$0xff]  ;;  %v4899_v51 = vld [vmem:[#allocation19 + $0x2f8] sm:$0xff]  ;;  %v8149_v52 = vpack.c.bf16 %v4843_v40, %v4840_v1 }
0x1285   : > { %v8137_v6 = vpack.c.bf16 %v4825_v56, %v4822_v55  ;;  %v4848_v55 = vld [vmem:[#allocation19 + $0x160] sm:$0xff]  ;;  %v3883_v56 = vrot.slane %v10170_v18, %v9891_v48  ;;  %v8535_v31 = vpack.c.bf16 %v4899_v51, %v4896_v50  ;;  %v4962_v1 = vld [vmem:[#allocation19 + $0x4f0] sm:$0xff]  ;;  %v4965_v40 = vld [vmem:[#allocation19 + $0x508] sm:$0xff] }
0x1286   : > { %8022 = vmatpush1.bf16.msra.mxu1 %v8021_v59  ;;  %v4832_v59 = vld [vmem:[#allocation19 + $0xe0] sm:$0xff]  ;;  %v4871_v50 = vld [vmem:[#allocation19 + $0x218] sm:$0xff]  ;;  %v4874_v51 = vld [vmem:[#allocation19 + $0x230] sm:$0xff] }
0x1287   : > { %8118 = vmatpush1.bf16.msra.mxu0 %v8117_v3  ;;  %8024 = vmatprep.subr.bf16.mxu1 %v8023_v4  ;;  %v4878_v3 = vld [vmem:[#allocation19 + $0x250] sm:$0xff]  ;;  %v4881_v4 = vld [vmem:[#allocation19 + $0x268] sm:$0xff]  ;;  %v8139_v8 = vpack.c.bf16 %v4832_v59, %v4829_v58  ;;  %v4851_v58 = vld [vmem:[#allocation19 + $0x178] sm:$0xff] }
0x1288   : > { %8120 = vmatprep.subr.bf16.mxu0 %v8119_v9  ;;  %v4828_v9 = vld [vmem:[#allocation19 + $0xc0] sm:$0xff]  ;;  %v8523_v26 = vpack.c.bf16 %v4881_v4, %v4878_v3  ;;  %v4853_v59 = vld [vmem:[#allocation19 + $0x188] sm:$0xff] }
0x1289   : > { %v8141_v17 = vpack.c.bf16 %v4831_v16, %v4828_v9  ;;  %v4856_v3 = vld [vmem:[#allocation19 + $0x1a0] sm:$0xff]  ;;  %v8537_v9 = vpack.c.bf16 %v4851_v58, %v4848_v55  ;;  %v4870_v55 = vld [vmem:[#allocation19 + $0x210] sm:$0xff]  ;;  %v4877_v58 = vld [vmem:[#allocation19 + $0x248] sm:$0xff] }
0x128a   : > { %8026 = vmatpush1.bf16.msra.mxu1 %v8025_v12  ;;  %v4838_v12 = vld [vmem:[#allocation19 + $0x110] sm:$0xff]  ;;  %v8155_v16 = vpack.c.bf16 %v4856_v3, %v4853_v59  ;;  %v4880_v59 = vld [vmem:[#allocation19 + $0x260] sm:$0xff] }
0x128b   : > { %8122 = vmatpush1.bf16.msra.mxu0 %v8121_v14  ;;  %8124 = vmatprep.subr.bf16.mxu1 %v8123_v30  ;;  %v4884_v14 = vld [vmem:[#allocation19 + $0x280] sm:$0xff]  ;;  %v4887_v30 = vld [vmem:[#allocation19 + $0x298] sm:$0xff]  ;;  %v4974_v3 = vld [vmem:[#allocation19 + $0x550] sm:$0xff] }
0x128c   : > { %8508 = vmatprep.subr.bf16.mxu0 %v8507_v32  ;;  %v8143_v32 = vpack.c.bf16 %v4838_v12, %v4835_v11  ;;  %v8527_v24 = vpack.c.bf16 %v4887_v30, %v4884_v14  ;;  %v4902_v12 = vld [vmem:[#allocation19 + $0x310] sm:$0xff]  ;;  %v4905_v14 = vld [vmem:[#allocation19 + $0x328] sm:$0xff]  ;;  %v4859_v30 = vld [vmem:[#allocation19 + $0x1b8] sm:$0xff] }
0x128d   : > { %4644 = vmatmul.mubr.f32.vlgmr.msra.gmra.mrb[18].mxu1 %v10150_v44 }
0x128e   : > { %4786 = vmatmul.mubr.f32.vlgmr.msra.gmra.mrb[34].mxu0 %v10150_v44  ;;  %8126 = vmatpush1.bf16.msra.mxu1 %v8125_v28  ;;  %v8517_v44 = vpack.c.bf16 %v4821_v13, %v4818_v61  ;;  %v4841_v28 = vld [vmem:[#allocation19 + $0x128] sm:$0xff]  ;;  %v3894_v61 = vsub.s32 3, %v9882_v45  ;;  %v4850_v13 = vld [vmem:[#allocation19 + $0x170] sm:$0xff] }
0x128f   : > { %8510 = vmatpush3.bf16.msra.mxu0 %v8509_v33  ;;  %8128 = vmatprep.subr.bf16.mxu1 %v8127_v35  ;;  %v4844_v33 = vld [vmem:[#allocation19 + $0x140] sm:$0xff]  ;;  %v4890_v35 = vld [vmem:[#allocation19 + $0x2b0] sm:$0xff] }
0x1290   : > { %8512 = vmatprep.subr.bf16.mxu0 %v8511_v29  ;;  %v8529_v29 = vpack.c.bf16 %v4839_v62, %v4836_v5  ;;  %v8147_v39 = vpack.c.bf16 %v4844_v33, %v4841_v28  ;;  %v3895_v4 = vrot.slane %v10170_v18, %v3894_v61  ;;  %v8541_v5 = vpack.c.bf16 %v4905_v14, %v4902_v12  ;;  %v4861_v62 = vld [vmem:[#allocation19 + $0x1c8] sm:$0xff]  ;;  %v4908_v28 = vld [vmem:[#allocation19 + $0x340] sm:$0xff]  ;;  %v4883_v12 = vld [vmem:[#allocation19 + $0x278] sm:$0xff] }
0x1291   : > { %v4886_v14 = vld [vmem:[#allocation19 + $0x290] sm:$0xff] }
0x1292   : > { %8130 = vmatpush1.bf16.msra.mxu1 %v8129_v34  ;;  %v8531_v34 = vpack.c.bf16 %v4893_v37, %v4890_v35 }
0x1293   : > { %8514 = vmatpush3.bf16.msra.mxu0 %v8513_v41  ;;  %8132 = vmatprep.subr.bf16.mxu1 %v8131_v2  ;;  %v4842_v41 = vld [vmem:[#allocation19 + $0x130] sm:$0xff]  ;;  %v4845_v2 = vld [vmem:[#allocation19 + $0x148] sm:$0xff] }
0x1294   : > { %8516 = vmatprep.subr.bf16.mxu0 %v8515_v27 }
0x1296   : > { %8134 = vmatpush1.bf16.msra.mxu1 %v8133_v53  ;;  %v8533_v53 = vpack.c.bf16 %v4845_v2, %v4842_v41  ;;  %v4864_v2 = vld [vmem:[#allocation19 + $0x1e0] sm:$0xff] }
0x1297   : > { %8518 = vmatpush3.bf16.msra.mxu0 %v8517_v44  ;;  %8136 = vmatprep.subr.bf16.mxu1 %v8135_v54  ;;  %v4846_v44 = vld [vmem:[#allocation19 + $0x150] sm:$0xff]  ;;  %v4849_v54 = vld [vmem:[#allocation19 + $0x168] sm:$0xff] }
0x1298   : > { %8520 = vmatprep.subr.bf16.mxu0 %v8519_v20  ;;  %v8151_v20 = vpack.c.bf16 %v4850_v13, %v4847_v42  ;;  %v4867_v42 = vld [vmem:[#allocation19 + $0x1f8] sm:$0xff]  ;;  %v4917_v13 = vld [vmem:[#allocation19 + $0x388] sm:$0xff] }
0x129a   : > { %8138 = vmatpush1.bf16.msra.mxu1 %v8137_v6  ;;  %v4950_v6 = vld [vmem:[#allocation19 + $0x490] sm:$0xff] }
0x129b   : > { %8522 = vmatpush3.bf16.msra.mxu0 %v8521_v7  ;;  %8140 = vmatprep.subr.bf16.mxu1 %v8139_v8  ;;  %v4953_v7 = vld [vmem:[#allocation19 + $0x4a8] sm:$0xff]  ;;  %v8153_v8 = vpack.c.bf16 %v4849_v54, %v4846_v44  ;;  %v8167_v54 = vpack.c.bf16 %v4874_v51, %v4871_v50  ;;  %v4992_v50 = vld [vmem:[#allocation19 + $0x5e0] sm:$0xff]  ;;  %v4995_v51 = vld [vmem:[#allocation19 + $0x5f8] sm:$0xff] }
0x129c   : > { %8524 = vmatprep.subr.bf16.mxu0 %v8523_v26  ;;  %v4855_v26 = vld [vmem:[#allocation19 + $0x198] sm:$0xff]  ;;  %v8539_v11 = vpack.c.bf16 %v4953_v7, %v4950_v6 }
0x129d   : > { %v8157_v23 = vpack.c.bf16 %v4855_v26, %v4852_v49  ;;  %v4926_v49 = vld [vmem:[#allocation19 + $0x3d0] sm:$0xff] }
0x129e   : > { %8142 = vmatpush1.bf16.msra.mxu1 %v8141_v17 }
0x129f   : > { %8526 = vmatpush3.bf16.msra.mxu0 %v8525_v21  ;;  %8144 = vmatprep.subr.bf16.mxu1 %v8143_v32  ;;  %v4862_v21 = vld [vmem:[#allocation19 + $0x1d0] sm:$0xff]  ;;  %v4956_v32 = vld [vmem:[#allocation19 + $0x4c0] sm:$0xff] }
0x12a0   : > { %v4077_v15 = vpop.f32.mrb[14].mxu1  ;;  %v10174_v63 = vpop.f32.mrb[30].mxu0  ;;  %8528 = vmatprep.subr.bf16.mxu0 %v8527_v24  ;;  %v4858_v24 = vld [vmem:[#allocation19 + $0x1b0] sm:$0xff]  ;;  %v8159_v35 = vpack.c.bf16 %v4862_v21, %v4859_v30  ;;  %v8543_v37 = vpack.c.bf16 %v4959_v19, %v4956_v32  ;;  %v4980_v30 = vld [vmem:[#allocation19 + $0x580] sm:$0xff]  ;;  %v4983_v21 = vld [vmem:[#allocation19 + $0x598] sm:$0xff] }
0x12a1   : > { %v4079_v22 = vpop.f32.mrb[15].mxu1  ;;  %v4221_v27 = vpop.f32.mrb[31].mxu0  ;;  %v10182_v10 = vadd.f32 %v4077_v15, %v3883_v56  ;;  %v8161_v15 = vpack.c.bf16 %v4861_v62, %v4858_v24  ;;  %v4873_v56 = vld [vmem:[#allocation19 + $0x228] sm:$0xff]  ;;  %v4932_v62 = vld [vmem:[#allocation19 + $0x400] sm:$0xff] }
0x12a2   : > { %v8704_v60 = vadd.f32 %v4079_v22, %v3887_v25  ;;  %8146 = vmatpush1.bf16.msra.mxu1 %v8145_v38  ;;  %v10184_v17 = vadd.f32 %v4221_v27, %v3895_v4  ;;  %v4911_v25 = vld [vmem:[#allocation19 + $0x358] sm:$0xff]  ;;  %v4865_v38 = vld [vmem:[#allocation19 + $0x1e8] sm:$0xff]  ;;  %v4914_v22 = vld [vmem:[#allocation19 + $0x370] sm:$0xff]  ;;  %v8547_v27 = vpack.c.bf16 %v4965_v40, %v4962_v1  ;;  %v8169_v6 = vpack.c.bf16 %v4873_v56, %v4870_v55 }
0x12a3   : > { %8530 = vmatpush3.bf16.msra.mxu0 %v8529_v29  ;;  %8148 = vmatprep.subr.bf16.mxu1 %v8147_v39  ;;  %v4792_v33 = vmax.f32 %v10182_v10, 0.0  ;;  %v4868_v29 = vld [vmem:[#allocation19 + $0x200] sm:$0xff]  ;;  %v8549_v44 = vpack.c.bf16 %v4917_v13, %v4914_v22  ;;  %v4977_v4 = vld [vmem:[#allocation19 + $0x568] sm:$0xff]  ;;  %v4898_v13 = vld [vmem:[#allocation19 + $0x2f0] sm:$0xff]  ;;  %v3891_v56 = vrot.slane %v10170_v18, %v9888_v47 }
0x12a4   : > { %v4793_v57 = vmax.f32 %v8704_v60, 0.0  ;;  %8532 = vmatprep.subr.bf16.mxu0 %v8531_v34  ;;  %v4795_v39 = vmax.f32 %v10184_v17, 0.0  ;;  %v8545_v34 = vpack.c.bf16 %v4911_v25, %v4908_v28  ;;  %v8163_v41 = vpack.c.bf16 %v4868_v29, %v4865_v38  ;;  %v4968_v60 = vld [vmem:[#allocation19 + $0x520] sm:$0xff]  ;;  %v4885_v24 = vld [vmem:[#allocation19 + $0x288] sm:$0xff]  ;;  %v4986_v38 = vld [vmem:[#allocation19 + $0x5b0] sm:$0xff] }
0x12a5   : > { %v8555_v26 = vpack.c.bf16 %v4977_v4, %v4974_v3  ;;  %v8559_v28 = vpack.c.bf16 %v4983_v21, %v4980_v30  ;;  %v4892_v25 = vld [vmem:[#allocation19 + $0x2c0] sm:$0xff]  ;;  %v4989_v29 = vld [vmem:[#allocation19 + $0x5c8] sm:$0xff]  ;;  %v4922_v10 = vld [vmem:[#allocation19 + $0x3b0] sm:$0xff] }
0x12a6   : > { %8150 = vmatpush1.bf16.msra.mxu1 %v8149_v52  ;;  %5461 = vmatprep.mubr.f32.mxu1 %v4793_v57  ;;  %v4971_v52 = vld [vmem:[#allocation19 + $0x538] sm:$0xff]  ;;  %v4941_v22 = vld [vmem:[#allocation19 + $0x448] sm:$0xff]  ;;  %v4944_v55 = vld [vmem:[#allocation19 + $0x460] sm:$0xff] }
0x12a7   : > { %8534 = vmatpush3.bf16.msra.mxu0 %v8533_v53  ;;  %5887 = vmatprep.mubr.f32.mxu0 %v4793_v57  ;;  %v8165_v53 = vpack.c.bf16 %v4867_v42, %v4864_v2  ;;  %v4920_v57 = vld [vmem:[#allocation19 + $0x3a0] sm:$0xff]  ;;  %v4938_v2 = vld [vmem:[#allocation19 + $0x430] sm:$0xff]  ;;  %v8563_v42 = vpack.c.bf16 %v4989_v29, %v4986_v38  ;;  %v5049_v3 = vld [vmem:[#allocation19 + $0x7a8] sm:$0xff] }
0x12a8   : > { %8152 = vmatprep.subr.bf16.mxu1 %v8151_v20  ;;  %8536 = vmatprep.subr.bf16.mxu0 %v8535_v31  ;;  %v8551_v20 = vpack.c.bf16 %v4971_v52, %v4968_v60  ;;  %v4923_v31 = vld [vmem:[#allocation19 + $0x3b8] sm:$0xff]  ;;  %v8565_v52 = vpack.c.bf16 %v4941_v22, %v4938_v2  ;;  %v5052_v21 = vld [vmem:[#allocation19 + $0x7c0] sm:$0xff]  ;;  %v5058_v29 = vld [vmem:[#allocation19 + $0x7f0] sm:$0xff] }
0x12a9   : > { %v8553_v7 = vpack.c.bf16 %v4923_v31, %v4920_v57  ;;  %v8567_v57 = vpack.c.bf16 %v4995_v51, %v4992_v50  ;;  %v4901_v31 = vld [vmem:[#allocation19 + $0x308] sm:$0xff]  ;;  %v5067_v50 = vld [vmem:[#allocation19 + $0x838] sm:$0xff]  ;;  %v4918_v17 = vld [vmem:[#allocation19 + $0x390] sm:$0xff] }
0x12aa   : > { %8154 = vmatpush1.bf16.msra.mxu1 %v8153_v8  ;;  %v8171_v8 = vpack.c.bf16 %v4880_v59, %v4877_v58  ;;  %v4904_v58 = vld [vmem:[#allocation19 + $0x320] sm:$0xff]  ;;  %v5046_v59 = vld [vmem:[#allocation19 + $0x790] sm:$0xff]  ;;  %v5013_v22 = vld [vmem:[#allocation19 + $0x688] sm:$0xff] }
0x12ab   : > { %8538 = vmatpush3.bf16.msra.mxu0 %v8537_v9  ;;  %8156 = vmatprep.subr.bf16.mxu1 %v8155_v16  ;;  %v4876_v9 = vld [vmem:[#allocation19 + $0x240] sm:$0xff]  ;;  %v4879_v16 = vld [vmem:[#allocation19 + $0x258] sm:$0xff] }
0x12ac   : > { %8540 = vmatprep.subr.bf16.mxu0 %v8539_v11  ;;  %v4929_v11 = vld [vmem:[#allocation19 + $0x3e8] sm:$0xff]  ;;  %v8173_v32 = vpack.c.bf16 %v4879_v16, %v4876_v9  ;;  %v4903_v9 = vld [vmem:[#allocation19 + $0x318] sm:$0xff]  ;;  %v10195_v16 = vadd.f32 %v10174_v63, %v3891_v56  ;;  %v4916_v63 = vld [vmem:[#allocation19 + $0x380] sm:$0xff] }
0x12ad   : > { %v8557_v19 = vpack.c.bf16 %v4929_v11, %v4926_v49  ;;  %v4907_v49 = vld [vmem:[#allocation19 + $0x338] sm:$0xff]  ;;  %v8571_v11 = vpack.c.bf16 %v5049_v3, %v5046_v59 }
0x12ae   : > { %5888 = vmatmul.mubr.f32.vlgmr.msra.gmra.mrb[36].mxu0 %v4792_v33  ;;  %8158 = vmatpush1.bf16.msra.mxu1 %v8157_v23  ;;  %v8175_v23 = vpack.c.bf16 %v4886_v14, %v4883_v12  ;;  %v4998_v12 = vld [vmem:[#allocation19 + $0x610] sm:$0xff]  ;;  %v5001_v14 = vld [vmem:[#allocation19 + $0x628] sm:$0xff]  ;;  %v4927_v59 = vld [vmem:[#allocation19 + $0x3d8] sm:$0xff] }
0x12af   : > { %8542 = vmatpush3.bf16.msra.mxu0 %v8541_v5  ;;  %5957 = vmatprep.mubr.f32.mxu0 %v4795_v39  ;;  %v4882_v5 = vld [vmem:[#allocation19 + $0x270] sm:$0xff]  ;;  %v4931_v3 = vld [vmem:[#allocation19 + $0x3f8] sm:$0xff] }
0x12b0   : > { %8160 = vmatprep.subr.bf16.mxu1 %v8159_v35  ;;  %8544 = vmatprep.subr.bf16.mxu0 %v8543_v37  ;;  %v4935_v35 = vld [vmem:[#allocation19 + $0x418] sm:$0xff]  ;;  %v4889_v37 = vld [vmem:[#allocation19 + $0x2a8] sm:$0xff]  ;;  %v8177_v1 = vpack.c.bf16 %v4885_v24, %v4882_v5  ;;  %v4794_v24 = vmax.f32 %v10195_v16, 0.0 }
0x12b1   : > { %v8561_v40 = vpack.c.bf16 %v4935_v35, %v4932_v62  ;;  %v4909_v5 = vld [vmem:[#allocation19 + $0x348] sm:$0xff] }
0x12b2   : > { %8162 = vmatpush1.bf16.msra.mxu1 %v8161_v15  ;;  %v8179_v15 = vpack.c.bf16 %v4892_v25, %v4889_v37  ;;  %v4913_v62 = vld [vmem:[#allocation19 + $0x368] sm:$0xff]  ;;  %v5004_v37 = vld [vmem:[#allocation19 + $0x640] sm:$0xff]  ;;  %v5007_v25 = vld [vmem:[#allocation19 + $0x658] sm:$0xff] }
0x12b3   : > { %8546 = vmatpush3.bf16.msra.mxu0 %v8545_v34  ;;  %8164 = vmatprep.subr.bf16.mxu1 %v8163_v41  ;;  %v4888_v34 = vld [vmem:[#allocation19 + $0x2a0] sm:$0xff]  ;;  %v4891_v41 = vld [vmem:[#allocation19 + $0x2b8] sm:$0xff] }
0x12b4   : > { %8548 = vmatprep.subr.bf16.mxu0 %v8547_v27  ;;  %v4895_v27 = vld [vmem:[#allocation19 + $0x2d8] sm:$0xff]  ;;  %v8181_v60 = vpack.c.bf16 %v4891_v41, %v4888_v34 }
0x12b5   : > { %v4915_v34 = vld [vmem:[#allocation19 + $0x378] sm:$0xff] }
0x12b6   : > { %8166 = vmatpush1.bf16.msra.mxu1 %v8165_v53  ;;  %v8183_v53 = vpack.c.bf16 %v4898_v13, %v4895_v27  ;;  %v4919_v41 = vld [vmem:[#allocation19 + $0x398] sm:$0xff]  ;;  %v5064_v13 = vld [vmem:[#allocation19 + $0x820] sm:$0xff] }
0x12b7   : > { %8550 = vmatpush3.bf16.msra.mxu0 %v8549_v44  ;;  %8168 = vmatprep.subr.bf16.mxu1 %v8167_v54  ;;  %v4894_v44 = vld [vmem:[#allocation19 + $0x2d0] sm:$0xff]  ;;  %v4897_v54 = vld [vmem:[#allocation19 + $0x2e8] sm:$0xff]  ;;  %v8199_v51 = vpack.c.bf16 %v4922_v10, %v4919_v41 }
0x12b8   : > { %8552 = vmatprep.subr.bf16.mxu0 %v8551_v20  ;;  %v4947_v20 = vld [vmem:[#allocation19 + $0x478] sm:$0xff]  ;;  %v8185_v4 = vpack.c.bf16 %v4897_v54, %v4894_v44  ;;  %v8583_v44 = vpack.c.bf16 %v5067_v50, %v5064_v13  ;;  %v5016_v54 = vld [vmem:[#allocation19 + $0x6a0] sm:$0xff]  ;;  %v5037_v41 = vld [vmem:[#allocation19 + $0x748] sm:$0xff] }
0x12b9   : > { %v4949_v13 = vld [vmem:[#allocation19 + $0x488] sm:$0xff]  ;;  %v4952_v50 = vld [vmem:[#allocation19 + $0x4a0] sm:$0xff] }
0x12ba   : > { %8170 = vmatpush1.bf16.msra.mxu1 %v8169_v6  ;;  %v8569_v6 = vpack.c.bf16 %v4947_v20, %v4944_v55  ;;  %v5019_v55 = vld [vmem:[#allocation19 + $0x6b8] sm:$0xff]  ;;  %v5073_v20 = vld [vmem:[#allocation19 + $0x868] sm:$0xff] }
0x12bb   : > { %8554 = vmatpush3.bf16.msra.mxu0 %v8553_v7  ;;  %8172 = vmatprep.subr.bf16.mxu1 %v8171_v8  ;;  %v8187_v7 = vpack.c.bf16 %v4904_v58, %v4901_v31  ;;  %v4900_v8 = vld [vmem:[#allocation19 + $0x300] sm:$0xff] }
0x12bc   : > { %8556 = vmatprep.subr.bf16.mxu0 %v8555_v26  ;;  %v4910_v26 = vld [vmem:[#allocation19 + $0x350] sm:$0xff]  ;;  %v8189_v30 = vpack.c.bf16 %v4903_v9, %v4900_v8  ;;  %v4924_v58 = vld [vmem:[#allocation19 + $0x3c0] sm:$0xff]  ;;  %v5025_v9 = vld [vmem:[#allocation19 + $0x6e8] sm:$0xff] }
0x12bd   : > { %v5022_v8 = vld [vmem:[#allocation19 + $0x6d0] sm:$0xff] }
0x12be   : > { %8174 = vmatpush1.bf16.msra.mxu1 %v8173_v32  ;;  %v5055_v32 = vld [vmem:[#allocation19 + $0x7d8] sm:$0xff] }
0x12bf   : > { %8558 = vmatpush3.bf16.msra.mxu0 %v8557_v19  ;;  %8176 = vmatprep.subr.bf16.mxu1 %v8175_v23  ;;  %v8191_v19 = vpack.c.bf16 %v4910_v26, %v4907_v49  ;;  %v4906_v23 = vld [vmem:[#allocation19 + $0x330] sm:$0xff]  ;;  %v8575_v35 = vpack.c.bf16 %v5055_v32, %v5052_v21  ;;  %v8205_v49 = vpack.c.bf16 %v4927_v59, %v4924_v58  ;;  %v5076_v26 = vld [vmem:[#allocation19 + $0x880] sm:$0xff]  ;;  %v4937_v21 = vld [vmem:[#allocation19 + $0x428] sm:$0xff] }
0x12c0   : > { %8560 = vmatprep.subr.bf16.mxu0 %v8559_v28  ;;  %v8573_v28 = vpack.c.bf16 %v5001_v14, %v4998_v12  ;;  %v8193_v38 = vpack.c.bf16 %v4909_v5, %v4906_v23  ;;  %v4930_v14 = vld [vmem:[#allocation19 + $0x3f0] sm:$0xff]  ;;  %v4940_v32 = vld [vmem:[#allocation19 + $0x440] sm:$0xff] }
0x12c1   : > { %v5028_v5 = vld [vmem:[#allocation19 + $0x700] sm:$0xff] }
0x12c2   : > { %8178 = vmatpush1.bf16.msra.mxu1 %v8177_v1  ;;  %v5061_v1 = vld [vmem:[#allocation19 + $0x808] sm:$0xff] }
0x12c3   : > { %8562 = vmatpush3.bf16.msra.mxu0 %v8561_v40  ;;  %8180 = vmatprep.subr.bf16.mxu1 %v8179_v15  ;;  %v8195_v40 = vpack.c.bf16 %v4916_v63, %v4913_v62  ;;  %v4912_v15 = vld [vmem:[#allocation19 + $0x360] sm:$0xff]  ;;  %v8579_v2 = vpack.c.bf16 %v5061_v1, %v5058_v29  ;;  %v5031_v62 = vld [vmem:[#allocation19 + $0x718] sm:$0xff]  ;;  %v4946_v1 = vld [vmem:[#allocation19 + $0x470] sm:$0xff] }
0x12c4   : > { %8564 = vmatprep.subr.bf16.mxu0 %v8563_v42  ;;  %v5010_v42 = vld [vmem:[#allocation19 + $0x670] sm:$0xff]  ;;  %v8197_v27 = vpack.c.bf16 %v4915_v34, %v4912_v15  ;;  %v4943_v29 = vld [vmem:[#allocation19 + $0x458] sm:$0xff] }
0x12c5   : > { %v5034_v34 = vld [vmem:[#allocation19 + $0x730] sm:$0xff] }
0x12c6   : > { %8182 = vmatpush1.bf16.msra.mxu1 %v8181_v60  ;;  %v4925_v60 = vld [vmem:[#allocation19 + $0x3c8] sm:$0xff] }
0x12c7   : > { %8566 = vmatpush3.bf16.msra.mxu0 %v8565_v52  ;;  %8184 = vmatprep.subr.bf16.mxu1 %v8183_v53  ;;  %v4928_v52 = vld [vmem:[#allocation19 + $0x3e0] sm:$0xff]  ;;  %v8581_v53 = vpack.c.bf16 %v5013_v22, %v5010_v42  ;;  %v8215_v42 = vpack.c.bf16 %v4946_v1, %v4943_v29  ;;  %v4942_v22 = vld [vmem:[#allocation19 + $0x450] sm:$0xff]  ;;  %v3902_v1 = vsub.s32 5, %v9882_v45 }
0x12c8   : > { %8568 = vmatprep.subr.bf16.mxu0 %v8567_v57  ;;  %v5070_v57 = vld [vmem:[#allocation19 + $0x850] sm:$0xff]  ;;  %v8203_v31 = vpack.c.bf16 %v4928_v52, %v4925_v60  ;;  %v5043_v60 = vld [vmem:[#allocation19 + $0x778] sm:$0xff] }
0x12ca   : > { %8186 = vmatpush1.bf16.msra.mxu1 %v8185_v4  ;;  %v4934_v4 = vld [vmem:[#allocation19 + $0x410] sm:$0xff] }
0x12cb   : > { %8570 = vmatpush3.bf16.msra.mxu0 %v8569_v6  ;;  %8188 = vmatprep.subr.bf16.mxu1 %v8187_v7  ;;  %v8585_v6 = vpack.c.bf16 %v5019_v55, %v5016_v54  ;;  %v8587_v7 = vpack.c.bf16 %v5073_v20, %v5070_v57  ;;  %v8207_v12 = vpack.c.bf16 %v4934_v4, %v4931_v3  ;;  %v4948_v55 = vld [vmem:[#allocation19 + $0x480] sm:$0xff]  ;;  %v4955_v57 = vld [vmem:[#allocation19 + $0x4b8] sm:$0xff]  ;;  %v4958_v20 = vld [vmem:[#allocation19 + $0x4d0] sm:$0xff] }
0x12cc   : > { %8572 = vmatprep.subr.bf16.mxu0 %v8571_v11  ;;  %v5079_v11 = vld [vmem:[#allocation19 + $0x898] sm:$0xff]  ;;  %v8219_v54 = vpack.c.bf16 %v4952_v50, %v4949_v13  ;;  %v8223_v3 = vpack.c.bf16 %v4958_v20, %v4955_v57  ;;  %v4954_v4 = vld [vmem:[#allocation19 + $0x4b0] sm:$0xff]  ;;  %v4984_v50 = vld [vmem:[#allocation19 + $0x5a0] sm:$0xff] }
0x12cd   : > { %5462 = vmatmul.mubr.f32.vlgmr.msra.gmra.mrb[20].mxu1 %v4792_v33  ;;  %v8577_v33 = vpack.c.bf16 %v5007_v25, %v5004_v37  ;;  %v8591_v23 = vpack.c.bf16 %v5079_v11, %v5076_v26  ;;  %v8211_v37 = vpack.c.bf16 %v4940_v32, %v4937_v21  ;;  %v4936_v25 = vld [vmem:[#allocation19 + $0x420] sm:$0xff]  ;;  %v4963_v11 = vld [vmem:[#allocation19 + $0x4f8] sm:$0xff]  ;;  %v4966_v32 = vld [vmem:[#allocation19 + $0x510] sm:$0xff] }
0x12ce   : > { %5958 = vmatmul.mubr.f32.vlgmr.msra.gmra.mrb[38].mxu0 %v4794_v24  ;;  %8190 = vmatpush1.bf16.msra.mxu1 %v8189_v30  ;;  %v4933_v30 = vld [vmem:[#allocation19 + $0x408] sm:$0xff]  ;;  %v4960_v26 = vld [vmem:[#allocation19 + $0x4e0] sm:$0xff] }
0x12cf   : > { %5532 = vmatprep.mubr.f32.mxu1 %v4795_v39  ;;  %8192 = vmatprep.subr.bf16.mxu1 %v8191_v19  ;;  %v4921_v39 = vld [vmem:[#allocation19 + $0x3a8] sm:$0xff]  ;;  %v8589_v19 = vpack.c.bf16 %v5025_v9, %v5022_v8  ;;  %v8209_v63 = vpack.c.bf16 %v4933_v30, %v4930_v14  ;;  %v4964_v8 = vld [vmem:[#allocation19 + $0x500] sm:$0xff]  ;;  %v4970_v14 = vld [vmem:[#allocation19 + $0x530] sm:$0xff]  ;;  %v8229_v30 = vpack.c.bf16 %v4963_v11, %v4960_v26 }
0x12d0   : > { %8574 = vmatpush3.bf16.msra.mxu0 %v8573_v28  ;;  %v8201_v56 = vpack.c.bf16 %v4921_v39, %v4918_v17  ;;  %v5082_v28 = vld [vmem:[#allocation19 + $0x8b0] sm:$0xff]  ;;  %v5040_v39 = vld [vmem:[#allocation19 + $0x760] sm:$0xff] }
0x12d1   : > { %8576 = vmatprep.subr.bf16.mxu0 %v8575_v35  ;;  %v5085_v35 = vld [vmem:[#allocation19 + $0x8c8] sm:$0xff]  ;;  %v5100_v11 = vld [vmem:[#allocation19 + $0x940] sm:$0xff] }
0x12d2   : > { %8194 = vmatpush1.bf16.msra.mxu1 %v8193_v38  ;;  %v4939_v38 = vld [vmem:[#allocation19 + $0x438] sm:$0xff]  ;;  %v8595_v15 = vpack.c.bf16 %v5085_v35, %v5082_v28  ;;  %v4972_v28 = vld [vmem:[#allocation19 + $0x540] sm:$0xff] }
0x12d3   : > { %8196 = vmatprep.subr.bf16.mxu1 %v8195_v40  ;;  %v8593_v40 = vpack.c.bf16 %v5031_v62, %v5028_v5  ;;  %v8213_v10 = vpack.c.bf16 %v4939_v38, %v4936_v25  ;;  %v4976_v5 = vld [vmem:[#allocation19 + $0x560] sm:$0xff]  ;;  %v4975_v35 = vld [vmem:[#allocation19 + $0x558] sm:$0xff]  ;;  %v4982_v25 = vld [vmem:[#allocation19 + $0x590] sm:$0xff]  ;;  %v3898_v38 = vsub.s32 4, %v9882_v45 }
0x12d4   : > { %8578 = vmatpush3.bf16.msra.mxu0 %v8577_v33  ;;  %v5088_v33 = vld [vmem:[#allocation19 + $0x8e0] sm:$0xff]  ;;  %v8237_v29 = vpack.c.bf16 %v4975_v35, %v4972_v28  ;;  %v5006_v28 = vld [vmem:[#allocation19 + $0x650] sm:$0xff] }
0x12d5   : > { %8580 = vmatprep.subr.bf16.mxu0 %v8579_v2  ;;  %v5091_v2 = vld [vmem:[#allocation19 + $0x8f8] sm:$0xff] }
0x12d6   : > { %8198 = vmatpush1.bf16.msra.mxu1 %v8197_v27  ;;  %v4945_v27 = vld [vmem:[#allocation19 + $0x468] sm:$0xff]  ;;  %v8599_v17 = vpack.c.bf16 %v5091_v2, %v5088_v33  ;;  %v4988_v33 = vld [vmem:[#allocation19 + $0x5c0] sm:$0xff]  ;;  %v3899_v2 = vrot.slane %v10170_v18, %v3898_v38 }
0x12d7   : > { %8200 = vmatprep.subr.bf16.mxu1 %v8199_v51  ;;  %v8597_v51 = vpack.c.bf16 %v5037_v41, %v5034_v34  ;;  %v8217_v52 = vpack.c.bf16 %v4945_v27, %v4942_v22  ;;  %v4978_v34 = vld [vmem:[#allocation19 + $0x570] sm:$0xff]  ;;  %v4981_v41 = vld [vmem:[#allocation19 + $0x588] sm:$0xff] }
0x12d8   : > { %8582 = vmatpush3.bf16.msra.mxu0 %v8581_v53  ;;  %v5142_v53 = vld [vmem:[#allocation19 + $0xa90] sm:$0xff]  ;;  %v8241_v22 = vpack.c.bf16 %v4981_v41, %v4978_v34  ;;  %v5005_v34 = vld [vmem:[#allocation19 + $0x648] sm:$0xff] }
0x12d9   : > { %8584 = vmatprep.subr.bf16.mxu0 %v8583_v44  ;;  %v5145_v44 = vld [vmem:[#allocation19 + $0xaa8] sm:$0xff] }
0x12da   : > { %8202 = vmatpush1.bf16.msra.mxu1 %v8201_v56  ;;  %v4951_v56 = vld [vmem:[#allocation19 + $0x498] sm:$0xff]  ;;  %v8603_v58 = vpack.c.bf16 %v5145_v44, %v5142_v53 }
0x12db   : > { %8204 = vmatprep.subr.bf16.mxu1 %v8203_v31  ;;  %v8601_v31 = vpack.c.bf16 %v5043_v60, %v5040_v39  ;;  %v8221_v59 = vpack.c.bf16 %v4951_v56, %v4948_v55  ;;  %v4991_v39 = vld [vmem:[#allocation19 + $0x5d8] sm:$0xff]  ;;  %v4994_v60 = vld [vmem:[#allocation19 + $0x5f0] sm:$0xff]  ;;  %v5097_v55 = vld [vmem:[#allocation19 + $0x928] sm:$0xff] }
0x12dc   : > { %8586 = vmatpush3.bf16.msra.mxu0 %v8585_v6  ;;  %v4957_v6 = vld [vmem:[#allocation19 + $0x4c8] sm:$0xff] }
0x12dd   : > { %8588 = vmatprep.subr.bf16.mxu0 %v8587_v7  ;;  %v4961_v7 = vld [vmem:[#allocation19 + $0x4e8] sm:$0xff]  ;;  %v8225_v9 = vpack.c.bf16 %v4957_v6, %v4954_v4 }
0x12de   : > { %8206 = vmatpush1.bf16.msra.mxu1 %v8205_v49  ;;  %v8227_v49 = vpack.c.bf16 %v4964_v8, %v4961_v7  ;;  %v4993_v4 = vld [vmem:[#allocation19 + $0x5e8] sm:$0xff] }
0x12df   : > { %8208 = vmatprep.subr.bf16.mxu1 %v8207_v12  ;;  %v4967_v12 = vld [vmem:[#allocation19 + $0x518] sm:$0xff]  ;;  %v4997_v8 = vld [vmem:[#allocation19 + $0x608] sm:$0xff] }
0x12e0   : > { %8590 = vmatpush3.bf16.msra.mxu0 %v8589_v19  ;;  %v8231_v21 = vpack.c.bf16 %v4970_v14, %v4967_v12  ;;  %v4969_v19 = vld [vmem:[#allocation19 + $0x528] sm:$0xff]  ;;  %v5103_v12 = vld [vmem:[#allocation19 + $0x958] sm:$0xff] }
0x12e1   : > { %8592 = vmatprep.subr.bf16.mxu0 %v8591_v23  ;;  %v4973_v23 = vld [vmem:[#allocation19 + $0x548] sm:$0xff]  ;;  %v8233_v62 = vpack.c.bf16 %v4969_v19, %v4966_v32 }
0x12e2   : > { %8210 = vmatpush1.bf16.msra.mxu1 %v8209_v63  ;;  %v8235_v63 = vpack.c.bf16 %v4976_v5, %v4973_v23  ;;  %v5157_v32 = vld [vmem:[#allocation19 + $0xb08] sm:$0xff]  ;;  %v4996_v23 = vld [vmem:[#allocation19 + $0x600] sm:$0xff]  ;;  %v4999_v5 = vld [vmem:[#allocation19 + $0x618] sm:$0xff] }
0x12e3   : > { %8212 = vmatprep.subr.bf16.mxu1 %v8211_v37  ;;  %v4979_v37 = vld [vmem:[#allocation19 + $0x578] sm:$0xff]  ;;  %v8253_v38 = vpack.c.bf16 %v4999_v5, %v4996_v23  ;;  %v5030_v5 = vld [vmem:[#allocation19 + $0x710] sm:$0xff] }
0x12e4   : > { %8594 = vmatpush3.bf16.msra.mxu0 %v8593_v40  ;;  %v3910_v40 = vsub.s32 7, %v9882_v45  ;;  %v5027_v23 = vld [vmem:[#allocation19 + $0x6f8] sm:$0xff] }
0x12e5   : > { %8596 = vmatprep.subr.bf16.mxu0 %v8595_v15  ;;  %v8239_v15 = vpack.c.bf16 %v4982_v25, %v4979_v37  ;;  %v5106_v37 = vld [vmem:[#allocation19 + $0x970] sm:$0xff]  ;;  %v5109_v25 = vld [vmem:[#allocation19 + $0x988] sm:$0xff] }
0x12e6   : > { %8214 = vmatpush1.bf16.msra.mxu1 %v8213_v10  ;;  %v4985_v10 = vld [vmem:[#allocation19 + $0x5a8] sm:$0xff]  ;;  %v3911_v27 = vrot.slane %v10170_v18, %v3910_v40  ;;  %v8613_v41 = vpack.c.bf16 %v5109_v25, %v5106_v37  ;;  %v5184_v25 = vld [vmem:[#allocation19 + $0xbe0] sm:$0xff] }
0x12e7   : > { %8216 = vmatprep.subr.bf16.mxu1 %v8215_v42  ;;  %v3903_v42 = vrot.slane %v10170_v18, %v3902_v1  ;;  %v8243_v13 = vpack.c.bf16 %v4988_v33, %v4985_v10  ;;  %v5151_v18 = vld [vmem:[#allocation19 + $0xad8] sm:$0xff]  ;;  %v5009_v10 = vld [vmem:[#allocation19 + $0x668] sm:$0xff]  ;;  %v5012_v33 = vld [vmem:[#allocation19 + $0x680] sm:$0xff] }
0x12e8   : > { %8598 = vmatpush3.bf16.msra.mxu0 %v8597_v51  ;;  %v4987_v51 = vld [vmem:[#allocation19 + $0x5b8] sm:$0xff] }
0x12e9   : > { %8600 = vmatprep.subr.bf16.mxu0 %v8599_v17  ;;  %v8245_v20 = vpack.c.bf16 %v4987_v51, %v4984_v50  ;;  %v5163_v1 = vld [vmem:[#allocation19 + $0xb38] sm:$0xff]  ;;  %v5169_v50 = vld [vmem:[#allocation19 + $0xb68] sm:$0xff]  ;;  %v8259_v51 = vpack.c.bf16 %v5012_v33, %v5009_v10 }
0x12ea   : > { %8218 = vmatpush1.bf16.msra.mxu1 %v8217_v52  ;;  %v8954_v10 = vld [vmem:[#allocation17] sm:$0xff] }
0x12eb   : > { %8220 = vmatprep.subr.bf16.mxu1 %v8219_v54  ;;  %v5094_v54 = vld [vmem:[#allocation19 + $0x910] sm:$0xff] }
0x12ec   : > { %8602 = vmatpush3.bf16.msra.mxu0 %v8601_v31  ;;  %v5148_v31 = vld [vmem:[#allocation19 + $0xac0] sm:$0xff]  ;;  %v8605_v7 = vpack.c.bf16 %v5097_v55, %v5094_v54  ;;  %v5018_v54 = vld [vmem:[#allocation19 + $0x6b0] sm:$0xff]  ;;  %v5121_v55 = vld [vmem:[#allocation19 + $0x9e8] sm:$0xff] }
0x12ed   : > { %8604 = vmatprep.subr.bf16.mxu0 %v8603_v58  ;;  %v8607_v26 = vpack.c.bf16 %v5151_v18, %v5148_v31  ;;  %v5014_v18 = vld [vmem:[#allocation19 + $0x690] sm:$0xff] }
0x12ee   : > { %8222 = vmatpush1.bf16.msra.mxu1 %v8221_v59  ;;  %v8247_v59 = vpack.c.bf16 %v4994_v60, %v4991_v39  ;;  %v5011_v39 = vld [vmem:[#allocation19 + $0x678] sm:$0xff] }
0x12ef   : > { %8224 = vmatprep.subr.bf16.mxu1 %v8223_v3  ;;  %v4990_v3 = vld [vmem:[#allocation19 + $0x5d0] sm:$0xff] }
0x12f2   : > { %8226 = vmatpush1.bf16.msra.mxu1 %v8225_v9  ;;  %v5000_v9 = vld [vmem:[#allocation19 + $0x620] sm:$0xff] }
0x12f3   : > { %8228 = vmatprep.subr.bf16.mxu1 %v8227_v49  ;;  %v8251_v19 = vpack.c.bf16 %v5000_v9, %v4997_v8  ;;  %v5124_v8 = vld [vmem:[#allocation19 + $0xa00] sm:$0xff]  ;;  %v5127_v9 = vld [vmem:[#allocation19 + $0xa18] sm:$0xff] }
0x12f6   : > { %8230 = vmatpush1.bf16.msra.mxu1 %v8229_v30  ;;  %v8249_v30 = vpack.c.bf16 %v4993_v4, %v4990_v3  ;;  %v5021_v4 = vld [vmem:[#allocation19 + $0x6c8] sm:$0xff] }
0x12f7   : > { %8232 = vmatprep.subr.bf16.mxu1 %v8231_v21  ;;  %v5154_v21 = vld [vmem:[#allocation19 + $0xaf0] sm:$0xff] }
0x12f8   : > { %v8611_v35 = vpack.c.bf16 %v5157_v32, %v5154_v21  ;;  %v5020_v21 = vld [vmem:[#allocation19 + $0x6c0] sm:$0xff]  ;;  %v5023_v32 = vld [vmem:[#allocation19 + $0x6d8] sm:$0xff] }
0x12f9   : > { %v8269_v37 = vpack.c.bf16 %v5023_v32, %v5020_v21  ;;  %v5044_v32 = vld [vmem:[#allocation19 + $0x780] sm:$0xff] }
0x12fa   : > { %8234 = vmatpush1.bf16.msra.mxu1 %v8233_v62  ;;  %v8609_v62 = vpack.c.bf16 %v5103_v12, %v5100_v11  ;;  %v5178_v11 = vld [vmem:[#allocation19 + $0xbb0] sm:$0xff]  ;;  %v5181_v12 = vld [vmem:[#allocation19 + $0xbc8] sm:$0xff] }
0x12fb   : > { %8236 = vmatprep.subr.bf16.mxu1 %v8235_v63  ;;  %v5003_v63 = vld [vmem:[#allocation19 + $0x638] sm:$0xff] }
0x12fc   : > { %v8255_v40 = vpack.c.bf16 %v5006_v28, %v5003_v63  ;;  %v8627_v63 = vpack.c.bf16 %v5181_v12, %v5178_v11  ;;  %v5130_v28 = vld [vmem:[#allocation19 + $0xa30] sm:$0xff] }
0x12fd   : > { %v5250_v12 = vld [vmem:[#allocation19 + $0xdf0] sm:$0xff] }
0x12fe   : > { %8238 = vmatpush1.bf16.msra.mxu1 %v8237_v29  ;;  %v5160_v29 = vld [vmem:[#allocation19 + $0xb20] sm:$0xff] }
0x12ff   : > { %8240 = vmatprep.subr.bf16.mxu1 %v8239_v15  ;;  %v5002_v15 = vld [vmem:[#allocation19 + $0x630] sm:$0xff] }
0x1300   : > { %v4361_v17 = vpop.f32.mrb[16].mxu1 }
0x1301   : > { %v10210_v52 = vadd.f32 %v4361_v17, %v3899_v2  ;;  %v10212_v53 = vpop.f32.mrb[32].mxu0  ;;  %v4363_v44 = vpop.f32.mrb[17].mxu1  ;;  %v8615_v2 = vpack.c.bf16 %v5163_v1, %v5160_v29  ;;  %v5008_v17 = vld [vmem:[#allocation19 + $0x660] sm:$0xff]  ;;  %v8271_v29 = vpack.c.bf16 %v5030_v5, %v5027_v23  ;;  %v5026_v1 = vld [vmem:[#allocation19 + $0x6f0] sm:$0xff]  ;;  %v5051_v23 = vld [vmem:[#allocation19 + $0x7b8] sm:$0xff] }
0x1302   : > { %v8708_v56 = vadd.f32 %v4363_v44, %v3903_v42  ;;  %v4505_v57 = vpop.f32.mrb[33].mxu0  ;;  %8242 = vmatpush1.bf16.msra.mxu1 %v8241_v22  ;;  %v5112_v42 = vld [vmem:[#allocation19 + $0x9a0] sm:$0xff]  ;;  %v5115_v22 = vld [vmem:[#allocation19 + $0x9b8] sm:$0xff]  ;;  %v5054_v5 = vld [vmem:[#allocation19 + $0x7d0] sm:$0xff] }
0x1303   : > { %v10214_v58 = vadd.f32 %v4505_v57, %v3911_v27  ;;  %8244 = vmatprep.subr.bf16.mxu1 %v8243_v13  ;;  %v4796_v49 = vmax.f32 %v10210_v52, 0.0  ;;  %v8257_v27 = vpack.c.bf16 %v5005_v34, %v5002_v15  ;;  %v5166_v13 = vld [vmem:[#allocation19 + $0xb50] sm:$0xff]  ;;  %v8617_v60 = vpack.c.bf16 %v5115_v22, %v5112_v42  ;;  %v5015_v44 = vld [vmem:[#allocation19 + $0x698] sm:$0xff]  ;;  %v5172_v57 = vld [vmem:[#allocation19 + $0xb80] sm:$0xff] }
0x1304   : > { %v4797_v6 = vmax.f32 %v8708_v56, 0.0  ;;  %v8619_v16 = vpack.c.bf16 %v5169_v50, %v5166_v13  ;;  %v8261_v56 = vpack.c.bf16 %v5011_v39, %v5008_v17  ;;  %v8263_v31 = vpack.c.bf16 %v5018_v54, %v5015_v44  ;;  %v5033_v34 = vld [vmem:[#allocation19 + $0x728] sm:$0xff]  ;;  %v5136_v42 = vld [vmem:[#allocation19 + $0xa60] sm:$0xff]  ;;  %v5139_v22 = vld [vmem:[#allocation19 + $0xa78] sm:$0xff] }
0x1305   : > { %v4799_v14 = vmax.f32 %v10214_v58, 0.0  ;;  %v5238_v13 = vld [vmem:[#allocation19 + $0xd90] sm:$0xff]  ;;  %v5241_v50 = vld [vmem:[#allocation19 + $0xda8] sm:$0xff]  ;;  %v5032_v17 = vld [vmem:[#allocation19 + $0x720] sm:$0xff] }
0x1306   : > { %8246 = vmatpush1.bf16.msra.mxu1 %v8245_v20  ;;  %6027 = vmatprep.mubr.f32.mxu0 %v4797_v6  ;;  %v5175_v20 = vld [vmem:[#allocation19 + $0xb98] sm:$0xff]  ;;  %v5042_v54 = vld [vmem:[#allocation19 + $0x770] sm:$0xff]  ;;  %v5120_v52 = vld [vmem:[#allocation19 + $0x9e0] sm:$0xff] }
0x1307   : > { %6028 = vmatmul.mubr.f32.vlgmr.msra.gmra.mrb[40].mxu0 %v4796_v49  ;;  %8248 = vmatprep.subr.bf16.mxu1 %v8247_v59  ;;  %v5017_v59 = vld [vmem:[#allocation19 + $0x6a8] sm:$0xff]  ;;  %v5035_v39 = vld [vmem:[#allocation19 + $0x738] sm:$0xff] }
0x1308   : > { %8606 = vmatpush3.bf16.msra.mxu0 %v8605_v7  ;;  %6097 = vmatprep.mubr.f32.mxu0 %v4799_v14  ;;  %v8623_v7 = vpack.c.bf16 %v5175_v20, %v5172_v57  ;;  %v5039_v44 = vld [vmem:[#allocation19 + $0x758] sm:$0xff]  ;;  %v8277_v57 = vpack.c.bf16 %v5035_v39, %v5032_v17  ;;  %v5244_v20 = vld [vmem:[#allocation19 + $0xdc0] sm:$0xff]  ;;  %v5066_v39 = vld [vmem:[#allocation19 + $0x830] sm:$0xff] }
0x1309   : > { %8608 = vmatprep.subr.bf16.mxu0 %v8607_v26  ;;  %v8265_v26 = vpack.c.bf16 %v5017_v59, %v5014_v18  ;;  %v8279_v18 = vpack.c.bf16 %v5042_v54, %v5039_v44  ;;  %v5038_v59 = vld [vmem:[#allocation19 + $0x750] sm:$0xff]  ;;  %v5063_v17 = vld [vmem:[#allocation19 + $0x818] sm:$0xff] }
0x130a   : > { %8250 = vmatpush1.bf16.msra.mxu1 %v8249_v30  ;;  %v5214_v54 = vld [vmem:[#allocation19 + $0xcd0] sm:$0xff] }
0x130b   : > { %8252 = vmatprep.subr.bf16.mxu1 %v8251_v19  ;;  %v8625_v19 = vpack.c.bf16 %v5127_v9, %v5124_v8  ;;  %v5196_v9 = vld [vmem:[#allocation19 + $0xc40] sm:$0xff] }
0x130c   : > { %8610 = vmatpush3.bf16.msra.mxu0 %v8609_v62  ;;  %v3906_v62 = vsub.s32 6, %v9882_v45 }
0x130d   : > { %5533 = vmatmul.mubr.f32.vlgmr.msra.gmra.mrb[20].mxu1 %v4794_v24  ;;  %8612 = vmatprep.subr.bf16.mxu0 %v8611_v35  ;;  %v5118_v24 = vld [vmem:[#allocation19 + $0x9d0] sm:$0xff]  ;;  %v5133_v35 = vld [vmem:[#allocation19 + $0xa48] sm:$0xff] }
0x130e   : > { %8254 = vmatpush1.bf16.msra.mxu1 %v8253_v38  ;;  %5603 = vmatprep.mubr.f32.mxu1 %v4797_v6  ;;  %v8621_v3 = vpack.c.bf16 %v5121_v55, %v5118_v24  ;;  %v5024_v6 = vld [vmem:[#allocation19 + $0x6e0] sm:$0xff]  ;;  %v5187_v38 = vld [vmem:[#allocation19 + $0xbf8] sm:$0xff]  ;;  %v8629_v15 = vpack.c.bf16 %v5133_v35, %v5130_v28  ;;  %v3907_v33 = vrot.slane %v8954_v10, %v3906_v62  ;;  %v5190_v55 = vld [vmem:[#allocation19 + $0xc10] sm:$0xff] }
0x130f   : > { %8256 = vmatprep.subr.bf16.mxu1 %v8255_v40  ;;  %v8267_v30 = vpack.c.bf16 %v5024_v6, %v5021_v4  ;;  %v5029_v40 = vld [vmem:[#allocation19 + $0x708] sm:$0xff]  ;;  %v8635_v24 = vpack.c.bf16 %v5241_v50, %v5238_v13  ;;  %v5048_v6 = vld [vmem:[#allocation19 + $0x7a0] sm:$0xff]  ;;  %v5202_v28 = vld [vmem:[#allocation19 + $0xc70] sm:$0xff] }
0x1310   : > { %8614 = vmatpush3.bf16.msra.mxu0 %v8613_v41  ;;  %v5036_v41 = vld [vmem:[#allocation19 + $0x740] sm:$0xff]  ;;  %v5045_v4 = vld [vmem:[#allocation19 + $0x788] sm:$0xff] }
0x1311   : > { %8616 = vmatprep.subr.bf16.mxu0 %v8615_v2  ;;  %v8631_v2 = vpack.c.bf16 %v5187_v38, %v5184_v25  ;;  %v8283_v21 = vpack.c.bf16 %v5048_v6, %v5045_v4  ;;  %v5205_v35 = vld [vmem:[#allocation19 + $0xc88] sm:$0xff]  ;;  %v5256_v25 = vld [vmem:[#allocation19 + $0xe20] sm:$0xff]  ;;  %v5259_v38 = vld [vmem:[#allocation19 + $0xe38] sm:$0xff] }
0x1312   : > { %8258 = vmatpush1.bf16.msra.mxu1 %v8257_v27  ;;  %v8273_v27 = vpack.c.bf16 %v5029_v40, %v5026_v1  ;;  %v5050_v1 = vld [vmem:[#allocation19 + $0x7b0] sm:$0xff]  ;;  %v5053_v40 = vld [vmem:[#allocation19 + $0x7c8] sm:$0xff]  ;;  %v8647_v10 = vpack.c.bf16 %v5259_v38, %v5256_v25  ;;  %v5056_v50 = vld [vmem:[#allocation19 + $0x7e0] sm:$0xff] }
0x1313   : > { %8260 = vmatprep.subr.bf16.mxu1 %v8259_v51  ;;  %v8275_v51 = vpack.c.bf16 %v5036_v41, %v5033_v34  ;;  %v5060_v34 = vld [vmem:[#allocation19 + $0x800] sm:$0xff]  ;;  %v8645_v41 = vpack.c.bf16 %v5205_v35, %v5202_v28  ;;  %v5074_v38 = vld [vmem:[#allocation19 + $0x870] sm:$0xff] }
0x1314   : > { %8618 = vmatpush3.bf16.msra.mxu0 %v8617_v60  ;;  %v8633_v60 = vpack.c.bf16 %v5139_v22, %v5136_v42  ;;  %v8289_v42 = vpack.c.bf16 %v5053_v40, %v5050_v1  ;;  %v5262_v22 = vld [vmem:[#allocation19 + $0xe50] sm:$0xff]  ;;  %v5280_v35 = vld [vmem:[#allocation19 + $0xee0] sm:$0xff]  ;;  %v5081_v1 = vld [vmem:[#allocation19 + $0x8a8] sm:$0xff] }
0x1315   : > { %8620 = vmatprep.subr.bf16.mxu0 %v8619_v16  ;;  %v10226_v16 = vadd.f32 %v10212_v53, %v3907_v33  ;;  %v5208_v33 = vld [vmem:[#allocation19 + $0xca0] sm:$0xff] }
0x1316   : > { %8262 = vmatpush1.bf16.msra.mxu1 %v8261_v56  ;;  %v5193_v56 = vld [vmem:[#allocation19 + $0xc28] sm:$0xff]  ;;  %v5084_v40 = vld [vmem:[#allocation19 + $0x8c0] sm:$0xff] }
0x1317   : > { %8264 = vmatprep.subr.bf16.mxu1 %v8263_v31  ;;  %v5247_v31 = vld [vmem:[#allocation19 + $0xdd8] sm:$0xff]  ;;  %v4798_v8 = vmax.f32 %v10226_v16, 0.0  ;;  %v5216_v16 = vld [vmem:[#allocation19 + $0xce0] sm:$0xff] }
0x1318   : > { %8622 = vmatpush3.bf16.msra.mxu0 %v8621_v3  ;;  %v5041_v3 = vld [vmem:[#allocation19 + $0x768] sm:$0xff]  ;;  %v8639_v53 = vpack.c.bf16 %v5247_v31, %v5244_v20  ;;  %v8295_v20 = vpack.c.bf16 %v5066_v39, %v5063_v17  ;;  %v5062_v31 = vld [vmem:[#allocation19 + $0x810] sm:$0xff] }
0x1319   : > { %8624 = vmatprep.subr.bf16.mxu0 %v8623_v7  ;;  %v8637_v7 = vpack.c.bf16 %v5193_v56, %v5190_v55  ;;  %v8281_v11 = vpack.c.bf16 %v5041_v3, %v5038_v59  ;;  %v5268_v56 = vld [vmem:[#allocation19 + $0xe80] sm:$0xff]  ;;  %v5069_v59 = vld [vmem:[#allocation19 + $0x848] sm:$0xff] }
0x131a   : > { %8266 = vmatpush1.bf16.msra.mxu1 %v8265_v26  ;;  %v5199_v26 = vld [vmem:[#allocation19 + $0xc58] sm:$0xff]  ;;  %v5072_v3 = vld [vmem:[#allocation19 + $0x860] sm:$0xff] }
0x131b   : > { %8268 = vmatprep.subr.bf16.mxu1 %v8267_v30  ;;  %v5253_v30 = vld [vmem:[#allocation19 + $0xe08] sm:$0xff]  ;;  %v8641_v62 = vpack.c.bf16 %v5199_v26, %v5196_v9  ;;  %v5274_v26 = vld [vmem:[#allocation19 + $0xeb0] sm:$0xff] }
0x131c   : > { %8626 = vmatpush3.bf16.msra.mxu0 %v8625_v19  ;;  %v5047_v19 = vld [vmem:[#allocation19 + $0x798] sm:$0xff] }
0x131d   : > { %8628 = vmatprep.subr.bf16.mxu0 %v8627_v63  ;;  %v8643_v63 = vpack.c.bf16 %v5253_v30, %v5250_v12  ;;  %v8299_v12 = vpack.c.bf16 %v5072_v3, %v5069_v59  ;;  %v5068_v30 = vld [vmem:[#allocation19 + $0x840] sm:$0xff]  ;;  %v5099_v59 = vld [vmem:[#allocation19 + $0x938] sm:$0xff]  ;;  %v5102_v3 = vld [vmem:[#allocation19 + $0x950] sm:$0xff] }
0x131e   : > { %8270 = vmatpush1.bf16.msra.mxu1 %v8269_v37  ;;  %v8285_v37 = vpack.c.bf16 %v5047_v19, %v5044_v32  ;;  %v5075_v32 = vld [vmem:[#allocation19 + $0x878] sm:$0xff]  ;;  %v5078_v19 = vld [vmem:[#allocation19 + $0x890] sm:$0xff] }
0x131f   : > { %8272 = vmatprep.subr.bf16.mxu1 %v8271_v29  ;;  %v8287_v29 = vpack.c.bf16 %v5054_v5, %v5051_v23  ;;  %v8303_v25 = vpack.c.bf16 %v5078_v19, %v5075_v32  ;;  %v5111_v32 = vld [vmem:[#allocation19 + $0x998] sm:$0xff]  ;;  %v5114_v19 = vld [vmem:[#allocation19 + $0x9b0] sm:$0xff] }
0x1320   : > { %8630 = vmatpush3.bf16.msra.mxu0 %v8629_v15  ;;  %v5057_v15 = vld [vmem:[#allocation19 + $0x7e8] sm:$0xff] }
0x1321   : > { %8632 = vmatprep.subr.bf16.mxu0 %v8631_v2  ;;  %v5211_v2 = vld [vmem:[#allocation19 + $0xcb8] sm:$0xff]  ;;  %v8291_v13 = vpack.c.bf16 %v5060_v34, %v5057_v15 }
0x1322   : > { %8274 = vmatpush1.bf16.msra.mxu1 %v8273_v27  ;;  %v5265_v27 = vld [vmem:[#allocation19 + $0xe68] sm:$0xff] }
0x1323   : > { %8276 = vmatprep.subr.bf16.mxu1 %v8275_v51  ;;  %v5059_v51 = vld [vmem:[#allocation19 + $0x7f8] sm:$0xff]  ;;  %v8651_v44 = vpack.c.bf16 %v5265_v27, %v5262_v22  ;;  %v8307_v22 = vpack.c.bf16 %v5084_v40, %v5081_v1  ;;  %v5080_v27 = vld [vmem:[#allocation19 + $0x8a0] sm:$0xff]  ;;  %v5122_v40 = vld [vmem:[#allocation19 + $0x9f0] sm:$0xff] }
0x1324   : > { %8634 = vmatpush3.bf16.msra.mxu0 %v8633_v60  ;;  %v8649_v60 = vpack.c.bf16 %v5211_v2, %v5208_v33  ;;  %v8293_v55 = vpack.c.bf16 %v5059_v51, %v5056_v50  ;;  %v5334_v2 = vld [vmem:[#allocation19 + $0x1090] sm:$0xff]  ;;  %v5087_v50 = vld [vmem:[#allocation19 + $0x8d8] sm:$0xff] }
0x1325   : > { %8636 = vmatprep.subr.bf16.mxu0 %v8635_v24  ;;  %v5217_v24 = vld [vmem:[#allocation19 + $0xce8] sm:$0xff]  ;;  %v5090_v51 = vld [vmem:[#allocation19 + $0x8f0] sm:$0xff] }
0x1326   : > { %8278 = vmatpush1.bf16.msra.mxu1 %v8277_v57  ;;  %v5271_v57 = vld [vmem:[#allocation19 + $0xe98] sm:$0xff]  ;;  %v8653_v4 = vpack.c.bf16 %v5217_v24, %v5214_v54  ;;  %v5086_v54 = vld [vmem:[#allocation19 + $0x8d0] sm:$0xff]  ;;  %v5089_v24 = vld [vmem:[#allocation19 + $0x8e8] sm:$0xff] }
0x1327   : > { %6098 = vmatmul.mubr.f32.vlgmr.msra.gmra.mrb[42].mxu0 %v4798_v8  ;;  %8280 = vmatprep.subr.bf16.mxu1 %v8279_v18  ;;  %v5065_v18 = vld [vmem:[#allocation19 + $0x828] sm:$0xff]  ;;  %v8655_v6 = vpack.c.bf16 %v5271_v57, %v5268_v56  ;;  %v5096_v56 = vld [vmem:[#allocation19 + $0x920] sm:$0xff]  ;;  %v8313_v57 = vpack.c.bf16 %v5089_v24, %v5086_v54  ;;  %v5286_v54 = vld [vmem:[#allocation19 + $0xf10] sm:$0xff] }
0x1328   : > { %8638 = vmatpush3.bf16.msra.mxu0 %v8637_v7  ;;  %v5220_v7 = vld [vmem:[#allocation19 + $0xd00] sm:$0xff]  ;;  %v8297_v9 = vpack.c.bf16 %v5065_v18, %v5062_v31  ;;  %v5095_v18 = vld [vmem:[#allocation19 + $0x918] sm:$0xff]  ;;  %v5289_v24 = vld [vmem:[#allocation19 + $0xf28] sm:$0xff] }
0x1329   : > { %8640 = vmatprep.subr.bf16.mxu0 %v8639_v53  ;;  %v5223_v53 = vld [vmem:[#allocation19 + $0xd18] sm:$0xff]  ;;  %v5092_v31 = vld [vmem:[#allocation19 + $0x900] sm:$0xff] }
0x132a   : > { %8282 = vmatpush1.bf16.msra.mxu1 %v8281_v11  ;;  %v5277_v11 = vld [vmem:[#allocation19 + $0xec8] sm:$0xff]  ;;  %v8657_v23 = vpack.c.bf16 %v5223_v53, %v5220_v7  ;;  %v5098_v7 = vld [vmem:[#allocation19 + $0x930] sm:$0xff] }
0x132b   : > { %8284 = vmatprep.subr.bf16.mxu1 %v8283_v21  ;;  %v5071_v21 = vld [vmem:[#allocation19 + $0x858] sm:$0xff]  ;;  %v8659_v5 = vpack.c.bf16 %v5277_v11, %v5274_v26  ;;  %v5101_v53 = vld [vmem:[#allocation19 + $0x948] sm:$0xff]  ;;  %v5108_v26 = vld [vmem:[#allocation19 + $0x980] sm:$0xff] }
0x132c   : > { %8642 = vmatpush3.bf16.msra.mxu0 %v8641_v62  ;;  %v5226_v62 = vld [vmem:[#allocation19 + $0xd30] sm:$0xff]  ;;  %v8301_v28 = vpack.c.bf16 %v5071_v21, %v5068_v30  ;;  %v8321_v11 = vpack.c.bf16 %v5101_v53, %v5098_v7  ;;  %v5104_v30 = vld [vmem:[#allocation19 + $0x960] sm:$0xff]  ;;  %v5107_v21 = vld [vmem:[#allocation19 + $0x978] sm:$0xff] }
0x132d   : > { %8644 = vmatprep.subr.bf16.mxu0 %v8643_v63  ;;  %v5229_v63 = vld [vmem:[#allocation19 + $0xd48] sm:$0xff]  ;;  %v5144_v7 = vld [vmem:[#allocation19 + $0xaa0] sm:$0xff] }
0x132e   : > { %8286 = vmatpush1.bf16.msra.mxu1 %v8285_v37  ;;  %v5283_v37 = vld [vmem:[#allocation19 + $0xef8] sm:$0xff]  ;;  %v8661_v15 = vpack.c.bf16 %v5229_v63, %v5226_v62  ;;  %v5110_v62 = vld [vmem:[#allocation19 + $0x990] sm:$0xff]  ;;  %v5113_v63 = vld [vmem:[#allocation19 + $0x9a8] sm:$0xff] }
0x132f   : > { %8288 = vmatprep.subr.bf16.mxu1 %v8287_v29  ;;  %v5077_v29 = vld [vmem:[#allocation19 + $0x888] sm:$0xff]  ;;  %v8663_v34 = vpack.c.bf16 %v5283_v37, %v5280_v35  ;;  %v5119_v35 = vld [vmem:[#allocation19 + $0x9d8] sm:$0xff] }
0x1330   : > { %8646 = vmatpush3.bf16.msra.mxu0 %v8645_v41  ;;  %v5232_v41 = vld [vmem:[#allocation19 + $0xd60] sm:$0xff]  ;;  %v8305_v33 = vpack.c.bf16 %v5077_v29, %v5074_v38  ;;  %v5123_v37 = vld [vmem:[#allocation19 + $0x9f8] sm:$0xff] }
0x1331   : > { %8648 = vmatprep.subr.bf16.mxu0 %v8647_v10  ;;  %v5235_v10 = vld [vmem:[#allocation19 + $0xd78] sm:$0xff] }
0x1332   : > { %8290 = vmatpush1.bf16.msra.mxu1 %v8289_v42  ;;  %v5337_v42 = vld [vmem:[#allocation19 + $0x10a8] sm:$0xff]  ;;  %v8665_v17 = vpack.c.bf16 %v5235_v10, %v5232_v41  ;;  %v10235_v29 = vld [vmem:[#allocation17 + $0x8] sm:$0xf]  ;;  %v5132_v41 = vld [vmem:[#allocation19 + $0xa40] sm:$0xff] }
0x1333   : > { %8292 = vmatprep.subr.bf16.mxu1 %v8291_v13  ;;  %v5083_v13 = vld [vmem:[#allocation19 + $0x8b8] sm:$0xff]  ;;  %v8667_v39 = vpack.c.bf16 %v5337_v42, %v5334_v2  ;;  %v3915_v10 = vrot.slane %v10235_v29, %v9891_v48  ;;  %v3927_v42 = vrot.slane %v10235_v29, %v3894_v61  ;;  %v5340_v61 = vld [vmem:[#allocation19 + $0x10c0] sm:$0xff] }
0x1334   : > { %8650 = vmatpush3.bf16.msra.mxu0 %v8649_v60  ;;  %v8309_v60 = vpack.c.bf16 %v5083_v13, %v5080_v27  ;;  %v5128_v27 = vld [vmem:[#allocation19 + $0xa20] sm:$0xff]  ;;  %v5131_v13 = vld [vmem:[#allocation19 + $0xa38] sm:$0xff] }
0x1335   : > { %8652 = vmatprep.subr.bf16.mxu0 %v8651_v44  ;;  %v8311_v44 = vpack.c.bf16 %v5090_v51, %v5087_v50  ;;  %v5135_v51 = vld [vmem:[#allocation19 + $0xa58] sm:$0xff]  ;;  %v8341_v45 = vpack.c.bf16 %v5131_v13, %v5128_v27  ;;  %v5152_v13 = vld [vmem:[#allocation19 + $0xae0] sm:$0xff] }
0x1336   : > { %8294 = vmatpush1.bf16.msra.mxu1 %v8293_v55  ;;  %v5093_v55 = vld [vmem:[#allocation19 + $0x908] sm:$0xff] }
0x1337   : > { %8296 = vmatprep.subr.bf16.mxu1 %v8295_v20  ;;  %v8315_v20 = vpack.c.bf16 %v5096_v56, %v5093_v55 }
0x1338   : > { %8654 = vmatpush3.bf16.msra.mxu0 %v8653_v4  ;;  %v8317_v4 = vpack.c.bf16 %v5095_v18, %v5092_v31  ;;  %v5134_v18 = vld [vmem:[#allocation19 + $0xa50] sm:$0xff] }
0x1339   : > { %8656 = vmatprep.subr.bf16.mxu0 %v8655_v6  ;;  %v8319_v6 = vpack.c.bf16 %v5102_v3, %v5099_v59  ;;  %v5137_v59 = vld [vmem:[#allocation19 + $0xa68] sm:$0xff] }
0x133a   : > { %8298 = vmatpush1.bf16.msra.mxu1 %v8297_v9  ;;  %v5105_v9 = vld [vmem:[#allocation19 + $0x968] sm:$0xff] }
0x133b   : > { %8300 = vmatprep.subr.bf16.mxu1 %v8299_v12  ;;  %v8323_v12 = vpack.c.bf16 %v5108_v26, %v5105_v9  ;;  %v5292_v26 = vld [vmem:[#allocation19 + $0xf40] sm:$0xff] }
0x133c   : > { %8658 = vmatpush3.bf16.msra.mxu0 %v8657_v23  ;;  %v8325_v23 = vpack.c.bf16 %v5107_v21, %v5104_v30  ;;  %v8345_v30 = vpack.c.bf16 %v5137_v59, %v5134_v18  ;;  %v5346_v21 = vld [vmem:[#allocation19 + $0x10f0] sm:$0xff]  ;;  %v5161_v59 = vld [vmem:[#allocation19 + $0xb28] sm:$0xff] }
0x133d   : > { %8660 = vmatprep.subr.bf16.mxu0 %v8659_v5  ;;  %v8327_v5 = vpack.c.bf16 %v5114_v19, %v5111_v32  ;;  %v5349_v32 = vld [vmem:[#allocation19 + $0x1108] sm:$0xff]  ;;  %v5158_v18 = vld [vmem:[#allocation19 + $0xb10] sm:$0xff] }
0x133e   : > { %8302 = vmatpush1.bf16.msra.mxu1 %v8301_v28  ;;  %v5117_v28 = vld [vmem:[#allocation19 + $0x9c8] sm:$0xff] }
0x133f   : > { %8304 = vmatprep.subr.bf16.mxu1 %v8303_v25  ;;  %v8331_v58 = vpack.c.bf16 %v5120_v52, %v5117_v28  ;;  %v5126_v25 = vld [vmem:[#allocation19 + $0xa10] sm:$0xff]  ;;  %v8675_v52 = vpack.c.bf16 %v5349_v32, %v5346_v21  ;;  %v5373_v32 = vld [vmem:[#allocation19 + $0x11c8] sm:$0xff] }
0x1340   : > { %8662 = vmatpush3.bf16.msra.mxu0 %v8661_v15  ;;  %v8335_v1 = vpack.c.bf16 %v5126_v25, %v5123_v37  ;;  %v5125_v15 = vld [vmem:[#allocation19 + $0xa08] sm:$0xff]  ;;  %v5150_v28 = vld [vmem:[#allocation19 + $0xad0] sm:$0xff]  ;;  %v5355_v37 = vld [vmem:[#allocation19 + $0x1138] sm:$0xff] }
0x1341   : > { %8664 = vmatprep.subr.bf16.mxu0 %v8663_v34  ;;  %v5129_v34 = vld [vmem:[#allocation19 + $0xa28] sm:$0xff]  ;;  %v8337_v2 = vpack.c.bf16 %v5125_v15, %v5122_v40  ;;  %v5370_v21 = vld [vmem:[#allocation19 + $0x11b0] sm:$0xff] }
0x1342   : > { %8306 = vmatpush1.bf16.msra.mxu1 %v8305_v33  ;;  %v3919_v33 = vrot.slane %v10235_v29, %v9885_v46  ;;  %v5153_v15 = vld [vmem:[#allocation19 + $0xae8] sm:$0xff] }
0x1343   : > { %8308 = vmatprep.subr.bf16.mxu1 %v8307_v22  ;;  %v8339_v22 = vpack.c.bf16 %v5132_v41, %v5129_v34  ;;  %v5156_v34 = vld [vmem:[#allocation19 + $0xb00] sm:$0xff] }
0x1344   : > { %8666 = vmatpush3.bf16.msra.mxu0 %v8665_v17  ;;  %v5138_v17 = vld [vmem:[#allocation19 + $0xa70] sm:$0xff]  ;;  %v8355_v27 = vpack.c.bf16 %v5156_v34, %v5153_v15  ;;  %v5177_v15 = vld [vmem:[#allocation19 + $0xba8] sm:$0xff]  ;;  %v5180_v34 = vld [vmem:[#allocation19 + $0xbc0] sm:$0xff] }
0x1345   : > { %8668 = vmatprep.subr.bf16.mxu0 %v8667_v39  ;;  %v8343_v31 = vpack.c.bf16 %v5138_v17, %v5135_v51  ;;  %v5159_v17 = vld [vmem:[#allocation19 + $0xb18] sm:$0xff] }
0x1346   : > { %8310 = vmatpush1.bf16.msra.mxu1 %v8309_v60 }
0x1347   : > { %8312 = vmatprep.subr.bf16.mxu1 %v8311_v44 }
0x134a   : > { %8314 = vmatpush1.bf16.msra.mxu1 %v8313_v57  ;;  %v5343_v57 = vld [vmem:[#allocation19 + $0x10d8] sm:$0xff] }
0x134b   : > { %8316 = vmatprep.subr.bf16.mxu1 %v8315_v20  ;;  %v8671_v9 = vpack.c.bf16 %v5343_v57, %v5340_v61  ;;  %v5364_v61 = vld [vmem:[#allocation19 + $0x1180] sm:$0xff]  ;;  %v5367_v57 = vld [vmem:[#allocation19 + $0x1198] sm:$0xff] }
0x134d   : > { %5604 = vmatmul.mubr.f32.vlgmr.msra.gmra.mrb[20].mxu1 %v4796_v49  ;;  %v8329_v49 = vpack.c.bf16 %v5113_v63, %v5110_v62  ;;  %v5147_v63 = vld [vmem:[#allocation19 + $0xab8] sm:$0xff] }
0x134e   : > { %8318 = vmatpush1.bf16.msra.mxu1 %v8317_v4  ;;  %5674 = vmatprep.mubr.f32.mxu1 %v4799_v14  ;;  %v5116_v14 = vld [vmem:[#allocation19 + $0x9c0] sm:$0xff]  ;;  %v8669_v4 = vpack.c.bf16 %v5289_v24, %v5286_v54  ;;  %v8351_v25 = vpack.c.bf16 %v5150_v28, %v5147_v63  ;;  %v5310_v24 = vld [vmem:[#allocation19 + $0xfd0] sm:$0xff]  ;;  %v5171_v63 = vld [vmem:[#allocation19 + $0xb78] sm:$0xff] }
0x134f   : > { %8320 = vmatprep.subr.bf16.mxu1 %v8319_v6  ;;  %v8333_v38 = vpack.c.bf16 %v5119_v35, %v5116_v14  ;;  %v5141_v6 = vld [vmem:[#allocation19 + $0xa88] sm:$0xff]  ;;  %v5352_v35 = vld [vmem:[#allocation19 + $0x1120] sm:$0xff]  ;;  %v5174_v28 = vld [vmem:[#allocation19 + $0xb90] sm:$0xff] }
0x1350   : > { %v8347_v19 = vpack.c.bf16 %v5144_v7, %v5141_v6  ;;  %v8679_v41 = vpack.c.bf16 %v5355_v37, %v5352_v35  ;;  %v5165_v6 = vld [vmem:[#allocation19 + $0xb48] sm:$0xff]  ;;  %v5168_v7 = vld [vmem:[#allocation19 + $0xb60] sm:$0xff]  ;;  %v5379_v37 = vld [vmem:[#allocation19 + $0x11f8] sm:$0xff] }
0x1351   : > { %v5376_v35 = vld [vmem:[#allocation19 + $0x11e0] sm:$0xff] }
0x1352   : > { %8322 = vmatpush1.bf16.msra.mxu1 %v8321_v11  ;;  %v5295_v11 = vld [vmem:[#allocation19 + $0xf58] sm:$0xff] }
0x1353   : > { %8324 = vmatprep.subr.bf16.mxu1 %v8323_v12  ;;  %v8673_v62 = vpack.c.bf16 %v5295_v11, %v5292_v26  ;;  %v5316_v26 = vld [vmem:[#allocation19 + $0x1000] sm:$0xff]  ;;  %v5319_v11 = vld [vmem:[#allocation19 + $0x1018] sm:$0xff] }
0x1356   : > { %8326 = vmatpush1.bf16.msra.mxu1 %v8325_v23  ;;  %v5140_v23 = vld [vmem:[#allocation19 + $0xa80] sm:$0xff] }
0x1357   : > { %8328 = vmatprep.subr.bf16.mxu1 %v8327_v5  ;;  %v5143_v5 = vld [vmem:[#allocation19 + $0xa98] sm:$0xff] }
0x1358   : > { %v8349_v14 = vpack.c.bf16 %v5143_v5, %v5140_v23  ;;  %v5164_v23 = vld [vmem:[#allocation19 + $0xb40] sm:$0xff]  ;;  %v5167_v5 = vld [vmem:[#allocation19 + $0xb58] sm:$0xff] }
0x135a   : > { %8330 = vmatpush1.bf16.msra.mxu1 %v8329_v49  ;;  %v5298_v49 = vld [vmem:[#allocation19 + $0xf70] sm:$0xff] }
0x135b   : > { %8332 = vmatprep.subr.bf16.mxu1 %v8331_v58  ;;  %v5301_v58 = vld [vmem:[#allocation19 + $0xf88] sm:$0xff] }
0x135c   : > { %v8677_v40 = vpack.c.bf16 %v5301_v58, %v5298_v49  ;;  %v5322_v49 = vld [vmem:[#allocation19 + $0x1030] sm:$0xff]  ;;  %v5325_v58 = vld [vmem:[#allocation19 + $0x1048] sm:$0xff] }
0x135e   : > { %8334 = vmatpush1.bf16.msra.mxu1 %v8333_v38  ;;  %v5146_v38 = vld [vmem:[#allocation19 + $0xab0] sm:$0xff] }
0x135f   : > { %8336 = vmatprep.subr.bf16.mxu1 %v8335_v1  ;;  %v5149_v1 = vld [vmem:[#allocation19 + $0xac8] sm:$0xff] }
0x1360   : > { %v4645_v50 = vpop.f32.mrb[18].mxu1 }
0x1361   : > { %v10244_v39 = vadd.f32 %v4645_v50, %v3915_v10  ;;  %v10246_v60 = vpop.f32.mrb[34].mxu0  ;;  %v4647_v44 = vpop.f32.mrb[19].mxu1  ;;  %v5304_v10 = vld [vmem:[#allocation19 + $0xfa0] sm:$0xff]  ;;  %v5155_v50 = vld [vmem:[#allocation19 + $0xaf8] sm:$0xff] }
0x1362   : > { %v10248_v55 = vadd.f32 %v4647_v44, %v3919_v33  ;;  %v4789_v56 = vpop.f32.mrb[35].mxu0  ;;  %8338 = vmatpush1.bf16.msra.mxu1 %v8337_v2  ;;  %v5307_v33 = vld [vmem:[#allocation19 + $0xfb8] sm:$0xff]  ;;  %v8353_v2 = vpack.c.bf16 %v5149_v1, %v5146_v38  ;;  %v5162_v44 = vld [vmem:[#allocation19 + $0xb30] sm:$0xff]  ;;  %v5173_v1 = vld [vmem:[#allocation19 + $0xb88] sm:$0xff] }
0x1363   : > { %v10250_v20 = vadd.f32 %v4789_v56, %v3927_v42  ;;  %8340 = vmatprep.subr.bf16.mxu1 %v8339_v22  ;;  %v4800_v53 = vmax.f32 %v10244_v39, 0.0  ;;  %v5358_v42 = vld [vmem:[#allocation19 + $0x1150] sm:$0xff]  ;;  %v5361_v22 = vld [vmem:[#allocation19 + $0x1168] sm:$0xff]  ;;  %v8681_v51 = vpack.c.bf16 %v5307_v33, %v5304_v10  ;;  %v8695_v10 = vpack.c.bf16 %v5379_v37, %v5376_v35  ;;  %v5328_v33 = vld [vmem:[#allocation19 + $0x1060] sm:$0xff] }
0x1364   : > { %v4801_v3 = vmax.f32 %v10248_v55, 0.0  ;;  %v8683_v54 = vpack.c.bf16 %v5361_v22, %v5358_v42  ;;  %v5313_v56 = vld [vmem:[#allocation19 + $0xfe8] sm:$0xff]  ;;  %v5170_v38 = vld [vmem:[#allocation19 + $0xb70] sm:$0xff]  ;;  %v8371_v22 = vpack.c.bf16 %v5180_v34, %v5177_v15  ;;  %v5312_v39 = vld [vmem:[#allocation19 + $0xfe0] sm:$0xff] }
0x1365   : > { %v4803_v12 = vmax.f32 %v10250_v20, 0.0  ;;  %v8369_v42 = vpack.c.bf16 %v5173_v1, %v5170_v38  ;;  %v5206_v35 = vld [vmem:[#allocation19 + $0xc90] sm:$0xff]  ;;  %v5209_v37 = vld [vmem:[#allocation19 + $0xca8] sm:$0xff]  ;;  %v5215_v38 = vld [vmem:[#allocation19 + $0xcd8] sm:$0xff] }
0x1366   : > { %8342 = vmatpush1.bf16.msra.mxu1 %v8341_v45  ;;  %6167 = vmatprep.mubr.f32.mxu0 %v4801_v3  ;;  %v8357_v45 = vpack.c.bf16 %v5155_v50, %v5152_v13  ;;  %v5179_v13 = vld [vmem:[#allocation19 + $0xbb8] sm:$0xff] }
0x1367   : > { %6168 = vmatmul.mubr.f32.vlgmr.msra.gmra.mrb[44].mxu0 %v4800_v53  ;;  %8344 = vmatprep.subr.bf16.mxu1 %v8343_v31  ;;  %v8359_v31 = vpack.c.bf16 %v5162_v44, %v5159_v17  ;;  %v5186_v17 = vld [vmem:[#allocation19 + $0xbf0] sm:$0xff]  ;;  %v5219_v1 = vld [vmem:[#allocation19 + $0xcf8] sm:$0xff] }
0x1368   : > { %8670 = vmatpush3.bf16.msra.mxu0 %v8669_v4  ;;  %6237 = vmatprep.mubr.f32.mxu0 %v4803_v12  ;;  %v8685_v4 = vpack.c.bf16 %v5313_v56, %v5310_v24 }
0x1369   : > { %8672 = vmatprep.subr.bf16.mxu0 %v8671_v9  ;;  %v8687_v9 = vpack.c.bf16 %v5367_v57, %v5364_v61  ;;  %v5182_v61 = vld [vmem:[#allocation19 + $0xbd0] sm:$0xff]  ;;  %v5185_v57 = vld [vmem:[#allocation19 + $0xbe8] sm:$0xff] }
0x136a   : > { %8346 = vmatpush1.bf16.msra.mxu1 %v8345_v30  ;;  %v8361_v30 = vpack.c.bf16 %v5161_v59, %v5158_v18  ;;  %v5192_v18 = vld [vmem:[#allocation19 + $0xc20] sm:$0xff] }
0x136b   : > { %8348 = vmatprep.subr.bf16.mxu1 %v8347_v19  ;;  %v8363_v19 = vpack.c.bf16 %v5168_v7, %v5165_v6  ;;  %v5188_v6 = vld [vmem:[#allocation19 + $0xc00] sm:$0xff]  ;;  %v5191_v7 = vld [vmem:[#allocation19 + $0xc18] sm:$0xff] }
0x136c   : > { %8674 = vmatpush3.bf16.msra.mxu0 %v8673_v62  ;;  %v8689_v62 = vpack.c.bf16 %v5319_v11, %v5316_v26  ;;  %v5198_v26 = vld [vmem:[#allocation19 + $0xc50] sm:$0xff]  ;;  %v8381_v11 = vpack.c.bf16 %v5191_v7, %v5188_v6  ;;  %v5240_v6 = vld [vmem:[#allocation19 + $0xda0] sm:$0xff] }
0x136d   : > { %8676 = vmatprep.subr.bf16.mxu0 %v8675_v52  ;;  %v8691_v52 = vpack.c.bf16 %v5373_v32, %v5370_v21  ;;  %v5194_v21 = vld [vmem:[#allocation19 + $0xc30] sm:$0xff]  ;;  %v5197_v32 = vld [vmem:[#allocation19 + $0xc48] sm:$0xff] }
0x136e   : > { %8350 = vmatpush1.bf16.msra.mxu1 %v8349_v14  ;;  %v8365_v14 = vpack.c.bf16 %v5167_v5, %v5164_v23  ;;  %v5204_v23 = vld [vmem:[#allocation19 + $0xc80] sm:$0xff]  ;;  %v8385_v5 = vpack.c.bf16 %v5197_v32, %v5194_v21  ;;  %v5246_v21 = vld [vmem:[#allocation19 + $0xdd0] sm:$0xff] }
0x136f   : > { %8352 = vmatprep.subr.bf16.mxu1 %v8351_v25  ;;  %v8367_v25 = vpack.c.bf16 %v5174_v28, %v5171_v63  ;;  %v5200_v63 = vld [vmem:[#allocation19 + $0xc60] sm:$0xff]  ;;  %v5203_v28 = vld [vmem:[#allocation19 + $0xc78] sm:$0xff] }
0x1370   : > { %8678 = vmatpush3.bf16.msra.mxu0 %v8677_v40  ;;  %v8693_v40 = vpack.c.bf16 %v5325_v58, %v5322_v49  ;;  %v5210_v49 = vld [vmem:[#allocation19 + $0xcb0] sm:$0xff]  ;;  %v8389_v58 = vpack.c.bf16 %v5203_v28, %v5200_v63 }
0x1371   : > { %8680 = vmatprep.subr.bf16.mxu0 %v8679_v41  ;;  %v3923_v41 = vrot.slane %v10235_v29, %v9888_v47 }
0x1372   : > { %8354 = vmatpush1.bf16.msra.mxu1 %v8353_v2  ;;  %v5331_v2 = vld [vmem:[#allocation19 + $0x1078] sm:$0xff] }
0x1373   : > { %8356 = vmatprep.subr.bf16.mxu1 %v8355_v27  ;;  %v5176_v27 = vld [vmem:[#allocation19 + $0xba0] sm:$0xff]  ;;  %v8697_v50 = vpack.c.bf16 %v5331_v2, %v5328_v33  ;;  %v10264_v44 = vadd.f32 %v10246_v60, %v3923_v41  ;;  %v5218_v41 = vld [vmem:[#allocation19 + $0xcf0] sm:$0xff]  ;;  %v5225_v2 = vld [vmem:[#allocation19 + $0xd28] sm:$0xff] }
0x1374   : > { %8682 = vmatpush3.bf16.msra.mxu0 %v8681_v51  ;;  %v5183_v51 = vld [vmem:[#allocation19 + $0xbd8] sm:$0xff]  ;;  %v8373_v24 = vpack.c.bf16 %v5179_v13, %v5176_v27  ;;  %v10275_v33 = vld [vmem:[#allocation20] sm:$0x7] }
0x1375   : > { %8684 = vmatprep.subr.bf16.mxu0 %v8683_v54  ;;  %v4802_v59 = vmax.f32 %v10264_v44, 0.0  ;;  %v5393_v27 = vrot.slane %v10275_v33, %v9888_v47  ;;  %v5389_v44 = vrot.slane %v10275_v33, %v9885_v46 }
0x1376   : > { %8358 = vmatpush1.bf16.msra.mxu1 %v8357_v45  ;;  %v8375_v45 = vpack.c.bf16 %v5186_v17, %v5183_v51  ;;  %v5227_v51 = vld [vmem:[#allocation19 + $0xd38] sm:$0xff] }
0x1377   : > { %8360 = vmatprep.subr.bf16.mxu1 %v8359_v31  ;;  %v5189_v31 = vld [vmem:[#allocation19 + $0xc08] sm:$0xff]  ;;  %v5231_v17 = vld [vmem:[#allocation19 + $0xd58] sm:$0xff] }
0x1378   : > { %8686 = vmatpush3.bf16.msra.mxu0 %v8685_v4  ;;  %v8377_v4 = vpack.c.bf16 %v5185_v57, %v5182_v61  ;;  %v8379_v60 = vpack.c.bf16 %v5192_v18, %v5189_v31  ;;  %v5230_v18 = vld [vmem:[#allocation19 + $0xd50] sm:$0xff] }
0x1379   : > { %8688 = vmatprep.subr.bf16.mxu0 %v8687_v9  ;;  %v5195_v9 = vld [vmem:[#allocation19 + $0xc38] sm:$0xff] }
0x137a   : > { %8362 = vmatpush1.bf16.msra.mxu1 %v8361_v30  ;;  %v8383_v30 = vpack.c.bf16 %v5198_v26, %v5195_v9  ;;  %v5236_v26 = vld [vmem:[#allocation19 + $0xd80] sm:$0xff] }
0x137b   : > { %8364 = vmatprep.subr.bf16.mxu1 %v8363_v19  ;;  %v5201_v19 = vld [vmem:[#allocation19 + $0xc68] sm:$0xff] }
0x137c   : > { %8690 = vmatpush3.bf16.msra.mxu0 %v8689_v62  ;;  %v8387_v62 = vpack.c.bf16 %v5204_v23, %v5201_v19  ;;  %v5242_v19 = vld [vmem:[#allocation19 + $0xdb0] sm:$0xff]  ;;  %v5245_v23 = vld [vmem:[#allocation19 + $0xdc8] sm:$0xff] }
0x137d   : > { %8692 = vmatprep.subr.bf16.mxu0 %v8691_v52  ;;  %v5207_v52 = vld [vmem:[#allocation19 + $0xc98] sm:$0xff]  ;;  %v8417_v63 = vpack.c.bf16 %v5245_v23, %v5242_v19  ;;  %v5300_v19 = vld [vmem:[#allocation19 + $0xf80] sm:$0xff] }
0x137e   : > { %8366 = vmatpush1.bf16.msra.mxu1 %v8365_v14  ;;  %v8391_v14 = vpack.c.bf16 %v5210_v49, %v5207_v52  ;;  %v5248_v52 = vld [vmem:[#allocation19 + $0xde0] sm:$0xff]  ;;  %v5251_v49 = vld [vmem:[#allocation19 + $0xdf8] sm:$0xff] }
0x137f   : > { %8368 = vmatprep.subr.bf16.mxu1 %v8367_v25  ;;  %v5213_v25 = vld [vmem:[#allocation19 + $0xcc8] sm:$0xff] }
0x1380   : > { %8694 = vmatpush3.bf16.msra.mxu0 %v8693_v40  ;;  %v8395_v55 = vpack.c.bf16 %v5216_v16, %v5213_v25  ;;  %v5222_v40 = vld [vmem:[#allocation19 + $0xd10] sm:$0xff]  ;;  %v5257_v16 = vld [vmem:[#allocation19 + $0xe28] sm:$0xff] }
0x1381   : > { %v6647_v54 = vpop.f32.mrb[36].mxu0  ;;  %8696 = vmatprep.subr.bf16.mxu0 %v8695_v10  ;;  %v8399_v34 = vpack.c.bf16 %v5222_v40, %v5219_v1  ;;  %v5221_v10 = vld [vmem:[#allocation19 + $0xd08] sm:$0xff]  ;;  %v5254_v25 = vld [vmem:[#allocation19 + $0xe10] sm:$0xff]  ;;  %v5260_v1 = vld [vmem:[#allocation19 + $0xe40] sm:$0xff] }
0x1382   : > { %v6648_v29 = vpop.f32.mrb[37].mxu0  ;;  %8370 = vmatpush1.bf16.msra.mxu1 %v8369_v42  ;;  %v5228_v42 = vld [vmem:[#allocation19 + $0xd40] sm:$0xff]  ;;  %v5263_v40 = vld [vmem:[#allocation19 + $0xe58] sm:$0xff] }
0x1383   : > { %v10266_v56 = vadd.f32 %v6648_v29, %v6647_v54  ;;  %8372 = vmatprep.subr.bf16.mxu1 %v8371_v22  ;;  %v8401_v22 = vpack.c.bf16 %v5221_v10, %v5218_v41  ;;  %v8403_v13 = vpack.c.bf16 %v5228_v42, %v5225_v2  ;;  %v5234_v54 = vld [vmem:[#allocation19 + $0xd70] sm:$0xff]  ;;  %v8429_v41 = vpack.c.bf16 %v5263_v40, %v5260_v1  ;;  %v5269_v42 = vld [vmem:[#allocation19 + $0xe88] sm:$0xff] }
0x1384   : > { %8698 = vmatpush3.bf16.msra.mxu0 %v8697_v50  ;;  %v5224_v50 = vld [vmem:[#allocation19 + $0xd20] sm:$0xff]  ;;  %v8407_v31 = vpack.c.bf16 %v5234_v54, %v5231_v17  ;;  %v5266_v2 = vld [vmem:[#allocation19 + $0xe70] sm:$0xff]  ;;  %v5275_v17 = vld [vmem:[#allocation19 + $0xeb8] sm:$0xff] }
0x1385   : > { %v5890_v61 = vadd.f32 %v10266_v56, %v5393_v27  ;;  %v5276_v27 = vld [vmem:[#allocation19 + $0xec0] sm:$0xff]  ;;  %v5279_v54 = vld [vmem:[#allocation19 + $0xed8] sm:$0xff]  ;;  %v5314_v40 = vld [vmem:[#allocation19 + $0xff0] sm:$0xff] }
0x1386   : > { %8374 = vmatpush1.bf16.msra.mxu1 %v8373_v24 }
0x1387   : > { %6238 = vmatmul.mubr.f32.vlgmr.msra.gmra.mrb[46].mxu0 %v4802_v59  ;;  %8376 = vmatprep.subr.bf16.mxu1 %v8375_v45  ;;  %v8405_v45 = vpack.c.bf16 %v5227_v51, %v5224_v50  ;;  %v5272_v51 = vld [vmem:[#allocation19 + $0xea0] sm:$0xff] }
0x138a   : > { %8378 = vmatpush1.bf16.msra.mxu1 %v8377_v4  ;;  %v5233_v4 = vld [vmem:[#allocation19 + $0xd68] sm:$0xff] }
0x138b   : > { %8380 = vmatprep.subr.bf16.mxu1 %v8379_v60  ;;  %v5237_v60 = vld [vmem:[#allocation19 + $0xd88] sm:$0xff]  ;;  %v8409_v7 = vpack.c.bf16 %v5233_v4, %v5230_v18  ;;  %v5288_v18 = vld [vmem:[#allocation19 + $0xf20] sm:$0xff] }
0x138c   : > { %v8411_v9 = vpack.c.bf16 %v5240_v6, %v5237_v60  ;;  %v5284_v6 = vld [vmem:[#allocation19 + $0xf00] sm:$0xff] }
0x138d   : > { %5675 = vmatmul.mubr.f32.vlgmr.msra.gmra.mrb[20].mxu1 %v4798_v8  ;;  %v8393_v8 = vpack.c.bf16 %v5209_v37, %v5206_v35  ;;  %v8421_v35 = vpack.c.bf16 %v5251_v49, %v5248_v52  ;;  %v5306_v52 = vld [vmem:[#allocation19 + $0xfb0] sm:$0xff] }
0x138e   : > { %8382 = vmatpush1.bf16.msra.mxu1 %v8381_v11  ;;  %5745 = vmatprep.mubr.f32.mxu1 %v4801_v3  ;;  %v5212_v3 = vld [vmem:[#allocation19 + $0xcc0] sm:$0xff]  ;;  %v5239_v11 = vld [vmem:[#allocation19 + $0xd98] sm:$0xff] }
0x138f   : > { %8384 = vmatprep.subr.bf16.mxu1 %v8383_v30  ;;  %v8397_v15 = vpack.c.bf16 %v5215_v38, %v5212_v3  ;;  %v5243_v30 = vld [vmem:[#allocation19 + $0xdb8] sm:$0xff]  ;;  %v8413_v32 = vpack.c.bf16 %v5239_v11, %v5236_v26  ;;  %v8425_v3 = vpack.c.bf16 %v5257_v16, %v5254_v25  ;;  %v5294_v26 = vld [vmem:[#allocation19 + $0xf50] sm:$0xff] }
0x1390   : > { %v8415_v56 = vpack.c.bf16 %v5246_v21, %v5243_v30  ;;  %v5290_v21 = vld [vmem:[#allocation19 + $0xf30] sm:$0xff]  ;;  %v5311_v25 = vld [vmem:[#allocation19 + $0xfd8] sm:$0xff] }
0x1391   : > { %v5315_v16 = vld [vmem:[#allocation19 + $0xff8] sm:$0xff] }
0x1392   : > { %8386 = vmatpush1.bf16.msra.mxu1 %v8385_v5  ;;  %v5249_v5 = vld [vmem:[#allocation19 + $0xde8] sm:$0xff] }
0x1393   : > { %8388 = vmatprep.subr.bf16.mxu1 %v8387_v62  ;;  %v5252_v62 = vld [vmem:[#allocation19 + $0xe00] sm:$0xff] }
0x1394   : > { %v8419_v28 = vpack.c.bf16 %v5252_v62, %v5249_v5  ;;  %v5296_v62 = vld [vmem:[#allocation19 + $0xf60] sm:$0xff] }
0x1396   : > { %8390 = vmatpush1.bf16.msra.mxu1 %v8389_v58  ;;  %v5255_v58 = vld [vmem:[#allocation19 + $0xe18] sm:$0xff] }
0x1397   : > { %8392 = vmatprep.subr.bf16.mxu1 %v8391_v14  ;;  %v5258_v14 = vld [vmem:[#allocation19 + $0xe30] sm:$0xff] }
0x1398   : > { %v8423_v37 = vpack.c.bf16 %v5258_v14, %v5255_v58  ;;  %v5302_v14 = vld [vmem:[#allocation19 + $0xf90] sm:$0xff] }
0x139a   : > { %8394 = vmatpush1.bf16.msra.mxu1 %v8393_v8  ;;  %v5261_v8 = vld [vmem:[#allocation19 + $0xe48] sm:$0xff] }
0x139b   : > { %8396 = vmatprep.subr.bf16.mxu1 %v8395_v55  ;;  %v5264_v55 = vld [vmem:[#allocation19 + $0xe60] sm:$0xff] }
0x139c   : > { %v8427_v38 = vpack.c.bf16 %v5264_v55, %v5261_v8  ;;  %v5318_v8 = vld [vmem:[#allocation19 + $0x1010] sm:$0xff] }
0x139d   : > { %v8463_v1 = vpack.c.bf16 %v5318_v8, %v5315_v16 }
0x139e   : > { %8398 = vmatpush1.bf16.msra.mxu1 %v8397_v15  ;;  %v5267_v15 = vld [vmem:[#allocation19 + $0xe78] sm:$0xff] }
0x139f   : > { %8400 = vmatprep.subr.bf16.mxu1 %v8399_v34  ;;  %v5270_v34 = vld [vmem:[#allocation19 + $0xe90] sm:$0xff] }
0x13a0   : > { %v8431_v10 = vpack.c.bf16 %v5270_v34, %v5267_v15  ;;  %v5317_v15 = vld [vmem:[#allocation19 + $0x1008] sm:$0xff] }
0x13a1   : > { %v6682_v29 = vpop.f32.mrb[38].mxu0 }
0x13a2   : > { %v6683_v24 = vpop.f32.mrb[39].mxu0  ;;  %8402 = vmatpush1.bf16.msra.mxu1 %v8401_v22  ;;  %v5273_v22 = vld [vmem:[#allocation19 + $0xea8] sm:$0xff] }
0x13a3   : > { %v6684_v57 = vadd.f32 %v6683_v24, %v6682_v29  ;;  %8404 = vmatprep.subr.bf16.mxu1 %v8403_v13  ;;  %v8433_v13 = vpack.c.bf16 %v5269_v42, %v5266_v2  ;;  %v8435_v50 = vpack.c.bf16 %v5276_v27, %v5273_v22  ;;  %v5282_v29 = vld [vmem:[#allocation19 + $0xef0] sm:$0xff]  ;;  %v8437_v24 = vpack.c.bf16 %v5275_v17, %v5272_v51  ;;  %v5320_v27 = vld [vmem:[#allocation19 + $0x1020] sm:$0xff] }
0x13a4   : > { %v8465_v42 = vpack.c.bf16 %v5317_v15, %v5314_v40  ;;  %v5330_v51 = vld [vmem:[#allocation19 + $0x1070] sm:$0xff]  ;;  %v5372_v40 = vld [vmem:[#allocation19 + $0x11c0] sm:$0xff] }
0x13a5   : > { %v10280_v47 = vadd.f32 %v6684_v57, %v5890_v61  ;;  %v5278_v61 = vld [vmem:[#allocation19 + $0xed0] sm:$0xff]  ;;  %v5281_v57 = vld [vmem:[#allocation19 + $0xee8] sm:$0xff] }
0x13a6   : > { %8406 = vmatpush1.bf16.msra.mxu1 %v8405_v45  ;;  %v8439_v45 = vpack.c.bf16 %v5282_v29, %v5279_v54  ;;  %v8441_v4 = vpack.c.bf16 %v5281_v57, %v5278_v61  ;;  %v5326_v29 = vld [vmem:[#allocation19 + $0x1050] sm:$0xff]  ;;  %v5336_v61 = vld [vmem:[#allocation19 + $0x10a0] sm:$0xff] }
0x13a7   : > { %8408 = vmatprep.subr.bf16.mxu1 %v8407_v31  ;;  %v5285_v31 = vld [vmem:[#allocation19 + $0xf08] sm:$0xff] }
0x13a8   : > { %v8443_v60 = vpack.c.bf16 %v5288_v18, %v5285_v31  ;;  %v5332_v31 = vld [vmem:[#allocation19 + $0x1080] sm:$0xff]  ;;  %v5335_v18 = vld [vmem:[#allocation19 + $0x1098] sm:$0xff] }
0x13aa   : > { %8410 = vmatpush1.bf16.msra.mxu1 %v8409_v7  ;;  %v5287_v7 = vld [vmem:[#allocation19 + $0xf18] sm:$0xff] }
0x13ab   : > { %8412 = vmatprep.subr.bf16.mxu1 %v8411_v9  ;;  %v5291_v9 = vld [vmem:[#allocation19 + $0xf38] sm:$0xff]  ;;  %v8445_v11 = vpack.c.bf16 %v5287_v7, %v5284_v6  ;;  %v8477_v6 = vpack.c.bf16 %v5335_v18, %v5332_v31 }
0x13ac   : > { %v8447_v30 = vpack.c.bf16 %v5294_v26, %v5291_v9  ;;  %v5338_v9 = vld [vmem:[#allocation19 + $0x10b0] sm:$0xff]  ;;  %v5341_v26 = vld [vmem:[#allocation19 + $0x10c8] sm:$0xff] }
0x13ae   : > { %8414 = vmatpush1.bf16.msra.mxu1 %v8413_v32  ;;  %v5293_v32 = vld [vmem:[#allocation19 + $0xf48] sm:$0xff] }
0x13af   : > { %8416 = vmatprep.subr.bf16.mxu1 %v8415_v56  ;;  %v5297_v56 = vld [vmem:[#allocation19 + $0xf68] sm:$0xff]  ;;  %v8449_v23 = vpack.c.bf16 %v5293_v32, %v5290_v21  ;;  %v8481_v21 = vpack.c.bf16 %v5341_v26, %v5338_v9 }
0x13b0   : > { %v8451_v5 = vpack.c.bf16 %v5300_v19, %v5297_v56  ;;  %v5344_v56 = vld [vmem:[#allocation19 + $0x10e0] sm:$0xff]  ;;  %v5347_v19 = vld [vmem:[#allocation19 + $0x10f8] sm:$0xff] }
0x13b2   : > { %8418 = vmatpush1.bf16.msra.mxu1 %v8417_v63  ;;  %v5299_v63 = vld [vmem:[#allocation19 + $0xf78] sm:$0xff] }
0x13b3   : > { %8420 = vmatprep.subr.bf16.mxu1 %v8419_v28  ;;  %v5303_v28 = vld [vmem:[#allocation19 + $0xf98] sm:$0xff]  ;;  %v8453_v49 = vpack.c.bf16 %v5299_v63, %v5296_v62  ;;  %v8485_v62 = vpack.c.bf16 %v5347_v19, %v5344_v56 }
0x13b4   : > { %v8455_v58 = vpack.c.bf16 %v5306_v52, %v5303_v28  ;;  %v5350_v28 = vld [vmem:[#allocation19 + $0x1110] sm:$0xff]  ;;  %v5353_v52 = vld [vmem:[#allocation19 + $0x1128] sm:$0xff] }
0x13b6   : > { %8422 = vmatpush1.bf16.msra.mxu1 %v8421_v35  ;;  %v5305_v35 = vld [vmem:[#allocation19 + $0xfa8] sm:$0xff] }
0x13b7   : > { %8424 = vmatprep.subr.bf16.mxu1 %v8423_v37  ;;  %v5309_v37 = vld [vmem:[#allocation19 + $0xfc8] sm:$0xff] }
0x13b8   : > { %v8459_v20 = vpack.c.bf16 %v5312_v39, %v5309_v37  ;;  %v5356_v37 = vld [vmem:[#allocation19 + $0x1140] sm:$0xff]  ;;  %v5359_v39 = vld [vmem:[#allocation19 + $0x1158] sm:$0xff] }
0x13ba   : > { %8426 = vmatpush1.bf16.msra.mxu1 %v8425_v3 }
0x13bb   : > { %8428 = vmatprep.subr.bf16.mxu1 %v8427_v38 }
0x13be   : > { %8430 = vmatpush1.bf16.msra.mxu1 %v8429_v41  ;;  %v5321_v41 = vld [vmem:[#allocation19 + $0x1028] sm:$0xff] }
0x13bf   : > { %8432 = vmatprep.subr.bf16.mxu1 %v8431_v10  ;;  %v5324_v10 = vld [vmem:[#allocation19 + $0x1040] sm:$0xff] }
0x13c0   : > { %v8467_v22 = vpack.c.bf16 %v5324_v10, %v5321_v41  ;;  %v5368_v10 = vld [vmem:[#allocation19 + $0x11a0] sm:$0xff] }
0x13c2   : > { %8434 = vmatpush1.bf16.msra.mxu1 %v8433_v13  ;;  %v5323_v13 = vld [vmem:[#allocation19 + $0x1038] sm:$0xff] }
0x13c3   : > { %8436 = vmatprep.subr.bf16.mxu1 %v8435_v50  ;;  %v5327_v50 = vld [vmem:[#allocation19 + $0x1058] sm:$0xff]  ;;  %v8469_v17 = vpack.c.bf16 %v5323_v13, %v5320_v27  ;;  %v5378_v27 = vld [vmem:[#allocation19 + $0x11f0] sm:$0xff] }
0x13c4   : > { %v8471_v54 = vpack.c.bf16 %v5330_v51, %v5327_v50  ;;  %v5374_v51 = vld [vmem:[#allocation19 + $0x11d0] sm:$0xff] }
0x13c6   : > { %8438 = vmatpush1.bf16.msra.mxu1 %v8437_v24  ;;  %v5329_v24 = vld [vmem:[#allocation19 + $0x1068] sm:$0xff] }
0x13c7   : > { %8440 = vmatprep.subr.bf16.mxu1 %v8439_v45  ;;  %v5333_v45 = vld [vmem:[#allocation19 + $0x1088] sm:$0xff]  ;;  %v8473_v57 = vpack.c.bf16 %v5329_v24, %v5326_v29 }
0x13ca   : > { %8442 = vmatpush1.bf16.msra.mxu1 %v8441_v4  ;;  %v5339_v4 = vld [vmem:[#allocation19 + $0x10b8] sm:$0xff] }
0x13cb   : > { %8444 = vmatprep.subr.bf16.mxu1 %v8443_v60  ;;  %v5342_v60 = vld [vmem:[#allocation19 + $0x10d0] sm:$0xff] }
0x13cc   : > { %v8479_v7 = vpack.c.bf16 %v5342_v60, %v5339_v4  ;;  %v5385_v4 = vrot.slane %v10275_v33, %v9891_v48 }
0x13cd   : > { %5746 = vmatmul.mubr.f32.vlgmr.msra.gmra.mrb[20].mxu1 %v4800_v53  ;;  %v8457_v53 = vpack.c.bf16 %v5305_v35, %v5302_v14  ;;  %v8489_v14 = vpack.c.bf16 %v5353_v52, %v5350_v28 }
0x13ce   : > { %8446 = vmatpush1.bf16.msra.mxu1 %v8445_v11  ;;  %5816 = vmatprep.mubr.f32.mxu1 %v4803_v12  ;;  %v5308_v12 = vld [vmem:[#allocation19 + $0xfc0] sm:$0xff]  ;;  %v5345_v11 = vld [vmem:[#allocation19 + $0x10e8] sm:$0xff] }
0x13cf   : > { %8448 = vmatprep.subr.bf16.mxu1 %v8447_v30  ;;  %v8461_v3 = vpack.c.bf16 %v5311_v25, %v5308_v12  ;;  %v5348_v30 = vld [vmem:[#allocation19 + $0x1100] sm:$0xff]  ;;  %v8493_v25 = vpack.c.bf16 %v5359_v39, %v5356_v37 }
0x13d0   : > { %v8483_v32 = vpack.c.bf16 %v5348_v30, %v5345_v11 }
0x13d2   : > { %8450 = vmatpush1.bf16.msra.mxu1 %v8449_v23  ;;  %v5351_v23 = vld [vmem:[#allocation19 + $0x1118] sm:$0xff] }
0x13d3   : > { %8452 = vmatprep.subr.bf16.mxu1 %v8451_v5  ;;  %v5354_v5 = vld [vmem:[#allocation19 + $0x1130] sm:$0xff] }
0x13d4   : > { %v8487_v63 = vpack.c.bf16 %v5354_v5, %v5351_v23 }
0x13d6   : > { %8454 = vmatpush1.bf16.msra.mxu1 %v8453_v49  ;;  %v5357_v49 = vld [vmem:[#allocation19 + $0x1148] sm:$0xff] }
0x13d7   : > { %8456 = vmatprep.subr.bf16.mxu1 %v8455_v58  ;;  %v5360_v58 = vld [vmem:[#allocation19 + $0x1160] sm:$0xff] }
0x13d8   : > { %v8491_v35 = vpack.c.bf16 %v5360_v58, %v5357_v49 }
0x13da   : > { %8458 = vmatpush1.bf16.msra.mxu1 %v8457_v53  ;;  %v6717_v55 = vpop.f32.mrb[40].mxu0  ;;  %v5363_v53 = vld [vmem:[#allocation19 + $0x1178] sm:$0xff] }
0x13db   : > { %v6718_v38 = vpop.f32.mrb[41].mxu0  ;;  %8460 = vmatprep.subr.bf16.mxu1 %v8459_v20  ;;  %v5366_v20 = vld [vmem:[#allocation19 + $0x1190] sm:$0xff] }
0x13dc   : > { %v6719_v34 = vadd.f32 %v6718_v38, %v6717_v55  ;;  %v8495_v8 = vpack.c.bf16 %v5366_v20, %v5363_v53  ;;  %v5362_v55 = vld [vmem:[#allocation19 + $0x1170] sm:$0xff] }
0x13de   : > { %v10287_v2 = vadd.f32 %v6719_v34, %v10280_v47  ;;  %8462 = vmatpush1.bf16.msra.mxu1 %v8461_v3  ;;  %v8475_v47 = vpack.c.bf16 %v5336_v61, %v5333_v45  ;;  %v5365_v3 = vld [vmem:[#allocation19 + $0x1188] sm:$0xff] }
0x13df   : > { %8464 = vmatprep.subr.bf16.mxu1 %v8463_v1  ;;  %v5369_v1 = vld [vmem:[#allocation19 + $0x11a8] sm:$0xff]  ;;  %v8497_v34 = vpack.c.bf16 %v5365_v3, %v5362_v55 }
0x13e0   : > { %v8499_v41 = vpack.c.bf16 %v5372_v40, %v5369_v1 }
0x13e2   : > { %8466 = vmatpush1.bf16.msra.mxu1 %v8465_v42  ;;  %v5371_v42 = vld [vmem:[#allocation19 + $0x11b8] sm:$0xff] }
0x13e3   : > { %8468 = vmatprep.subr.bf16.mxu1 %v8467_v22  ;;  %v5375_v22 = vld [vmem:[#allocation19 + $0x11d8] sm:$0xff]  ;;  %v8501_v13 = vpack.c.bf16 %v5371_v42, %v5368_v10 }
0x13e4   : > { %v8503_v50 = vpack.c.bf16 %v5378_v27, %v5375_v22 }
0x13e6   : > { %8470 = vmatpush1.bf16.msra.mxu1 %v8469_v17  ;;  %v5377_v17 = vld [vmem:[#allocation19 + $0x11e8] sm:$0xff] }
0x13e7   : > { %8472 = vmatprep.subr.bf16.mxu1 %v8471_v54  ;;  %v8505_v54 = vpack.c.bf16 %v5377_v17, %v5374_v51 }
0x13ea   : > { %8474 = vmatpush1.bf16.msra.mxu1 %v8473_v57 }
0x13eb   : > { %8476 = vmatprep.subr.bf16.mxu1 %v8475_v47 }
0x13ee   : > { %8478 = vmatpush1.bf16.msra.mxu1 %v8477_v6 }
0x13ef   : > { %8480 = vmatprep.subr.bf16.mxu1 %v8479_v7 }
0x13f2   : > { %8482 = vmatpush1.bf16.msra.mxu1 %v8481_v21 }
0x13f3   : > { %8484 = vmatprep.subr.bf16.mxu1 %v8483_v32 }
0x13f6   : > { %8486 = vmatpush1.bf16.msra.mxu1 %v8485_v62 }
0x13f7   : > { %8488 = vmatprep.subr.bf16.mxu1 %v8487_v63 }
0x13fa   : > { %v6752_v12 = vpop.f32.mrb[42].mxu0  ;;  %8490 = vmatpush1.bf16.msra.mxu1 %v8489_v14 }
0x13fb   : > { %v6753_v16 = vpop.f32.mrb[43].mxu0  ;;  %8492 = vmatprep.subr.bf16.mxu1 %v8491_v35 }
0x13fc   : > { %v6754_v38 = vadd.f32 %v6753_v16, %v6752_v12 }
0x13fe   : > { %v6100_v15 = vadd.f32 %v6754_v38, %v10287_v2  ;;  %8494 = vmatpush1.bf16.msra.mxu1 %v8493_v25 }
0x13ff   : > { %8496 = vmatprep.subr.bf16.mxu1 %v8495_v8 }
0x1402   : > { %8498 = vmatpush1.bf16.msra.mxu1 %v8497_v34 }
0x1403   : > { %8500 = vmatprep.subr.bf16.mxu1 %v8499_v41 }
0x1406   : > { %8502 = vmatpush1.bf16.msra.mxu1 %v8501_v13 }
0x1407   : > { %8504 = vmatprep.subr.bf16.mxu1 %v8503_v50 }
0x140a   : > { %8506 = vmatpush1.bf16.msra.mxu1 %v8505_v54 }
0x140d   : > { %5817 = vmatmul.mubr.f32.vlgmr.msra.gmra.mrb[20].mxu1 %v4802_v59 }
0x143a   : > { %v6787_v2 = vpop.f32.mrb[44].mxu0 }
0x143b   : > { %v6788_v29 = vpop.f32.mrb[45].mxu0 }
0x143c   : > { %v6789_v24 = vadd.f32 %v6788_v29, %v6787_v2 }
0x143e   : > { %v6170_v45 = vadd.f32 %v6789_v24, %v6100_v15 }
0x145a   : > { %v6822_v61 = vpop.f32.mrb[46].mxu0 }
0x145b   : > { %v6823_v57 = vpop.f32.mrb[47].mxu0 }
0x145c   : > { %v6824_v47 = vadd.f32 %v6823_v57, %v6822_v61 }
0x145e   : > { %v6240_v31 = vadd.f32 %v6824_v47, %v6170_v45 }
0x1460   : > { %v6245_v18 = vadd.f32 %v6240_v31, %v10096_v43 }
0x1462   : > { %6248 = vst [vmem:[%s575_s5 + $0x10] sm:$0xff] %v6245_v18 }
0x14e0   : > { %v5818_v59 = vpop.f32.mrb[20].mxu1 }
0x14e1   : > { %v8715_v60 = vadd.f32 %v5818_v59, %v5385_v4  ;;  %v5820_v6 = vpop.f32.mrb[21].mxu1 }
0x14e2   : > { %v8716_v7 = vadd.f32 %v5820_v6, %v5389_v44 }
0x14e3   : > { %v6243_v9 = vadd.f32 %v8715_v60, %v10090_v36 }
0x14e4   : > { %v6244_v43 = vadd.f32 %v8716_v7, %v10093_v0 }
0x14e5   : > { %6246 = vst [vmem:[%s575_s5] sm:$0xff] %v6243_v9 }
0x14e6   : > { %6247 = vst [vmem:[%s575_s5 + $0x8] sm:$0xff] %v6244_v43 }
0x14e7   : > { %9306 = shalt.err (!%p9303_p9)
}
0x14e8   : > { %s9307_s16 = scalar_lea.hbm %s10305_s3, 384  ;;  %s9311_s5 = scalar_lea.hbm %s10405_s14, 768 }
0x14e9   : > { %p9308_p7 = scmp.ne.s32.totalorder %s10305_s3, %s9307_s16  ;;  %p9312_p13 = scmp.lt.u32.totalorder %s10305_s3, %s10405_s14 }
0x14ea   : > { %p9313_p1 = scmp.lt.u32.totalorder %s9311_s5, %s9307_s16  ;;  %p9315_p2 = scmp.lt.u32.totalorder %s9307_s16, %s10305_s3 }
0x14eb   : > { %p9309_p10 = pnand %p9308_p7, %p10406_p0 }
0x14ec   : > { %p9314_p3 = por %p9313_p1, %p9312_p13 }
0x14ed   : > { %p9310_p4 = pneg %p9309_p10 }
0x14ee   : > { %p9316_p6 = por %p9315_p2, %p9314_p3 }
0x14f0   : > { %p9317_p11 = pnand %p9316_p6, %p9310_p4 }
0x14f2   : > { %9320 = shalt.err (!%p9317_p11)
}
0x14f3   : > { %8797 = dma.vmem_to_hbm [thread:$0]  (%p10406_p0), %s10307_s29, 384, %s10305_s3, %s6250_s27  }
0x14f4 PF: > { %s6276_s18 = sand.u32 1, %s9371_s21   ;;  %p10407_p12 = scmp.ne.s32.totalorder %s10387_s2, 0 }
0x14f5   : > { %p10408_p8 = scmp.ge.s32.totalorder %s9383_s24, 2  ;;  %s6277_s26 = scalar_lea.sflag [#allocation4], %s6276_s18 }
0x14f7   : > { %p8838_p5 = pnand %p10408_p8, %p10407_p12 }
0x14f9   : > { %9366 = dma.done.wait (!%p8838_p5), %s6277_s26, 384  }
0x14fa   : > { %9368 = vsyncadd (!%p8838_p5), %s6277_s26, 4294966912  ;;  %p31_p9 = scmp.ge.s32.totalorder %s9747_s13, 4   ;;  %s10409_s21 = smov %s9375_s22 }
0x14fb   : > { %s10410_s22 = smov %s9379_s23  ;;  %s10411_s23 = smov %s9759_s20 }
0x14fc   : > { %s10412_s24 = smov %s9747_s13  ;;  %33 = sbr.rel (!%p31_p9) target bundleno = 17 (0x11), region = 157 }
0x1503   :  { %6282 = vsyncpa [#allocation3], 1 }
0x1504   :  { %6284 = vsyncpa [#allocation3 + $0x1], 1 }
0x1505   :  { %6285 = vsyncpa [#allocation6], 1 }
0x1506   :  { %6286 = vsyncpa [#allocation9], 1 }
0x1507   :  { %6287 = vsyncpa [#allocation12], 1 }
0x1508   :  { %6288 = vsyncpa [#allocation15], 1 }
0x1509   :  { %6289 = vsyncpa [#allocation18], 1 }
0x150a   :  { %6290 = vsyncpa [#allocation21], 1 }
0x150b   :  { %6291 = vsyncpa [#allocation4], 1 }
0x150c   :  { %6293 = vsyncpa [#allocation4 + $0x1], 1 }

</bundles_post_ra>
